<compile_context>
chip_gen: v6e
topology: v6e:2x2x1
jax: 0.10.0
libtpu: 0.0.40
codegen_flags: <defaults>
</compile_context>

<pallas_src>
import numpy as np
import jax
import jax.numpy as jnp
from jax import lax
from jax.experimental import pallas as pl
from jax.experimental.pallas import tpu as pltpu

# ---- module hyperparameters (defaults of Multi_Resolution_Mel_Spectrogram) ----
SAMPLE_RATE = 16000
N_FFT_LIST = [1024, 1024, 1024, 1024, 1024]
WIN_LENGTH_LIST = [100, 200, 400, 800, 1024]
HOP_LIST = [160, 160, 160, 160, 160]
N_MELS = 64
COEF = 0.97
R = len(N_FFT_LIST)
N_FFT = N_FFT_LIST[0]
HOP = HOP_LIST[0]
N_FREQ = N_FFT // 2 + 1                 # 513 (onesided STFT)
LANE = 128
N_FREQ_PAD = ((N_FREQ + LANE - 1) // LANE) * LANE   # 640 = 5*128
N_MELS_PAD = ((N_MELS + LANE - 1) // LANE) * LANE   # 128
WIN_ROW_STRIDE = 16                     # bf16-tile-aligned sublane offset per resolution


def _round_up(x, m):
    return ((x + m - 1) // m) * m


def _k_spans():
    # Live (128-aligned) contraction span of each zero-padded window.
    spans = []
    for wl in WIN_LENGTH_LIST:
        left = (N_FFT - wl) // 2
        right = left + wl
        k0 = (left // LANE) * LANE
        k1 = min(_round_up(right, LANE), N_FFT)
        spans.append((k0, k1 - k0))
    return tuple(spans)


K_SPANS = _k_spans()        # ((384,256),(384,256),(256,512),(0,1024),(0,1024))


def _k_groups():
    # Group consecutive resolutions that share a K-span so they can be M-batched
    # into a single MXU matmul (one RHS weight-load stream per group).
    groups = []
    for r, span in enumerate(K_SPANS):
        if groups and groups[-1][1] == span:
            groups[-1][0].append(r)
        else:
            groups.append([[r], span])
    return tuple((tuple(rs), span) for rs, span in groups)


K_GROUPS = _k_groups()      # (((0,1),(384,256)), ((2,),(256,512)), ((3,4),(0,1024)))


# ------------------------- deterministic parameter setup -------------------------

def _hamming_window(win_length):
    # torch.hamming_window(win_length, periodic=True): 0.54 - 0.46*cos(2*pi*n/N)
    n = np.arange(win_length, dtype=np.float64)
    return 0.54 - 0.46 * np.cos(2.0 * np.pi * n / win_length)


def _windows_padded():
    # torch.stft pads the window to n_fft, centered.  Resolution r lives at sublane
    # row 16*r so the in-kernel single-row read is always bf16-tile aligned.
    w = np.zeros((R * WIN_ROW_STRIDE, N_FFT), dtype=np.float64)
    for r, wl in enumerate(WIN_LENGTH_LIST):
        left = (N_FFT - wl) // 2
        w[WIN_ROW_STRIDE * r, left:left + wl] = _hamming_window(wl)
    return w.astype(np.float32)


def _fused_dft_basis():
    # One un-windowed DFT basis shared by all resolutions, freq-padded 513 -> 640 and
    # fused as [cos | -sin] so the STFT is one (M, K) x (K, 1280) matmul.
    n = np.arange(N_FFT, dtype=np.float64)[:, None]
    k = np.arange(N_FREQ, dtype=np.float64)[None, :]
    ang = 2.0 * np.pi * n * k / N_FFT
    basis = np.zeros((N_FFT, 2 * N_FREQ_PAD), dtype=np.float64)
    basis[:, :N_FREQ] = np.cos(ang)
    basis[:, N_FREQ_PAD:N_FREQ_PAD + N_FREQ] = -np.sin(ang)
    return basis.astype(np.float32)


def _mel_filterbank(sr, n_fft, n_mels):
    # librosa.filters.mel defaults: Slaney mel scale (htk=False) + Slaney area norm.
    f_sp = 200.0 / 3.0
    min_log_hz = 1000.0
    min_log_mel = min_log_hz / f_sp
    logstep = np.log(6.4) / 27.0

    def hz_to_mel(f):
        f = np.asarray(f, dtype=np.float64)
        mels = f / f_sp
        return np.where(f >= min_log_hz,
                        min_log_mel + np.log(np.maximum(f, 1e-10) / min_log_hz) / logstep,
                        mels)

    def mel_to_hz(m):
        m = np.asarray(m, dtype=np.float64)
        freqs = f_sp * m
        return np.where(m >= min_log_mel,
                        min_log_hz * np.exp(logstep * (m - min_log_mel)),
                        freqs)

    n_freq = n_fft // 2 + 1
    fftfreqs = np.linspace(0.0, sr / 2.0, n_freq)
    mel_f = mel_to_hz(np.linspace(hz_to_mel(0.0), hz_to_mel(sr / 2.0), n_mels + 2))
    fdiff = np.diff(mel_f)
    ramps = mel_f[:, None] - fftfreqs[None, :]
    weights = np.zeros((n_mels, n_freq), dtype=np.float64)
    for m in range(n_mels):
        lower = -ramps[m] / fdiff[m]
        upper = ramps[m + 2] / fdiff[m + 1]
        weights[m] = np.maximum(0.0, np.minimum(lower, upper))
    enorm = 2.0 / (mel_f[2:n_mels + 2] - mel_f[:n_mels])
    weights *= enorm[:, None]
    return weights.astype(np.float32)            # (n_mels, n_freq)


def _melT_padded():
    # Padded freq rows (513..639) and mel cols (64..127) are EXACTLY zero; the kernel's
    # correctness for the padded lanes relies on that invariant.  Kept in f32.
    fb = _mel_filterbank(SAMPLE_RATE, N_FFT, N_MELS)        # (64, 513)
    m = np.zeros((N_FREQ_PAD, N_MELS_PAD), dtype=np.float32)
    m[:N_FREQ, :N_MELS] = fb.T
    return m                                                # (640, 128)


# ------------------------------- Pallas kernel -----------------------------------

def _mr_mel_kernel(frames_ref, win_ref, basis_ref, melT_ref, out_ref):
    frames = frames_ref[0]                       # (tf, n_fft) bf16
    melT = melT_ref[...]                         # (n_freq_pad, n_mels_pad) f32
    tf = frames.shape[0]

    logmags = []
    for rs, (k0, klen) in K_GROUPS:              # static unroll over K-span groups
        def windowed(r, k0=k0, klen=klen):
            row = WIN_ROW_STRIDE * r
            w = win_ref[row:row + 1, k0:k0 + klen]        # (1, klen) bf16, aligned row
            return frames[:, k0:k0 + klen] * w            # VPU windowing, bf16

        fws = [windowed(r) for r in rs]
        fw = fws[0] if len(fws) == 1 else jnp.concatenate(fws, axis=0)  # (g*tf, klen)

        # STFT of the whole group as ONE bf16 MXU matmul against the fused [cos|-sin]
        # basis slice (f32 accumulation).
        reim = jnp.dot(fw, basis_ref[k0:k0 + klen, :],
                       preferred_element_type=jnp.float32)   # (g*tf, 2*n_freq_pad) f32
        re = reim[:, :N_FREQ_PAD]
        im = reim[:, N_FREQ_PAD:]

        # log(|stft| + 1e-9) ~= 0.5*log(re^2 + im^2 + 1e-18): one EUP op instead of two
        # (deviates only in near-silent bins).
        logmags.append(0.5 * jnp.log(re * re + im * im + 1e-18))

    logmag = jnp.concatenate(logmags, axis=0)                # (R*tf, n_freq_pad) f32

    # Single mel projection for all 5 resolutions: padded freq rows / mel cols of melT
    # are zero -> exact result for the real lanes.
    mel = jnp.dot(logmag, melT, preferred_element_type=jnp.float32)   # (R*tf, n_mels_pad)
    out_ref[0] = mel.reshape(R, tf, N_MELS_PAD).astype(out_ref.dtype)


# --------------------------------- wrapper ---------------------------------------

def _pre_emphasis(x, coef=COEF):
    # F.pad(x.unsqueeze(1), (1,0), 'reflect') then conv1d([-coef, 1.0]):
    # y[t] = x[t] - coef*x[t-1],  y[0] = x[0] - coef*x[1]
    padded = jnp.concatenate([x[:, 1:2], x], axis=1)
    return padded[:, 1:] - coef * padded[:, :-1]


def multi_resolution_mel(waveform, windows, basis, melT):
    B, _ = waveform.shape

    # Pre-emphasis applied twice (f32): once in Multi_Resolution.forward, once per
    # Mel_Spectrogram.
    x = _pre_emphasis(_pre_emphasis(waveform))

    # torch.stft(center=True): reflect pad n_fft//2 both sides, frames every `hop`.
    pad = N_FFT // 2
    xp = jnp.pad(x, ((0, 0), (pad, pad)), mode="reflect")
    n_frames = 1 + (xp.shape[1] - N_FFT) // HOP

    # Frame tiling: up to 512 frames per grid step, 16-aligned (bf16 sublane tile).
    tf = min(512, _round_up(n_frames, 16))
    if B == 1 and _round_up(n_frames, tf) == tf and n_frames > 16:
        # v7x has 2 TensorCores: make sure single-batch short clips still produce
        # >= 2 parallel grid steps.
        tf = _round_up((n_frames + 1) // 2, 16)
    n_frames_pad = _round_up(n_frames, tf)
    needed = (n_frames_pad - 1) * HOP + N_FFT
    xp = jnp.pad(xp, ((0, 0), (0, needed - xp.shape[1])))

    # bf16 frames halve both the XLA gather's HBM writeback (n_fft/hop = 6.4x
    # duplication) and the kernel's per-step frames DMA.
    # TODO(synk): build the (tf, n_fft) tile in-kernel from the padded waveform
    # (memory_space=pl.ANY + make_async_copy of the contiguous ~167 KB span) to remove
    # the frame duplication entirely.
    idx = np.arange(n_frames_pad)[:, None] * HOP + np.arange(N_FFT)[None, :]
    frames = xp.astype(jnp.bfloat16)[:, idx]                  # (B, n_frames_pad, n_fft)

    grid = (B, n_frames_pad // tf)
    out = pl.pallas_call(
        _mr_mel_kernel,
        out_shape=jax.ShapeDtypeStruct((B, R, n_frames_pad, N_MELS_PAD), jnp.float32),
        grid_spec=pltpu.PrefetchScalarGridSpec(
            num_scalar_prefetch=0,
            grid=grid,
            in_specs=[
                pl.BlockSpec((1, tf, N_FFT), lambda b, t: (b, t, 0)),
                pl.BlockSpec((R * WIN_ROW_STRIDE, N_FFT), lambda b, t: (0, 0)),   # grid-invariant
                pl.BlockSpec((N_FFT, 2 * N_FREQ_PAD), lambda b, t: (0, 0)),       # grid-invariant
                pl.BlockSpec((N_FREQ_PAD, N_MELS_PAD), lambda b, t: (0, 0)),      # grid-invariant
            ],
            out_specs=pl.BlockSpec((1, R, tf, N_MELS_PAD), lambda b, t: (b, 0, t, 0)),
        ),
        compiler_params=pltpu.CompilerParams(
            dimension_semantics=("parallel", "parallel"),
            # Sized for the tf=512 working set (~30 MiB incl. double-buffered inputs and
            # the grouped STFT intermediates); fits v7x's 64 MiB/TC and is well above
            # v5e's 16 MiB default scoped limit.
            vmem_limit_bytes=40 << 20,
        ),
    )(frames, windows, basis, melT)

    # Drop frame/mel padding, then InstanceNorm1d (affine=False, eps=1e-5, biased var)
    # over the frame axis — tiny XLA op on the (B, R, F, n_mels) log-mel tensor, so the
    # padded frames never bias the statistics.
    mel = out[:, :, :n_frames, :N_MELS]
    mean = jnp.mean(mel, axis=2, keepdims=True)
    cen = mel - mean
    var = jnp.mean(cen * cen, axis=2, keepdims=True)
    normed = cen * lax.rsqrt(var + 1e-5)

    # TODO(synk): the torchvision resize branch never triggers (all resolutions share
    # n_fft/hop, hence the same frame count); not implemented.
    return jnp.transpose(normed, (0, 1, 3, 2))                # (B, R, n_mels, n_frames)


if __name__ == "__main__":
    windows = jnp.asarray(_windows_padded(), dtype=jnp.bfloat16)   # (80, 1024)
    basis = jnp.asarray(_fused_dft_basis(), dtype=jnp.bfloat16)    # (1024, 1280)
    melT = jnp.asarray(_melT_padded())                             # (640, 128) f32

    # Small deterministic waveform: batch=2, 1600 samples (0.1 s @ 16 kHz) -> 11 frames.
    key = jax.random.PRNGKey(0)
    waveform = 0.1 * jax.random.normal(key, (2, 1600), dtype=jnp.float32)

    fn = jax.jit(multi_resolution_mel)
    out = jax.block_until_ready(fn(waveform, windows, basis, melT))

    assert out.shape == (2, R, N_MELS, 1 + 1600 // HOP), out.shape
    assert bool(jnp.all(jnp.isfinite(out)))
    print("KERNEL_OK")
</pallas_src>

<mosaic_0001>
module attributes {stable_mosaic.version = 11 : i64} {
  func.func @_mr_mel_kernel(%arg0: i32, %arg1: i32, %arg2: memref<1x16x1024xbf16, #tpu.memory_space<vmem>>, %arg3: memref<80x1024xbf16, #tpu.memory_space<vmem>>, %arg4: memref<1024x1280xbf16, #tpu.memory_space<vmem>>, %arg5: memref<640x128xf32, #tpu.memory_space<vmem>>, %arg6: memref<1x5x16x128xf32, #tpu.memory_space<vmem>>) attributes {dimension_semantics = [#tpu.dimension_semantics<parallel>, #tpu.dimension_semantics<parallel>], iteration_bounds = array<i64: 2, 1>, scalar_prefetch = 0 : i64, scratch_operands = 0 : i64, tpu.core_type = #tpu.core_type<tc>, window_params = [{transform_indices = @transform_0, window_bounds = array<i64: 1, 16, 1024>}, {pipeline_mode = #tpu.pipeline_mode<synchronous>, transform_indices = @transform_1, window_bounds = array<i64: 80, 1024>}, {pipeline_mode = #tpu.pipeline_mode<synchronous>, transform_indices = @transform_2, window_bounds = array<i64: 1024, 1280>}, {pipeline_mode = #tpu.pipeline_mode<synchronous>, transform_indices = @transform_3, window_bounds = array<i64: 640, 128>}, {transform_indices = @transform_4, window_bounds = array<i64: 1, 5, 16, 128>}]} {
    %c0 = arith.constant 0 : index
    %c0_0 = arith.constant 0 : index
    %c0_1 = arith.constant 0 : index
    %0 = vector.load %arg2[%c0, %c0_0, %c0_1] : memref<1x16x1024xbf16, #tpu.memory_space<vmem>>, vector<1x16x1024xbf16>
    %1 = vector.shape_cast %0 : vector<1x16x1024xbf16> to vector<16x1024xbf16>
    %c0_2 = arith.constant 0 : index
    %c0_3 = arith.constant 0 : index
    %2 = vector.load %arg5[%c0_2, %c0_3] : memref<640x128xf32, #tpu.memory_space<vmem>>, vector<640x128xf32>
    %c0_4 = arith.constant 0 : index
    %c384 = arith.constant 384 : index
    %3 = vector.load %arg3[%c0_4, %c384] : memref<80x1024xbf16, #tpu.memory_space<vmem>>, vector<1x256xbf16>
    %4 = vector.extract_strided_slice %1 {offsets = [0, 384], sizes = [16, 256], strides = [1, 1]} : vector<16x1024xbf16> to vector<16x256xbf16>
    %5 = vector.broadcast %3 : vector<1x256xbf16> to vector<16x256xbf16>
    %6 = arith.mulf %4, %5 : vector<16x256xbf16>
    %c16 = arith.constant 16 : index
    %c384_5 = arith.constant 384 : index
    %7 = vector.load %arg3[%c16, %c384_5] : memref<80x1024xbf16, #tpu.memory_space<vmem>>, vector<1x256xbf16>
    %8 = vector.extract_strided_slice %1 {offsets = [0, 384], sizes = [16, 256], strides = [1, 1]} : vector<16x1024xbf16> to vector<16x256xbf16>
    %9 = vector.broadcast %7 : vector<1x256xbf16> to vector<16x256xbf16>
    %10 = arith.mulf %8, %9 : vector<16x256xbf16>
    %11 = tpu.concatenate %6, %10 in 0 : vector<16x256xbf16>, vector<16x256xbf16> -> vector<32x256xbf16>
    %c384_6 = arith.constant 384 : index
    %c0_7 = arith.constant 0 : index
    %12 = vector.load %arg4[%c384_6, %c0_7] : memref<1024x1280xbf16, #tpu.memory_space<vmem>>, vector<256x1280xbf16>
    %cst = arith.constant dense<0.000000e+00> : vector<32x1280xf32>
    %13 = tpu.matmul %11, %12, %cst {dimension_numbers = #tpu.dot_dimension_numbers<[1], [0], [0], [1], [0, 0, 1, 1], [], []>} : vector<32x256xbf16>, vector<256x1280xbf16>, vector<32x1280xf32> -> vector<32x1280xf32>
    %14 = vector.extract_strided_slice %13 {offsets = [0, 0], sizes = [32, 640], strides = [1, 1]} : vector<32x1280xf32> to vector<32x640xf32>
    %15 = vector.extract_strided_slice %13 {offsets = [0, 640], sizes = [32, 640], strides = [1, 1]} : vector<32x1280xf32> to vector<32x640xf32>
    %16 = arith.mulf %14, %14 : vector<32x640xf32>
    %17 = arith.mulf %15, %15 : vector<32x640xf32>
    %18 = arith.addf %16, %17 : vector<32x640xf32>
    %cst_8 = arith.constant 1.000000e-18 : f32
    %19 = vector.broadcast %cst_8 : f32 to vector<32x640xf32>
    %20 = arith.addf %18, %19 : vector<32x640xf32>
    %21 = math.log %20 : vector<32x640xf32>
    %cst_9 = arith.constant 5.000000e-01 : f32
    %22 = vector.broadcast %cst_9 : f32 to vector<32x640xf32>
    %23 = arith.mulf %22, %21 : vector<32x640xf32>
    %c32 = arith.constant 32 : index
    %c256 = arith.constant 256 : index
    %24 = vector.load %arg3[%c32, %c256] : memref<80x1024xbf16, #tpu.memory_space<vmem>>, vector<1x512xbf16>
    %25 = vector.extract_strided_slice %1 {offsets = [0, 256], sizes = [16, 512], strides = [1, 1]} : vector<16x1024xbf16> to vector<16x512xbf16>
    %26 = vector.broadcast %24 : vector<1x512xbf16> to vector<16x512xbf16>
    %27 = arith.mulf %25, %26 : vector<16x512xbf16>
    %c256_10 = arith.constant 256 : index
    %c0_11 = arith.constant 0 : index
    %28 = vector.load %arg4[%c256_10, %c0_11] : memref<1024x1280xbf16, #tpu.memory_space<vmem>>, vector<512x1280xbf16>
    %cst_12 = arith.constant dense<0.000000e+00> : vector<16x1280xf32>
    %29 = tpu.matmul %27, %28, %cst_12 {dimension_numbers = #tpu.dot_dimension_numbers<[1], [0], [0], [1], [0, 0, 1, 1], [], []>} : vector<16x512xbf16>, vector<512x1280xbf16>, vector<16x1280xf32> -> vector<16x1280xf32>
    %30 = vector.extract_strided_slice %29 {offsets = [0, 0], sizes = [16, 640], strides = [1, 1]} : vector<16x1280xf32> to vector<16x640xf32>
    %31 = vector.extract_strided_slice %29 {offsets = [0, 640], sizes = [16, 640], strides = [1, 1]} : vector<16x1280xf32> to vector<16x640xf32>
    %32 = arith.mulf %30, %30 : vector<16x640xf32>
    %33 = arith.mulf %31, %31 : vector<16x640xf32>
    %34 = arith.addf %32, %33 : vector<16x640xf32>
    %cst_13 = arith.constant 1.000000e-18 : f32
    %35 = vector.broadcast %cst_13 : f32 to vector<16x640xf32>
    %36 = arith.addf %34, %35 : vector<16x640xf32>
    %37 = math.log %36 : vector<16x640xf32>
    %cst_14 = arith.constant 5.000000e-01 : f32
    %38 = vector.broadcast %cst_14 : f32 to vector<16x640xf32>
    %39 = arith.mulf %38, %37 : vector<16x640xf32>
    %c48 = arith.constant 48 : index
    %c0_15 = arith.constant 0 : index
    %40 = vector.load %arg3[%c48, %c0_15] : memref<80x1024xbf16, #tpu.memory_space<vmem>>, vector<1x1024xbf16>
    %41 = vector.broadcast %40 : vector<1x1024xbf16> to vector<16x1024xbf16>
    %42 = arith.mulf %1, %41 : vector<16x1024xbf16>
    %c64 = arith.constant 64 : index
    %c0_16 = arith.constant 0 : index
    %43 = vector.load %arg3[%c64, %c0_16] : memref<80x1024xbf16, #tpu.memory_space<vmem>>, vector<1x1024xbf16>
    %44 = vector.broadcast %43 : vector<1x1024xbf16> to vector<16x1024xbf16>
    %45 = arith.mulf %1, %44 : vector<16x1024xbf16>
    %46 = tpu.concatenate %42, %45 in 0 : vector<16x1024xbf16>, vector<16x1024xbf16> -> vector<32x1024xbf16>
    %c0_17 = arith.constant 0 : index
    %c0_18 = arith.constant 0 : index
    %47 = vector.load %arg4[%c0_17, %c0_18] : memref<1024x1280xbf16, #tpu.memory_space<vmem>>, vector<1024x1280xbf16>
    %cst_19 = arith.constant dense<0.000000e+00> : vector<32x1280xf32>
    %48 = tpu.matmul %46, %47, %cst_19 {dimension_numbers = #tpu.dot_dimension_numbers<[1], [0], [0], [1], [0, 0, 1, 1], [], []>} : vector<32x1024xbf16>, vector<1024x1280xbf16>, vector<32x1280xf32> -> vector<32x1280xf32>
    %49 = vector.extract_strided_slice %48 {offsets = [0, 0], sizes = [32, 640], strides = [1, 1]} : vector<32x1280xf32> to vector<32x640xf32>
    %50 = vector.extract_strided_slice %48 {offsets = [0, 640], sizes = [32, 640], strides = [1, 1]} : vector<32x1280xf32> to vector<32x640xf32>
    %51 = arith.mulf %49, %49 : vector<32x640xf32>
    %52 = arith.mulf %50, %50 : vector<32x640xf32>
    %53 = arith.addf %51, %52 : vector<32x640xf32>
    %cst_20 = arith.constant 1.000000e-18 : f32
    %54 = vector.broadcast %cst_20 : f32 to vector<32x640xf32>
    %55 = arith.addf %53, %54 : vector<32x640xf32>
    %56 = math.log %55 : vector<32x640xf32>
    %cst_21 = arith.constant 5.000000e-01 : f32
    %57 = vector.broadcast %cst_21 : f32 to vector<32x640xf32>
    %58 = arith.mulf %57, %56 : vector<32x640xf32>
    %59 = tpu.concatenate %23, %39, %58 in 0 : vector<32x640xf32>, vector<16x640xf32>, vector<32x640xf32> -> vector<80x640xf32>
    %cst_22 = arith.constant dense<0.000000e+00> : vector<80x128xf32>
    %60 = tpu.matmul %59, %2, %cst_22 {dimension_numbers = #tpu.dot_dimension_numbers<[1], [0], [0], [1], [0, 0, 1, 1], [], []>} : vector<80x640xf32>, vector<640x128xf32>, vector<80x128xf32> -> vector<80x128xf32>
    %61 = vector.shape_cast %60 : vector<80x128xf32> to vector<5x16x128xf32>
    %c0_23 = arith.constant 0 : index
    %c0_24 = arith.constant 0 : index
    %c0_25 = arith.constant 0 : index
    %c0_26 = arith.constant 0 : index
    %62 = vector.load %arg6[%c0_23, %c0_24, %c0_25, %c0_26] : memref<1x5x16x128xf32, #tpu.memory_space<vmem>>, vector<1x5x16x128xf32>
    %63 = vector.shape_cast %62 : vector<1x5x16x128xf32> to vector<5x16x128xf32>
    %64 = vector.shape_cast %61 : vector<5x16x128xf32> to vector<1x5x16x128xf32>
    tpu.vector_store %arg6[%c0_23, %c0_24, %c0_25, %c0_26], %64 {strides = array<i32>} : memref<1x5x16x128xf32, #tpu.memory_space<vmem>>, vector<1x5x16x128xf32>,
    return
  }
  func.func @transform_0(%arg0: i32, %arg1: i32) -> (i32, i32, i32) {
    %c0_i32 = arith.constant 0 : i32
    %c0_i32_0 = arith.constant 0 : i32
    return %arg0, %arg1, %c0_i32 : i32, i32, i32
  }
  func.func @transform_1(%arg0: i32, %arg1: i32) -> (i32, i32) {
    %c0_i32 = arith.constant 0 : i32
    %c0_i32_0 = arith.constant 0 : i32
    %c0_i32_1 = arith.constant 0 : i32
    return %c0_i32, %c0_i32_0 : i32, i32
  }
  func.func @transform_2(%arg0: i32, %arg1: i32) -> (i32, i32) {
    %c0_i32 = arith.constant 0 : i32
    %c0_i32_0 = arith.constant 0 : i32
    %c0_i32_1 = arith.constant 0 : i32
    return %c0_i32, %c0_i32_0 : i32, i32
  }
  func.func @transform_3(%arg0: i32, %arg1: i32) -> (i32, i32) {
    %c0_i32 = arith.constant 0 : i32
    %c0_i32_0 = arith.constant 0 : i32
    %c0_i32_1 = arith.constant 0 : i32
    return %c0_i32, %c0_i32_0 : i32, i32
  }
  func.func @transform_4(%arg0: i32, %arg1: i32) -> (i32, i32, i32, i32) {
    %c0_i32 = arith.constant 0 : i32
    %c0_i32_0 = arith.constant 0 : i32
    %c0_i32_1 = arith.constant 0 : i32
    return %arg0, %c0_i32, %arg1, %c0_i32_0 : i32, i32, i32, i32
  }
}

</mosaic_0001>

<bundles_post_ra>
// kernel: multi_resolution_mel.1
= control target key start
LH: loop header
LB: loop body
LE: loop exit
PB: predicated region body
PF: predicated region fallthrough
CT: control target
= control target key end

     0   :  { %s13339_s15 = smov 0   ;;  %s13341_s16 = smov 0   ;;  %s17905_s0 = inlined_call_operand.vmem [shape: bf16[2,16,1024], index: 0, kind: input, shape index: {}]   ;;  %s17906_s1 = inlined_call_operand.vmem [shape: bf16[80,1024], index: 1, kind: input, shape index: {}]   ;;  %s17907_s2 = inlined_call_operand.vmem [shape: bf16[1024,1280], index: 2, kind: input, shape index: {}]   ;;  %s17908_s3 = inlined_call_operand.vmem [shape: f32[640,128], index: 3, kind: input, shape index: {}]   ;;  %s17909_s4 = inlined_call_operand.vmem [shape: f32[2,5,16,128], index: 4, kind: output, shape index: {}]  }
   0x1   :  { %s13343_s17 = smov 0  }
   0x2 LB: > { %s26_s18 = sadd.s32 1, %s13308_s16  ;;  %p10071_p0 = scmp.ge.s32.totalorder %s13312_s17, 1  ;;  %s13312_s17 = sphi %s13343_s17, %s14_s17   ;;  %s13308_s16 = sphi %s13341_s16, %s18011_s16   ;;  %s13304_s15 = sphi %s13339_s15, %s18010_s15  }
   0x3   : > { %p28_p1 = scmp.ge.s32.totalorder %s26_s18, 2  ;;  %p184_p2 = scmp.lt.s32.totalorder %s13312_s17, 3 }
   0x5   : > { %s18013_s18 = smov (%p28_p1, %s26_s18), 0  ;;  %p185_p3 = pnand %p10071_p0, %p184_p2 }
   0x7   : > { %188 = sbr.rel (%p185_p3) target bundleno = 1601 (0x641), region = 36 }
   0xc   : > { %v11480_v0 = vld [vmem:[%s17907_s2 + $0x9b4] ss:$40 sps:$4 sm:$0xff]   ;;  %v11484_v2 = vld [vmem:[%s17907_s2 + $0x9b0] ss:$40 sps:$4 sm:$0xff]   ;;  %v11486_v4 = vld [vmem:[%s17907_s2 + $0x964] ss:$40 sps:$4 sm:$0xff]   ;;  %v337_v42 = vlaneseq }
   0xd   : > { %v11482_v1 = vld [vmem:[%s17907_s2 + $0x9bc] ss:$40 sps:$4 sm:$0xff]   ;;  %1377 = vmatprep.subr.bf16.mxu0 %v11480_v0  ;;  %v11485_v3 = vld [vmem:[%s17907_s2 + $0x9b8] ss:$40 sps:$4 sm:$0xff]   ;;  %v11488_v5 = vld [vmem:[%s17907_s2 + $0x96c] ss:$40 sps:$4 sm:$0xff]  }
   0xe   : > { %1430 = vmatprep.subr.bf16.mxu1 %v11482_v1  ;;  %1378 = vmatpush1.bf16.msra.mxu0 %v11484_v2  ;;  %v11490_v6 = vld [vmem:[%s17907_s2 + $0x960] ss:$40 sps:$4 sm:$0xff]   ;;  %v11492_v8 = vld [vmem:[%s17907_s2 + $0x914] ss:$40 sps:$4 sm:$0xff]   ;;  %v11496_v10 = vld [vmem:[%s17907_s2 + $0x910] ss:$40 sps:$4 sm:$0xff]  }
   0xf   : > { %1431 = vmatpush1.bf16.msra.mxu1 %v11485_v3  ;;  %1379 = vmatprep.subr.bf16.mxu0 %v11486_v4  ;;  %v11491_v7 = vld [vmem:[%s17907_s2 + $0x968] ss:$40 sps:$4 sm:$0xff]   ;;  %v11494_v9 = vld [vmem:[%s17907_s2 + $0x91c] ss:$40 sps:$4 sm:$0xff]   ;;  %v11497_v11 = vld [vmem:[%s17907_s2 + $0x918] ss:$40 sps:$4 sm:$0xff]  }
  0x10   : > { %1432 = vmatprep.subr.bf16.mxu1 %v11488_v5  ;;  %v11498_v12 = vld [vmem:[%s17907_s2 + $0x8c4] ss:$40 sps:$4 sm:$0xff]   ;;  %v11502_v14 = vld [vmem:[%s17907_s2 + $0x8c0] ss:$40 sps:$4 sm:$0xff]   ;;  %v11504_v16 = vld [vmem:[%s17907_s2 + $0x874] ss:$40 sps:$4 sm:$0xff]  }
  0x11   : > { %v11500_v13 = vld [vmem:[%s17907_s2 + $0x8cc] ss:$40 sps:$4 sm:$0xff]   ;;  %v11503_v15 = vld [vmem:[%s17907_s2 + $0x8c8] ss:$40 sps:$4 sm:$0xff]   ;;  %v11506_v17 = vld [vmem:[%s17907_s2 + $0x87c] ss:$40 sps:$4 sm:$0xff]  }
  0x12   : > { %1380 = vmatpush1.bf16.msra.mxu0 %v11490_v6  ;;  %v11508_v18 = vld [vmem:[%s17907_s2 + $0x870] ss:$40 sps:$4 sm:$0xff]   ;;  %v11510_v20 = vld [vmem:[%s17907_s2 + $0x824] ss:$40 sps:$4 sm:$0xff]   ;;  %v11514_v22 = vld [vmem:[%s17907_s2 + $0x820] ss:$40 sps:$4 sm:$0xff]  }
  0x13   : > { %1433 = vmatpush1.bf16.msra.mxu1 %v11491_v7  ;;  %1381 = vmatprep.subr.bf16.mxu0 %v11492_v8  ;;  %v11509_v19 = vld [vmem:[%s17907_s2 + $0x878] ss:$40 sps:$4 sm:$0xff]   ;;  %v11512_v21 = vld [vmem:[%s17907_s2 + $0x82c] ss:$40 sps:$4 sm:$0xff]   ;;  %v11515_v23 = vld [vmem:[%s17907_s2 + $0x828] ss:$40 sps:$4 sm:$0xff]  }
  0x14   : > { %1434 = vmatprep.subr.bf16.mxu1 %v11494_v9  ;;  %v11516_v24 = vld [vmem:[%s17907_s2 + $0x7d4] ss:$40 sps:$4 sm:$0xff]   ;;  %v11520_v26 = vld [vmem:[%s17907_s2 + $0x7d0] ss:$40 sps:$4 sm:$0xff]   ;;  %v11522_v28 = vld [vmem:[%s17907_s2 + $0x784] ss:$40 sps:$4 sm:$0xff]  }
  0x15   : > { %v11518_v25 = vld [vmem:[%s17907_s2 + $0x7dc] ss:$40 sps:$4 sm:$0xff]   ;;  %v11521_v27 = vld [vmem:[%s17907_s2 + $0x7d8] ss:$40 sps:$4 sm:$0xff]   ;;  %v11524_v29 = vld [vmem:[%s17907_s2 + $0x78c] ss:$40 sps:$4 sm:$0xff]  }
  0x16   : > { %1382 = vmatpush1.bf16.msra.mxu0 %v11496_v10  ;;  %v11526_v30 = vld [vmem:[%s17907_s2 + $0x780] ss:$40 sps:$4 sm:$0xff]   ;;  %v11528_v32 = vld [vmem:[%s17907_s2 + $0xc34] ss:$40 sps:$4 sm:$0xff]   ;;  %p220_p4 = scmp.lt.s32.totalorder %s13304_s15, 1  ;;  %v338_v47 = vshrl.u32 %v337_v42, 7 }
  0x17   : > { %1435 = vmatpush1.bf16.msra.mxu1 %v11497_v11  ;;  %1383 = vmatprep.subr.bf16.mxu0 %v11498_v12  ;;  %v11527_v31 = vld [vmem:[%s17907_s2 + $0x788] ss:$40 sps:$4 sm:$0xff]   ;;  %v11530_v33 = vld [vmem:[%s17907_s2 + $0xc3c] ss:$40 sps:$4 sm:$0xff]   ;;  %v11533_v35 = vld [vmem:[%s17907_s2 + $0xc38] ss:$40 sps:$4 sm:$0xff]  }
  0x18   : > { %1436 = vmatprep.subr.bf16.mxu1 %v11500_v13  ;;  %v11532_v34 = vld [vmem:[%s17907_s2 + $0xc30] ss:$40 sps:$4 sm:$0xff]   ;;  %v11534_v36 = vld [vmem:[%s17907_s2 + $0xbe4] ss:$40 sps:$4 sm:$0xff]   ;;  %s18015_s15 = smov (!%p220_p4, %s13304_s15), 1  ;;  %v13530_v59 = vsub.s32 0, %v338_v47 }
  0x19   : > { %v11536_v37 = vld [vmem:[%s17907_s2 + $0xbec] ss:$40 sps:$4 sm:$0xff]   ;;  %v11538_v38 = vld [vmem:[%s17907_s2 + $0xbe0] ss:$40 sps:$4 sm:$0xff]   ;;  %s11257_s9 = sshll.u32 %s18015_s15, 6  ;;  %vm356_vm0 = vcmask 1043456  }
  0x1a   : > { %1384 = vmatpush1.bf16.msra.mxu0 %v11502_v14  ;;  %v11539_v39 = vld [vmem:[%s17907_s2 + $0xbe8] ss:$40 sps:$4 sm:$0xff]   ;;  %v11540_v40 = vld [vmem:[%s17907_s2 + $0xb94] ss:$40 sps:$4 sm:$0xff]   ;;  %v11545_v44 = vld [vmem:[%s17907_s2 + $0xb98] ss:$40 sps:$4 sm:$0xff]   ;;  %s13499_s22 = scalar_lea.vmem %s17905_s0, %s11257_s9 }
  0x1b   : > { %1437 = vmatpush1.bf16.msra.mxu1 %v11503_v15  ;;  %1385 = vmatprep.subr.bf16.mxu0 %v11504_v16  ;;  %v11542_v41 = vld [vmem:[%s17907_s2 + $0xb9c] ss:$40 sps:$4 sm:$0xff]   ;;  %v11544_v43 = vld [vmem:[%s17907_s2 + $0xb90] ss:$40 sps:$4 sm:$0xff]   ;;  %v11548_v46 = vld [vmem:[%s17907_s2 + $0xb4c] ss:$40 sps:$4 sm:$0xff]  }
  0x1c   : > { %1438 = vmatprep.subr.bf16.mxu1 %v11506_v17  ;;  %v11546_v45 = vld [vmem:[%s17907_s2 + $0xb44] ss:$40 sps:$4 sm:$0xff]   ;;  %v11550_v48 = vld [vmem:[%s17907_s2 + $0xb40] ss:$40 sps:$4 sm:$0xff]   ;;  %v242_v50 = vld [vmem:[%s13499_s22 + $0x10] sm:$0xff]  ;;  %s11455_s9 = smul.u32 80, %s18015_s15 }
  0x1d   : > { %v13511_v49 = vld [vmem:[%s13499_s22 + $0x8] sm:$0xff]  ;;  %v246_v52 = vld [vmem:[%s13499_s22 + $0x30] sm:$0xff]  ;;  %v11554_v56 = vld [vmem:[%s17907_s2 + $0xafc] ss:$40 sps:$4 sm:$0xff]   ;;  %v353_v61 = vrot.slane %v242_v50, 4 }
  0x1e   : > { %1386 = vmatpush1.bf16.msra.mxu0 %v11508_v18  ;;  %v13515_v51 = vld [vmem:[%s13499_s22 + $0x28] sm:$0xff]  ;;  %v11552_v55 = vld [vmem:[%s17907_s2 + $0xaf4] ss:$40 sps:$4 sm:$0xff]   ;;  %v352_v60 = vrot.slane %v13511_v49, 4  ;;  %v355_v63 = vrot.slane %v246_v52, 4  ;;  %s17880_s12 = scalar_lea.vmem %s17909_s4, %s11455_s9 }
  0x1f   : > { %1439 = vmatpush1.bf16.msra.mxu1 %v11509_v19  ;;  %1387 = vmatprep.subr.bf16.mxu0 %v11510_v20  ;;  %v11551_v53 = vld [vmem:[%s17907_s2 + $0xb48] ss:$40 sps:$4 sm:$0xff]   ;;  %v354_v62 = vrot.slane %v13515_v51, 4  ;;  %v11557_v3 = vld [vmem:[%s17907_s2 + $0xaf8] ss:$40 sps:$4 sm:$0xff]  }
  0x20   : > { %1440 = vmatprep.subr.bf16.mxu1 %v11512_v21  ;;  %v328_v54 = vld [vmem:[%s17906_s1 + $0xc] sm:$0x11]  ;;  %v13548_v8 = vsel %vm356_vm0, %v352_v60, %v353_v61  ;;  %v11562_v11 = vld [vmem:[%s17907_s2 + $0xaa0] ss:$40 sps:$4 sm:$0xff]   ;;  %v11564_v13 = vld [vmem:[%s17907_s2 + $0xa54] ss:$40 sps:$4 sm:$0xff]  }
  0x21   : > { %v10075_v57 = vcombine.low %v328_v54, %v328_v54  ;;  %v10076_v58 = vcombine.high %v328_v54, %v328_v54  ;;  %v11556_v2 = vld [vmem:[%s17907_s2 + $0xaf0] ss:$40 sps:$4 sm:$0xff]   ;;  %v11558_v4 = vld [vmem:[%s17907_s2 + $0xaa4] ss:$40 sps:$4 sm:$0xff]   ;;  %v13550_v9 = vsel %vm356_vm0, %v354_v62, %v355_v63  ;;  %v11614_v62 = vld [vmem:[%s17907_s2 + $0x7e0] ss:$40 sps:$4 sm:$0xff]  }
  0x22   : > { %1388 = vmatpush1.bf16.msra.mxu0 %v11514_v22  ;;  %v11560_v5 = vld [vmem:[%s17907_s2 + $0xaac] ss:$40 sps:$4 sm:$0xff]   ;;  %v11563_v12 = vld [vmem:[%s17907_s2 + $0xaa8] ss:$40 sps:$4 sm:$0xff]   ;;  %v11566_v14 = vld [vmem:[%s17907_s2 + $0xa5c] ss:$40 sps:$4 sm:$0xff]  }
  0x23   : > { %1441 = vmatpush1.bf16.msra.mxu1 %v11515_v23  ;;  %1389 = vmatprep.subr.bf16.mxu0 %v11516_v24  ;;  %v335_v0 = vpack.i.b16 %v10075_v57, %v10075_v57  ;;  %v342_v1 = vpack.i.b16 %v10076_v58, %v10076_v58  ;;  %v11568_v18 = vld [vmem:[%s17907_s2 + $0xa50] ss:$40 sps:$4 sm:$0xff]   ;;  %v11570_v20 = vld [vmem:[%s17907_s2 + $0xa04] ss:$40 sps:$4 sm:$0xff]   ;;  %v11574_v22 = vld [vmem:[%s17907_s2 + $0xa00] ss:$40 sps:$4 sm:$0xff]  }
  0x24   : > { %1442 = vmatprep.subr.bf16.mxu1 %v11518_v25  ;;  %v11569_v19 = vld [vmem:[%s17907_s2 + $0xa58] ss:$40 sps:$4 sm:$0xff]   ;;  %v11572_v21 = vld [vmem:[%s17907_s2 + $0xa0c] ss:$40 sps:$4 sm:$0xff]   ;;  %v11575_v23 = vld [vmem:[%s17907_s2 + $0xa08] ss:$40 sps:$4 sm:$0xff]  }
  0x25   : > { %v340_v6 = vrot.slane %v335_v0, %v13530_v59  ;;  %v347_v7 = vrot.slane %v342_v1, %v13530_v59  ;;  %v11580_v24 = vld [vmem:[%s17907_s2 + $0x9c4] ss:$40 sps:$4 sm:$0xff]   ;;  %v11608_v54 = vld [vmem:[%s17907_s2 + $0x830] ss:$40 sps:$4 sm:$0xff]   ;;  %v11622_v0 = vld [vmem:[%s17907_s2 + $0x794] ss:$40 sps:$4 sm:$0xff]  }
  0x26   : > { %1390 = vmatpush1.bf16.msra.mxu0 %v11520_v26  ;;  %v11583_v25 = vld [vmem:[%s17907_s2 + $0x9cc] ss:$40 sps:$4 sm:$0xff]   ;;  %v11613_v50 = vld [vmem:[%s17907_s2 + $0x83c] ss:$40 sps:$4 sm:$0xff]   ;;  %v11617_v63 = vld [vmem:[%s17907_s2 + $0x7e8] ss:$40 sps:$4 sm:$0xff]  }
  0x27   : > { %1443 = vmatpush1.bf16.msra.mxu1 %v11521_v27  ;;  %1391 = vmatprep.subr.bf16.mxu0 %v11522_v28  ;;  %v10077_v10 = vcombine.low %v340_v6, %v347_v7  ;;  %v11578_v27 = vld [vmem:[%s17907_s2 + $0x9c0] ss:$40 sps:$4 sm:$0xff]   ;;  %v11607_v42 = vld [vmem:[%s17907_s2 + $0x88c] ss:$40 sps:$4 sm:$0xff]  }
  0x28   : > { %1444 = vmatprep.subr.bf16.mxu1 %v11524_v29  ;;  %v11581_v28 = vld [vmem:[%s17907_s2 + $0x9c8] ss:$40 sps:$4 sm:$0xff]   ;;  %v11586_v29 = vld [vmem:[%s17907_s2 + $0x974] ss:$40 sps:$4 sm:$0xff]   ;;  %v11623_v7 = vld [vmem:[%s17907_s2 + $0x798] ss:$40 sps:$4 sm:$0xff]  }
  0x29   : > { %v367_v15 = vmul.bf16 %v10077_v10, %v13548_v8  ;;  %v368_v16 = vmul.bf16 %v10077_v10, %v13550_v9  ;;  %v11619_v60 = vld [vmem:[%s17907_s2 + $0x7ec] ss:$40 sps:$4 sm:$0xff]   ;;  %v11626_v10 = vld [vmem:[%s17907_s2 + $0xc40] ss:$40 sps:$4 sm:$0xff]  }
  0x2a   : > { %1392 = vmatpush1.bf16.msra.mxu0 %v11526_v30  ;;  %v11589_v30 = vld [vmem:[%s17907_s2 + $0x97c] ss:$40 sps:$4 sm:$0xff]  }
  0x2b   : > { %1445 = vmatpush1.bf16.msra.mxu1 %v11527_v31  ;;  %1393 = vmatprep.subr.bf16.mxu0 %v11528_v32  ;;  %v13566_v17 = vcombine.high %v367_v15, %v368_v16  ;;  %v13594_v26 = vcombine.low %v367_v15, %v368_v16  ;;  %v11584_v31 = vld [vmem:[%s17907_s2 + $0x970] ss:$40 sps:$4 sm:$0xff]   ;;  %v11640_v16 = vld [vmem:[%s17907_s2 + $0xba4] ss:$40 sps:$4 sm:$0xff]  }
  0x2c   : > { %1446 = vmatprep.subr.bf16.mxu1 %v11530_v33  ;;  %v11587_v32 = vld [vmem:[%s17907_s2 + $0x978] ss:$40 sps:$4 sm:$0xff]   ;;  %v11592_v33 = vld [vmem:[%s17907_s2 + $0x924] ss:$40 sps:$4 sm:$0xff]  }
  0x2d   : > { %1409 = vmatprep.mubr.bf16.mxu0 %v13566_v17  ;;  %1462 = vmatprep.mubr.bf16.mxu1 %v13566_v17  ;;  %v11635_v15 = vld [vmem:[%s17907_s2 + $0xbf8] ss:$40 sps:$4 sm:$0xff]  }
  0x2e   : > { %1394 = vmatpush2.bf16.msra.mxu0 %v11532_v34  ;;  %v11595_v34 = vld [vmem:[%s17907_s2 + $0x92c] ss:$40 sps:$4 sm:$0xff]  }
  0x2f   : > { %1447 = vmatpush2.bf16.msra.mxu1 %v11533_v35  ;;  %1395 = vmatprep.subr.bf16.mxu0 %v11534_v36  ;;  %v11590_v35 = vld [vmem:[%s17907_s2 + $0x920] ss:$40 sps:$4 sm:$0xff]  }
  0x30   : > { %1448 = vmatprep.subr.bf16.mxu1 %v11536_v37  ;;  %v11593_v36 = vld [vmem:[%s17907_s2 + $0x928] ss:$40 sps:$4 sm:$0xff]   ;;  %v11598_v37 = vld [vmem:[%s17907_s2 + $0x8d4] ss:$40 sps:$4 sm:$0xff]  }
  0x32   : > { %1396 = vmatpush2.bf16.msra.mxu0 %v11538_v38  ;;  %v11601_v38 = vld [vmem:[%s17907_s2 + $0x8dc] ss:$40 sps:$4 sm:$0xff]  }
  0x33   : > { %1449 = vmatpush2.bf16.msra.mxu1 %v11539_v39  ;;  %1397 = vmatprep.subr.bf16.mxu0 %v11540_v40  ;;  %v11596_v39 = vld [vmem:[%s17907_s2 + $0x8d0] ss:$40 sps:$4 sm:$0xff]  }
  0x34   : > { %1450 = vmatprep.subr.bf16.mxu1 %v11542_v41  ;;  %v11599_v40 = vld [vmem:[%s17907_s2 + $0x8d8] ss:$40 sps:$4 sm:$0xff]   ;;  %v11604_v41 = vld [vmem:[%s17907_s2 + $0x884] ss:$40 sps:$4 sm:$0xff]  }
  0x36   : > { %1398 = vmatpush2.bf16.msra.mxu0 %v11544_v43  ;;  %v11602_v43 = vld [vmem:[%s17907_s2 + $0x880] ss:$40 sps:$4 sm:$0xff]  }
  0x37   : > { %1451 = vmatpush2.bf16.msra.mxu1 %v11545_v44  ;;  %1399 = vmatprep.subr.bf16.mxu0 %v11546_v45  ;;  %v369_v44 = vld [vmem:[%s17906_s1 + $0x4c] sm:$0x11] }
  0x38   : > { %1452 = vmatprep.subr.bf16.mxu1 %v11548_v46  ;;  %v11605_v45 = vld [vmem:[%s17907_s2 + $0x888] ss:$40 sps:$4 sm:$0xff]   ;;  %v11610_v46 = vld [vmem:[%s17907_s2 + $0x834] ss:$40 sps:$4 sm:$0xff]   ;;  %v10078_v47 = vcombine.low %v369_v44, %v369_v44 }
  0x3a   : > { %1400 = vmatpush2.bf16.msra.mxu0 %v11550_v48  ;;  %v10079_v48 = vcombine.high %v369_v44, %v369_v44  ;;  %v376_v52 = vpack.i.b16 %v10078_v47, %v10078_v47  ;;  %v11676_v44 = vld [vmem:[%s17907_s2 + $0x9d0] ss:$40 sps:$4 sm:$0xff]   ;;  %v11687_v47 = vld [vmem:[%s17907_s2 + $0x6e4] ss:$40 sps:$4 sm:$0xff]  }
  0x3b   : > { %1453 = vmatpush2.bf16.msra.mxu1 %v11551_v53  ;;  %1401 = vmatprep.subr.bf16.mxu0 %v11552_v55  ;;  %v11611_v55 = vld [vmem:[%s17907_s2 + $0x838] ss:$40 sps:$4 sm:$0xff]  }
  0x3c   : > { %1454 = vmatprep.subr.bf16.mxu1 %v11554_v56  ;;  %v383_v53 = vpack.i.b16 %v10079_v48, %v10079_v48  ;;  %v11616_v56 = vld [vmem:[%s17907_s2 + $0x7e4] ss:$40 sps:$4 sm:$0xff]   ;;  %v381_v57 = vrot.slane %v376_v52, %v13530_v59  ;;  %v11685_v52 = vld [vmem:[%s17907_s2 + $0x6e0] ss:$40 sps:$4 sm:$0xff]  }
  0x3d   : > { %v1782_v48 = vld [vmem:[%s17906_s1 + $0x88] sm:$0x11] }
  0x3e   : > { %1402 = vmatpush2.bf16.msra.mxu0 %v11556_v2  ;;  %v388_v58 = vrot.slane %v383_v53, %v13530_v59  ;;  %v10245_v53 = vcombine.low %v1782_v48, %v1782_v48 }
  0x3f   : > { %1455 = vmatpush2.bf16.msra.mxu1 %v11557_v3  ;;  %1403 = vmatprep.subr.bf16.mxu0 %v11558_v4  ;;  %v11625_v3 = vld [vmem:[%s17907_s2 + $0x79c] ss:$40 sps:$4 sm:$0xff]  }
  0x40   : > { %1456 = vmatprep.subr.bf16.mxu1 %v11560_v5  ;;  %v10080_v61 = vcombine.low %v381_v57, %v388_v58  ;;  %v11620_v5 = vld [vmem:[%s17907_s2 + $0x790] ss:$40 sps:$4 sm:$0xff]   ;;  %v1795_v57 = vpack.i.b16 %v10245_v53, %v10245_v53  ;;  %v11765_v53 = vld [vmem:[%s17907_s2 + $0x7d4] ss:$40 sps:$4 sm:$0xff]  }
  0x42   : > { %1404 = vmatpush2.bf16.msra.mxu0 %v11562_v11  ;;  %v395_v1 = vmul.bf16 %v10080_v61, %v13548_v8  ;;  %v396_v2 = vmul.bf16 %v10080_v61, %v13550_v9  ;;  %v11628_v8 = vld [vmem:[%s17907_s2 + $0xc44] ss:$40 sps:$4 sm:$0xff]   ;;  %v11629_v11 = vld [vmem:[%s17907_s2 + $0xc48] ss:$40 sps:$4 sm:$0xff]  }
  0x43   : > { %1457 = vmatpush2.bf16.msra.mxu1 %v11563_v12  ;;  %1405 = vmatprep.subr.bf16.mxu0 %v11564_v13  ;;  %v11631_v9 = vld [vmem:[%s17907_s2 + $0xc4c] ss:$40 sps:$4 sm:$0xff]   ;;  %v11637_v13 = vld [vmem:[%s17907_s2 + $0xbfc] ss:$40 sps:$4 sm:$0xff]   ;;  %v11691_v61 = vld [vmem:[%s17907_s2 + $0x690] ss:$40 sps:$4 sm:$0xff]  }
  0x44   : > { %1458 = vmatprep.subr.bf16.mxu1 %v11566_v14  ;;  %v13689_v4 = vcombine.high %v395_v1, %v396_v2  ;;  %v13694_v6 = vcombine.low %v395_v1, %v396_v2  ;;  %v11634_v12 = vld [vmem:[%s17907_s2 + $0xbf4] ss:$40 sps:$4 sm:$0xff]   ;;  %v11632_v14 = vld [vmem:[%s17907_s2 + $0xbf0] ss:$40 sps:$4 sm:$0xff]   ;;  %v11699_v1 = vld [vmem:[%s17907_s2 + $0x644] ss:$40 sps:$4 sm:$0xff]  }
  0x46   : > { %1406 = vmatpush2.bf16.msra.mxu0 %v11568_v18  ;;  %v11643_v18 = vld [vmem:[%s17907_s2 + $0xbac] ss:$40 sps:$4 sm:$0xff]  }
  0x47   : > { %1459 = vmatpush2.bf16.msra.mxu1 %v11569_v19  ;;  %1407 = vmatprep.subr.bf16.mxu0 %v11570_v20  ;;  %v11638_v19 = vld [vmem:[%s17907_s2 + $0xba0] ss:$40 sps:$4 sm:$0xff]  }
  0x48   : > { %1460 = vmatprep.subr.bf16.mxu1 %v11572_v21  ;;  %v11641_v20 = vld [vmem:[%s17907_s2 + $0xba8] ss:$40 sps:$4 sm:$0xff]   ;;  %v11646_v21 = vld [vmem:[%s17907_s2 + $0xb54] ss:$40 sps:$4 sm:$0xff]  }
  0x4a   : > { %1408 = vmatpush2.bf16.msra.mxu0 %v11574_v22  ;;  %v11649_v22 = vld [vmem:[%s17907_s2 + $0xb5c] ss:$40 sps:$4 sm:$0xff]  }
  0x4b   : > { %1461 = vmatpush2.bf16.msra.mxu1 %v11575_v23  ;;  %1483 = vmatprep.subr.bf16.mxu0 %v11580_v24  ;;  %v11644_v23 = vld [vmem:[%s17907_s2 + $0xb50] ss:$40 sps:$4 sm:$0xff]  }
  0x4c   : > { %1536 = vmatprep.subr.bf16.mxu1 %v11583_v25  ;;  %v11647_v24 = vld [vmem:[%s17907_s2 + $0xb58] ss:$40 sps:$4 sm:$0xff]   ;;  %v11652_v25 = vld [vmem:[%s17907_s2 + $0xb04] ss:$40 sps:$4 sm:$0xff]  }
  0x4d   : > { %1410 = vmatmul.mubr.bf16.vlgmr.msra.gmra.mxu0 %v13594_v26 }
  0x4e   : > { %1463 = vmatmul.mubr.bf16.vlgmr.msra.gmra.mxu1 %v13594_v26  ;;  %1484 = vmatpush1.bf16.msra.mxu0 %v11578_v27  ;;  %v11655_v27 = vld [vmem:[%s17907_s2 + $0xb0c] ss:$40 sps:$4 sm:$0xff]  }
  0x4f   : > { %1537 = vmatpush1.bf16.msra.mxu1 %v11581_v28  ;;  %1485 = vmatprep.subr.bf16.mxu0 %v11586_v29  ;;  %v11650_v28 = vld [vmem:[%s17907_s2 + $0xb00] ss:$40 sps:$4 sm:$0xff]  }
  0x50   : > { %1538 = vmatprep.subr.bf16.mxu1 %v11589_v30  ;;  %1419 = vmatprep.mubr.bf16.mxu0 %v13689_v4  ;;  %v11653_v29 = vld [vmem:[%s17907_s2 + $0xb08] ss:$40 sps:$4 sm:$0xff]   ;;  %v11660_v30 = vld [vmem:[%s17907_s2 + $0xab4] ss:$40 sps:$4 sm:$0xff]  }
  0x51   : > { %1472 = vmatprep.mubr.bf16.mxu1 %v13689_v4 }
  0x52   : > { %1486 = vmatpush1.bf16.msra.mxu0 %v11584_v31  ;;  %v11663_v31 = vld [vmem:[%s17907_s2 + $0xabc] ss:$40 sps:$4 sm:$0xff]  }
  0x53   : > { %1539 = vmatpush1.bf16.msra.mxu1 %v11587_v32  ;;  %1487 = vmatprep.subr.bf16.mxu0 %v11592_v33  ;;  %v11658_v32 = vld [vmem:[%s17907_s2 + $0xab0] ss:$40 sps:$4 sm:$0xff]  }
  0x54   : > { %1540 = vmatprep.subr.bf16.mxu1 %v11595_v34  ;;  %v11661_v33 = vld [vmem:[%s17907_s2 + $0xab8] ss:$40 sps:$4 sm:$0xff]   ;;  %v11666_v34 = vld [vmem:[%s17907_s2 + $0xa64] ss:$40 sps:$4 sm:$0xff]  }
  0x55   : > { %1420 = vmatmul.mubr.bf16.gmra.mxu0 %v13694_v6 }
  0x56   : > { %1488 = vmatpush1.bf16.msra.mxu0 %v11590_v35  ;;  %1473 = vmatmul.mubr.bf16.gmra.mxu1 %v13694_v6  ;;  %v11669_v35 = vld [vmem:[%s17907_s2 + $0xa6c] ss:$40 sps:$4 sm:$0xff]  }
  0x57   : > { %1541 = vmatpush1.bf16.msra.mxu1 %v11593_v36  ;;  %1489 = vmatprep.subr.bf16.mxu0 %v11598_v37  ;;  %v11664_v36 = vld [vmem:[%s17907_s2 + $0xa60] ss:$40 sps:$4 sm:$0xff]  }
  0x58   : > { %1542 = vmatprep.subr.bf16.mxu1 %v11601_v38  ;;  %1515 = vmatprep.mubr.bf16.mxu0 %v13566_v17  ;;  %v11667_v37 = vld [vmem:[%s17907_s2 + $0xa68] ss:$40 sps:$4 sm:$0xff]   ;;  %v11672_v38 = vld [vmem:[%s17907_s2 + $0xa14] ss:$40 sps:$4 sm:$0xff]  }
  0x59   : > { %1568 = vmatprep.mubr.bf16.mxu1 %v13566_v17 }
  0x5a   : > { %1490 = vmatpush1.bf16.msra.mxu0 %v11596_v39  ;;  %v11675_v39 = vld [vmem:[%s17907_s2 + $0xa1c] ss:$40 sps:$4 sm:$0xff]  }
  0x5b   : > { %1543 = vmatpush1.bf16.msra.mxu1 %v11599_v40  ;;  %1491 = vmatprep.subr.bf16.mxu0 %v11604_v41  ;;  %v11670_v40 = vld [vmem:[%s17907_s2 + $0xa10] ss:$40 sps:$4 sm:$0xff]  }
  0x5c   : > { %1544 = vmatprep.subr.bf16.mxu1 %v11607_v42  ;;  %v11673_v41 = vld [vmem:[%s17907_s2 + $0xa18] ss:$40 sps:$4 sm:$0xff]   ;;  %v11678_v42 = vld [vmem:[%s17907_s2 + $0x9d4] ss:$40 sps:$4 sm:$0xff]  }
  0x5e   : > { %1492 = vmatpush1.bf16.msra.mxu0 %v11602_v43  ;;  %v11681_v43 = vld [vmem:[%s17907_s2 + $0x734] ss:$40 sps:$4 sm:$0xff]  }
  0x5f   : > { %1545 = vmatpush1.bf16.msra.mxu1 %v11605_v45  ;;  %1493 = vmatprep.subr.bf16.mxu0 %v11610_v46  ;;  %v11679_v45 = vld [vmem:[%s17907_s2 + $0x730] ss:$40 sps:$4 sm:$0xff]   ;;  %v11684_v46 = vld [vmem:[%s17907_s2 + $0x984] ss:$40 sps:$4 sm:$0xff]  }
  0x60   : > { %1546 = vmatprep.subr.bf16.mxu1 %v11613_v50  ;;  %v11682_v50 = vld [vmem:[%s17907_s2 + $0x980] ss:$40 sps:$4 sm:$0xff]  }
  0x62   : > { %1494 = vmatpush1.bf16.msra.mxu0 %v11608_v54  ;;  %v10246_v54 = vcombine.high %v1782_v48, %v1782_v48  ;;  %v1783_v48 = vld [vmem:[%s17906_s1 + $0x90] sm:$0x11] }
  0x63   : > { %1547 = vmatpush1.bf16.msra.mxu1 %v11611_v55  ;;  %1495 = vmatprep.subr.bf16.mxu0 %v11616_v56  ;;  %v11690_v55 = vld [vmem:[%s17907_s2 + $0x934] ss:$40 sps:$4 sm:$0xff]  }
  0x64   : > { %1548 = vmatprep.subr.bf16.mxu1 %v11619_v60  ;;  %v11693_v56 = vld [vmem:[%s17907_s2 + $0x694] ss:$40 sps:$4 sm:$0xff]   ;;  %v1802_v58 = vpack.i.b16 %v10246_v54, %v10246_v54  ;;  %v11688_v60 = vld [vmem:[%s17907_s2 + $0x930] ss:$40 sps:$4 sm:$0xff]   ;;  %v10247_v54 = vcombine.low %v1783_v48, %v1783_v48 }
  0x66   : > { %1496 = vmatpush1.bf16.msra.mxu0 %v11614_v62  ;;  %v1800_v62 = vrot.slane %v1795_v57, %v13530_v59  ;;  %v11763_v57 = vld [vmem:[%s17907_s2 + $0x7d0] ss:$40 sps:$4 sm:$0xff]  }
  0x67   : > { %1549 = vmatpush1.bf16.msra.mxu1 %v11617_v63  ;;  %1497 = vmatprep.subr.bf16.mxu0 %v11622_v0  ;;  %v1807_v63 = vrot.slane %v1802_v58, %v13530_v59  ;;  %v11696_v0 = vld [vmem:[%s17907_s2 + $0x8e4] ss:$40 sps:$4 sm:$0xff]  }
  0x68   : > { %1550 = vmatprep.subr.bf16.mxu1 %v11625_v3  ;;  %v11694_v3 = vld [vmem:[%s17907_s2 + $0x8e0] ss:$40 sps:$4 sm:$0xff]   ;;  %v11768_v58 = vld [vmem:[%s17907_s2 + $0xa24] ss:$40 sps:$4 sm:$0xff]  }
  0x69   : > { %v10249_v2 = vcombine.low %v1800_v62, %v1807_v63  ;;  %v11766_v63 = vld [vmem:[%s17907_s2 + $0xa20] ss:$40 sps:$4 sm:$0xff]  }
  0x6a   : > { %1498 = vmatpush1.bf16.msra.mxu0 %v11620_v5  ;;  %v11697_v5 = vld [vmem:[%s17907_s2 + $0x640] ss:$40 sps:$4 sm:$0xff]  }
  0x6b   : > { %1551 = vmatpush1.bf16.msra.mxu1 %v11623_v7  ;;  %1499 = vmatprep.subr.bf16.mxu0 %v11628_v8  ;;  %v13861_v7 = vmul.bf16 %v10249_v2, %v13511_v49  ;;  %v13864_v8 = vmul.bf16 %v10249_v2, %v13515_v51  ;;  %v11700_v49 = vld [vmem:[%s17907_s2 + $0x890] ss:$40 sps:$4 sm:$0xff]   ;;  %v11779_v2 = vld [vmem:[%s17907_s2 + $0x73c] ss:$40 sps:$4 sm:$0xff]  }
  0x6c   : > { %1552 = vmatprep.subr.bf16.mxu1 %v11631_v9  ;;  %v11702_v9 = vld [vmem:[%s17907_s2 + $0x894] ss:$40 sps:$4 sm:$0xff]   ;;  %v11703_v51 = vld [vmem:[%s17907_s2 + $0x5f0] ss:$40 sps:$4 sm:$0xff]  }
  0x6e   : > { %1500 = vmatpush2.bf16.msra.mxu0 %v11626_v10  ;;  %v11705_v10 = vld [vmem:[%s17907_s2 + $0x5f4] ss:$40 sps:$4 sm:$0xff]  }
  0x6f   : > { %1553 = vmatpush2.bf16.msra.mxu1 %v11629_v11  ;;  %1501 = vmatprep.subr.bf16.mxu0 %v11634_v12  ;;  %v13874_v11 = vcombine.high %v13861_v7, %v13864_v8  ;;  %v11708_v12 = vld [vmem:[%s17907_s2 + $0x844] ss:$40 sps:$4 sm:$0xff]  }
  0x70   : > { %1554 = vmatprep.subr.bf16.mxu1 %v11637_v13  ;;  %v11706_v13 = vld [vmem:[%s17907_s2 + $0x840] ss:$40 sps:$4 sm:$0xff]  }
  0x72   : > { %1502 = vmatpush2.bf16.msra.mxu0 %v11632_v14  ;;  %v11709_v14 = vld [vmem:[%s17907_s2 + $0x5a0] ss:$40 sps:$4 sm:$0xff]  }
  0x73   : > { %1555 = vmatpush2.bf16.msra.mxu1 %v11635_v15  ;;  %1503 = vmatprep.subr.bf16.mxu0 %v11640_v16  ;;  %v11714_v15 = vld [vmem:[%s17907_s2 + $0x7f4] ss:$40 sps:$4 sm:$0xff]  }
  0x74   : > { %1556 = vmatprep.subr.bf16.mxu1 %v11643_v18  ;;  %v11717_v16 = vld [vmem:[%s17907_s2 + $0x554] ss:$40 sps:$4 sm:$0xff]   ;;  %v11712_v18 = vld [vmem:[%s17907_s2 + $0x7f0] ss:$40 sps:$4 sm:$0xff]  }
  0x76   : > { %1504 = vmatpush2.bf16.msra.mxu0 %v11638_v19  ;;  %v11715_v19 = vld [vmem:[%s17907_s2 + $0x550] ss:$40 sps:$4 sm:$0xff]  }
  0x77   : > { %1557 = vmatpush2.bf16.msra.mxu1 %v11641_v20  ;;  %1505 = vmatprep.subr.bf16.mxu0 %v11646_v21  ;;  %v11720_v20 = vld [vmem:[%s17907_s2 + $0x7a4] ss:$40 sps:$4 sm:$0xff]  }
  0x78   : > { %1558 = vmatprep.subr.bf16.mxu1 %v11649_v22  ;;  %v11723_v21 = vld [vmem:[%s17907_s2 + $0x504] ss:$40 sps:$4 sm:$0xff]   ;;  %v11718_v22 = vld [vmem:[%s17907_s2 + $0x7a0] ss:$40 sps:$4 sm:$0xff]  }
  0x7a   : > { %1506 = vmatpush2.bf16.msra.mxu0 %v11644_v23  ;;  %v11721_v23 = vld [vmem:[%s17907_s2 + $0x500] ss:$40 sps:$4 sm:$0xff]  }
  0x7b   : > { %1559 = vmatpush2.bf16.msra.mxu1 %v11647_v24  ;;  %1507 = vmatprep.subr.bf16.mxu0 %v11652_v25  ;;  %v11726_v24 = vld [vmem:[%s17907_s2 + $0xc54] ss:$40 sps:$4 sm:$0xff]  }
  0x7c   : > { %1560 = vmatprep.subr.bf16.mxu1 %v11655_v27  ;;  %v11729_v25 = vld [vmem:[%s17907_s2 + $0x9b4] ss:$40 sps:$4 sm:$0xff]   ;;  %v11724_v27 = vld [vmem:[%s17907_s2 + $0xc50] ss:$40 sps:$4 sm:$0xff]  }
  0x7e   : > { %1508 = vmatpush2.bf16.msra.mxu0 %v11650_v28  ;;  %v11727_v28 = vld [vmem:[%s17907_s2 + $0x9b0] ss:$40 sps:$4 sm:$0xff]  }
  0x7f   : > { %1561 = vmatpush2.bf16.msra.mxu1 %v11653_v29  ;;  %1509 = vmatprep.subr.bf16.mxu0 %v11660_v30  ;;  %v11732_v29 = vld [vmem:[%s17907_s2 + $0xc04] ss:$40 sps:$4 sm:$0xff]  }
  0x80   : > { %1562 = vmatprep.subr.bf16.mxu1 %v11663_v31  ;;  %v11735_v30 = vld [vmem:[%s17907_s2 + $0x964] ss:$40 sps:$4 sm:$0xff]   ;;  %v11730_v31 = vld [vmem:[%s17907_s2 + $0xc00] ss:$40 sps:$4 sm:$0xff]  }
  0x82   : > { %1510 = vmatpush2.bf16.msra.mxu0 %v11658_v32  ;;  %v11733_v32 = vld [vmem:[%s17907_s2 + $0x960] ss:$40 sps:$4 sm:$0xff]  }
  0x83   : > { %1563 = vmatpush2.bf16.msra.mxu1 %v11661_v33  ;;  %1511 = vmatprep.subr.bf16.mxu0 %v11666_v34  ;;  %v11738_v33 = vld [vmem:[%s17907_s2 + $0xbb4] ss:$40 sps:$4 sm:$0xff]  }
  0x84   : > { %1564 = vmatprep.subr.bf16.mxu1 %v11669_v35  ;;  %v11741_v34 = vld [vmem:[%s17907_s2 + $0x914] ss:$40 sps:$4 sm:$0xff]   ;;  %v11736_v35 = vld [vmem:[%s17907_s2 + $0xbb0] ss:$40 sps:$4 sm:$0xff]  }
  0x86   : > { %1512 = vmatpush2.bf16.msra.mxu0 %v11664_v36  ;;  %v11739_v36 = vld [vmem:[%s17907_s2 + $0x910] ss:$40 sps:$4 sm:$0xff]  }
  0x87   : > { %1565 = vmatpush2.bf16.msra.mxu1 %v11667_v37  ;;  %1513 = vmatprep.subr.bf16.mxu0 %v11672_v38  ;;  %v11744_v37 = vld [vmem:[%s17907_s2 + $0xb64] ss:$40 sps:$4 sm:$0xff]  }
  0x88   : > { %1566 = vmatprep.subr.bf16.mxu1 %v11675_v39  ;;  %v11747_v38 = vld [vmem:[%s17907_s2 + $0x8c4] ss:$40 sps:$4 sm:$0xff]   ;;  %v11742_v39 = vld [vmem:[%s17907_s2 + $0xb60] ss:$40 sps:$4 sm:$0xff]  }
  0x8a   : > { %1514 = vmatpush2.bf16.msra.mxu0 %v11670_v40  ;;  %v11745_v40 = vld [vmem:[%s17907_s2 + $0x8c0] ss:$40 sps:$4 sm:$0xff]  }
  0x8b   : > { %1567 = vmatpush2.bf16.msra.mxu1 %v11673_v41  ;;  %1589 = vmatprep.subr.bf16.mxu0 %v11678_v42  ;;  %v11750_v41 = vld [vmem:[%s17907_s2 + $0xb14] ss:$40 sps:$4 sm:$0xff]  }
  0x8c   : > { %3778 = vmatprep.subr.bf16.mxu1 %v11681_v43  ;;  %v11753_v42 = vld [vmem:[%s17907_s2 + $0x874] ss:$40 sps:$4 sm:$0xff]   ;;  %v11748_v43 = vld [vmem:[%s17907_s2 + $0xb10] ss:$40 sps:$4 sm:$0xff]  }
  0x8d   : > { %1516 = vmatmul.mubr.bf16.vlgmr.msra.gmra.mxu0 %v13594_v26 }
  0x8e   : > { %1569 = vmatmul.mubr.bf16.vlgmr.msra.gmra.mxu1 %v13594_v26  ;;  %1590 = vmatpush1.bf16.msra.mxu0 %v11676_v44  ;;  %v11751_v44 = vld [vmem:[%s17907_s2 + $0x870] ss:$40 sps:$4 sm:$0xff]  }
  0x8f   : > { %3779 = vmatpush1.bf16.msra.mxu1 %v11679_v45  ;;  %1591 = vmatprep.subr.bf16.mxu0 %v11684_v46  ;;  %v11756_v45 = vld [vmem:[%s17907_s2 + $0xac4] ss:$40 sps:$4 sm:$0xff]  }
  0x90   : > { %3780 = vmatprep.subr.bf16.mxu1 %v11687_v47  ;;  %1525 = vmatprep.mubr.bf16.mxu0 %v13689_v4  ;;  %v11759_v46 = vld [vmem:[%s17907_s2 + $0x824] ss:$40 sps:$4 sm:$0xff]   ;;  %v11754_v47 = vld [vmem:[%s17907_s2 + $0xac0] ss:$40 sps:$4 sm:$0xff]  }
  0x91   : > { %1578 = vmatprep.mubr.bf16.mxu1 %v13689_v4 }
  0x92   : > { %1592 = vmatpush1.bf16.msra.mxu0 %v11682_v50  ;;  %v11757_v50 = vld [vmem:[%s17907_s2 + $0x820] ss:$40 sps:$4 sm:$0xff]  }
  0x93   : > { %3781 = vmatpush1.bf16.msra.mxu1 %v11685_v52  ;;  %1593 = vmatprep.subr.bf16.mxu0 %v11690_v55  ;;  %v11762_v52 = vld [vmem:[%s17907_s2 + $0xa74] ss:$40 sps:$4 sm:$0xff]   ;;  %v10248_v55 = vcombine.high %v1783_v48, %v1783_v48  ;;  %v11831_v48 = vld [vmem:[%s17907_s2 + $0x968] ss:$40 sps:$4 sm:$0xff]  }
  0x94   : > { %3782 = vmatprep.subr.bf16.mxu1 %v11693_v56  ;;  %v11760_v56 = vld [vmem:[%s17907_s2 + $0xa70] ss:$40 sps:$4 sm:$0xff]  }
  0x95   : > { %1526 = vmatmul.mubr.bf16.gmra.mxu0 %v13694_v6  ;;  %v1816_v62 = vpack.i.b16 %v10248_v55, %v10248_v55  ;;  %v11842_v55 = vld [vmem:[%s17907_s2 + $0xdc4] ss:$40 sps:$4 sm:$0xff]  }
  0x96   : > { %1579 = vmatmul.mubr.bf16.gmra.mxu1 %v13694_v6  ;;  %1594 = vmatpush1.bf16.msra.mxu0 %v11688_v60  ;;  %v11771_v60 = vld [vmem:[%s17907_s2 + $0x784] ss:$40 sps:$4 sm:$0xff]  }
  0x97   : > { %3783 = vmatpush1.bf16.msra.mxu1 %v11691_v61  ;;  %1595 = vmatprep.subr.bf16.mxu0 %v11696_v0  ;;  %v1809_v61 = vpack.i.b16 %v10247_v54, %v10247_v54  ;;  %v11769_v0 = vld [vmem:[%s17907_s2 + $0x780] ss:$40 sps:$4 sm:$0xff]  }
  0x98   : > { %3784 = vmatprep.subr.bf16.mxu1 %v11699_v1  ;;  %1621 = vmatprep.mubr.bf16.mxu0 %v13566_v17  ;;  %v11711_v17 = vld [vmem:[%s17907_s2 + $0x5a4] ss:$40 sps:$4 sm:$0xff]   ;;  %v11776_v1 = vld [vmem:[%s17907_s2 + $0xc34] ss:$40 sps:$4 sm:$0xff]   ;;  %v11837_v54 = vld [vmem:[%s17907_s2 + $0x918] ss:$40 sps:$4 sm:$0xff]  }
  0x99   : > { %3810 = vmatprep.mubr.bf16.mxu1 %v13874_v11 }
  0x9a   : > { %1596 = vmatpush1.bf16.msra.mxu0 %v11694_v3  ;;  %v1814_v3 = vrot.slane %v1809_v61, %v13530_v59  ;;  %v11851_v61 = vld [vmem:[%s17907_s2 + $0x87c] ss:$40 sps:$4 sm:$0xff]  }
  0x9b   : > { %3785 = vmatpush1.bf16.msra.mxu1 %v11697_v5  ;;  %1597 = vmatprep.subr.bf16.mxu0 %v11702_v9  ;;  %v1821_v5 = vrot.slane %v1816_v62, %v13530_v59  ;;  %v11774_v9 = vld [vmem:[%s17907_s2 + $0xc30] ss:$40 sps:$4 sm:$0xff]  }
  0x9c   : > { %3786 = vmatprep.subr.bf16.mxu1 %v11705_v10  ;;  %v14032_v10 = vcombine.low %v13861_v7, %v13864_v8  ;;  %v11780_v8 = vld [vmem:[%s17907_s2 + $0xbe0] ss:$40 sps:$4 sm:$0xff]   ;;  %v11846_v62 = vld [vmem:[%s17907_s2 + $0xd70] ss:$40 sps:$4 sm:$0xff]  }
  0x9d   : > { %v10250_v7 = vcombine.low %v1814_v3, %v1821_v5  ;;  %v11855_v3 = vld [vmem:[%s17907_s2 + $0x828] ss:$40 sps:$4 sm:$0xff]   ;;  %v11860_v5 = vld [vmem:[%s17907_s2 + $0xcd4] ss:$40 sps:$4 sm:$0xff]  }
  0x9e   : > { %1598 = vmatpush1.bf16.msra.mxu0 %v11700_v49  ;;  %v11777_v49 = vld [vmem:[%s17907_s2 + $0x738] ss:$40 sps:$4 sm:$0xff]  }
  0x9f   : > { %3787 = vmatpush1.bf16.msra.mxu1 %v11703_v51  ;;  %1599 = vmatprep.subr.bf16.mxu0 %v11708_v12  ;;  %v11782_v51 = vld [vmem:[%s17907_s2 + $0xbe4] ss:$40 sps:$4 sm:$0xff]  }
  0xa0   : > { %3788 = vmatprep.subr.bf16.mxu1 %v11711_v17  ;;  %v11785_v12 = vld [vmem:[%s17907_s2 + $0x6ec] ss:$40 sps:$4 sm:$0xff]   ;;  %v11783_v17 = vld [vmem:[%s17907_s2 + $0x6e8] ss:$40 sps:$4 sm:$0xff]  }
  0xa2   : > { %1600 = vmatpush1.bf16.msra.mxu0 %v11706_v13  ;;  %v11788_v13 = vld [vmem:[%s17907_s2 + $0xb94] ss:$40 sps:$4 sm:$0xff]  }
  0xa3   : > { %3789 = vmatpush1.bf16.msra.mxu1 %v11709_v14  ;;  %1601 = vmatprep.subr.bf16.mxu0 %v11714_v15  ;;  %v13284_v14 = vld [vmem:[%s13499_s22 + $0x10] sm:$0xff] }
  0xa4   : > { %3790 = vmatprep.subr.bf16.mxu1 %v11717_v16  ;;  %v14059_v15 = vmul.bf16 %v13284_v14, %v10250_v7  ;;  %v13285_v16 = vld [vmem:[%s13499_s22 + $0x30] sm:$0xff] }
  0xa6   : > { %1602 = vmatpush1.bf16.msra.mxu0 %v11712_v18  ;;  %v14062_v18 = vmul.bf16 %v13285_v16, %v10250_v7  ;;  %v11869_v7 = vld [vmem:[%s17907_s2 + $0x78c] ss:$40 sps:$4 sm:$0xff]   ;;  %v11872_v16 = vld [vmem:[%s17907_s2 + $0xc38] ss:$40 sps:$4 sm:$0xff]  }
  0xa7   : > { %3791 = vmatpush1.bf16.msra.mxu1 %v11715_v19  ;;  %1603 = vmatprep.subr.bf16.mxu0 %v11720_v20  ;;  %v11786_v19 = vld [vmem:[%s17907_s2 + $0xb90] ss:$40 sps:$4 sm:$0xff]  }
  0xa8   : > { %3792 = vmatprep.subr.bf16.mxu1 %v11723_v21  ;;  %v11789_v20 = vld [vmem:[%s17907_s2 + $0x698] ss:$40 sps:$4 sm:$0xff]   ;;  %v11797_v21 = vld [vmem:[%s17907_s2 + $0x64c] ss:$40 sps:$4 sm:$0xff]   ;;  %v14241_v14 = vcombine.low %v14059_v15, %v14062_v18 }
  0xaa   : > { %1604 = vmatpush1.bf16.msra.mxu0 %v11718_v22  ;;  %v14079_v22 = vcombine.high %v14059_v15, %v14062_v18  ;;  %v11883_v15 = vld [vmem:[%s17907_s2 + $0x6f4] ss:$40 sps:$4 sm:$0xff]   ;;  %v11878_v18 = vld [vmem:[%s17907_s2 + $0xbe8] ss:$40 sps:$4 sm:$0xff]  }
  0xab   : > { %3793 = vmatpush1.bf16.msra.mxu1 %v11721_v23  ;;  %1605 = vmatprep.subr.bf16.mxu0 %v11726_v24  ;;  %v11792_v23 = vld [vmem:[%s17907_s2 + $0xb40] ss:$40 sps:$4 sm:$0xff]  }
  0xac   : > { %3794 = vmatprep.subr.bf16.mxu1 %v11729_v25  ;;  %v11795_v24 = vld [vmem:[%s17907_s2 + $0x648] ss:$40 sps:$4 sm:$0xff]   ;;  %v11800_v25 = vld [vmem:[%s17907_s2 + $0xaf4] ss:$40 sps:$4 sm:$0xff]  }
  0xae   : > { %1606 = vmatpush2.bf16.msra.mxu0 %v11724_v27  ;;  %v11798_v27 = vld [vmem:[%s17907_s2 + $0xaf0] ss:$40 sps:$4 sm:$0xff]  }
  0xaf   : > { %3795 = vmatpush2.bf16.msra.mxu1 %v11727_v28  ;;  %1607 = vmatprep.subr.bf16.mxu0 %v11732_v29  ;;  %v11801_v28 = vld [vmem:[%s17907_s2 + $0x5f8] ss:$40 sps:$4 sm:$0xff]   ;;  %v11806_v29 = vld [vmem:[%s17907_s2 + $0xaa4] ss:$40 sps:$4 sm:$0xff]  }
  0xb0   : > { %3796 = vmatprep.subr.bf16.mxu1 %v11735_v30  ;;  %v11809_v30 = vld [vmem:[%s17907_s2 + $0x5ac] ss:$40 sps:$4 sm:$0xff]  }
  0xb2   : > { %1608 = vmatpush2.bf16.msra.mxu0 %v11730_v31  ;;  %v11804_v31 = vld [vmem:[%s17907_s2 + $0xaa0] ss:$40 sps:$4 sm:$0xff]  }
  0xb3   : > { %3797 = vmatpush2.bf16.msra.mxu1 %v11733_v32  ;;  %1609 = vmatprep.subr.bf16.mxu0 %v11738_v33  ;;  %v11807_v32 = vld [vmem:[%s17907_s2 + $0x5a8] ss:$40 sps:$4 sm:$0xff]   ;;  %v11812_v33 = vld [vmem:[%s17907_s2 + $0xa54] ss:$40 sps:$4 sm:$0xff]  }
  0xb4   : > { %3798 = vmatprep.subr.bf16.mxu1 %v11741_v34  ;;  %v11815_v34 = vld [vmem:[%s17907_s2 + $0x55c] ss:$40 sps:$4 sm:$0xff]  }
  0xb6   : > { %1610 = vmatpush2.bf16.msra.mxu0 %v11736_v35  ;;  %v11810_v35 = vld [vmem:[%s17907_s2 + $0xa50] ss:$40 sps:$4 sm:$0xff]  }
  0xb7   : > { %3799 = vmatpush2.bf16.msra.mxu1 %v11739_v36  ;;  %1611 = vmatprep.subr.bf16.mxu0 %v11744_v37  ;;  %v11813_v36 = vld [vmem:[%s17907_s2 + $0x558] ss:$40 sps:$4 sm:$0xff]   ;;  %v11818_v37 = vld [vmem:[%s17907_s2 + $0xa04] ss:$40 sps:$4 sm:$0xff]  }
  0xb8   : > { %3800 = vmatprep.subr.bf16.mxu1 %v11747_v38  ;;  %v11821_v38 = vld [vmem:[%s17907_s2 + $0x50c] ss:$40 sps:$4 sm:$0xff]  }
  0xba   : > { %1612 = vmatpush2.bf16.msra.mxu0 %v11742_v39  ;;  %v11816_v39 = vld [vmem:[%s17907_s2 + $0xa00] ss:$40 sps:$4 sm:$0xff]  }
  0xbb   : > { %3801 = vmatpush2.bf16.msra.mxu1 %v11745_v40  ;;  %1613 = vmatprep.subr.bf16.mxu0 %v11750_v41  ;;  %v11819_v40 = vld [vmem:[%s17907_s2 + $0x508] ss:$40 sps:$4 sm:$0xff]   ;;  %v11824_v41 = vld [vmem:[%s17907_s2 + $0xeb4] ss:$40 sps:$4 sm:$0xff]  }
  0xbc   : > { %3802 = vmatprep.subr.bf16.mxu1 %v11753_v42  ;;  %v11827_v42 = vld [vmem:[%s17907_s2 + $0x9bc] ss:$40 sps:$4 sm:$0xff]  }
  0xbe   : > { %1614 = vmatpush2.bf16.msra.mxu0 %v11748_v43  ;;  %v11822_v43 = vld [vmem:[%s17907_s2 + $0xeb0] ss:$40 sps:$4 sm:$0xff]  }
  0xbf   : > { %3803 = vmatpush2.bf16.msra.mxu1 %v11751_v44  ;;  %1615 = vmatprep.subr.bf16.mxu0 %v11756_v45  ;;  %v11825_v44 = vld [vmem:[%s17907_s2 + $0x9b8] ss:$40 sps:$4 sm:$0xff]   ;;  %v11830_v45 = vld [vmem:[%s17907_s2 + $0xe64] ss:$40 sps:$4 sm:$0xff]  }
  0xc0   : > { %3804 = vmatprep.subr.bf16.mxu1 %v11759_v46  ;;  %v11833_v46 = vld [vmem:[%s17907_s2 + $0x96c] ss:$40 sps:$4 sm:$0xff]  }
  0xc2   : > { %1616 = vmatpush2.bf16.msra.mxu0 %v11754_v47  ;;  %v11828_v47 = vld [vmem:[%s17907_s2 + $0xe60] ss:$40 sps:$4 sm:$0xff]  }
  0xc3   : > { %3805 = vmatpush2.bf16.msra.mxu1 %v11757_v50  ;;  %1617 = vmatprep.subr.bf16.mxu0 %v11762_v52  ;;  %v11836_v50 = vld [vmem:[%s17907_s2 + $0xe14] ss:$40 sps:$4 sm:$0xff]  }
  0xc4   : > { %3806 = vmatprep.subr.bf16.mxu1 %v11765_v53  ;;  %v11839_v52 = vld [vmem:[%s17907_s2 + $0x91c] ss:$40 sps:$4 sm:$0xff]   ;;  %v11834_v53 = vld [vmem:[%s17907_s2 + $0xe10] ss:$40 sps:$4 sm:$0xff]  }
  0xc6   : > { %1618 = vmatpush2.bf16.msra.mxu0 %v11760_v56  ;;  %v11845_v56 = vld [vmem:[%s17907_s2 + $0x8cc] ss:$40 sps:$4 sm:$0xff]  }
  0xc7   : > { %3807 = vmatpush2.bf16.msra.mxu1 %v11763_v57  ;;  %1619 = vmatprep.subr.bf16.mxu0 %v11768_v58  ;;  %v11840_v57 = vld [vmem:[%s17907_s2 + $0xdc0] ss:$40 sps:$4 sm:$0xff]  }
  0xc8   : > { %3808 = vmatprep.subr.bf16.mxu1 %v11771_v60  ;;  %v11843_v58 = vld [vmem:[%s17907_s2 + $0x8c8] ss:$40 sps:$4 sm:$0xff]   ;;  %v11848_v60 = vld [vmem:[%s17907_s2 + $0xd74] ss:$40 sps:$4 sm:$0xff]  }
  0xca   : > { %1620 = vmatpush2.bf16.msra.mxu0 %v11766_v63  ;;  %v11849_v63 = vld [vmem:[%s17907_s2 + $0x878] ss:$40 sps:$4 sm:$0xff]  }
  0xcb   : > { %3809 = vmatpush2.bf16.msra.mxu1 %v11769_v0  ;;  %3821 = vmatprep.subr.bf16.mxu0 %v11776_v1  ;;  %v11854_v0 = vld [vmem:[%s17907_s2 + $0xd24] ss:$40 sps:$4 sm:$0xff]  }
  0xcc   : > { %3864 = vmatprep.subr.bf16.mxu1 %v11779_v2  ;;  %v11857_v1 = vld [vmem:[%s17907_s2 + $0x82c] ss:$40 sps:$4 sm:$0xff]   ;;  %v11852_v2 = vld [vmem:[%s17907_s2 + $0xd20] ss:$40 sps:$4 sm:$0xff]  }
  0xcd   : > { %1622 = vmatmul.mubr.bf16.vlgmr.msra.gmra.mxu0 %v13594_v26  ;;  %v11791_v26 = vld [vmem:[%s17907_s2 + $0x69c] ss:$40 sps:$4 sm:$0xff]  }
  0xce   : > { %3811 = vmatmul.mubr.bf16.vlgmr.msra.gmra.mxu1 %v14032_v10  ;;  %3822 = vmatpush1.bf16.msra.mxu0 %v11774_v9  ;;  %v11863_v9 = vld [vmem:[%s17907_s2 + $0x7dc] ss:$40 sps:$4 sm:$0xff]  }
  0xcf   : > { %3865 = vmatpush1.bf16.msra.mxu1 %v11777_v49  ;;  %3823 = vmatprep.subr.bf16.mxu0 %v11782_v51  ;;  %v11858_v49 = vld [vmem:[%s17907_s2 + $0xcd0] ss:$40 sps:$4 sm:$0xff]  }
  0xd0   : > { %3866 = vmatprep.subr.bf16.mxu1 %v11785_v12  ;;  %1631 = vmatprep.mubr.bf16.mxu0 %v13689_v4  ;;  %v11794_v4 = vld [vmem:[%s17907_s2 + $0xb44] ss:$40 sps:$4 sm:$0xff]   ;;  %v11861_v51 = vld [vmem:[%s17907_s2 + $0x7d8] ss:$40 sps:$4 sm:$0xff]  }
  0xd1   : > { %3896 = vmatprep.mubr.bf16.mxu1 %v13874_v11  ;;  %v11866_v12 = vld [vmem:[%s17907_s2 + $0xc84] ss:$40 sps:$4 sm:$0xff]  }
  0xd2   : > { %3824 = vmatpush1.bf16.msra.mxu0 %v11780_v8  ;;  %v11864_v8 = vld [vmem:[%s17907_s2 + $0xc80] ss:$40 sps:$4 sm:$0xff]  }
  0xd3   : > { %3867 = vmatpush1.bf16.msra.mxu1 %v11783_v17  ;;  %3825 = vmatprep.subr.bf16.mxu0 %v11788_v13  ;;  %v11867_v17 = vld [vmem:[%s17907_s2 + $0x788] ss:$40 sps:$4 sm:$0xff]   ;;  %v11874_v13 = vld [vmem:[%s17907_s2 + $0xc3c] ss:$40 sps:$4 sm:$0xff]  }
  0xd4   : > { %3868 = vmatprep.subr.bf16.mxu1 %v11791_v26  ;;  %v11877_v26 = vld [vmem:[%s17907_s2 + $0x744] ss:$40 sps:$4 sm:$0xff]  }
  0xd5   : > { %1632 = vmatmul.mubr.bf16.gmra.mxu0 %v13694_v6  ;;  %v11803_v6 = vld [vmem:[%s17907_s2 + $0x5fc] ss:$40 sps:$4 sm:$0xff]  }
  0xd6   : > { %3826 = vmatpush1.bf16.msra.mxu0 %v11786_v19  ;;  %3853 = vmatprep.mubr.bf16.mxu0 %v14079_v22  ;;  %v11875_v19 = vld [vmem:[%s17907_s2 + $0x740] ss:$40 sps:$4 sm:$0xff]  }
  0xd7   : > { %3869 = vmatpush1.bf16.msra.mxu1 %v11789_v20  ;;  %3827 = vmatprep.subr.bf16.mxu0 %v11794_v4  ;;  %v11880_v20 = vld [vmem:[%s17907_s2 + $0xbec] ss:$40 sps:$4 sm:$0xff]   ;;  %v11881_v4 = vld [vmem:[%s17907_s2 + $0x6f0] ss:$40 sps:$4 sm:$0xff]  }
  0xd8   : > { %3870 = vmatprep.subr.bf16.mxu1 %v11797_v21  ;;  %v11886_v21 = vld [vmem:[%s17907_s2 + $0xb9c] ss:$40 sps:$4 sm:$0xff]  }
  0xda   : > { %3828 = vmatpush1.bf16.msra.mxu0 %v11792_v23  ;;  %v11889_v23 = vld [vmem:[%s17907_s2 + $0x6a4] ss:$40 sps:$4 sm:$0xff]  }
  0xdb   : > { %3871 = vmatpush1.bf16.msra.mxu1 %v11795_v24  ;;  %3829 = vmatprep.subr.bf16.mxu0 %v11800_v25  ;;  %v11884_v24 = vld [vmem:[%s17907_s2 + $0xb98] ss:$40 sps:$4 sm:$0xff]  }
  0xdc   : > { %3872 = vmatprep.subr.bf16.mxu1 %v11803_v6  ;;  %v11887_v25 = vld [vmem:[%s17907_s2 + $0x6a0] ss:$40 sps:$4 sm:$0xff]   ;;  %v11892_v6 = vld [vmem:[%s17907_s2 + $0xb4c] ss:$40 sps:$4 sm:$0xff]  }
  0xde   : > { %3830 = vmatpush1.bf16.msra.mxu0 %v11798_v27  ;;  %v11895_v27 = vld [vmem:[%s17907_s2 + $0x654] ss:$40 sps:$4 sm:$0xff]  }
  0xdf   : > { %3873 = vmatpush1.bf16.msra.mxu1 %v11801_v28  ;;  %3831 = vmatprep.subr.bf16.mxu0 %v11806_v29  ;;  %v11890_v28 = vld [vmem:[%s17907_s2 + $0xb48] ss:$40 sps:$4 sm:$0xff]  }
  0xe0   : > { %3874 = vmatprep.subr.bf16.mxu1 %v11809_v30  ;;  %v11893_v29 = vld [vmem:[%s17907_s2 + $0x650] ss:$40 sps:$4 sm:$0xff]   ;;  %v11898_v30 = vld [vmem:[%s17907_s2 + $0xafc] ss:$40 sps:$4 sm:$0xff]  }
  0xe2   : > { %3832 = vmatpush1.bf16.msra.mxu0 %v11804_v31  ;;  %v11901_v31 = vld [vmem:[%s17907_s2 + $0x604] ss:$40 sps:$4 sm:$0xff]  }
  0xe3   : > { %3875 = vmatpush1.bf16.msra.mxu1 %v11807_v32  ;;  %3833 = vmatprep.subr.bf16.mxu0 %v11812_v33  ;;  %v11896_v32 = vld [vmem:[%s17907_s2 + $0xaf8] ss:$40 sps:$4 sm:$0xff]  }
  0xe4   : > { %3876 = vmatprep.subr.bf16.mxu1 %v11815_v34  ;;  %v11899_v33 = vld [vmem:[%s17907_s2 + $0x600] ss:$40 sps:$4 sm:$0xff]   ;;  %v11904_v34 = vld [vmem:[%s17907_s2 + $0xaac] ss:$40 sps:$4 sm:$0xff]  }
  0xe6   : > { %3834 = vmatpush1.bf16.msra.mxu0 %v11810_v35  ;;  %v11907_v35 = vld [vmem:[%s17907_s2 + $0x5b4] ss:$40 sps:$4 sm:$0xff]  }
  0xe7   : > { %3877 = vmatpush1.bf16.msra.mxu1 %v11813_v36  ;;  %3835 = vmatprep.subr.bf16.mxu0 %v11818_v37  ;;  %v11902_v36 = vld [vmem:[%s17907_s2 + $0xaa8] ss:$40 sps:$4 sm:$0xff]  }
  0xe8   : > { %3878 = vmatprep.subr.bf16.mxu1 %v11821_v38  ;;  %v11905_v37 = vld [vmem:[%s17907_s2 + $0x5b0] ss:$40 sps:$4 sm:$0xff]   ;;  %v11910_v38 = vld [vmem:[%s17907_s2 + $0xa5c] ss:$40 sps:$4 sm:$0xff]  }
  0xea   : > { %3836 = vmatpush1.bf16.msra.mxu0 %v11816_v39  ;;  %v11913_v39 = vld [vmem:[%s17907_s2 + $0x564] ss:$40 sps:$4 sm:$0xff]  }
  0xeb   : > { %3879 = vmatpush1.bf16.msra.mxu1 %v11819_v40  ;;  %3837 = vmatprep.subr.bf16.mxu0 %v11824_v41  ;;  %v11908_v40 = vld [vmem:[%s17907_s2 + $0xa58] ss:$40 sps:$4 sm:$0xff]  }
  0xec   : > { %3880 = vmatprep.subr.bf16.mxu1 %v11827_v42  ;;  %v11911_v41 = vld [vmem:[%s17907_s2 + $0x560] ss:$40 sps:$4 sm:$0xff]   ;;  %v11916_v42 = vld [vmem:[%s17907_s2 + $0xa0c] ss:$40 sps:$4 sm:$0xff]  }
  0xee   : > { %3838 = vmatpush2.bf16.msra.mxu0 %v11822_v43  ;;  %v11919_v43 = vld [vmem:[%s17907_s2 + $0x514] ss:$40 sps:$4 sm:$0xff]  }
  0xef   : > { %3881 = vmatpush2.bf16.msra.mxu1 %v11825_v44  ;;  %3839 = vmatprep.subr.bf16.mxu0 %v11830_v45  ;;  %v11914_v44 = vld [vmem:[%s17907_s2 + $0xa08] ss:$40 sps:$4 sm:$0xff]  }
  0xf0   : > { %3882 = vmatprep.subr.bf16.mxu1 %v11833_v46  ;;  %v11917_v45 = vld [vmem:[%s17907_s2 + $0x510] ss:$40 sps:$4 sm:$0xff]   ;;  %v11922_v46 = vld [vmem:[%s17907_s2 + $0xebc] ss:$40 sps:$4 sm:$0xff]  }
  0xf2   : > { %3840 = vmatpush2.bf16.msra.mxu0 %v11828_v47  ;;  %v11925_v47 = vld [vmem:[%s17907_s2 + $0x9c4] ss:$40 sps:$4 sm:$0xff]  }
  0xf3   : > { %3883 = vmatpush2.bf16.msra.mxu1 %v11831_v48  ;;  %3841 = vmatprep.subr.bf16.mxu0 %v11836_v50  ;;  %v11920_v48 = vld [vmem:[%s17907_s2 + $0xeb8] ss:$40 sps:$4 sm:$0xff]  }
  0xf4   : > { %3884 = vmatprep.subr.bf16.mxu1 %v11839_v52  ;;  %v11923_v50 = vld [vmem:[%s17907_s2 + $0x9c0] ss:$40 sps:$4 sm:$0xff]   ;;  %v11928_v52 = vld [vmem:[%s17907_s2 + $0xe6c] ss:$40 sps:$4 sm:$0xff]  }
  0xf6   : > { %3842 = vmatpush2.bf16.msra.mxu0 %v11834_v53  ;;  %v11931_v53 = vld [vmem:[%s17907_s2 + $0x974] ss:$40 sps:$4 sm:$0xff]  }
  0xf7   : > { %3885 = vmatpush2.bf16.msra.mxu1 %v11837_v54  ;;  %3843 = vmatprep.subr.bf16.mxu0 %v11842_v55  ;;  %v11926_v54 = vld [vmem:[%s17907_s2 + $0xe68] ss:$40 sps:$4 sm:$0xff]  }
  0xf8   : > { %3886 = vmatprep.subr.bf16.mxu1 %v11845_v56  ;;  %v11929_v55 = vld [vmem:[%s17907_s2 + $0x970] ss:$40 sps:$4 sm:$0xff]   ;;  %v11934_v56 = vld [vmem:[%s17907_s2 + $0xe1c] ss:$40 sps:$4 sm:$0xff]  }
  0xfa   : > { %3844 = vmatpush2.bf16.msra.mxu0 %v11840_v57  ;;  %v11937_v57 = vld [vmem:[%s17907_s2 + $0x924] ss:$40 sps:$4 sm:$0xff]  }
  0xfb   : > { %3887 = vmatpush2.bf16.msra.mxu1 %v11843_v58  ;;  %3845 = vmatprep.subr.bf16.mxu0 %v11848_v60  ;;  %v11932_v58 = vld [vmem:[%s17907_s2 + $0xe18] ss:$40 sps:$4 sm:$0xff]  }
  0xfc   : > { %3888 = vmatprep.subr.bf16.mxu1 %v11851_v61  ;;  %v11935_v60 = vld [vmem:[%s17907_s2 + $0x920] ss:$40 sps:$4 sm:$0xff]   ;;  %v11940_v61 = vld [vmem:[%s17907_s2 + $0xdcc] ss:$40 sps:$4 sm:$0xff]  }
  0xfe   : > { %3846 = vmatpush2.bf16.msra.mxu0 %v11846_v62  ;;  %v11943_v62 = vld [vmem:[%s17907_s2 + $0x8d4] ss:$40 sps:$4 sm:$0xff]  }
  0xff   : > { %3889 = vmatpush2.bf16.msra.mxu1 %v11849_v63  ;;  %3847 = vmatprep.subr.bf16.mxu0 %v11854_v0  ;;  %v11938_v63 = vld [vmem:[%s17907_s2 + $0xdc8] ss:$40 sps:$4 sm:$0xff]  }
 0x100   : > { %3890 = vmatprep.subr.bf16.mxu1 %v11857_v1  ;;  %v11941_v0 = vld [vmem:[%s17907_s2 + $0x8d0] ss:$40 sps:$4 sm:$0xff]   ;;  %v11946_v1 = vld [vmem:[%s17907_s2 + $0xd7c] ss:$40 sps:$4 sm:$0xff]  }
 0x102   : > { %3848 = vmatpush2.bf16.msra.mxu0 %v11852_v2  ;;  %v11949_v2 = vld [vmem:[%s17907_s2 + $0x884] ss:$40 sps:$4 sm:$0xff]  }
 0x103   : > { %3891 = vmatpush2.bf16.msra.mxu1 %v11855_v3  ;;  %3849 = vmatprep.subr.bf16.mxu0 %v11860_v5  ;;  %v11944_v3 = vld [vmem:[%s17907_s2 + $0xd78] ss:$40 sps:$4 sm:$0xff]  }
 0x104   : > { %3892 = vmatprep.subr.bf16.mxu1 %v11863_v9  ;;  %v11947_v5 = vld [vmem:[%s17907_s2 + $0x880] ss:$40 sps:$4 sm:$0xff]   ;;  %v11952_v9 = vld [vmem:[%s17907_s2 + $0xd2c] ss:$40 sps:$4 sm:$0xff]  }
 0x106   : > { %3850 = vmatpush2.bf16.msra.mxu0 %v11858_v49  ;;  %v11955_v49 = vld [vmem:[%s17907_s2 + $0x834] ss:$40 sps:$4 sm:$0xff]  }
 0x107   : > { %3893 = vmatpush2.bf16.msra.mxu1 %v11861_v51  ;;  %3851 = vmatprep.subr.bf16.mxu0 %v11866_v12  ;;  %v11950_v51 = vld [vmem:[%s17907_s2 + $0xd28] ss:$40 sps:$4 sm:$0xff]  }
 0x108   : > { %3894 = vmatprep.subr.bf16.mxu1 %v11869_v7  ;;  %v11953_v12 = vld [vmem:[%s17907_s2 + $0x830] ss:$40 sps:$4 sm:$0xff]   ;;  %v11958_v7 = vld [vmem:[%s17907_s2 + $0xcdc] ss:$40 sps:$4 sm:$0xff]  }
 0x10a   : > { %3852 = vmatpush2.bf16.msra.mxu0 %v11864_v8  ;;  %v11961_v8 = vld [vmem:[%s17907_s2 + $0x7e4] ss:$40 sps:$4 sm:$0xff]  }
 0x10b   : > { %3895 = vmatpush2.bf16.msra.mxu1 %v11867_v17  ;;  %3907 = vmatprep.subr.bf16.mxu0 %v11874_v13  ;;  %v11956_v17 = vld [vmem:[%s17907_s2 + $0xcd8] ss:$40 sps:$4 sm:$0xff]  }
 0x10c   : > { %3950 = vmatprep.subr.bf16.mxu1 %v11877_v26  ;;  %v11959_v13 = vld [vmem:[%s17907_s2 + $0x7e0] ss:$40 sps:$4 sm:$0xff]   ;;  %v11964_v26 = vld [vmem:[%s17907_s2 + $0xc8c] ss:$40 sps:$4 sm:$0xff]  }
 0x10d   : > { %3854 = vmatmul.mubr.bf16.vlgmr.msra.gmra.mxu0 %v14241_v14 }
 0x10e   : > { %3897 = vmatmul.mubr.bf16.vlgmr.msra.gmra.mxu1 %v14032_v10  ;;  %3908 = vmatpush1.bf16.msra.mxu0 %v11872_v16  ;;  %v11967_v16 = vld [vmem:[%s17907_s2 + $0x794] ss:$40 sps:$4 sm:$0xff]  }
 0x10f   : > { %3951 = vmatpush1.bf16.msra.mxu1 %v11875_v19  ;;  %3909 = vmatprep.subr.bf16.mxu0 %v11880_v20  ;;  %v11962_v19 = vld [vmem:[%s17907_s2 + $0xc88] ss:$40 sps:$4 sm:$0xff]  }
 0x110   : > { %3952 = vmatprep.subr.bf16.mxu1 %v11883_v15  ;;  %3939 = vmatprep.mubr.bf16.mxu0 %v14079_v22  ;;  %v11965_v20 = vld [vmem:[%s17907_s2 + $0x790] ss:$40 sps:$4 sm:$0xff]   ;;  %v11970_v15 = vld [vmem:[%s17907_s2 + $0xc44] ss:$40 sps:$4 sm:$0xff]  }
 0x111   : > { %3982 = vmatprep.mubr.bf16.mxu1 %v13874_v11 }
 0x112   : > { %3910 = vmatpush1.bf16.msra.mxu0 %v11878_v18  ;;  %v11973_v18 = vld [vmem:[%s17907_s2 + $0x74c] ss:$40 sps:$4 sm:$0xff]  }
 0x113   : > { %3953 = vmatpush1.bf16.msra.mxu1 %v11881_v4  ;;  %3911 = vmatprep.subr.bf16.mxu0 %v11886_v21  ;;  %v11968_v4 = vld [vmem:[%s17907_s2 + $0xc40] ss:$40 sps:$4 sm:$0xff]  }
 0x114   : > { %3954 = vmatprep.subr.bf16.mxu1 %v11889_v23  ;;  %v11971_v21 = vld [vmem:[%s17907_s2 + $0x748] ss:$40 sps:$4 sm:$0xff]   ;;  %v11976_v23 = vld [vmem:[%s17907_s2 + $0xbf4] ss:$40 sps:$4 sm:$0xff]  }
 0x116   : > { %3912 = vmatpush1.bf16.msra.mxu0 %v11884_v24  ;;  %v11979_v24 = vld [vmem:[%s17907_s2 + $0x6fc] ss:$40 sps:$4 sm:$0xff]  }
 0x117   : > { %3955 = vmatpush1.bf16.msra.mxu1 %v11887_v25  ;;  %3913 = vmatprep.subr.bf16.mxu0 %v11892_v6  ;;  %v11974_v25 = vld [vmem:[%s17907_s2 + $0xbf0] ss:$40 sps:$4 sm:$0xff]  }
 0x118   : > { %3956 = vmatprep.subr.bf16.mxu1 %v11895_v27  ;;  %v11977_v6 = vld [vmem:[%s17907_s2 + $0x6f8] ss:$40 sps:$4 sm:$0xff]   ;;  %v11982_v27 = vld [vmem:[%s17907_s2 + $0xba4] ss:$40 sps:$4 sm:$0xff]  }
 0x11a   : > { %3914 = vmatpush1.bf16.msra.mxu0 %v11890_v28  ;;  %v11985_v28 = vld [vmem:[%s17907_s2 + $0x6ac] ss:$40 sps:$4 sm:$0xff]  }
 0x11b   : > { %3957 = vmatpush1.bf16.msra.mxu1 %v11893_v29  ;;  %3915 = vmatprep.subr.bf16.mxu0 %v11898_v30  ;;  %v11980_v29 = vld [vmem:[%s17907_s2 + $0xba0] ss:$40 sps:$4 sm:$0xff]  }
 0x11c   : > { %3958 = vmatprep.subr.bf16.mxu1 %v11901_v31  ;;  %v11983_v30 = vld [vmem:[%s17907_s2 + $0x6a8] ss:$40 sps:$4 sm:$0xff]   ;;  %v11988_v31 = vld [vmem:[%s17907_s2 + $0xb54] ss:$40 sps:$4 sm:$0xff]  }
 0x11e   : > { %3916 = vmatpush1.bf16.msra.mxu0 %v11896_v32  ;;  %v11991_v32 = vld [vmem:[%s17907_s2 + $0x65c] ss:$40 sps:$4 sm:$0xff]  }
 0x11f   : > { %3959 = vmatpush1.bf16.msra.mxu1 %v11899_v33  ;;  %3917 = vmatprep.subr.bf16.mxu0 %v11904_v34  ;;  %v14479_v33 = vpop.f32.mrf.mxu0  ;;  %v11986_v34 = vld [vmem:[%s17907_s2 + $0xb50] ss:$40 sps:$4 sm:$0xff]  }
 0x120   : > { %3960 = vmatprep.subr.bf16.mxu1 %v11907_v35  ;;  %v11989_v35 = vld [vmem:[%s17907_s2 + $0x658] ss:$40 sps:$4 sm:$0xff]  }
 0x122   : > { %3918 = vmatpush1.bf16.msra.mxu0 %v11902_v36  ;;  %v14487_v36 = vpop.f32.mrf.mxu0 }
 0x123   : > { %3961 = vmatpush1.bf16.msra.mxu1 %v11905_v37  ;;  %3919 = vmatprep.subr.bf16.mxu0 %v11910_v38  ;;  %v11994_v37 = vld [vmem:[%s17907_s2 + $0xb04] ss:$40 sps:$4 sm:$0xff]  }
 0x124   : > { %3962 = vmatprep.subr.bf16.mxu1 %v11913_v39  ;;  %v11997_v38 = vld [vmem:[%s17907_s2 + $0x60c] ss:$40 sps:$4 sm:$0xff]   ;;  %v11992_v39 = vld [vmem:[%s17907_s2 + $0xb00] ss:$40 sps:$4 sm:$0xff]  }
 0x126   : > { %3920 = vmatpush1.bf16.msra.mxu0 %v11908_v40  ;;  %v11995_v40 = vld [vmem:[%s17907_s2 + $0x608] ss:$40 sps:$4 sm:$0xff]  }
 0x127   : > { %3963 = vmatpush1.bf16.msra.mxu1 %v11911_v41  ;;  %3921 = vmatprep.subr.bf16.mxu0 %v11916_v42  ;;  %v14501_v41 = vpop.f32.mrf.mxu0  ;;  %v12000_v42 = vld [vmem:[%s17907_s2 + $0xab4] ss:$40 sps:$4 sm:$0xff]  }
 0x128   : > { %3964 = vmatprep.subr.bf16.mxu1 %v11919_v43  ;;  %v12003_v43 = vld [vmem:[%s17907_s2 + $0x5bc] ss:$40 sps:$4 sm:$0xff]  }
 0x12a   : > { %3922 = vmatpush1.bf16.msra.mxu0 %v11914_v44  ;;  %v11998_v44 = vld [vmem:[%s17907_s2 + $0xab0] ss:$40 sps:$4 sm:$0xff]  }
 0x12b   : > { %3965 = vmatpush1.bf16.msra.mxu1 %v11917_v45  ;;  %3923 = vmatprep.subr.bf16.mxu0 %v11922_v46  ;;  %v12001_v45 = vld [vmem:[%s17907_s2 + $0x5b8] ss:$40 sps:$4 sm:$0xff]   ;;  %v14515_v46 = vpop.f32.mrf.mxu0 }
 0x12c   : > { %3966 = vmatprep.subr.bf16.mxu1 %v11925_v47  ;;  %v12006_v47 = vld [vmem:[%s17907_s2 + $0xa64] ss:$40 sps:$4 sm:$0xff]  }
 0x12e   : > { %3924 = vmatpush2.bf16.msra.mxu0 %v11920_v48  ;;  %v12009_v48 = vld [vmem:[%s17907_s2 + $0x56c] ss:$40 sps:$4 sm:$0xff]  }
 0x12f   : > { %3967 = vmatpush2.bf16.msra.mxu1 %v11923_v50  ;;  %3925 = vmatprep.subr.bf16.mxu0 %v11928_v52  ;;  %v14523_v50 = vpop.f32.mrf.mxu0  ;;  %v12004_v52 = vld [vmem:[%s17907_s2 + $0xa60] ss:$40 sps:$4 sm:$0xff]  }
 0x130   : > { %3968 = vmatprep.subr.bf16.mxu1 %v11931_v53  ;;  %v12007_v53 = vld [vmem:[%s17907_s2 + $0x568] ss:$40 sps:$4 sm:$0xff]  }
 0x132   : > { %3926 = vmatpush2.bf16.msra.mxu0 %v11926_v54  ;;  %v12012_v54 = vld [vmem:[%s17907_s2 + $0xa14] ss:$40 sps:$4 sm:$0xff]  }
 0x133   : > { %3969 = vmatpush2.bf16.msra.mxu1 %v11929_v55  ;;  %3927 = vmatprep.subr.bf16.mxu0 %v11934_v56  ;;  %v12015_v55 = vld [vmem:[%s17907_s2 + $0x51c] ss:$40 sps:$4 sm:$0xff]   ;;  %v14537_v56 = vpop.f32.mrf.mxu0 }
 0x134   : > { %3970 = vmatprep.subr.bf16.mxu1 %v11937_v57  ;;  %v12010_v57 = vld [vmem:[%s17907_s2 + $0xa10] ss:$40 sps:$4 sm:$0xff]  }
 0x136   : > { %3928 = vmatpush2.bf16.msra.mxu0 %v11932_v58  ;;  %v12013_v58 = vld [vmem:[%s17907_s2 + $0x518] ss:$40 sps:$4 sm:$0xff]  }
 0x137   : > { %3971 = vmatpush2.bf16.msra.mxu1 %v11935_v60  ;;  %3929 = vmatprep.subr.bf16.mxu0 %v11940_v61  ;;  %v12018_v60 = vld [vmem:[%s17907_s2 + $0xec4] ss:$40 sps:$4 sm:$0xff]  }
 0x138   : > { %3972 = vmatprep.subr.bf16.mxu1 %v11943_v62  ;;  %v12021_v61 = vld [vmem:[%s17907_s2 + $0x9cc] ss:$40 sps:$4 sm:$0xff]   ;;  %v14551_v62 = vpop.f32.mrf.mxu0 }
 0x13a   : > { %3930 = vmatpush2.bf16.msra.mxu0 %v11938_v63  ;;  %v12016_v63 = vld [vmem:[%s17907_s2 + $0xec0] ss:$40 sps:$4 sm:$0xff]  }
 0x13b   : > { %3973 = vmatpush2.bf16.msra.mxu1 %v11941_v0  ;;  %3931 = vmatprep.subr.bf16.mxu0 %v11946_v1  ;;  %v12019_v0 = vld [vmem:[%s17907_s2 + $0x9c8] ss:$40 sps:$4 sm:$0xff]   ;;  %v12024_v1 = vld [vmem:[%s17907_s2 + $0xe74] ss:$40 sps:$4 sm:$0xff]  }
 0x13c   : > { %3974 = vmatprep.subr.bf16.mxu1 %v11949_v2  ;;  %v12027_v2 = vld [vmem:[%s17907_s2 + $0x97c] ss:$40 sps:$4 sm:$0xff]  }
 0x13e   : > { %3932 = vmatpush2.bf16.msra.mxu0 %v11944_v3  ;;  %v14565_v3 = vpop.f32.mrf.mxu0 }
 0x13f   : > { %3975 = vmatpush2.bf16.msra.mxu1 %v11947_v5  ;;  %3933 = vmatprep.subr.bf16.mxu0 %v11952_v9  ;;  %v12022_v5 = vld [vmem:[%s17907_s2 + $0xe70] ss:$40 sps:$4 sm:$0xff]  }
 0x140   : > { %3976 = vmatprep.subr.bf16.mxu1 %v11955_v49  ;;  %v12025_v9 = vld [vmem:[%s17907_s2 + $0x978] ss:$40 sps:$4 sm:$0xff]  }
 0x142   : > { %3934 = vmatpush2.bf16.msra.mxu0 %v11950_v51  ;;  %v12030_v51 = vld [vmem:[%s17907_s2 + $0xe24] ss:$40 sps:$4 sm:$0xff]  }
 0x143   : > { %3977 = vmatpush2.bf16.msra.mxu1 %v11953_v12  ;;  %3935 = vmatprep.subr.bf16.mxu0 %v11958_v7  ;;  %v12033_v12 = vld [vmem:[%s17907_s2 + $0x92c] ss:$40 sps:$4 sm:$0xff]   ;;  %v12028_v7 = vld [vmem:[%s17907_s2 + $0xe20] ss:$40 sps:$4 sm:$0xff]  }
 0x144   : > { %3978 = vmatprep.subr.bf16.mxu1 %v11961_v8  ;;  %v12031_v8 = vld [vmem:[%s17907_s2 + $0x928] ss:$40 sps:$4 sm:$0xff]  }
 0x146   : > { %3936 = vmatpush2.bf16.msra.mxu0 %v11956_v17 }
 0x147   : > { %3979 = vmatpush2.bf16.msra.mxu1 %v11959_v13  ;;  %3937 = vmatprep.subr.bf16.mxu0 %v11964_v26  ;;  %v12036_v13 = vld [vmem:[%s17907_s2 + $0xdd4] ss:$40 sps:$4 sm:$0xff]  }
 0x148   : > { %3980 = vmatprep.subr.bf16.mxu1 %v11967_v16  ;;  %v12039_v26 = vld [vmem:[%s17907_s2 + $0x8dc] ss:$40 sps:$4 sm:$0xff]   ;;  %v12034_v16 = vld [vmem:[%s17907_s2 + $0xdd0] ss:$40 sps:$4 sm:$0xff]  }
 0x14a   : > { %3938 = vmatpush2.bf16.msra.mxu0 %v11962_v19  ;;  %v12037_v19 = vld [vmem:[%s17907_s2 + $0x8d8] ss:$40 sps:$4 sm:$0xff]  }
 0x14b   : > { %3981 = vmatpush2.bf16.msra.mxu1 %v11965_v20  ;;  %3993 = vmatprep.subr.bf16.mxu0 %v11970_v15  ;;  %v12042_v15 = vld [vmem:[%s17907_s2 + $0xd84] ss:$40 sps:$4 sm:$0xff]  }
 0x14c   : > { %4036 = vmatprep.subr.bf16.mxu1 %v11973_v18  ;;  %v12045_v18 = vld [vmem:[%s17907_s2 + $0x88c] ss:$40 sps:$4 sm:$0xff]  }
 0x14d   : > { %3940 = vmatmul.mubr.bf16.vlgmr.msra.gmra.mxu0 %v14241_v14  ;;  %v14573_v49 = vpop.f32.mrf.mxu0 }
 0x14e   : > { %3983 = vmatmul.mubr.bf16.vlgmr.msra.gmra.mxu1 %v14032_v10  ;;  %3994 = vmatpush1.bf16.msra.mxu0 %v11968_v4  ;;  %17910 = vst [vmem:[#allocation2_spill] sm:$0xff] %v14573_v49  ;;  %v12040_v4 = vld [vmem:[%s17907_s2 + $0xd80] ss:$40 sps:$4 sm:$0xff]  }
 0x14f   : > { %4037 = vmatpush1.bf16.msra.mxu1 %v11971_v21  ;;  %3995 = vmatprep.subr.bf16.mxu0 %v11976_v23  ;;  %v14587_v17 = vpop.f32.mrf.mxu0  ;;  %v12043_v21 = vld [vmem:[%s17907_s2 + $0x888] ss:$40 sps:$4 sm:$0xff]   ;;  %v12375_v49 = vld [vmem:[%s17907_s2 + $0x198] ss:$40 sps:$4 sm:$0xff]  }
 0x150   : > { %4038 = vmatprep.subr.bf16.mxu1 %v11979_v24  ;;  %4025 = vmatprep.mubr.bf16.mxu0 %v14079_v22  ;;  %v12048_v24 = vld [vmem:[%s17907_s2 + $0xd34] ss:$40 sps:$4 sm:$0xff]  }
 0x151   : > { %4068 = vmatprep.mubr.bf16.mxu1 %v13874_v11  ;;  %v14601_v20 = vpop.f32.mrf.mxu0 }
 0x152   : > { %3996 = vmatpush1.bf16.msra.mxu0 %v11974_v25  ;;  %17911 = vst [vmem:[#allocation3_spill] sm:$0xff] %v14601_v20  ;;  %v12051_v25 = vld [vmem:[%s17907_s2 + $0x83c] ss:$40 sps:$4 sm:$0xff]  }
 0x153   : > { %4039 = vmatpush1.bf16.msra.mxu1 %v11977_v6  ;;  %3997 = vmatprep.subr.bf16.mxu0 %v11982_v27  ;;  %v14615_v23 = vpop.f32.mrf.mxu0  ;;  %v12046_v6 = vld [vmem:[%s17907_s2 + $0xd30] ss:$40 sps:$4 sm:$0xff]  }
 0x154   : > { %4040 = vmatprep.subr.bf16.mxu1 %v11985_v28  ;;  %v12049_v27 = vld [vmem:[%s17907_s2 + $0x838] ss:$40 sps:$4 sm:$0xff]  }
 0x155   : > { %v14629_v28 = vpop.f32.mrf.mxu0 }
 0x156   : > { %3998 = vmatpush1.bf16.msra.mxu0 %v11980_v29  ;;  %17912 = vst [vmem:[#allocation4_spill] sm:$0xff] %v14629_v28  ;;  %v12054_v29 = vld [vmem:[%s17907_s2 + $0xce4] ss:$40 sps:$4 sm:$0xff]   ;;  %v12336_v28 = vld [vmem:[%s17907_s2 + $0x820] ss:$40 sps:$4 sm:$0xff]  }
 0x157   : > { %4041 = vmatpush1.bf16.msra.mxu1 %v11983_v30  ;;  %3999 = vmatprep.subr.bf16.mxu0 %v11988_v31  ;;  %v12057_v30 = vld [vmem:[%s17907_s2 + $0x7ec] ss:$40 sps:$4 sm:$0xff]   ;;  %v12052_v31 = vld [vmem:[%s17907_s2 + $0xce0] ss:$40 sps:$4 sm:$0xff]  }
 0x158   : > { %4042 = vmatprep.subr.bf16.mxu1 %v11991_v32  ;;  %v12055_v32 = vld [vmem:[%s17907_s2 + $0x7e8] ss:$40 sps:$4 sm:$0xff]  }
 0x15a   : > { %4000 = vmatpush1.bf16.msra.mxu0 %v11986_v34  ;;  %v14643_v34 = vpop.f32.mrf.mxu0 }
 0x15b   : > { %4043 = vmatpush1.bf16.msra.mxu1 %v11989_v35  ;;  %4001 = vmatprep.subr.bf16.mxu0 %v11994_v37  ;;  %v12060_v35 = vld [vmem:[%s17907_s2 + $0xc94] ss:$40 sps:$4 sm:$0xff]  }
 0x15c   : > { %4044 = vmatprep.subr.bf16.mxu1 %v11997_v38  ;;  %v12063_v37 = vld [vmem:[%s17907_s2 + $0x79c] ss:$40 sps:$4 sm:$0xff]   ;;  %v12058_v38 = vld [vmem:[%s17907_s2 + $0xc90] ss:$40 sps:$4 sm:$0xff]  }
 0x15e   : > { %4002 = vmatpush1.bf16.msra.mxu0 %v11992_v39  ;;  %v12061_v39 = vld [vmem:[%s17907_s2 + $0x798] ss:$40 sps:$4 sm:$0xff]  }
 0x15f   : > { %4045 = vmatpush1.bf16.msra.mxu1 %v11995_v40  ;;  %4003 = vmatprep.subr.bf16.mxu0 %v12000_v42  ;;  %v1531_v40 = vpop.f32.mrf.mxu0  ;;  %v12066_v42 = vld [vmem:[%s17907_s2 + $0xc4c] ss:$40 sps:$4 sm:$0xff]  }
 0x160   : > { %4046 = vmatprep.subr.bf16.mxu1 %v12003_v43  ;;  %v12069_v43 = vld [vmem:[%s17907_s2 + $0x754] ss:$40 sps:$4 sm:$0xff]  }
 0x162   : > { %4004 = vmatpush1.bf16.msra.mxu0 %v11998_v44  ;;  %v12064_v44 = vld [vmem:[%s17907_s2 + $0xc48] ss:$40 sps:$4 sm:$0xff]  }
 0x163   : > { %4047 = vmatpush1.bf16.msra.mxu1 %v12001_v45  ;;  %4005 = vmatprep.subr.bf16.mxu0 %v12006_v47  ;;  %v12067_v45 = vld [vmem:[%s17907_s2 + $0x750] ss:$40 sps:$4 sm:$0xff]   ;;  %v14669_v47 = vpop.f32.mrf.mxu1 }
 0x164   : > { %4048 = vmatprep.subr.bf16.mxu1 %v12009_v48  ;;  %17913 = vst [vmem:[#allocation5_spill] sm:$0xff] %v14669_v47  ;;  %v12072_v48 = vld [vmem:[%s17907_s2 + $0xbfc] ss:$40 sps:$4 sm:$0xff]  }
 0x166   : > { %4006 = vmatpush1.bf16.msra.mxu0 %v12004_v52  ;;  %v12075_v52 = vld [vmem:[%s17907_s2 + $0x704] ss:$40 sps:$4 sm:$0xff]  }
 0x167   : > { %4049 = vmatpush1.bf16.msra.mxu1 %v12007_v53  ;;  %4007 = vmatprep.subr.bf16.mxu0 %v12012_v54  ;;  %v14677_v53 = vpop.f32.mrf.mxu0  ;;  %v12070_v54 = vld [vmem:[%s17907_s2 + $0xbf8] ss:$40 sps:$4 sm:$0xff]  }
 0x168   : > { %4050 = vmatprep.subr.bf16.mxu1 %v12015_v55  ;;  %v12073_v55 = vld [vmem:[%s17907_s2 + $0x700] ss:$40 sps:$4 sm:$0xff]  }
 0x16a   : > { %4008 = vmatpush1.bf16.msra.mxu0 %v12010_v57  ;;  %v1466_v57 = vpop.f32.mrf.mxu1 }
 0x16b   : > { %4051 = vmatpush1.bf16.msra.mxu1 %v12013_v58  ;;  %4009 = vmatprep.subr.bf16.mxu0 %v12018_v60  ;;  %v12078_v60 = vld [vmem:[%s17907_s2 + $0xbac] ss:$40 sps:$4 sm:$0xff]  }
 0x16c   : > { %4052 = vmatprep.subr.bf16.mxu1 %v12021_v61  ;;  %v12081_v61 = vld [vmem:[%s17907_s2 + $0x6b4] ss:$40 sps:$4 sm:$0xff]  }
 0x16e   : > { %4010 = vmatpush2.bf16.msra.mxu0 %v12016_v63  ;;  %v1645_v63 = vmul.f32 %v1466_v57, %v1466_v57  ;;  %v12123_v57 = vld [vmem:[%s17907_s2 + $0x984] ss:$40 sps:$4 sm:$0xff]  }
 0x16f   : > { %4053 = vmatpush2.bf16.msra.mxu1 %v12019_v0  ;;  %4011 = vmatprep.subr.bf16.mxu0 %v12024_v1 }
 0x170   : > { %4054 = vmatprep.subr.bf16.mxu1 %v12027_v2 }
 0x172   : > { %4012 = vmatpush2.bf16.msra.mxu0 %v12022_v5  ;;  %v12076_v5 = vld [vmem:[%s17907_s2 + $0xba8] ss:$40 sps:$4 sm:$0xff]  }
 0x173   : > { %4055 = vmatpush2.bf16.msra.mxu1 %v12025_v9  ;;  %4013 = vmatprep.subr.bf16.mxu0 %v12030_v51  ;;  %v12079_v9 = vld [vmem:[%s17907_s2 + $0x6b0] ss:$40 sps:$4 sm:$0xff]  }
 0x174   : > { %4056 = vmatprep.subr.bf16.mxu1 %v12033_v12  ;;  %v12084_v12 = vld [vmem:[%s17907_s2 + $0xb5c] ss:$40 sps:$4 sm:$0xff]  }
 0x176   : > { %4014 = vmatpush2.bf16.msra.mxu0 %v12028_v7  ;;  %v12087_v7 = vld [vmem:[%s17907_s2 + $0x664] ss:$40 sps:$4 sm:$0xff]  }
 0x177   : > { %4057 = vmatpush2.bf16.msra.mxu1 %v12031_v8  ;;  %4015 = vmatprep.subr.bf16.mxu0 %v12036_v13 }
 0x178   : > { %4058 = vmatprep.subr.bf16.mxu1 %v12039_v26  ;;  %v12085_v26 = vld [vmem:[%s17907_s2 + $0x660] ss:$40 sps:$4 sm:$0xff]  }
 0x17a   : > { %4016 = vmatpush2.bf16.msra.mxu0 %v12034_v16 }
 0x17b   : > { %4059 = vmatpush2.bf16.msra.mxu1 %v12037_v19  ;;  %4017 = vmatprep.subr.bf16.mxu0 %v12042_v15  ;;  %v12090_v19 = vld [vmem:[%s17907_s2 + $0xb0c] ss:$40 sps:$4 sm:$0xff]  }
 0x17c   : > { %4060 = vmatprep.subr.bf16.mxu1 %v12045_v18  ;;  %v12093_v15 = vld [vmem:[%s17907_s2 + $0x614] ss:$40 sps:$4 sm:$0xff]  }
 0x17e   : > { %4018 = vmatpush2.bf16.msra.mxu0 %v12040_v4  ;;  %v12088_v4 = vld [vmem:[%s17907_s2 + $0xb08] ss:$40 sps:$4 sm:$0xff]  }
 0x17f   : > { %4061 = vmatpush2.bf16.msra.mxu1 %v12043_v21  ;;  %4019 = vmatprep.subr.bf16.mxu0 %v12048_v24  ;;  %v12091_v21 = vld [vmem:[%s17907_s2 + $0x610] ss:$40 sps:$4 sm:$0xff]  }
 0x180   : > { %4062 = vmatprep.subr.bf16.mxu1 %v12051_v25  ;;  %v12096_v25 = vld [vmem:[%s17907_s2 + $0xabc] ss:$40 sps:$4 sm:$0xff]  }
 0x182   : > { %4020 = vmatpush2.bf16.msra.mxu0 %v12046_v6  ;;  %v12099_v6 = vld [vmem:[%s17907_s2 + $0x5c4] ss:$40 sps:$4 sm:$0xff]  }
 0x183   : > { %4063 = vmatpush2.bf16.msra.mxu1 %v12049_v27  ;;  %4021 = vmatprep.subr.bf16.mxu0 %v12054_v29  ;;  %v1661_v27 = vmul.f32 %v1531_v40, %v1531_v40  ;;  %v12108_v40 = vld [vmem:[%s17907_s2 + $0xa1c] ss:$40 sps:$4 sm:$0xff]  }
 0x184   : > { %4064 = vmatprep.subr.bf16.mxu1 %v12057_v30 }
 0x186   : > { %4022 = vmatpush2.bf16.msra.mxu0 %v12052_v31  ;;  %v12094_v31 = vld [vmem:[%s17907_s2 + $0xab8] ss:$40 sps:$4 sm:$0xff]  }
 0x187   : > { %4065 = vmatpush2.bf16.msra.mxu1 %v12055_v32  ;;  %4023 = vmatprep.subr.bf16.mxu0 %v12060_v35  ;;  %v12097_v32 = vld [vmem:[%s17907_s2 + $0x5c0] ss:$40 sps:$4 sm:$0xff]   ;;  %v12102_v35 = vld [vmem:[%s17907_s2 + $0xa6c] ss:$40 sps:$4 sm:$0xff]  }
 0x188   : > { %4066 = vmatprep.subr.bf16.mxu1 %v12063_v37  ;;  %v12105_v37 = vld [vmem:[%s17907_s2 + $0x574] ss:$40 sps:$4 sm:$0xff]  }
 0x18a   : > { %4024 = vmatpush2.bf16.msra.mxu0 %v12058_v38  ;;  %v12100_v38 = vld [vmem:[%s17907_s2 + $0xa68] ss:$40 sps:$4 sm:$0xff]  }
 0x18b   : > { %4067 = vmatpush2.bf16.msra.mxu1 %v12061_v39  ;;  %4079 = vmatprep.subr.bf16.mxu0 %v12066_v42  ;;  %v12103_v39 = vld [vmem:[%s17907_s2 + $0x570] ss:$40 sps:$4 sm:$0xff]   ;;  %v12111_v42 = vld [vmem:[%s17907_s2 + $0x524] ss:$40 sps:$4 sm:$0xff]  }
 0x18c   : > { %4122 = vmatprep.subr.bf16.mxu1 %v12069_v43  ;;  %v12106_v43 = vld [vmem:[%s17907_s2 + $0xa18] ss:$40 sps:$4 sm:$0xff]  }
 0x18d   : > { %v1623_v58 = vpop.f32.mrf.mxu0  ;;  %4026 = vmatmul.mubr.bf16.vlgmr.msra.gmra.mxu0 %v14241_v14 }
 0x18e   : > { %4069 = vmatmul.mubr.bf16.vlgmr.msra.gmra.mxu1 %v14032_v10  ;;  %v1665_v0 = vmul.f32 %v1623_v58, %v1623_v58  ;;  %4080 = vmatpush1.bf16.msra.mxu0 %v12064_v44  ;;  %v12109_v44 = vld [vmem:[%s17907_s2 + $0x520] ss:$40 sps:$4 sm:$0xff]  }
 0x18f   : > { %4123 = vmatpush1.bf16.msra.mxu1 %v12067_v45  ;;  %v14693_v1 = vpop.f32.mrf.mxu0  ;;  %4081 = vmatprep.subr.bf16.mxu0 %v12072_v48  ;;  %v12114_v45 = vld [vmem:[%s17907_s2 + $0xecc] ss:$40 sps:$4 sm:$0xff]   ;;  %v12118_v58 = vld [vmem:[%s17907_s2 + $0xe78] ss:$40 sps:$4 sm:$0xff]  }
 0x190   : > { %17914 = vst [vmem:[#allocation6_spill] sm:$0xff] %v14693_v1  ;;  %4124 = vmatprep.subr.bf16.mxu1 %v12075_v52  ;;  %v14695_v2 = vadd.f32 %v1665_v0, %v1645_v63  ;;  %4111 = vmatprep.mubr.bf16.mxu0 %v14079_v22  ;;  %v12117_v48 = vld [vmem:[%s17907_s2 + $0x9d4] ss:$40 sps:$4 sm:$0xff]   ;;  %v12112_v52 = vld [vmem:[%s17907_s2 + $0xec8] ss:$40 sps:$4 sm:$0xff]  }
 0x191   : > { %4154 = vmatprep.mubr.bf16.mxu1 %v13874_v11  ;;  %v14705_v51 = vpop.f32.mrf.mxu0  ;;  %v12082_v11 = vld [vmem:[%s17907_s2 + $0xb58] ss:$40 sps:$4 sm:$0xff]   ;;  %v12129_v63 = vld [vmem:[%s17907_s2 + $0x934] ss:$40 sps:$4 sm:$0xff]   ;;  %v12124_v0 = vld [vmem:[%s17907_s2 + $0xe28] ss:$40 sps:$4 sm:$0xff]  }
 0x192   : > { %17915 = vst [vmem:[#allocation7_spill] sm:$0xff] %v14695_v2  ;;  %17916 = vst [vmem:[#allocation8_spill] sm:$0xff] %v14705_v51  ;;  %4082 = vmatpush1.bf16.msra.mxu0 %v12070_v54  ;;  %v12115_v54 = vld [vmem:[%s17907_s2 + $0x9d0] ss:$40 sps:$4 sm:$0xff]   ;;  %v12278_v2 = vld [vmem:[%s17907_s2 + $0x644] ss:$40 sps:$4 sm:$0xff]  }
 0x193   : > { %4125 = vmatpush1.bf16.msra.mxu1 %v12073_v55  ;;  %v14713_v8 = vpop.f32.mrf.mxu0  ;;  %4083 = vmatprep.subr.bf16.mxu0 %v12078_v60  ;;  %v12120_v55 = vld [vmem:[%s17907_s2 + $0xe7c] ss:$40 sps:$4 sm:$0xff]   ;;  %v12121_v60 = vld [vmem:[%s17907_s2 + $0x980] ss:$40 sps:$4 sm:$0xff]  }
 0x194   : > { %17917 = vst [vmem:[#allocation9_spill] sm:$0xff] %v14713_v8  ;;  %4126 = vmatprep.subr.bf16.mxu1 %v12081_v61  ;;  %v12126_v61 = vld [vmem:[%s17907_s2 + $0xe2c] ss:$40 sps:$4 sm:$0xff]   ;;  %v12372_v8 = vld [vmem:[%s17907_s2 + $0x1090] ss:$40 sps:$4 sm:$0xff]  }
 0x195   : > { %v14715_v13 = vpop.f32.mrf.mxu0 }
 0x196   : > { %17918 = vst [vmem:[#allocation10_spill] sm:$0xff] %v14715_v13  ;;  %4084 = vmatpush1.bf16.msra.mxu0 %v12076_v5  ;;  %v12127_v5 = vld [vmem:[%s17907_s2 + $0x930] ss:$40 sps:$4 sm:$0xff]  }
 0x197   : > { %4127 = vmatpush1.bf16.msra.mxu1 %v12079_v9  ;;  %v14723_v16 = vpop.f32.mrf.mxu0  ;;  %4085 = vmatprep.subr.bf16.mxu0 %v12084_v12  ;;  %v12132_v9 = vld [vmem:[%s17907_s2 + $0xddc] ss:$40 sps:$4 sm:$0xff]  }
 0x198   : > { %17919 = vst [vmem:[#allocation11_spill] sm:$0xff] %v14723_v16  ;;  %4128 = vmatprep.subr.bf16.mxu1 %v12087_v7  ;;  %v12135_v12 = vld [vmem:[%s17907_s2 + $0x8e4] ss:$40 sps:$4 sm:$0xff]  }
 0x199   : > { %v14731_v18 = vpop.f32.mrf.mxu0  ;;  %v4278_v7 = vld [vmem:[%s17906_s1 + $0xc0] sm:$0x11] }
 0x19a   : > { %17920 = vst [vmem:[#allocation12_spill] sm:$0xff] %v14731_v18  ;;  %4086 = vmatpush1.bf16.msra.mxu0 %v12082_v11  ;;  %v12130_v11 = vld [vmem:[%s17907_s2 + $0xdd8] ss:$40 sps:$4 sm:$0xff]  }
 0x19b   : > { %4129 = vmatpush1.bf16.msra.mxu1 %v12085_v26  ;;  %v1639_v24 = vpop.f32.mrf.mxu0  ;;  %4087 = vmatprep.subr.bf16.mxu0 %v12090_v19  ;;  %v12133_v26 = vld [vmem:[%s17907_s2 + $0x8e0] ss:$40 sps:$4 sm:$0xff]   ;;  %v12138_v19 = vld [vmem:[%s17907_s2 + $0xd8c] ss:$40 sps:$4 sm:$0xff]  }
 0x19c   : > { %4130 = vmatprep.subr.bf16.mxu1 %v12093_v15  ;;  %v1681_v29 = vmul.f32 %v1639_v24, %v1639_v24  ;;  %v12141_v15 = vld [vmem:[%s17907_s2 + $0x894] ss:$40 sps:$4 sm:$0xff]   ;;  %v4390_v24 = vld [vmem:[%s17906_s1 + $0x100] sm:$0x11] }
 0x19e   : > { %v14745_v30 = vadd.f32 %v1681_v29, %v1661_v27  ;;  %4088 = vmatpush1.bf16.msra.mxu0 %v12088_v4  ;;  %v10575_v4 = vcombine.low %v4278_v7, %v4278_v7  ;;  %v10587_v27 = vcombine.low %v4390_v24, %v4390_v24  ;;  %v10588_v29 = vcombine.high %v4390_v24, %v4390_v24  ;;  %v12160_v24 = vld [vmem:[%s17907_s2 + $0xc50] ss:$40 sps:$4 sm:$0xff]  }
 0x19f   : > { %4131 = vmatpush1.bf16.msra.mxu1 %v12091_v21  ;;  %4089 = vmatprep.subr.bf16.mxu0 %v12096_v25  ;;  %v10576_v21 = vcombine.high %v4278_v7, %v4278_v7  ;;  %v12136_v25 = vld [vmem:[%s17907_s2 + $0xd88] ss:$40 sps:$4 sm:$0xff]  }
 0x1a0   : > { %17921 = vst [vmem:[#allocation13_spill] sm:$0xff] %v14745_v30  ;;  %4132 = vmatprep.subr.bf16.mxu1 %v12099_v6  ;;  %v12139_v6 = vld [vmem:[%s17907_s2 + $0x890] ss:$40 sps:$4 sm:$0xff]  }
 0x1a2   : > { %4090 = vmatpush1.bf16.msra.mxu0 %v12094_v31  ;;  %v12144_v31 = vld [vmem:[%s17907_s2 + $0xd3c] ss:$40 sps:$4 sm:$0xff]  }
 0x1a3   : > { %4133 = vmatpush1.bf16.msra.mxu1 %v12097_v32  ;;  %4091 = vmatprep.subr.bf16.mxu0 %v12102_v35  ;;  %v12147_v32 = vld [vmem:[%s17907_s2 + $0x844] ss:$40 sps:$4 sm:$0xff]   ;;  %v4303_v35 = vpack.i.b16 %v10575_v4, %v10575_v4  ;;  %v12162_v4 = vld [vmem:[%s17907_s2 + $0xc54] ss:$40 sps:$4 sm:$0xff]  }
 0x1a4   : > { %4134 = vmatprep.subr.bf16.mxu1 %v12105_v37  ;;  %v4310_v37 = vpack.i.b16 %v10576_v21, %v10576_v21  ;;  %v12165_v21 = vld [vmem:[%s17907_s2 + $0x234] ss:$40 sps:$4 sm:$0xff]  }
 0x1a6   : > { %4092 = vmatpush1.bf16.msra.mxu0 %v12100_v38  ;;  %v4415_v38 = vpack.i.b16 %v10587_v27, %v10587_v27 }
 0x1a7   : > { %4135 = vmatpush1.bf16.msra.mxu1 %v12103_v39  ;;  %4093 = vmatprep.subr.bf16.mxu0 %v12108_v40  ;;  %v4422_v39 = vpack.i.b16 %v10588_v29, %v10588_v29  ;;  %v12142_v40 = vld [vmem:[%s17907_s2 + $0xd38] ss:$40 sps:$4 sm:$0xff]   ;;  %v12168_v29 = vld [vmem:[%s17907_s2 + $0xc04] ss:$40 sps:$4 sm:$0xff]  }
 0x1a8   : > { %4136 = vmatprep.subr.bf16.mxu1 %v12111_v42  ;;  %v12145_v42 = vld [vmem:[%s17907_s2 + $0x840] ss:$40 sps:$4 sm:$0xff]  }
 0x1aa   : > { %4094 = vmatpush1.bf16.msra.mxu0 %v12106_v43  ;;  %v4420_v43 = vrot.slane %v4415_v38, %v13530_v59 }
 0x1ab   : > { %4137 = vmatpush1.bf16.msra.mxu1 %v12109_v44  ;;  %4095 = vmatprep.subr.bf16.mxu0 %v12114_v45  ;;  %v4427_v44 = vrot.slane %v4422_v39, %v13530_v59  ;;  %v12150_v45 = vld [vmem:[%s17907_s2 + $0xcec] ss:$40 sps:$4 sm:$0xff]  }
 0x1ac   : > { %4138 = vmatprep.subr.bf16.mxu1 %v12117_v48  ;;  %v12153_v48 = vld [vmem:[%s17907_s2 + $0x7f4] ss:$40 sps:$4 sm:$0xff]  }
 0x1ad   : > { %v12174_v39 = vld [vmem:[%s17907_s2 + $0xbb4] ss:$40 sps:$4 sm:$0xff]  }
 0x1ae   : > { %4096 = vmatpush2.bf16.msra.mxu0 %v12112_v52  ;;  %v240_v52 = vld [vmem:[%s13499_s22] sm:$0xff] }
 0x1af   : > { %4139 = vmatpush2.bf16.msra.mxu1 %v12115_v54  ;;  %4097 = vmatprep.subr.bf16.mxu0 %v12120_v55  ;;  %v4308_v54 = vrot.slane %v4303_v35, %v13530_v59  ;;  %v4315_v55 = vrot.slane %v4310_v37, %v13530_v59  ;;  %v12166_v35 = vld [vmem:[%s17907_s2 + $0xc00] ss:$40 sps:$4 sm:$0xff]  }
 0x1b0   : > { %4140 = vmatprep.subr.bf16.mxu1 %v12123_v57  ;;  %v10595_v57 = vcombine.low %v4420_v43, %v4427_v44  ;;  %v12169_v37 = vld [vmem:[%s17907_s2 + $0x1e0] ss:$40 sps:$4 sm:$0xff]   ;;  %v12172_v43 = vld [vmem:[%s17907_s2 + $0xbb0] ss:$40 sps:$4 sm:$0xff]   ;;  %v12180_v44 = vld [vmem:[%s17907_s2 + $0xb64] ss:$40 sps:$4 sm:$0xff]  }
 0x1b2   : > { %4098 = vmatpush2.bf16.msra.mxu0 %v12118_v58  ;;  %v244_v58 = vld [vmem:[%s13499_s22 + $0x20] sm:$0xff] }
 0x1b3   : > { %4141 = vmatpush2.bf16.msra.mxu1 %v12121_v60  ;;  %4099 = vmatprep.subr.bf16.mxu0 %v12126_v61  ;;  %v12148_v60 = vld [vmem:[%s17907_s2 + $0xce8] ss:$40 sps:$4 sm:$0xff]  }
 0x1b4   : > { %4142 = vmatprep.subr.bf16.mxu1 %v12129_v63  ;;  %v12151_v61 = vld [vmem:[%s17907_s2 + $0x7f0] ss:$40 sps:$4 sm:$0xff]   ;;  %v4494_v63 = vmul.bf16 %v10595_v57, %v240_v52 }
 0x1b6   : > { %4100 = vmatpush2.bf16.msra.mxu0 %v12124_v0  ;;  %v4498_v0 = vmul.bf16 %v10595_v57, %v244_v58 }
 0x1b7   : > { %4143 = vmatpush2.bf16.msra.mxu1 %v12127_v5  ;;  %4101 = vmatprep.subr.bf16.mxu0 %v12132_v9  ;;  %v12156_v5 = vld [vmem:[%s17907_s2 + $0xc9c] ss:$40 sps:$4 sm:$0xff]  }
 0x1b8   : > { %4144 = vmatprep.subr.bf16.mxu1 %v12135_v12  ;;  %v12159_v9 = vld [vmem:[%s17907_s2 + $0x7a4] ss:$40 sps:$4 sm:$0xff]   ;;  %v10583_v12 = vcombine.low %v4308_v54, %v4315_v55  ;;  %v14879_v7 = vcombine.high %v4494_v63, %v4498_v0  ;;  %v12186_v54 = vld [vmem:[%s17907_s2 + $0xb14] ss:$40 sps:$4 sm:$0xff]  }
 0x1b9   : > { %v12189_v55 = vld [vmem:[%s17907_s2 + $0xf4] ss:$40 sps:$4 sm:$0xff]  }
 0x1ba   : > { %4102 = vmatpush2.bf16.msra.mxu0 %v12130_v11  ;;  %v14881_v11 = vcombine.low %v4494_v63, %v4498_v0  ;;  %v14905_v27 = vmul.bf16 %v10583_v12, %v244_v58  ;;  %v12184_v58 = vld [vmem:[%s17907_s2 + $0xb10] ss:$40 sps:$4 sm:$0xff]   ;;  %v12195_v63 = vld [vmem:[%s17907_s2 + $0xa4] ss:$40 sps:$4 sm:$0xff]  }
 0x1bb   : > { %4145 = vmatpush2.bf16.msra.mxu1 %v12133_v26  ;;  %4103 = vmatprep.subr.bf16.mxu0 %v12138_v19  ;;  %v12154_v26 = vld [vmem:[%s17907_s2 + $0xc98] ss:$40 sps:$4 sm:$0xff]  }
 0x1bc   : > { %4146 = vmatprep.subr.bf16.mxu1 %v12141_v15  ;;  %v12157_v19 = vld [vmem:[%s17907_s2 + $0x7a0] ss:$40 sps:$4 sm:$0xff]   ;;  %v14889_v15 = vpop.f32.mrf.mxu1 }
 0x1bd   : > { %17922 = vst [vmem:[#allocation14_spill] sm:$0xff] %v14889_v15 }
 0x1be   : > { %4104 = vmatpush2.bf16.msra.mxu0 %v12136_v25  ;;  %v12163_v25 = vld [vmem:[%s17907_s2 + $0x230] ss:$40 sps:$4 sm:$0xff]  }
 0x1bf   : > { %4147 = vmatpush2.bf16.msra.mxu1 %v12139_v6  ;;  %4105 = vmatprep.subr.bf16.mxu0 %v12144_v31  ;;  %v14903_v6 = vmul.bf16 %v10583_v12, %v240_v52  ;;  %v12171_v31 = vld [vmem:[%s17907_s2 + $0x1e4] ss:$40 sps:$4 sm:$0xff]   ;;  %v12181_v52 = vld [vmem:[%s17907_s2 + $0x140] ss:$40 sps:$4 sm:$0xff]   ;;  %v12198_v12 = vld [vmem:[%s17907_s2 + $0xa74] ss:$40 sps:$4 sm:$0xff]  }
 0x1c0   : > { %4148 = vmatprep.subr.bf16.mxu1 %v12147_v32  ;;  %v14913_v32 = vpop.f32.mrf.mxu1 }
 0x1c1   : > { %17923 = vst [vmem:[#allocation15_spill] sm:$0xff] %v14913_v32  ;;  %v14923_v38 = vcombine.high %v14903_v6, %v14905_v27  ;;  %v12279_v32 = vld [vmem:[%s17907_s2 + $0xb40] ss:$40 sps:$4 sm:$0xff]  }
 0x1c2   : > { %4106 = vmatpush2.bf16.msra.mxu0 %v12142_v40  ;;  %v12177_v40 = vld [vmem:[%s17907_s2 + $0x194] ss:$40 sps:$4 sm:$0xff]  }
 0x1c3   : > { %4149 = vmatpush2.bf16.msra.mxu1 %v12145_v42  ;;  %4107 = vmatprep.subr.bf16.mxu0 %v12150_v45  ;;  %v14933_v42 = vpop.f32.mrf.mxu1  ;;  %v12183_v45 = vld [vmem:[%s17907_s2 + $0x144] ss:$40 sps:$4 sm:$0xff]  }
 0x1c4   : > { %4150 = vmatprep.subr.bf16.mxu1 %v12153_v48  ;;  %17924 = vst [vmem:[#allocation16_spill] sm:$0xff] %v14933_v42  ;;  %v12269_v42 = vld [vmem:[%s17907_s2 + $0xbe4] ss:$40 sps:$4 sm:$0xff]  }
 0x1c5   : > { %v14949_v48 = vpop.f32.mrf.mxu1 }
 0x1c6   : > { %4108 = vmatpush2.bf16.msra.mxu0 %v12148_v60  ;;  %17925 = vst [vmem:[#allocation17_spill] sm:$0xff] %v14949_v48  ;;  %v12187_v60 = vld [vmem:[%s17907_s2 + $0xf0] ss:$40 sps:$4 sm:$0xff]   ;;  %v12266_v48 = vld [vmem:[%s17907_s2 + $0x6e4] ss:$40 sps:$4 sm:$0xff]  }
 0x1c7   : > { %4151 = vmatpush2.bf16.msra.mxu1 %v12151_v61  ;;  %4109 = vmatprep.subr.bf16.mxu0 %v12156_v5  ;;  %v14963_v57 = vpop.f32.mrf.mxu1  ;;  %v12192_v61 = vld [vmem:[%s17907_s2 + $0xac4] ss:$40 sps:$4 sm:$0xff]   ;;  %v12190_v5 = vld [vmem:[%s17907_s2 + $0xac0] ss:$40 sps:$4 sm:$0xff]  }
 0x1c8   : > { %4152 = vmatprep.subr.bf16.mxu1 %v12159_v9  ;;  %17926 = vst [vmem:[#allocation18_spill] sm:$0xff] %v14963_v57  ;;  %v12193_v9 = vld [vmem:[%s17907_s2 + $0xa0] ss:$40 sps:$4 sm:$0xff]  }
 0x1c9   : > { %v14977_v0 = vpop.f32.mrf.mxu1 }
 0x1ca   : > { %4110 = vmatpush2.bf16.msra.mxu0 %v12154_v26  ;;  %17927 = vst [vmem:[#allocation19_spill] sm:$0xff] %v14977_v0  ;;  %v12201_v26 = vld [vmem:[%s17907_s2 + $0x54] ss:$40 sps:$4 sm:$0xff]  }
 0x1cb   : > { %4153 = vmatpush2.bf16.msra.mxu1 %v12157_v19  ;;  %4165 = vmatprep.subr.bf16.mxu0 %v12162_v4  ;;  %v14991_v19 = vpop.f32.mrf.mxu1  ;;  %v12196_v4 = vld [vmem:[%s17907_s2 + $0xa70] ss:$40 sps:$4 sm:$0xff]  }
 0x1cc   : > { %8422 = vmatprep.subr.bf16.mxu1 %v12165_v21  ;;  %v12199_v21 = vld [vmem:[%s17907_s2 + $0x50] ss:$40 sps:$4 sm:$0xff]  }
 0x1cd   : > { %4112 = vmatmul.mubr.bf16.vlgmr.msra.gmra.mxu0 %v14241_v14 }
 0x1ce   : > { %4155 = vmatmul.mubr.bf16.vlgmr.msra.gmra.mxu1 %v14032_v10  ;;  %4166 = vmatpush1.bf16.msra.mxu0 %v12160_v24  ;;  %v12175_v10 = vld [vmem:[%s17907_s2 + $0x190] ss:$40 sps:$4 sm:$0xff]   ;;  %v12204_v24 = vld [vmem:[%s17907_s2 + $0xa24] ss:$40 sps:$4 sm:$0xff]  }
 0x1cf   : > { %8423 = vmatpush1.bf16.msra.mxu1 %v12163_v25  ;;  %4167 = vmatprep.subr.bf16.mxu0 %v12168_v29  ;;  %v12207_v25 = vld [vmem:[%s17907_s2 + $0x4] ss:$40 sps:$4 sm:$0xff]   ;;  %v15005_v29 = vpop.f32.mrf.mxu1 }
 0x1d0   : > { %8424 = vmatprep.subr.bf16.mxu1 %v12171_v31  ;;  %4197 = vmatprep.mubr.bf16.mxu0 %v14079_v22  ;;  %v12178_v22 = vld [vmem:[%s17907_s2 + $0xb60] ss:$40 sps:$4 sm:$0xff]   ;;  %17928 = vst [vmem:[#allocation20_spill] sm:$0xff] %v15005_v29 }
 0x1d1   : > { %8454 = vmatprep.mubr.bf16.mxu1 %v14923_v38  ;;  %v12202_v31 = vld [vmem:[%s17907_s2 + $0xa20] ss:$40 sps:$4 sm:$0xff]  }
 0x1d2   : > { %4168 = vmatpush1.bf16.msra.mxu0 %v12166_v35  ;;  %v12205_v35 = vld [vmem:[%s17907_s2] ss:$40 sps:$4 sm:$0xff]  }
 0x1d3   : > { %8425 = vmatpush1.bf16.msra.mxu1 %v12169_v37  ;;  %4169 = vmatprep.subr.bf16.mxu0 %v12174_v39  ;;  %v12210_v37 = vld [vmem:[%s17907_s2 + $0xed4] ss:$40 sps:$4 sm:$0xff]  }
 0x1d4   : > { %8426 = vmatprep.subr.bf16.mxu1 %v12177_v40  ;;  %v12213_v39 = vld [vmem:[%s17907_s2 + $0x4b4] ss:$40 sps:$4 sm:$0xff]   ;;  %v15019_v40 = vpop.f32.mrf.mxu1 }
 0x1d6   : > { %4170 = vmatpush1.bf16.msra.mxu0 %v12172_v43  ;;  %v12208_v43 = vld [vmem:[%s17907_s2 + $0xed0] ss:$40 sps:$4 sm:$0xff]  }
 0x1d7   : > { %8427 = vmatpush1.bf16.msra.mxu1 %v12175_v10  ;;  %4171 = vmatprep.subr.bf16.mxu0 %v12180_v44  ;;  %v12211_v10 = vld [vmem:[%s17907_s2 + $0x4b0] ss:$40 sps:$4 sm:$0xff]   ;;  %v15027_v44 = vpop.f32.mrf.mxu1 }
 0x1d8   : > { %8428 = vmatprep.subr.bf16.mxu1 %v12183_v45  ;;  %17929 = vst [vmem:[#allocation21_spill] sm:$0xff] %v15027_v44  ;;  %v12216_v45 = vld [vmem:[%s17907_s2 + $0xe84] ss:$40 sps:$4 sm:$0xff]  }
 0x1d9   : > { %v12281_v44 = vld [vmem:[%s17907_s2 + $0xb44] ss:$40 sps:$4 sm:$0xff]  }
 0x1da   : > { %4172 = vmatpush1.bf16.msra.mxu0 %v12178_v22  ;;  %v12219_v22 = vld [vmem:[%s17907_s2 + $0x464] ss:$40 sps:$4 sm:$0xff]  }
 0x1db   : > { %8429 = vmatpush1.bf16.msra.mxu1 %v12181_v52  ;;  %4173 = vmatprep.subr.bf16.mxu0 %v12186_v54  ;;  %v12214_v52 = vld [vmem:[%s17907_s2 + $0xe80] ss:$40 sps:$4 sm:$0xff]  }
 0x1dc   : > { %8430 = vmatprep.subr.bf16.mxu1 %v12189_v55  ;;  %v12217_v54 = vld [vmem:[%s17907_s2 + $0x460] ss:$40 sps:$4 sm:$0xff]   ;;  %v15041_v55 = vpop.f32.mrf.mxu1 }
 0x1de   : > { %4174 = vmatpush1.bf16.msra.mxu0 %v12184_v58  ;;  %v12222_v58 = vld [vmem:[%s17907_s2 + $0xe34] ss:$40 sps:$4 sm:$0xff]  }
 0x1df   : > { %8431 = vmatpush1.bf16.msra.mxu1 %v12187_v60  ;;  %4175 = vmatprep.subr.bf16.mxu0 %v12192_v61  ;;  %v12225_v60 = vld [vmem:[%s17907_s2 + $0x414] ss:$40 sps:$4 sm:$0xff]   ;;  %v12220_v61 = vld [vmem:[%s17907_s2 + $0xe30] ss:$40 sps:$4 sm:$0xff]  }
 0x1e0   : > { %8432 = vmatprep.subr.bf16.mxu1 %v12195_v63  ;;  %v12223_v63 = vld [vmem:[%s17907_s2 + $0x410] ss:$40 sps:$4 sm:$0xff]  }
 0x1e2   : > { %4176 = vmatpush1.bf16.msra.mxu0 %v12190_v5  ;;  %v15055_v5 = vpop.f32.mrf.mxu1 }
 0x1e3   : > { %8433 = vmatpush1.bf16.msra.mxu1 %v12193_v9  ;;  %4177 = vmatprep.subr.bf16.mxu0 %v12198_v12  ;;  %17930 = vst [vmem:[#allocation22_spill] sm:$0xff] %v15055_v5  ;;  %v12228_v9 = vld [vmem:[%s17907_s2 + $0xde4] ss:$40 sps:$4 sm:$0xff]   ;;  %v15171_v5 = vcombine.low %v14903_v6, %v14905_v27  ;;  %v12267_v6 = vld [vmem:[%s17907_s2 + $0xbe0] ss:$40 sps:$4 sm:$0xff]  }
 0x1e4   : > { %8434 = vmatprep.subr.bf16.mxu1 %v12201_v26  ;;  %v12231_v12 = vld [vmem:[%s17907_s2 + $0x3c4] ss:$40 sps:$4 sm:$0xff]  }
 0x1e5   : > { %v4279_v26 = vld [vmem:[%s17906_s1 + $0xc8] sm:$0x11] }
 0x1e6   : > { %4178 = vmatpush1.bf16.msra.mxu0 %v12196_v4  ;;  %v12226_v4 = vld [vmem:[%s17907_s2 + $0xde0] ss:$40 sps:$4 sm:$0xff]  }
 0x1e7   : > { %8435 = vmatpush1.bf16.msra.mxu1 %v12199_v21  ;;  %4179 = vmatprep.subr.bf16.mxu0 %v12204_v24  ;;  %v12229_v21 = vld [vmem:[%s17907_s2 + $0x3c0] ss:$40 sps:$4 sm:$0xff]   ;;  %v15072_v24 = vpop.f32.mrf.mxu1 }
 0x1e8   : > { %8436 = vmatprep.subr.bf16.mxu1 %v12207_v25  ;;  %v12234_v25 = vld [vmem:[%s17907_s2 + $0xd94] ss:$40 sps:$4 sm:$0xff]  }
 0x1ea   : > { %4180 = vmatpush1.bf16.msra.mxu0 %v12202_v31  ;;  %v12237_v31 = vld [vmem:[%s17907_s2 + $0x374] ss:$40 sps:$4 sm:$0xff]  }
 0x1eb   : > { %8437 = vmatpush1.bf16.msra.mxu1 %v12205_v35  ;;  %4181 = vmatprep.subr.bf16.mxu0 %v12210_v37  ;;  %v12232_v35 = vld [vmem:[%s17907_s2 + $0xd90] ss:$40 sps:$4 sm:$0xff]   ;;  %v10577_v37 = vcombine.low %v4279_v26, %v4279_v26 }
 0x1ec   : > { %8438 = vmatprep.subr.bf16.mxu1 %v12213_v39  ;;  %v10578_v39 = vcombine.high %v4279_v26, %v4279_v26  ;;  %v12246_v26 = vld [vmem:[%s17907_s2 + $0xcf4] ss:$40 sps:$4 sm:$0xff]  }
 0x1ee   : > { %4182 = vmatpush2.bf16.msra.mxu0 %v12208_v43  ;;  %v15083_v43 = vpop.f32.mrf.mxu1 }
 0x1ef   : > { %8439 = vmatpush2.bf16.msra.mxu1 %v12211_v10  ;;  %4183 = vmatprep.subr.bf16.mxu0 %v12216_v45  ;;  %17931 = vst [vmem:[#allocation23_spill] sm:$0xff] %v15083_v43  ;;  %v12235_v10 = vld [vmem:[%s17907_s2 + $0x370] ss:$40 sps:$4 sm:$0xff]   ;;  %v12240_v45 = vld [vmem:[%s17907_s2 + $0xd44] ss:$40 sps:$4 sm:$0xff]  }
 0x1f0   : > { %8440 = vmatprep.subr.bf16.mxu1 %v12219_v22  ;;  %v15091_v22 = vpop.f32.mrf.mxu1 }
 0x1f2   : > { %4184 = vmatpush2.bf16.msra.mxu0 %v12214_v52  ;;  %v12243_v52 = vld [vmem:[%s17907_s2 + $0x324] ss:$40 sps:$4 sm:$0xff]  }
 0x1f3   : > { %8441 = vmatpush2.bf16.msra.mxu1 %v12217_v54  ;;  %4185 = vmatprep.subr.bf16.mxu0 %v12222_v58  ;;  %v4280_v54 = vld [vmem:[%s17906_s1 + $0xd0] sm:$0x11]  ;;  %v4317_v58 = vpack.i.b16 %v10577_v37, %v10577_v37 }
 0x1f4   : > { %8442 = vmatprep.subr.bf16.mxu1 %v12225_v60  ;;  %v4324_v60 = vpack.i.b16 %v10578_v39, %v10578_v39  ;;  %v12244_v37 = vld [vmem:[%s17907_s2 + $0xcf0] ss:$40 sps:$4 sm:$0xff]  }
 0x1f5   : > { %v12247_v39 = vld [vmem:[%s17907_s2 + $0x2d0] ss:$40 sps:$4 sm:$0xff]  }
 0x1f6   : > { %4186 = vmatpush2.bf16.msra.mxu0 %v12220_v61  ;;  %v12238_v61 = vld [vmem:[%s17907_s2 + $0xd40] ss:$40 sps:$4 sm:$0xff]  }
 0x1f7   : > { %8443 = vmatpush2.bf16.msra.mxu1 %v12223_v63  ;;  %4187 = vmatprep.subr.bf16.mxu0 %v12228_v9  ;;  %v12241_v63 = vld [vmem:[%s17907_s2 + $0x320] ss:$40 sps:$4 sm:$0xff]   ;;  %v15105_v9 = vpop.f32.mrf.mxu1 }
 0x1f8   : > { %8444 = vmatprep.subr.bf16.mxu1 %v12231_v12  ;;  %v15107_v12 = vpop.f32.mrf.mxu0 }
 0x1f9   : > { %17932 = vst [vmem:[#allocation24_spill] sm:$0xff] %v15107_v12 }
 0x1fa   : > { %4188 = vmatpush2.bf16.msra.mxu0 %v12226_v4  ;;  %v12249_v4 = vld [vmem:[%s17907_s2 + $0x2d4] ss:$40 sps:$4 sm:$0xff]  }
 0x1fb   : > { %8445 = vmatpush2.bf16.msra.mxu1 %v12229_v21  ;;  %4189 = vmatprep.subr.bf16.mxu0 %v12234_v25  ;;  %v4322_v21 = vrot.slane %v4317_v58, %v13530_v59  ;;  %v4329_v25 = vrot.slane %v4324_v60, %v13530_v59 }
 0x1fc   : > { %8446 = vmatprep.subr.bf16.mxu1 %v12237_v31  ;;  %v10579_v31 = vcombine.low %v4280_v54, %v4280_v54 }
 0x1fd   : > { %v10584_v58 = vcombine.low %v4322_v21, %v4329_v25  ;;  %v12260_v21 = vld [vmem:[%s17907_s2 + $0x734] ss:$40 sps:$4 sm:$0xff]  }
 0x1fe   : > { %4190 = vmatpush2.bf16.msra.mxu0 %v12232_v35  ;;  %v10580_v35 = vcombine.high %v4280_v54, %v4280_v54  ;;  %v12255_v54 = vld [vmem:[%s17907_s2 + $0x284] ss:$40 sps:$4 sm:$0xff]   ;;  %v4331_v60 = vpack.i.b16 %v10579_v31, %v10579_v31  ;;  %v12263_v25 = vld [vmem:[%s17907_s2 + $0xc34] ss:$40 sps:$4 sm:$0xff]   ;;  %v12258_v31 = vld [vmem:[%s17907_s2 + $0x730] ss:$40 sps:$4 sm:$0xff]  }
 0x1ff   : > { %8447 = vmatpush2.bf16.msra.mxu1 %v12235_v10  ;;  %4191 = vmatprep.subr.bf16.mxu0 %v12240_v45  ;;  %v15123_v10 = vpop.f32.mrf.mxu1  ;;  %v15125_v45 = vpop.f32.mrf.mxu0 }
 0x200   : > { %8448 = vmatprep.subr.bf16.mxu1 %v12243_v52  ;;  %17933 = vst [vmem:[#allocation25_spill] sm:$0xff] %v15123_v10  ;;  %v12252_v52 = vld [vmem:[%s17907_s2 + $0xca4] ss:$40 sps:$4 sm:$0xff]   ;;  %v4336_v0 = vrot.slane %v4331_v60, %v13530_v59  ;;  %v12264_v60 = vld [vmem:[%s17907_s2 + $0x6e0] ss:$40 sps:$4 sm:$0xff]  }
 0x201   : > { %v15141_v43 = vpop.f32.mrf.mxu0 }
 0x202   : > { %4192 = vmatpush2.bf16.msra.mxu0 %v12238_v61  ;;  %v4338_v61 = vpack.i.b16 %v10580_v35, %v10580_v35  ;;  %17935 = vst [vmem:[#allocation27_spill] sm:$0xff] %v15141_v43  ;;  %v12261_v35 = vld [vmem:[%s17907_s2 + $0xc30] ss:$40 sps:$4 sm:$0xff]  }
 0x203   : > { %8449 = vmatpush2.bf16.msra.mxu1 %v12241_v63  ;;  %4193 = vmatprep.subr.bf16.mxu0 %v12246_v26  ;;  %v12250_v63 = vld [vmem:[%s17907_s2 + $0xca0] ss:$40 sps:$4 sm:$0xff]  }
 0x204   : > { %8450 = vmatprep.subr.bf16.mxu1 %v12249_v4  ;;  %v12253_v26 = vld [vmem:[%s17907_s2 + $0x280] ss:$40 sps:$4 sm:$0xff]   ;;  %v15139_v4 = vpop.f32.mrf.mxu1  ;;  %v4343_v57 = vrot.slane %v4338_v61, %v13530_v59 }
 0x205   : > { %17934 = vst [vmem:[#allocation26_spill] sm:$0xff] %v15139_v4  ;;  %v12668_v4 = vld [vmem:[%s17907_s2 + $0x6a0] ss:$40 sps:$4 sm:$0xff]  }
 0x206   : > { %4194 = vmatpush2.bf16.msra.mxu0 %v12244_v37  ;;  %v15156_v37 = vld [vmem:[%s13499_s22 + $0x8] sm:$0xff]  ;;  %v3898_v18 = vpop.f32.mrf.mxu1  ;;  %v10585_v61 = vcombine.low %v4336_v0, %v4343_v57  ;;  %v12273_v0 = vld [vmem:[%s17907_s2 + $0xb90] ss:$40 sps:$4 sm:$0xff]  }
 0x207   : > { %8451 = vmatpush2.bf16.msra.mxu1 %v12247_v39  ;;  %4195 = vmatprep.subr.bf16.mxu0 %v12252_v52  ;;  %v15159_v39 = vmul.bf16 %v15156_v37, %v10584_v58  ;;  %v15162_v52 = vld [vmem:[%s13499_s22 + $0x28] sm:$0xff] }
 0x208   : > { %8452 = vmatprep.subr.bf16.mxu1 %v12255_v54  ;;  %v15165_v54 = vmul.bf16 %v15162_v52, %v10584_v58  ;;  %v15179_v58 = vpop.f32.mrf.mxu0  ;;  %v15191_v13 = vpop.f32.mrf.mxu1 }
 0x209   : > { %17936 = vst [vmem:[#allocation28_spill] sm:$0xff] %v15179_v58  ;;  %v12381_v58 = vld [vmem:[%s17907_s2 + $0x148] ss:$40 sps:$4 sm:$0xff]  }
 0x20a   : > { %4196 = vmatpush2.bf16.msra.mxu0 %v12250_v63  ;;  %v15189_v27 = vcombine.high %v15159_v39, %v15165_v54 }
 0x20b   : > { %8453 = vmatpush2.bf16.msra.mxu1 %v12253_v26  ;;  %8475 = vmatprep.subr.bf16.mxu0 %v12260_v21  ;;  %v12272_v26 = vld [vmem:[%s17907_s2 + $0x694] ss:$40 sps:$4 sm:$0xff]  }
 0x20c   : > { %8528 = vmatprep.subr.bf16.mxu1 %v12263_v25  ;;  %v12275_v21 = vld [vmem:[%s17907_s2 + $0xb94] ss:$40 sps:$4 sm:$0xff]  }
 0x20d   : > { %v3941_v63 = vpop.f32.mrf.mxu0  ;;  %4198 = vmatmul.mubr.bf16.vlgmr.msra.gmra.mxu0 %v14241_v14  ;;  %v12270_v14 = vld [vmem:[%s17907_s2 + $0x690] ss:$40 sps:$4 sm:$0xff]  }
 0x20e   : > { %8455 = vmatmul.mubr.bf16.vlgmr.msra.gmra.mxu1 %v15171_v5  ;;  %v15201_v25 = vadd.f32 %v3941_v63, %v3898_v18  ;;  %8476 = vmatpush1.bf16.msra.mxu0 %v12258_v31  ;;  %v15214_v18 = vld [vmem:[%s13499_s22 + $0x10] sm:$0xff] }
 0x20f   : > { %8529 = vmatpush1.bf16.msra.mxu1 %v12261_v35  ;;  %v15203_v57 = vpop.f32.mrf.mxu0  ;;  %8477 = vmatprep.subr.bf16.mxu0 %v12266_v48  ;;  %v15217_v31 = vmul.bf16 %v15214_v18, %v10585_v61  ;;  %v15220_v35 = vld [vmem:[%s13499_s22 + $0x30] sm:$0xff]  ;;  %v3902_v48 = vpop.f32.mrf.mxu1 }
 0x210   : > { %8530 = vmatprep.subr.bf16.mxu1 %v12269_v42  ;;  %8464 = vmatprep.mubr.bf16.mxu1 %v14879_v7  ;;  %v15223_v42 = vmul.bf16 %v15220_v35, %v10585_v61  ;;  %v12276_v61 = vld [vmem:[%s17907_s2 + $0x640] ss:$40 sps:$4 sm:$0xff]  }
 0x211   : > { %8507 = vmatprep.mubr.bf16.mxu0 %v15189_v27  ;;  %v3945_v63 = vpop.f32.mrf.mxu0 }
 0x212   : > { %v15231_v51 = vadd.f32 %v3945_v63, %v3902_v48  ;;  %8478 = vmatpush1.bf16.msra.mxu0 %v12264_v60  ;;  %v15241_v29 = vcombine.high %v15217_v31, %v15223_v42  ;;  %v12284_v48 = vld [vmem:[%s17907_s2 + $0x5f4] ss:$40 sps:$4 sm:$0xff]  }
 0x213   : > { %8531 = vmatpush1.bf16.msra.mxu1 %v12267_v6  ;;  %8479 = vmatprep.subr.bf16.mxu0 %v12272_v26  ;;  %v12287_v60 = vld [vmem:[%s17907_s2 + $0xaf4] ss:$40 sps:$4 sm:$0xff]   ;;  %v12282_v6 = vld [vmem:[%s17907_s2 + $0x5f0] ss:$40 sps:$4 sm:$0xff]  }
 0x214   : > { %8532 = vmatprep.subr.bf16.mxu1 %v12275_v21  ;;  %v12285_v26 = vld [vmem:[%s17907_s2 + $0xaf0] ss:$40 sps:$4 sm:$0xff]   ;;  %v12290_v21 = vld [vmem:[%s17907_s2 + $0x5a4] ss:$40 sps:$4 sm:$0xff]   ;;  %v12299_v63 = vld [vmem:[%s17907_s2 + $0xa54] ss:$40 sps:$4 sm:$0xff]  }
 0x216   : > { %8465 = vmatmul.mubr.bf16.gmra.mxu1 %v14881_v11  ;;  %8480 = vmatpush1.bf16.msra.mxu0 %v12270_v14  ;;  %v12293_v14 = vld [vmem:[%s17907_s2 + $0xaa4] ss:$40 sps:$4 sm:$0xff]  }
 0x217   : > { %8533 = vmatpush1.bf16.msra.mxu1 %v12273_v0  ;;  %8481 = vmatprep.subr.bf16.mxu0 %v12278_v2  ;;  %v12288_v2 = vld [vmem:[%s17907_s2 + $0x5a0] ss:$40 sps:$4 sm:$0xff]   ;;  %v12296_v0 = vld [vmem:[%s17907_s2 + $0x554] ss:$40 sps:$4 sm:$0xff]  }
 0x218   : > { %8534 = vmatprep.subr.bf16.mxu1 %v12281_v44  ;;  %8560 = vmatprep.mubr.bf16.mxu1 %v15241_v29  ;;  %v12291_v44 = vld [vmem:[%s17907_s2 + $0xaa0] ss:$40 sps:$4 sm:$0xff]  }
 0x21a   : > { %8482 = vmatpush1.bf16.msra.mxu0 %v12276_v61  ;;  %v12297_v61 = vld [vmem:[%s17907_s2 + $0xa50] ss:$40 sps:$4 sm:$0xff]  }
 0x21b   : > { %8535 = vmatpush1.bf16.msra.mxu1 %v12279_v32  ;;  %8483 = vmatprep.subr.bf16.mxu0 %v12284_v48  ;;  %v12294_v32 = vld [vmem:[%s17907_s2 + $0x550] ss:$40 sps:$4 sm:$0xff]   ;;  %v12302_v48 = vld [vmem:[%s17907_s2 + $0x504] ss:$40 sps:$4 sm:$0xff]  }
 0x21c   : > { %8536 = vmatprep.subr.bf16.mxu1 %v12287_v60  ;;  %v12305_v60 = vld [vmem:[%s17907_s2 + $0xa04] ss:$40 sps:$4 sm:$0xff]  }
 0x21e   : > { %8484 = vmatpush1.bf16.msra.mxu0 %v12282_v6  ;;  %v12300_v6 = vld [vmem:[%s17907_s2 + $0x500] ss:$40 sps:$4 sm:$0xff]  }
 0x21f   : > { %8537 = vmatpush1.bf16.msra.mxu1 %v12285_v26  ;;  %8485 = vmatprep.subr.bf16.mxu0 %v12290_v21  ;;  %v12303_v26 = vld [vmem:[%s17907_s2 + $0xa00] ss:$40 sps:$4 sm:$0xff]   ;;  %v12308_v21 = vld [vmem:[%s17907_s2 + $0x9b4] ss:$40 sps:$4 sm:$0xff]  }
 0x220   : > { %8538 = vmatprep.subr.bf16.mxu1 %v12293_v14  ;;  %v12311_v14 = vld [vmem:[%s17907_s2 + $0xeb4] ss:$40 sps:$4 sm:$0xff]  }
 0x222   : > { %8486 = vmatpush1.bf16.msra.mxu0 %v12288_v2  ;;  %v12306_v2 = vld [vmem:[%s17907_s2 + $0x9b0] ss:$40 sps:$4 sm:$0xff]  }
 0x223   : > { %8539 = vmatpush1.bf16.msra.mxu1 %v12291_v44  ;;  %8487 = vmatprep.subr.bf16.mxu0 %v12296_v0  ;;  %v12309_v44 = vld [vmem:[%s17907_s2 + $0xeb0] ss:$40 sps:$4 sm:$0xff]   ;;  %v12314_v0 = vld [vmem:[%s17907_s2 + $0x964] ss:$40 sps:$4 sm:$0xff]  }
 0x224   : > { %8540 = vmatprep.subr.bf16.mxu1 %v12299_v63  ;;  %v12317_v63 = vld [vmem:[%s17907_s2 + $0xe64] ss:$40 sps:$4 sm:$0xff]  }
 0x226   : > { %8488 = vmatpush1.bf16.msra.mxu0 %v12294_v32  ;;  %v12312_v32 = vld [vmem:[%s17907_s2 + $0x960] ss:$40 sps:$4 sm:$0xff]  }
 0x227   : > { %8541 = vmatpush1.bf16.msra.mxu1 %v12297_v61  ;;  %8489 = vmatprep.subr.bf16.mxu0 %v12302_v48  ;;  %v12315_v61 = vld [vmem:[%s17907_s2 + $0xe60] ss:$40 sps:$4 sm:$0xff]   ;;  %v12320_v48 = vld [vmem:[%s17907_s2 + $0x914] ss:$40 sps:$4 sm:$0xff]  }
 0x228   : > { %8542 = vmatprep.subr.bf16.mxu1 %v12305_v60  ;;  %v12323_v60 = vld [vmem:[%s17907_s2 + $0xe14] ss:$40 sps:$4 sm:$0xff]  }
 0x22a   : > { %8490 = vmatpush1.bf16.msra.mxu0 %v12300_v6  ;;  %v12318_v6 = vld [vmem:[%s17907_s2 + $0x910] ss:$40 sps:$4 sm:$0xff]  }
 0x22b   : > { %8543 = vmatpush1.bf16.msra.mxu1 %v12303_v26  ;;  %8491 = vmatprep.subr.bf16.mxu0 %v12308_v21  ;;  %v12321_v26 = vld [vmem:[%s17907_s2 + $0xe10] ss:$40 sps:$4 sm:$0xff]   ;;  %v12326_v21 = vld [vmem:[%s17907_s2 + $0x8c4] ss:$40 sps:$4 sm:$0xff]  }
 0x22c   : > { %8544 = vmatprep.subr.bf16.mxu1 %v12311_v14  ;;  %v12329_v14 = vld [vmem:[%s17907_s2 + $0xdc4] ss:$40 sps:$4 sm:$0xff]  }
 0x22e   : > { %8492 = vmatpush2.bf16.msra.mxu0 %v12306_v2  ;;  %v4391_v2 = vld [vmem:[%s17906_s1 + $0x108] sm:$0x11] }
 0x22f   : > { %8545 = vmatpush2.bf16.msra.mxu1 %v12309_v44  ;;  %8493 = vmatprep.subr.bf16.mxu0 %v12314_v0  ;;  %v4392_v44 = vld [vmem:[%s17906_s1 + $0x110] sm:$0x11]  ;;  %v12324_v0 = vld [vmem:[%s17907_s2 + $0x8c0] ss:$40 sps:$4 sm:$0xff]  }
 0x230   : > { %8546 = vmatprep.subr.bf16.mxu1 %v12317_v63  ;;  %v12327_v63 = vld [vmem:[%s17907_s2 + $0xdc0] ss:$40 sps:$4 sm:$0xff]   ;;  %v10592_v15 = vcombine.high %v4392_v44, %v4392_v44 }
 0x232   : > { %8494 = vmatpush2.bf16.msra.mxu0 %v12312_v32  ;;  %v12332_v32 = vld [vmem:[%s17907_s2 + $0x874] ss:$40 sps:$4 sm:$0xff]  }
 0x233   : > { %8547 = vmatpush2.bf16.msra.mxu1 %v12315_v61  ;;  %8495 = vmatprep.subr.bf16.mxu0 %v12320_v48  ;;  %v12335_v61 = vld [vmem:[%s17907_s2 + $0xd74] ss:$40 sps:$4 sm:$0xff]   ;;  %v10589_v48 = vcombine.low %v4391_v2, %v4391_v2 }
 0x234   : > { %8548 = vmatprep.subr.bf16.mxu1 %v12323_v60  ;;  %v10590_v60 = vcombine.high %v4391_v2, %v4391_v2  ;;  %v12341_v2 = vld [vmem:[%s17907_s2 + $0xd24] ss:$40 sps:$4 sm:$0xff]  }
 0x235   : > { %v4429_v47 = vpack.i.b16 %v10589_v48, %v10589_v48 }
 0x236   : > { %8496 = vmatpush2.bf16.msra.mxu0 %v12318_v6  ;;  %v12330_v6 = vld [vmem:[%s17907_s2 + $0x870] ss:$40 sps:$4 sm:$0xff]   ;;  %v4436_v30 = vpack.i.b16 %v10590_v60, %v10590_v60 }
 0x237   : > { %8549 = vmatpush2.bf16.msra.mxu1 %v12321_v26  ;;  %8497 = vmatprep.subr.bf16.mxu0 %v12326_v21  ;;  %v10591_v26 = vcombine.low %v4392_v44, %v4392_v44  ;;  %v12333_v21 = vld [vmem:[%s17907_s2 + $0xd70] ss:$40 sps:$4 sm:$0xff]   ;;  %v4434_v48 = vrot.slane %v4429_v47, %v13530_v59  ;;  %v12352_v47 = vld [vmem:[%s17907_s2 + $0x784] ss:$40 sps:$4 sm:$0xff]  }
 0x238   : > { %8550 = vmatprep.subr.bf16.mxu1 %v12329_v14  ;;  %v12338_v14 = vld [vmem:[%s17907_s2 + $0x824] ss:$40 sps:$4 sm:$0xff]   ;;  %v4281_v44 = vld [vmem:[%s17906_s1 + $0xd8] sm:$0x11]  ;;  %v4441_v60 = vrot.slane %v4436_v30, %v13530_v59 }
 0x239   : > { %v10582_v20 = vcombine.high %v4281_v44, %v4281_v44  ;;  %v12355_v30 = vld [vmem:[%s17907_s2 + $0xc84] ss:$40 sps:$4 sm:$0xff]  }
 0x23a   : > { %8498 = vmatpush2.bf16.msra.mxu0 %v12324_v0  ;;  %v4443_v0 = vpack.i.b16 %v10591_v26, %v10591_v26 }
 0x23b   : > { %8551 = vmatpush2.bf16.msra.mxu1 %v12327_v63  ;;  %8499 = vmatprep.subr.bf16.mxu0 %v12332_v32  ;;  %v4450_v63 = vpack.i.b16 %v10592_v15, %v10592_v15  ;;  %v12339_v32 = vld [vmem:[%s17907_s2 + $0xd20] ss:$40 sps:$4 sm:$0xff]   ;;  %v12349_v15 = vld [vmem:[%s17907_s2 + $0xcd4] ss:$40 sps:$4 sm:$0xff]  }
 0x23c   : > { %8552 = vmatprep.subr.bf16.mxu1 %v12335_v61  ;;  %v12346_v61 = vld [vmem:[%s17907_s2 + $0x7d4] ss:$40 sps:$4 sm:$0xff]  }
 0x23d   : > { %v4455_v26 = vrot.slane %v4450_v63, %v13530_v59  ;;  %v4352_v63 = vpack.i.b16 %v10582_v20, %v10582_v20  ;;  %v12365_v20 = vld [vmem:[%s17907_s2 + $0x23c] ss:$40 sps:$4 sm:$0xff]  }
 0x23e   : > { %8500 = vmatpush2.bf16.msra.mxu0 %v12330_v6  ;;  %v4448_v6 = vrot.slane %v4443_v0, %v13530_v59 }
 0x23f   : > { %8553 = vmatpush2.bf16.msra.mxu1 %v12333_v21  ;;  %8501 = vmatprep.subr.bf16.mxu0 %v12338_v14  ;;  %v10581_v21 = vcombine.low %v4281_v44, %v4281_v44  ;;  %v12344_v14 = vld [vmem:[%s17907_s2 + $0x7d0] ss:$40 sps:$4 sm:$0xff]  }
 0x240   : > { %8554 = vmatprep.subr.bf16.mxu1 %v12341_v2  ;;  %v12347_v2 = vld [vmem:[%s17907_s2 + $0xcd0] ss:$40 sps:$4 sm:$0xff]   ;;  %v10597_v44 = vcombine.low %v4448_v6, %v4455_v26 }
 0x241   : > { %v4345_v0 = vpack.i.b16 %v10581_v21, %v10581_v21  ;;  %v12360_v26 = vld [vmem:[%s17907_s2 + $0x1130] ss:$40 sps:$4 sm:$0xff]  }
 0x242   : > { %8502 = vmatpush2.bf16.msra.mxu0 %v12336_v28  ;;  %v10596_v28 = vcombine.low %v4434_v48, %v4441_v60  ;;  %v12362_v48 = vld [vmem:[%s17907_s2 + $0x1134] ss:$40 sps:$4 sm:$0xff]   ;;  %v12363_v21 = vld [vmem:[%s17907_s2 + $0x238] ss:$40 sps:$4 sm:$0xff]  }
 0x243   : > { %8555 = vmatpush2.bf16.msra.mxu1 %v12339_v32  ;;  %8503 = vmatprep.subr.bf16.mxu0 %v12346_v61  ;;  %v12350_v32 = vld [vmem:[%s17907_s2 + $0x780] ss:$40 sps:$4 sm:$0xff]  }
 0x244   : > { %8556 = vmatprep.subr.bf16.mxu1 %v12349_v15  ;;  %v12353_v61 = vld [vmem:[%s17907_s2 + $0xc80] ss:$40 sps:$4 sm:$0xff]   ;;  %v15402_v15 = vpop.f32.mrf.mxu1  ;;  %v4495_v60 = vmul.bf16 %v15156_v37, %v10596_v28  ;;  %v4499_v6 = vmul.bf16 %v15162_v52, %v10596_v28  ;;  %v15424_v37 = vcombine.low %v15159_v39, %v15165_v54  ;;  %v15428_v52 = vcombine.low %v15217_v31, %v15223_v42  ;;  %v12368_v28 = vld [vmem:[%s17907_s2 + $0x10e4] ss:$40 sps:$4 sm:$0xff]  }
 0x245   : > { %v12366_v39 = vld [vmem:[%s17907_s2 + $0x10e0] ss:$40 sps:$4 sm:$0xff]  }
 0x246   : > { %8504 = vmatpush2.bf16.msra.mxu0 %v12344_v14  ;;  %v4496_v14 = vmul.bf16 %v15214_v18, %v10597_v44  ;;  %v3984_v16 = vpop.f32.mrf.mxu1  ;;  %v12371_v18 = vld [vmem:[%s17907_s2 + $0x1ec] ss:$40 sps:$4 sm:$0xff]   ;;  %v12369_v54 = vld [vmem:[%s17907_s2 + $0x1e8] ss:$40 sps:$4 sm:$0xff]   ;;  %v15444_v31 = vcombine.high %v4495_v60, %v4499_v6  ;;  %v15488_v1 = vcombine.low %v4495_v60, %v4499_v6 }
 0x247   : > { %8557 = vmatpush2.bf16.msra.mxu1 %v12347_v2  ;;  %8505 = vmatprep.subr.bf16.mxu0 %v12352_v47  ;;  %v4500_v2 = vmul.bf16 %v15220_v35, %v10597_v44  ;;  %v4350_v47 = vrot.slane %v4345_v0, %v13530_v59  ;;  %v15436_v35 = vpop.f32.mrf.mxu0  ;;  %v12386_v6 = vld [vmem:[%s17907_s2 + $0xff4] ss:$40 sps:$4 sm:$0xff]  }
 0x248   : > { %8558 = vmatprep.subr.bf16.mxu1 %v12355_v30  ;;  %v4357_v30 = vrot.slane %v4352_v63, %v13530_v59  ;;  %v15448_v0 = vpop.f32.mrf.mxu1 }
 0x249   : > { %v15446_v42 = vcombine.high %v4496_v14, %v4500_v2  ;;  %v15490_v43 = vcombine.low %v4496_v14, %v4500_v2  ;;  %v12389_v14 = vld [vmem:[%s17907_s2 + $0xfc] ss:$40 sps:$4 sm:$0xff]   ;;  %v12384_v2 = vld [vmem:[%s17907_s2 + $0xff0] ss:$40 sps:$4 sm:$0xff]  }
 0x24a   : > { %8506 = vmatpush2.bf16.msra.mxu0 %v12350_v32  ;;  %v10586_v44 = vcombine.low %v4350_v47, %v4357_v30  ;;  %v12374_v32 = vld [vmem:[%s17907_s2 + $0x1094] ss:$40 sps:$4 sm:$0xff]  }
 0x24b   : > { %8559 = vmatpush2.bf16.msra.mxu1 %v12353_v61  ;;  %8581 = vmatprep.subr.bf16.mxu0 %v12362_v48  ;;  %v12377_v61 = vld [vmem:[%s17907_s2 + $0x19c] ss:$40 sps:$4 sm:$0xff]  }
 0x24c   : > { %8634 = vmatprep.subr.bf16.mxu1 %v12365_v20  ;;  %v15459_v48 = vld [vmem:[%s13499_s22 + $0x18] sm:$0xff] }
 0x24d   : > { %v4027_v63 = vpop.f32.mrf.mxu0  ;;  %8508 = vmatmul.mubr.bf16.vlgmr.msra.gmra.mxu0 %v15424_v37  ;;  %v15462_v20 = vld [vmem:[%s13499_s22 + $0x38] sm:$0xff] }
 0x24e   : > { %8561 = vmatmul.mubr.bf16.vlgmr.msra.gmra.mxu1 %v15428_v52  ;;  %v15464_v47 = vadd.f32 %v4027_v63, %v3984_v16  ;;  %8582 = vmatpush1.bf16.msra.mxu0 %v12360_v26  ;;  %v15477_v16 = vmul.bf16 %v10586_v44, %v15459_v48  ;;  %v15480_v26 = vmul.bf16 %v10586_v44, %v15462_v20  ;;  %v12383_v63 = vld [vmem:[%s17907_s2 + $0x14c] ss:$40 sps:$4 sm:$0xff]   ;;  %v12378_v44 = vld [vmem:[%s17907_s2 + $0x1040] ss:$40 sps:$4 sm:$0xff]  }
 0x24f   : > { %8635 = vmatpush1.bf16.msra.mxu1 %v12363_v21  ;;  %v15466_v30 = vpop.f32.mrf.mxu0  ;;  %8583 = vmatprep.subr.bf16.mxu0 %v12368_v28  ;;  %v3988_v21 = vpop.f32.mrf.mxu1 }
 0x250   : > { %8636 = vmatprep.subr.bf16.mxu1 %v12371_v18  ;;  %8517 = vmatprep.mubr.bf16.mxu0 %v15444_v31  ;;  %v12380_v18 = vld [vmem:[%s17907_s2 + $0x1044] ss:$40 sps:$4 sm:$0xff]   ;;  %v15502_v60 = vcombine.high %v15477_v16, %v15480_v26 }
 0x251   : > { %8570 = vmatprep.mubr.bf16.mxu1 %v15446_v42  ;;  %v4031_v28 = vpop.f32.mrf.mxu0 }
 0x252   : > { %v15492_v10 = vadd.f32 %v4031_v28, %v3988_v21  ;;  %8584 = vmatpush1.bf16.msra.mxu0 %v12366_v39  ;;  %v12387_v39 = vld [vmem:[%s17907_s2 + $0xf8] ss:$40 sps:$4 sm:$0xff]   ;;  %v12401_v21 = vld [vmem:[%s17907_s2 + $0x5c] ss:$40 sps:$4 sm:$0xff]  }
 0x253   : > { %8637 = vmatpush1.bf16.msra.mxu1 %v12369_v54  ;;  %8585 = vmatprep.subr.bf16.mxu0 %v12374_v32  ;;  %v12392_v54 = vld [vmem:[%s17907_s2 + $0xfa4] ss:$40 sps:$4 sm:$0xff]   ;;  %v12393_v32 = vld [vmem:[%s17907_s2 + $0xa8] ss:$40 sps:$4 sm:$0xff]   ;;  %v12399_v28 = vld [vmem:[%s17907_s2 + $0x58] ss:$40 sps:$4 sm:$0xff]  }
 0x254   : > { %17937 = vst [vmem:[#allocation29_spill] sm:$0xff] %v15492_v10  ;;  %8638 = vmatprep.subr.bf16.mxu1 %v12377_v61  ;;  %v12398_v61 = vld [vmem:[%s17907_s2 + $0xf54] ss:$40 sps:$4 sm:$0xff]   ;;  %v12476_v10 = vld [vmem:[%s17907_s2 + $0x698] ss:$40 sps:$4 sm:$0xff]  }
 0x255   : > { %8518 = vmatmul.mubr.bf16.gmra.mxu0 %v15488_v1 }
 0x256   : > { %8571 = vmatmul.mubr.bf16.gmra.mxu1 %v15490_v43  ;;  %8586 = vmatpush1.bf16.msra.mxu0 %v12372_v8  ;;  %v12390_v8 = vld [vmem:[%s17907_s2 + $0xfa0] ss:$40 sps:$4 sm:$0xff]  }
 0x257   : > { %8639 = vmatpush1.bf16.msra.mxu1 %v12375_v49  ;;  %8587 = vmatprep.subr.bf16.mxu0 %v12380_v18  ;;  %v12395_v49 = vld [vmem:[%s17907_s2 + $0xac] ss:$40 sps:$4 sm:$0xff]  }
 0x258   : > { %8640 = vmatprep.subr.bf16.mxu1 %v12383_v63  ;;  %8613 = vmatprep.mubr.bf16.mxu0 %v15502_v60  ;;  %v12404_v18 = vld [vmem:[%s17907_s2 + $0xf04] ss:$40 sps:$4 sm:$0xff]  }
 0x259   : > { %8666 = vmatprep.mubr.bf16.mxu1 %v14923_v38  ;;  %v12407_v63 = vld [vmem:[%s17907_s2 + $0xc] ss:$40 sps:$4 sm:$0xff]  }
 0x25a   : > { %8588 = vmatpush1.bf16.msra.mxu0 %v12378_v44  ;;  %v12402_v44 = vld [vmem:[%s17907_s2 + $0xf00] ss:$40 sps:$4 sm:$0xff]  }
 0x25b   : > { %8641 = vmatpush1.bf16.msra.mxu1 %v12381_v58  ;;  %8589 = vmatprep.subr.bf16.mxu0 %v12386_v6  ;;  %v12396_v58 = vld [vmem:[%s17907_s2 + $0xf50] ss:$40 sps:$4 sm:$0xff]  }
 0x25c   : > { %8642 = vmatprep.subr.bf16.mxu1 %v12389_v14  ;;  %v12405_v6 = vld [vmem:[%s17907_s2 + $0x8] ss:$40 sps:$4 sm:$0xff]   ;;  %v12410_v14 = vld [vmem:[%s17907_s2 + $0x13b4] ss:$40 sps:$4 sm:$0xff]  }
 0x25e   : > { %8590 = vmatpush1.bf16.msra.mxu0 %v12384_v2  ;;  %v12413_v2 = vld [vmem:[%s17907_s2 + $0x4bc] ss:$40 sps:$4 sm:$0xff]  }
 0x25f   : > { %8643 = vmatpush1.bf16.msra.mxu1 %v12387_v39  ;;  %8591 = vmatprep.subr.bf16.mxu0 %v12392_v54  ;;  %v12408_v39 = vld [vmem:[%s17907_s2 + $0x13b0] ss:$40 sps:$4 sm:$0xff]  }
 0x260   : > { %8644 = vmatprep.subr.bf16.mxu1 %v12395_v49  ;;  %v12411_v54 = vld [vmem:[%s17907_s2 + $0x4b8] ss:$40 sps:$4 sm:$0xff]   ;;  %v12416_v49 = vld [vmem:[%s17907_s2 + $0x1364] ss:$40 sps:$4 sm:$0xff]  }
 0x262   : > { %8592 = vmatpush1.bf16.msra.mxu0 %v12390_v8  ;;  %v12419_v8 = vld [vmem:[%s17907_s2 + $0x46c] ss:$40 sps:$4 sm:$0xff]  }
 0x263   : > { %8645 = vmatpush1.bf16.msra.mxu1 %v12393_v32  ;;  %8593 = vmatprep.subr.bf16.mxu0 %v12398_v61  ;;  %v12414_v32 = vld [vmem:[%s17907_s2 + $0x1360] ss:$40 sps:$4 sm:$0xff]  }
 0x264   : > { %8646 = vmatprep.subr.bf16.mxu1 %v12401_v21  ;;  %v12417_v61 = vld [vmem:[%s17907_s2 + $0x468] ss:$40 sps:$4 sm:$0xff]   ;;  %v12422_v21 = vld [vmem:[%s17907_s2 + $0x1314] ss:$40 sps:$4 sm:$0xff]  }
 0x266   : > { %8594 = vmatpush1.bf16.msra.mxu0 %v12396_v58  ;;  %v12425_v58 = vld [vmem:[%s17907_s2 + $0x41c] ss:$40 sps:$4 sm:$0xff]  }
 0x267   : > { %8647 = vmatpush1.bf16.msra.mxu1 %v12399_v28  ;;  %8595 = vmatprep.subr.bf16.mxu0 %v12404_v18  ;;  %v12420_v28 = vld [vmem:[%s17907_s2 + $0x1310] ss:$40 sps:$4 sm:$0xff]  }
 0x268   : > { %8648 = vmatprep.subr.bf16.mxu1 %v12407_v63  ;;  %v12423_v18 = vld [vmem:[%s17907_s2 + $0x418] ss:$40 sps:$4 sm:$0xff]   ;;  %v12428_v63 = vld [vmem:[%s17907_s2 + $0x12c4] ss:$40 sps:$4 sm:$0xff]  }
 0x26a   : > { %8596 = vmatpush1.bf16.msra.mxu0 %v12402_v44  ;;  %v12431_v44 = vld [vmem:[%s17907_s2 + $0x3cc] ss:$40 sps:$4 sm:$0xff]  }
 0x26b   : > { %8649 = vmatpush1.bf16.msra.mxu1 %v12405_v6  ;;  %8597 = vmatprep.subr.bf16.mxu0 %v12410_v14  ;;  %v4393_v6 = vld [vmem:[%s17906_s1 + $0x118] sm:$0x11]  ;;  %v12426_v14 = vld [vmem:[%s17907_s2 + $0x12c0] ss:$40 sps:$4 sm:$0xff]  }
 0x26c   : > { %8650 = vmatprep.subr.bf16.mxu1 %v12413_v2  ;;  %v12429_v2 = vld [vmem:[%s17907_s2 + $0x3c8] ss:$40 sps:$4 sm:$0xff]  }
 0x26e   : > { %8598 = vmatpush2.bf16.msra.mxu0 %v12408_v39  ;;  %v12436_v39 = vld [vmem:[%s17907_s2 + $0x1274] ss:$40 sps:$4 sm:$0xff]  }
 0x26f   : > { %8651 = vmatpush2.bf16.msra.mxu1 %v12411_v54  ;;  %8599 = vmatprep.subr.bf16.mxu0 %v12416_v49  ;;  %v12439_v54 = vld [vmem:[%s17907_s2 + $0x37c] ss:$40 sps:$4 sm:$0xff]   ;;  %v10593_v49 = vcombine.low %v4393_v6, %v4393_v6 }
 0x270   : > { %8652 = vmatprep.subr.bf16.mxu1 %v12419_v8  ;;  %v10594_v8 = vcombine.high %v4393_v6, %v4393_v6  ;;  %v12450_v6 = vld [vmem:[%s17907_s2 + $0x11d4] ss:$40 sps:$4 sm:$0xff]  }
 0x272   : > { %8600 = vmatpush2.bf16.msra.mxu0 %v12414_v32  ;;  %v12434_v32 = vld [vmem:[%s17907_s2 + $0x1270] ss:$40 sps:$4 sm:$0xff]  }
 0x273   : > { %8653 = vmatpush2.bf16.msra.mxu1 %v12417_v61  ;;  %8601 = vmatprep.subr.bf16.mxu0 %v12422_v21  ;;  %v12437_v61 = vld [vmem:[%s17907_s2 + $0x378] ss:$40 sps:$4 sm:$0xff]   ;;  %v12444_v21 = vld [vmem:[%s17907_s2 + $0x1224] ss:$40 sps:$4 sm:$0xff]  }
 0x274   : > { %8654 = vmatprep.subr.bf16.mxu1 %v12425_v58  ;;  %v12447_v58 = vld [vmem:[%s17907_s2 + $0x32c] ss:$40 sps:$4 sm:$0xff]  }
 0x276   : > { %8602 = vmatpush2.bf16.msra.mxu0 %v12420_v28  ;;  %v4457_v28 = vpack.i.b16 %v10593_v49, %v10593_v49  ;;  %v12451_v49 = vld [vmem:[%s17907_s2 + $0x2d8] ss:$40 sps:$4 sm:$0xff]  }
 0x277   : > { %8655 = vmatpush2.bf16.msra.mxu1 %v12423_v18  ;;  %8603 = vmatprep.subr.bf16.mxu0 %v12428_v63  ;;  %v4464_v18 = vpack.i.b16 %v10594_v8, %v10594_v8  ;;  %v12442_v63 = vld [vmem:[%s17907_s2 + $0x1220] ss:$40 sps:$4 sm:$0xff]   ;;  %v12456_v8 = vld [vmem:[%s17907_s2 + $0x1184] ss:$40 sps:$4 sm:$0xff]  }
 0x278   : > { %8656 = vmatprep.subr.bf16.mxu1 %v12431_v44  ;;  %v12445_v44 = vld [vmem:[%s17907_s2 + $0x328] ss:$40 sps:$4 sm:$0xff]  }
 0x27a   : > { %8604 = vmatpush2.bf16.msra.mxu0 %v12426_v14  ;;  %v12453_v14 = vld [vmem:[%s17907_s2 + $0x2dc] ss:$40 sps:$4 sm:$0xff]  }
 0x27b   : > { %8657 = vmatpush2.bf16.msra.mxu1 %v12429_v2  ;;  %8605 = vmatprep.subr.bf16.mxu0 %v12436_v39  ;;  %v4462_v2 = vrot.slane %v4457_v28, %v13530_v59  ;;  %v4469_v39 = vrot.slane %v4464_v18, %v13530_v59  ;;  %v12459_v59 = vld [vmem:[%s17907_s2 + $0x28c] ss:$40 sps:$4 sm:$0xff]   ;;  %v12464_v18 = vld [vmem:[%s17907_s2 + $0x73c] ss:$40 sps:$4 sm:$0xff]  }
 0x27c   : > { %8658 = vmatprep.subr.bf16.mxu1 %v12439_v54  ;;  %v12448_v54 = vld [vmem:[%s17907_s2 + $0x11d0] ss:$40 sps:$4 sm:$0xff]  }
 0x27e   : > { %8606 = vmatpush2.bf16.msra.mxu0 %v12434_v32  ;;  %v10598_v32 = vcombine.low %v4462_v2, %v4469_v39  ;;  %v12462_v2 = vld [vmem:[%s17907_s2 + $0x738] ss:$40 sps:$4 sm:$0xff]  }
 0x27f   : > { %8659 = vmatpush2.bf16.msra.mxu1 %v12437_v61  ;;  %8607 = vmatprep.subr.bf16.mxu0 %v12444_v21  ;;  %v15651_v61 = vpop.f32.mrf.mxu1  ;;  %v12454_v21 = vld [vmem:[%s17907_s2 + $0x1180] ss:$40 sps:$4 sm:$0xff]  }
 0x280   : > { %8660 = vmatprep.subr.bf16.mxu1 %v12447_v58  ;;  %17938 = vst [vmem:[#allocation30_spill] sm:$0xff] %v15651_v61  ;;  %v12457_v58 = vld [vmem:[%s17907_s2 + $0x288] ss:$40 sps:$4 sm:$0xff]   ;;  %v12465_v39 = vld [vmem:[%s17907_s2 + $0xc38] ss:$40 sps:$4 sm:$0xff]  }
 0x281   : > { %v15659_v28 = vpop.f32.mrf.mxu1 }
 0x282   : > { %8608 = vmatpush2.bf16.msra.mxu0 %v12442_v63  ;;  %v12467_v63 = vld [vmem:[%s17907_s2 + $0xc3c] ss:$40 sps:$4 sm:$0xff]  }
 0x283   : > { %8661 = vmatpush2.bf16.msra.mxu1 %v12445_v44  ;;  %8609 = vmatprep.subr.bf16.mxu0 %v12450_v6  ;;  %v4497_v44 = vmul.bf16 %v10598_v32, %v15459_v48  ;;  %v4501_v6 = vmul.bf16 %v10598_v32, %v15462_v20  ;;  %v12470_v48 = vld [vmem:[%s17907_s2 + $0x6ec] ss:$40 sps:$4 sm:$0xff]  }
 0x284   : > { %8662 = vmatprep.subr.bf16.mxu1 %v12453_v14  ;;  %v15671_v14 = vcombine.low %v15477_v16, %v15480_v26  ;;  %v12473_v20 = vld [vmem:[%s17907_s2 + $0xbec] ss:$40 sps:$4 sm:$0xff]  }
 0x285   : > { %v15687_v16 = vcombine.high %v4497_v44, %v4501_v6 }
 0x286   : > { %8610 = vmatpush2.bf16.msra.mxu0 %v12448_v54  ;;  %v15679_v54 = vpop.f32.mrf.mxu0 }
 0x287   : > { %8663 = vmatpush2.bf16.msra.mxu1 %v12451_v49  ;;  %8611 = vmatprep.subr.bf16.mxu0 %v12456_v8  ;;  %17939 = vst [vmem:[#allocation31_spill] sm:$0xff] %v15679_v54  ;;  %v4072_v49 = vpop.f32.mrf.mxu1  ;;  %v12468_v8 = vld [vmem:[%s17907_s2 + $0x6e8] ss:$40 sps:$4 sm:$0xff]  }
 0x288   : > { %8664 = vmatprep.subr.bf16.mxu1 %v12459_v59  ;;  %v12471_v59 = vld [vmem:[%s17907_s2 + $0xbe8] ss:$40 sps:$4 sm:$0xff]  }
 0x289   : > { %v15699_v32 = vpop.f32.mrf.mxu1 }
 0x28a   : > { %8612 = vmatpush2.bf16.msra.mxu0 %v12454_v21 }
 0x28b   : > { %8665 = vmatpush2.bf16.msra.mxu1 %v12457_v58  ;;  %8687 = vmatprep.subr.bf16.mxu0 %v12464_v18  ;;  %v12478_v58 = vld [vmem:[%s17907_s2 + $0x69c] ss:$40 sps:$4 sm:$0xff]  }
 0x28c   : > { %8740 = vmatprep.subr.bf16.mxu1 %v12467_v63  ;;  %v12481_v18 = vld [vmem:[%s17907_s2 + $0xb9c] ss:$40 sps:$4 sm:$0xff]  }
 0x28d   : > { %v15689_v26 = vpop.f32.mrf.mxu0  ;;  %8614 = vmatmul.mubr.bf16.vlgmr.msra.gmra.mxu0 %v15671_v14 }
 0x28e   : > { %8667 = vmatmul.mubr.bf16.vlgmr.msra.gmra.mxu1 %v15171_v5  ;;  %8688 = vmatpush1.bf16.msra.mxu0 %v12462_v2 }
 0x28f   : > { %8741 = vmatpush1.bf16.msra.mxu1 %v12465_v39  ;;  %v4115_v21 = vpop.f32.mrf.mxu0  ;;  %8689 = vmatprep.subr.bf16.mxu0 %v12470_v48  ;;  %v15711_v39 = vcombine.low %v4497_v44, %v4501_v6  ;;  %v4210_v48 = vmul.f32 %v15201_v25, %v15201_v25  ;;  %v12484_v44 = vld [vmem:[%s17907_s2 + $0x64c] ss:$40 sps:$4 sm:$0xff]  }
 0x290   : > { %8742 = vmatprep.subr.bf16.mxu1 %v12473_v20  ;;  %v4116_v63 = vadd.f32 %v4115_v21, %v4072_v49  ;;  %8623 = vmatprep.mubr.bf16.mxu0 %v15687_v16  ;;  %v12479_v49 = vld [vmem:[%s17907_s2 + $0xb98] ss:$40 sps:$4 sm:$0xff]   ;;  %v4076_v21 = vpop.f32.mrf.mxu1  ;;  %v12487_v25 = vld [vmem:[%s17907_s2 + $0xb4c] ss:$40 sps:$4 sm:$0xff]  }
 0x291   : > { %8676 = vmatprep.mubr.bf16.mxu1 %v14879_v7  ;;  %v15709_v2 = vpop.f32.mrf.mxu0 }
 0x292   : > { %v4220_v20 = vmul.f32 %v4116_v63, %v4116_v63  ;;  %8690 = vmatpush1.bf16.msra.mxu0 %v12468_v8  ;;  %v12485_v63 = vld [vmem:[%s17907_s2 + $0xb48] ss:$40 sps:$4 sm:$0xff]  }
 0x293   : > { %8743 = vmatpush1.bf16.msra.mxu1 %v12471_v59  ;;  %v4119_v54 = vpop.f32.mrf.mxu0  ;;  %8691 = vmatprep.subr.bf16.mxu0 %v12478_v58  ;;  %v4215_v59 = vmul.f32 %v15231_v51, %v15231_v51  ;;  %v12493_v51 = vld [vmem:[%s17907_s2 + $0xafc] ss:$40 sps:$4 sm:$0xff]  }
 0x294   : > { %8744 = vmatprep.subr.bf16.mxu1 %v12481_v18  ;;  %v15727_v6 = vadd.f32 %v4220_v20, %v4210_v48  ;;  %v4120_v8 = vadd.f32 %v4119_v54, %v4076_v21  ;;  %v12482_v18 = vld [vmem:[%s17907_s2 + $0x648] ss:$40 sps:$4 sm:$0xff]   ;;  %v12490_v54 = vld [vmem:[%s17907_s2 + $0x5fc] ss:$40 sps:$4 sm:$0xff]   ;;  %v12488_v48 = vld [vmem:[%s17907_s2 + $0x5f8] ss:$40 sps:$4 sm:$0xff]  }
 0x295   : > { %8624 = vmatmul.mubr.bf16.gmra.mxu0 %v15711_v39  ;;  %v12491_v20 = vld [vmem:[%s17907_s2 + $0xaf8] ss:$40 sps:$4 sm:$0xff]   ;;  %v12499_v21 = vld [vmem:[%s17907_s2 + $0xaac] ss:$40 sps:$4 sm:$0xff]  }
 0x296   : > { %17940 = vst [vmem:[#allocation32_spill] sm:$0xff] %v15727_v6  ;;  %8677 = vmatmul.mubr.bf16.gmra.mxu1 %v14881_v11  ;;  %v4225_v58 = vmul.f32 %v4120_v8, %v4120_v8  ;;  %8692 = vmatpush1.bf16.msra.mxu0 %v12476_v10  ;;  %v12502_v8 = vld [vmem:[%s17907_s2 + $0x55c] ss:$40 sps:$4 sm:$0xff]  }
 0x297   : > { %8745 = vmatpush1.bf16.msra.mxu1 %v12479_v49  ;;  %8693 = vmatprep.subr.bf16.mxu0 %v12484_v44  ;;  %v12496_v49 = vld [vmem:[%s17907_s2 + $0x5ac] ss:$40 sps:$4 sm:$0xff]   ;;  %v12494_v44 = vld [vmem:[%s17907_s2 + $0x5a8] ss:$40 sps:$4 sm:$0xff]  }
 0x298   : > { %8746 = vmatprep.subr.bf16.mxu1 %v12487_v25  ;;  %v15745_v10 = vadd.f32 %v4225_v58, %v4215_v59  ;;  %8719 = vmatprep.mubr.bf16.mxu0 %v15189_v27  ;;  %v12497_v25 = vld [vmem:[%s17907_s2 + $0xaa8] ss:$40 sps:$4 sm:$0xff]   ;;  %v12505_v59 = vld [vmem:[%s17907_s2 + $0xa5c] ss:$40 sps:$4 sm:$0xff]   ;;  %v12500_v58 = vld [vmem:[%s17907_s2 + $0x558] ss:$40 sps:$4 sm:$0xff]  }
 0x299   : > { %8772 = vmatprep.mubr.bf16.mxu1 %v15241_v29 }
 0x29a   : > { %17941 = vst [vmem:[#allocation33_spill] sm:$0xff] %v15745_v10  ;;  %8694 = vmatpush1.bf16.msra.mxu0 %v12482_v18  ;;  %v12503_v18 = vld [vmem:[%s17907_s2 + $0xa58] ss:$40 sps:$4 sm:$0xff]  }
 0x29b   : > { %8747 = vmatpush1.bf16.msra.mxu1 %v12485_v63  ;;  %8695 = vmatprep.subr.bf16.mxu0 %v12490_v54  ;;  %v12508_v63 = vld [vmem:[%s17907_s2 + $0x50c] ss:$40 sps:$4 sm:$0xff]  }
 0x29c   : > { %8748 = vmatprep.subr.bf16.mxu1 %v12493_v51  ;;  %v12511_v54 = vld [vmem:[%s17907_s2 + $0xa0c] ss:$40 sps:$4 sm:$0xff]   ;;  %v12506_v51 = vld [vmem:[%s17907_s2 + $0x508] ss:$40 sps:$4 sm:$0xff]  }
 0x29e   : > { %8696 = vmatpush1.bf16.msra.mxu0 %v12488_v48  ;;  %v12509_v48 = vld [vmem:[%s17907_s2 + $0xa08] ss:$40 sps:$4 sm:$0xff]  }
 0x29f   : > { %8749 = vmatpush1.bf16.msra.mxu1 %v12491_v20  ;;  %8697 = vmatprep.subr.bf16.mxu0 %v12496_v49  ;;  %v12514_v20 = vld [vmem:[%s17907_s2 + $0x9bc] ss:$40 sps:$4 sm:$0xff]  }
 0x2a0   : > { %8750 = vmatprep.subr.bf16.mxu1 %v12499_v21  ;;  %v12517_v49 = vld [vmem:[%s17907_s2 + $0xebc] ss:$40 sps:$4 sm:$0xff]   ;;  %v12512_v21 = vld [vmem:[%s17907_s2 + $0x9b8] ss:$40 sps:$4 sm:$0xff]  }
 0x2a2   : > { %8698 = vmatpush1.bf16.msra.mxu0 %v12494_v44  ;;  %v12515_v44 = vld [vmem:[%s17907_s2 + $0xeb8] ss:$40 sps:$4 sm:$0xff]  }
 0x2a3   : > { %8751 = vmatpush1.bf16.msra.mxu1 %v12497_v25  ;;  %8699 = vmatprep.subr.bf16.mxu0 %v12502_v8  ;;  %v12520_v25 = vld [vmem:[%s17907_s2 + $0x96c] ss:$40 sps:$4 sm:$0xff]  }
 0x2a4   : > { %8752 = vmatprep.subr.bf16.mxu1 %v12505_v59  ;;  %v12523_v8 = vld [vmem:[%s17907_s2 + $0xe6c] ss:$40 sps:$4 sm:$0xff]   ;;  %v12518_v59 = vld [vmem:[%s17907_s2 + $0x968] ss:$40 sps:$4 sm:$0xff]  }
 0x2a6   : > { %8700 = vmatpush1.bf16.msra.mxu0 %v12500_v58  ;;  %v12521_v58 = vld [vmem:[%s17907_s2 + $0xe68] ss:$40 sps:$4 sm:$0xff]  }
 0x2a7   : > { %8753 = vmatpush1.bf16.msra.mxu1 %v12503_v18  ;;  %8701 = vmatprep.subr.bf16.mxu0 %v12508_v63  ;;  %v12526_v18 = vld [vmem:[%s17907_s2 + $0x91c] ss:$40 sps:$4 sm:$0xff]  }
 0x2a8   : > { %8754 = vmatprep.subr.bf16.mxu1 %v12511_v54  ;;  %v12529_v63 = vld [vmem:[%s17907_s2 + $0xe1c] ss:$40 sps:$4 sm:$0xff]   ;;  %v12524_v54 = vld [vmem:[%s17907_s2 + $0x918] ss:$40 sps:$4 sm:$0xff]  }
 0x2aa   : > { %8702 = vmatpush1.bf16.msra.mxu0 %v12506_v51  ;;  %v12527_v51 = vld [vmem:[%s17907_s2 + $0xe18] ss:$40 sps:$4 sm:$0xff]  }
 0x2ab   : > { %8755 = vmatpush1.bf16.msra.mxu1 %v12509_v48  ;;  %8703 = vmatprep.subr.bf16.mxu0 %v12514_v20  ;;  %v12532_v48 = vld [vmem:[%s17907_s2 + $0x8cc] ss:$40 sps:$4 sm:$0xff]  }
 0x2ac   : > { %8756 = vmatprep.subr.bf16.mxu1 %v12517_v49  ;;  %v12535_v20 = vld [vmem:[%s17907_s2 + $0xdcc] ss:$40 sps:$4 sm:$0xff]   ;;  %v12530_v49 = vld [vmem:[%s17907_s2 + $0x8c8] ss:$40 sps:$4 sm:$0xff]  }
 0x2ae   : > { %8704 = vmatpush2.bf16.msra.mxu0 %v12512_v21  ;;  %v12533_v21 = vld [vmem:[%s17907_s2 + $0xdc8] ss:$40 sps:$4 sm:$0xff]  }
 0x2af   : > { %8757 = vmatpush2.bf16.msra.mxu1 %v12515_v44  ;;  %8705 = vmatprep.subr.bf16.mxu0 %v12520_v25  ;;  %v12538_v44 = vld [vmem:[%s17907_s2 + $0x87c] ss:$40 sps:$4 sm:$0xff]  }
 0x2b0   : > { %8758 = vmatprep.subr.bf16.mxu1 %v12523_v8  ;;  %v12541_v25 = vld [vmem:[%s17907_s2 + $0xd7c] ss:$40 sps:$4 sm:$0xff]   ;;  %v12536_v8 = vld [vmem:[%s17907_s2 + $0x878] ss:$40 sps:$4 sm:$0xff]  }
 0x2b2   : > { %8706 = vmatpush2.bf16.msra.mxu0 %v12518_v59  ;;  %v12539_v59 = vld [vmem:[%s17907_s2 + $0xd78] ss:$40 sps:$4 sm:$0xff]  }
 0x2b3   : > { %8759 = vmatpush2.bf16.msra.mxu1 %v12521_v58  ;;  %8707 = vmatprep.subr.bf16.mxu0 %v12526_v18  ;;  %v12544_v58 = vld [vmem:[%s17907_s2 + $0x82c] ss:$40 sps:$4 sm:$0xff]  }
 0x2b4   : > { %8760 = vmatprep.subr.bf16.mxu1 %v12529_v63  ;;  %v12547_v18 = vld [vmem:[%s17907_s2 + $0xd2c] ss:$40 sps:$4 sm:$0xff]   ;;  %v12542_v63 = vld [vmem:[%s17907_s2 + $0x828] ss:$40 sps:$4 sm:$0xff]  }
 0x2b6   : > { %8708 = vmatpush2.bf16.msra.mxu0 %v12524_v54  ;;  %v12545_v54 = vld [vmem:[%s17907_s2 + $0xd28] ss:$40 sps:$4 sm:$0xff]  }
 0x2b7   : > { %8761 = vmatpush2.bf16.msra.mxu1 %v12527_v51  ;;  %8709 = vmatprep.subr.bf16.mxu0 %v12532_v48  ;;  %v12550_v51 = vld [vmem:[%s17907_s2 + $0x7dc] ss:$40 sps:$4 sm:$0xff]  }
 0x2b8   : > { %8762 = vmatprep.subr.bf16.mxu1 %v12535_v20  ;;  %v12553_v48 = vld [vmem:[%s17907_s2 + $0xcdc] ss:$40 sps:$4 sm:$0xff]   ;;  %v12548_v20 = vld [vmem:[%s17907_s2 + $0x7d8] ss:$40 sps:$4 sm:$0xff]  }
 0x2ba   : > { %8710 = vmatpush2.bf16.msra.mxu0 %v12530_v49  ;;  %v12551_v49 = vld [vmem:[%s17907_s2 + $0xcd8] ss:$40 sps:$4 sm:$0xff]  }
 0x2bb   : > { %8763 = vmatpush2.bf16.msra.mxu1 %v12533_v21  ;;  %8711 = vmatprep.subr.bf16.mxu0 %v12538_v44  ;;  %v12556_v21 = vld [vmem:[%s17907_s2 + $0x78c] ss:$40 sps:$4 sm:$0xff]  }
 0x2bc   : > { %8764 = vmatprep.subr.bf16.mxu1 %v12541_v25  ;;  %v12559_v44 = vld [vmem:[%s17907_s2 + $0xc8c] ss:$40 sps:$4 sm:$0xff]   ;;  %v12554_v25 = vld [vmem:[%s17907_s2 + $0x788] ss:$40 sps:$4 sm:$0xff]  }
 0x2be   : > { %8712 = vmatpush2.bf16.msra.mxu0 %v12536_v8  ;;  %v12557_v8 = vld [vmem:[%s17907_s2 + $0xc88] ss:$40 sps:$4 sm:$0xff]  }
 0x2bf   : > { %8765 = vmatpush2.bf16.msra.mxu1 %v12539_v59  ;;  %8713 = vmatprep.subr.bf16.mxu0 %v12544_v58  ;;  %v12562_v59 = vld [vmem:[%s17907_s2 + $0x113c] ss:$40 sps:$4 sm:$0xff]  }
 0x2c0   : > { %8766 = vmatprep.subr.bf16.mxu1 %v12547_v18  ;;  %v12565_v58 = vld [vmem:[%s17907_s2 + $0x244] ss:$40 sps:$4 sm:$0xff]   ;;  %v4156_v18 = vpop.f32.mrf.mxu1 }
 0x2c2   : > { %8714 = vmatpush2.bf16.msra.mxu0 %v12542_v63  ;;  %v12560_v63 = vld [vmem:[%s17907_s2 + $0x1138] ss:$40 sps:$4 sm:$0xff]  }
 0x2c3   : > { %8767 = vmatpush2.bf16.msra.mxu1 %v12545_v54  ;;  %8715 = vmatprep.subr.bf16.mxu0 %v12550_v51  ;;  %v12563_v54 = vld [vmem:[%s17907_s2 + $0x240] ss:$40 sps:$4 sm:$0xff]   ;;  %v3944_v51 = vadd.f32 %v15203_v57, %v15191_v13  ;;  %v12569_v57 = vld [vmem:[%s17907_s2 + $0x1f0] ss:$40 sps:$4 sm:$0xff]  }
 0x2c4   : > { %8768 = vmatprep.subr.bf16.mxu1 %v12553_v48  ;;  %v12568_v48 = vld [vmem:[%s17907_s2 + $0x10ec] ss:$40 sps:$4 sm:$0xff]   ;;  %v12566_v13 = vld [vmem:[%s17907_s2 + $0x10e8] ss:$40 sps:$4 sm:$0xff]  }
 0x2c6   : > { %8716 = vmatpush2.bf16.msra.mxu0 %v12548_v20  ;;  %v12571_v20 = vld [vmem:[%s17907_s2 + $0x1f4] ss:$40 sps:$4 sm:$0xff]  }
 0x2c7   : > { %8769 = vmatpush2.bf16.msra.mxu1 %v12551_v49  ;;  %8717 = vmatprep.subr.bf16.mxu0 %v12556_v21  ;;  %v4158_v49 = vpop.f32.mrf.mxu1 }
 0x2c8   : > { %8770 = vmatprep.subr.bf16.mxu1 %v12559_v44 }
 0x2ca   : > { %8718 = vmatpush2.bf16.msra.mxu0 %v12554_v25  ;;  %v4211_v25 = vmul.f32 %v3944_v51, %v3944_v51  ;;  %v4212_v51 = vmul.f32 %v15464_v47, %v15464_v47  ;;  %v12580_v47 = vld [vmem:[%s17907_s2 + $0x104c] ss:$40 sps:$4 sm:$0xff]  }
 0x2cb   : > { %8771 = vmatpush2.bf16.msra.mxu1 %v12557_v8  ;;  %8793 = vmatprep.subr.bf16.mxu0 %v12562_v59  ;;  %v12574_v59 = vld [vmem:[%s17907_s2 + $0x109c] ss:$40 sps:$4 sm:$0xff]  }
 0x2cc   : > { %8846 = vmatprep.subr.bf16.mxu1 %v12565_v58  ;;  %v12577_v58 = vld [vmem:[%s17907_s2 + $0x1a4] ss:$40 sps:$4 sm:$0xff]  }
 0x2cd   : > { %v4199_v21 = vpop.f32.mrf.mxu0  ;;  %8720 = vmatmul.mubr.bf16.vlgmr.msra.gmra.mxu0 %v15424_v37 }
 0x2ce   : > { %8773 = vmatmul.mubr.bf16.vlgmr.msra.gmra.mxu1 %v15428_v52  ;;  %v4200_v44 = vadd.f32 %v4199_v21, %v4156_v18  ;;  %8794 = vmatpush1.bf16.msra.mxu0 %v12560_v63  ;;  %v3948_v18 = vadd.f32 %v15436_v35, %v15402_v15  ;;  %v12572_v15 = vld [vmem:[%s17907_s2 + $0x1098] ss:$40 sps:$4 sm:$0xff]  }
 0x2cf   : > { %8847 = vmatpush1.bf16.msra.mxu1 %v12563_v54  ;;  %v4201_v8 = vpop.f32.mrf.mxu0  ;;  %8795 = vmatprep.subr.bf16.mxu0 %v12568_v48  ;;  %v4160_v48 = vpop.f32.mrf.mxu1  ;;  %v12575_v35 = vld [vmem:[%s17907_s2 + $0x1a0] ss:$40 sps:$4 sm:$0xff]  }
 0x2d0   : > { %8848 = vmatprep.subr.bf16.mxu1 %v12571_v20  ;;  %v4221_v63 = vmul.f32 %v4200_v44, %v4200_v44  ;;  %v4202_v54 = vadd.f32 %v4201_v8, %v4158_v49  ;;  %8729 = vmatprep.mubr.bf16.mxu0 %v15444_v31  ;;  %v12583_v49 = vld [vmem:[%s17907_s2 + $0x154] ss:$40 sps:$4 sm:$0xff]   ;;  %v4216_v44 = vmul.f32 %v3948_v18, %v3948_v18  ;;  %v12578_v8 = vld [vmem:[%s17907_s2 + $0x1048] ss:$40 sps:$4 sm:$0xff]  }
 0x2d1   : > { %8782 = vmatprep.mubr.bf16.mxu1 %v15446_v42  ;;  %v4203_v20 = vpop.f32.mrf.mxu0  ;;  %v12587_v18 = vld [vmem:[%s17907_s2 + $0x100] ss:$40 sps:$4 sm:$0xff]  }
 0x2d2   : > { %v15927_v21 = vadd.f32 %v4221_v63, %v4211_v25  ;;  %v4222_v10 = vmul.f32 %v4202_v54, %v4202_v54  ;;  %v4204_v6 = vadd.f32 %v4203_v20, %v4160_v48  ;;  %8796 = vmatpush1.bf16.msra.mxu0 %v12566_v13  ;;  %v12592_v63 = vld [vmem:[%s17907_s2 + $0xfac] ss:$40 sps:$4 sm:$0xff]   ;;  %v12593_v48 = vld [vmem:[%s17907_s2 + $0xb0] ss:$40 sps:$4 sm:$0xff]   ;;  %v12598_v20 = vld [vmem:[%s17907_s2 + $0xf5c] ss:$40 sps:$4 sm:$0xff]  }
 0x2d3   : > { %8849 = vmatpush1.bf16.msra.mxu1 %v12569_v57  ;;  %8797 = vmatprep.subr.bf16.mxu0 %v12574_v59  ;;  %v12581_v59 = vld [vmem:[%s17907_s2 + $0x150] ss:$40 sps:$4 sm:$0xff]   ;;  %v12595_v54 = vld [vmem:[%s17907_s2 + $0xb4] ss:$40 sps:$4 sm:$0xff]  }
 0x2d4   : > { %17942 = vst [vmem:[#allocation34_spill] sm:$0xff] %v15927_v21  ;;  %8850 = vmatprep.subr.bf16.mxu1 %v12577_v58  ;;  %v15941_v13 = vadd.f32 %v4222_v10, %v4212_v51  ;;  %v4226_v57 = vmul.f32 %v4204_v6, %v4204_v6  ;;  %v12586_v6 = vld [vmem:[%s17907_s2 + $0xffc] ss:$40 sps:$4 sm:$0xff]   ;;  %v12584_v58 = vld [vmem:[%s17907_s2 + $0xff8] ss:$40 sps:$4 sm:$0xff]  }
 0x2d5   : > { %8730 = vmatmul.mubr.bf16.gmra.mxu0 %v15488_v1  ;;  %v12589_v10 = vld [vmem:[%s17907_s2 + $0x104] ss:$40 sps:$4 sm:$0xff]   ;;  %v12590_v51 = vld [vmem:[%s17907_s2 + $0xfa8] ss:$40 sps:$4 sm:$0xff]  }
 0x2d6   : > { %17943 = vst [vmem:[#allocation35_spill] sm:$0xff] %v15941_v13  ;;  %8783 = vmatmul.mubr.bf16.gmra.mxu1 %v15490_v43  ;;  %v15945_v25 = vadd.f32 %v4226_v57, %v4216_v44  ;;  %8798 = vmatpush1.bf16.msra.mxu0 %v12572_v15  ;;  %v12601_v15 = vld [vmem:[%s17907_s2 + $0x64] ss:$40 sps:$4 sm:$0xff]   ;;  %v12607_v44 = vld [vmem:[%s17907_s2 + $0x14] ss:$40 sps:$4 sm:$0xff]  }
 0x2d7   : > { %8851 = vmatpush1.bf16.msra.mxu1 %v12575_v35  ;;  %8799 = vmatprep.subr.bf16.mxu0 %v12580_v47  ;;  %v12596_v35 = vld [vmem:[%s17907_s2 + $0xf58] ss:$40 sps:$4 sm:$0xff]   ;;  %v12602_v57 = vld [vmem:[%s17907_s2 + $0xf08] ss:$40 sps:$4 sm:$0xff]  }
 0x2d8   : > { %17944 = vst [vmem:[#allocation36_spill] sm:$0xff] %v15945_v25  ;;  %8852 = vmatprep.subr.bf16.mxu1 %v12583_v49  ;;  %8825 = vmatprep.mubr.bf16.mxu0 %v15502_v60  ;;  %v12599_v47 = vld [vmem:[%s17907_s2 + $0x60] ss:$40 sps:$4 sm:$0xff]   ;;  %v12604_v49 = vld [vmem:[%s17907_s2 + $0xf0c] ss:$40 sps:$4 sm:$0xff]  }
 0x2d9   : > { %8878 = vmatprep.mubr.bf16.mxu1 %v14923_v38 }
 0x2da   : > { %8800 = vmatpush1.bf16.msra.mxu0 %v12578_v8  ;;  %v12605_v8 = vld [vmem:[%s17907_s2 + $0x10] ss:$40 sps:$4 sm:$0xff]  }
 0x2db   : > { %8853 = vmatpush1.bf16.msra.mxu1 %v12581_v59  ;;  %8801 = vmatprep.subr.bf16.mxu0 %v12586_v6  ;;  %v12610_v59 = vld [vmem:[%s17907_s2 + $0x13bc] ss:$40 sps:$4 sm:$0xff]  }
 0x2dc   : > { %8854 = vmatprep.subr.bf16.mxu1 %v12589_v10  ;;  %v12613_v6 = vld [vmem:[%s17907_s2 + $0x4c4] ss:$40 sps:$4 sm:$0xff]   ;;  %v12608_v10 = vld [vmem:[%s17907_s2 + $0x13b8] ss:$40 sps:$4 sm:$0xff]  }
 0x2de   : > { %8802 = vmatpush1.bf16.msra.mxu0 %v12584_v58  ;;  %v12611_v58 = vld [vmem:[%s17907_s2 + $0x4c0] ss:$40 sps:$4 sm:$0xff]  }
 0x2df   : > { %8855 = vmatpush1.bf16.msra.mxu1 %v12587_v18  ;;  %8803 = vmatprep.subr.bf16.mxu0 %v12592_v63  ;;  %v16015_v18 = vpop.f32.mrf.mxu1  ;;  %v12616_v63 = vld [vmem:[%s17907_s2 + $0x136c] ss:$40 sps:$4 sm:$0xff]  }
 0x2e0   : > { %8856 = vmatprep.subr.bf16.mxu1 %v12595_v54  ;;  %17945 = vst [vmem:[#allocation37_spill] sm:$0xff] %v16015_v18  ;;  %v12619_v54 = vld [vmem:[%s17907_s2 + $0x474] ss:$40 sps:$4 sm:$0xff]   ;;  %v12670_v18 = vld [vmem:[%s17907_s2 + $0x6a4] ss:$40 sps:$4 sm:$0xff]  }
 0x2e2   : > { %8804 = vmatpush1.bf16.msra.mxu0 %v12590_v51  ;;  %v16023_v51 = vpop.f32.mrf.mxu1 }
 0x2e3   : > { %8857 = vmatpush1.bf16.msra.mxu1 %v12593_v48  ;;  %8805 = vmatprep.subr.bf16.mxu0 %v12598_v20  ;;  %v12614_v48 = vld [vmem:[%s17907_s2 + $0x1368] ss:$40 sps:$4 sm:$0xff]  }
 0x2e4   : > { %8858 = vmatprep.subr.bf16.mxu1 %v12601_v15  ;;  %v12617_v20 = vld [vmem:[%s17907_s2 + $0x470] ss:$40 sps:$4 sm:$0xff]   ;;  %v12622_v15 = vld [vmem:[%s17907_s2 + $0x131c] ss:$40 sps:$4 sm:$0xff]  }
 0x2e6   : > { %8806 = vmatpush1.bf16.msra.mxu0 %v12596_v35  ;;  %v12625_v35 = vld [vmem:[%s17907_s2 + $0x424] ss:$40 sps:$4 sm:$0xff]  }
 0x2e7   : > { %8859 = vmatpush1.bf16.msra.mxu1 %v12599_v47  ;;  %8807 = vmatprep.subr.bf16.mxu0 %v12604_v49  ;;  %v16037_v47 = vpop.f32.mrf.mxu1  ;;  %v12620_v49 = vld [vmem:[%s17907_s2 + $0x1318] ss:$40 sps:$4 sm:$0xff]  }
 0x2e8   : > { %8860 = vmatprep.subr.bf16.mxu1 %v12607_v44  ;;  %v12623_v44 = vld [vmem:[%s17907_s2 + $0x420] ss:$40 sps:$4 sm:$0xff]  }
 0x2ea   : > { %8808 = vmatpush1.bf16.msra.mxu0 %v12602_v57  ;;  %v12628_v57 = vld [vmem:[%s17907_s2 + $0x12cc] ss:$40 sps:$4 sm:$0xff]  }
 0x2eb   : > { %8861 = vmatpush1.bf16.msra.mxu1 %v12605_v8  ;;  %8809 = vmatprep.subr.bf16.mxu0 %v12610_v59  ;;  %v12631_v8 = vld [vmem:[%s17907_s2 + $0x3d4] ss:$40 sps:$4 sm:$0xff]   ;;  %v16051_v59 = vpop.f32.mrf.mxu1 }
 0x2ec   : > { %8862 = vmatprep.subr.bf16.mxu1 %v12613_v6  ;;  %v12626_v6 = vld [vmem:[%s17907_s2 + $0x12c8] ss:$40 sps:$4 sm:$0xff]  }
 0x2ee   : > { %8810 = vmatpush2.bf16.msra.mxu0 %v12608_v10  ;;  %v12629_v10 = vld [vmem:[%s17907_s2 + $0x3d0] ss:$40 sps:$4 sm:$0xff]  }
 0x2ef   : > { %8863 = vmatpush2.bf16.msra.mxu1 %v12611_v58  ;;  %8811 = vmatprep.subr.bf16.mxu0 %v12616_v63  ;;  %v12634_v58 = vld [vmem:[%s17907_s2 + $0x127c] ss:$40 sps:$4 sm:$0xff]  }
 0x2f0   : > { %8864 = vmatprep.subr.bf16.mxu1 %v12619_v54  ;;  %v12637_v63 = vld [vmem:[%s17907_s2 + $0x384] ss:$40 sps:$4 sm:$0xff]   ;;  %v16065_v54 = vpop.f32.mrf.mxu1 }
 0x2f2   : > { %8812 = vmatpush2.bf16.msra.mxu0 %v12614_v48  ;;  %v12632_v48 = vld [vmem:[%s17907_s2 + $0x1278] ss:$40 sps:$4 sm:$0xff]  }
 0x2f3   : > { %8865 = vmatpush2.bf16.msra.mxu1 %v12617_v20  ;;  %8813 = vmatprep.subr.bf16.mxu0 %v12622_v15  ;;  %v12635_v20 = vld [vmem:[%s17907_s2 + $0x380] ss:$40 sps:$4 sm:$0xff]   ;;  %v12640_v15 = vld [vmem:[%s17907_s2 + $0x122c] ss:$40 sps:$4 sm:$0xff]  }
 0x2f4   : > { %8866 = vmatprep.subr.bf16.mxu1 %v12625_v35  ;;  %v12643_v35 = vld [vmem:[%s17907_s2 + $0x334] ss:$40 sps:$4 sm:$0xff]  }
 0x2f6   : > { %8814 = vmatpush2.bf16.msra.mxu0 %v12620_v49  ;;  %v16079_v49 = vpop.f32.mrf.mxu1 }
 0x2f7   : > { %8867 = vmatpush2.bf16.msra.mxu1 %v12623_v44  ;;  %8815 = vmatprep.subr.bf16.mxu0 %v12628_v57  ;;  %v12638_v44 = vld [vmem:[%s17907_s2 + $0x1228] ss:$40 sps:$4 sm:$0xff]  }
 0x2f8   : > { %8868 = vmatprep.subr.bf16.mxu1 %v12631_v8  ;;  %v12641_v57 = vld [vmem:[%s17907_s2 + $0x330] ss:$40 sps:$4 sm:$0xff]   ;;  %v12646_v8 = vld [vmem:[%s17907_s2 + $0x11dc] ss:$40 sps:$4 sm:$0xff]  }
 0x2fa   : > { %8816 = vmatpush2.bf16.msra.mxu0 %v12626_v6  ;;  %v12649_v6 = vld [vmem:[%s17907_s2 + $0x2e4] ss:$40 sps:$4 sm:$0xff]  }
 0x2fb   : > { %8869 = vmatpush2.bf16.msra.mxu1 %v12629_v10  ;;  %8817 = vmatprep.subr.bf16.mxu0 %v12634_v58  ;;  %v16093_v10 = vpop.f32.mrf.mxu1  ;;  %v12644_v58 = vld [vmem:[%s17907_s2 + $0x11d8] ss:$40 sps:$4 sm:$0xff]  }
 0x2fc   : > { %8870 = vmatprep.subr.bf16.mxu1 %v12637_v63  ;;  %v12647_v63 = vld [vmem:[%s17907_s2 + $0x2e0] ss:$40 sps:$4 sm:$0xff]  }
 0x2fe   : > { %8818 = vmatpush2.bf16.msra.mxu0 %v12632_v48  ;;  %v12652_v48 = vld [vmem:[%s17907_s2 + $0x118c] ss:$40 sps:$4 sm:$0xff]  }
 0x2ff   : > { %8871 = vmatpush2.bf16.msra.mxu1 %v12635_v20  ;;  %8819 = vmatprep.subr.bf16.mxu0 %v12640_v15  ;;  %v12655_v20 = vld [vmem:[%s17907_s2 + $0x294] ss:$40 sps:$4 sm:$0xff]   ;;  %v16107_v15 = vpop.f32.mrf.mxu1 }
 0x300   : > { %8872 = vmatprep.subr.bf16.mxu1 %v12643_v35  ;;  %v12650_v35 = vld [vmem:[%s17907_s2 + $0x1188] ss:$40 sps:$4 sm:$0xff]  }
 0x302   : > { %8820 = vmatpush2.bf16.msra.mxu0 %v12638_v44  ;;  %v12653_v44 = vld [vmem:[%s17907_s2 + $0x290] ss:$40 sps:$4 sm:$0xff]  }
 0x303   : > { %8873 = vmatpush2.bf16.msra.mxu1 %v12641_v57  ;;  %8821 = vmatprep.subr.bf16.mxu0 %v12646_v8  ;;  %v12658_v57 = vld [vmem:[%s17907_s2 + $0x744] ss:$40 sps:$4 sm:$0xff]  }
 0x304   : > { %8874 = vmatprep.subr.bf16.mxu1 %v12649_v6  ;;  %v12661_v8 = vld [vmem:[%s17907_s2 + $0xc44] ss:$40 sps:$4 sm:$0xff]   ;;  %v16121_v6 = vpop.f32.mrf.mxu1 }
 0x306   : > { %8822 = vmatpush2.bf16.msra.mxu0 %v12644_v58  ;;  %v12656_v58 = vld [vmem:[%s17907_s2 + $0x740] ss:$40 sps:$4 sm:$0xff]  }
 0x307   : > { %8875 = vmatpush2.bf16.msra.mxu1 %v12647_v63  ;;  %8823 = vmatprep.subr.bf16.mxu0 %v12652_v48  ;;  %v12659_v63 = vld [vmem:[%s17907_s2 + $0xc40] ss:$40 sps:$4 sm:$0xff]   ;;  %v16129_v48 = vpop.f32.mrf.mxu0 }
 0x308   : > { %8876 = vmatprep.subr.bf16.mxu1 %v12655_v20  ;;  %17946 = vst [vmem:[#allocation38_spill] sm:$0xff] %v16129_v48  ;;  %v12664_v20 = vld [vmem:[%s17907_s2 + $0x6f4] ss:$40 sps:$4 sm:$0xff]  }
 0x30a   : > { %8824 = vmatpush2.bf16.msra.mxu0 %v12650_v35  ;;  %v12667_v35 = vld [vmem:[%s17907_s2 + $0xbf4] ss:$40 sps:$4 sm:$0xff]  }
 0x30b   : > { %8877 = vmatpush2.bf16.msra.mxu1 %v12653_v44  ;;  %8899 = vmatprep.subr.bf16.mxu0 %v12658_v57  ;;  %v12662_v57 = vld [vmem:[%s17907_s2 + $0x6f0] ss:$40 sps:$4 sm:$0xff]  }
 0x30c   : > { %8952 = vmatprep.subr.bf16.mxu1 %v12661_v8  ;;  %v12665_v8 = vld [vmem:[%s17907_s2 + $0xbf0] ss:$40 sps:$4 sm:$0xff]  }
 0x30d   : > { %v8509_v44 = vpop.f32.mrf.mxu0  ;;  %8826 = vmatmul.mubr.bf16.vlgmr.msra.gmra.mxu0 %v15671_v14 }
 0x30e   : > { %8879 = vmatmul.mubr.bf16.vlgmr.msra.gmra.mxu1 %v15171_v5  ;;  %v8562_v25 = vpop.f32.mrf.mxu1  ;;  %v8510_v21 = vadd.f32 %v8509_v44, %v16023_v51  ;;  %8900 = vmatpush1.bf16.msra.mxu0 %v12656_v58  ;;  %v12673_v51 = vld [vmem:[%s17907_s2 + $0xba4] ss:$40 sps:$4 sm:$0xff]  }
 0x30f   : > { %8953 = vmatpush1.bf16.msra.mxu1 %v12659_v63  ;;  %v8511_v13 = vpop.f32.mrf.mxu0  ;;  %8901 = vmatprep.subr.bf16.mxu0 %v12664_v20 }
 0x310   : > { %v8564_v48 = vpop.f32.mrf.mxu1  ;;  %8954 = vmatprep.subr.bf16.mxu1 %v12667_v35  ;;  %v8512_v58 = vadd.f32 %v8511_v13, %v16037_v47  ;;  %v16153_v63 = vadd.f32 %v8562_v25, %v8510_v21  ;;  %8835 = vmatprep.mubr.bf16.mxu0 %v15687_v16  ;;  %v12671_v21 = vld [vmem:[%s17907_s2 + $0xba0] ss:$40 sps:$4 sm:$0xff]   ;;  %v12676_v47 = vld [vmem:[%s17907_s2 + $0x654] ss:$40 sps:$4 sm:$0xff]  }
 0x311   : > { %8888 = vmatprep.mubr.bf16.mxu1 %v14879_v7  ;;  %v8513_v44 = vpop.f32.mrf.mxu0 }
 0x312   : > { %v8566_v61 = vpop.f32.mrf.mxu1  ;;  %v8514_v20 = vadd.f32 %v8513_v44, %v16051_v59  ;;  %v16158_v35 = vadd.f32 %v8564_v48, %v8512_v58  ;;  %8902 = vmatpush1.bf16.msra.mxu0 %v12662_v57  ;;  %v12679_v59 = vld [vmem:[%s17907_s2 + $0xb54] ss:$40 sps:$4 sm:$0xff]   ;;  %v12682_v44 = vld [vmem:[%s17907_s2 + $0x604] ss:$40 sps:$4 sm:$0xff]  }
 0x313   : > { %8955 = vmatpush1.bf16.msra.mxu1 %v12665_v8  ;;  %v8515_v13 = vpop.f32.mrf.mxu0  ;;  %8903 = vmatprep.subr.bf16.mxu0 %v12670_v18 }
 0x314   : > { %v8568_v25 = vpop.f32.mrf.mxu1  ;;  %8956 = vmatprep.subr.bf16.mxu1 %v12673_v51  ;;  %v8516_v48 = vadd.f32 %v8515_v13, %v16065_v54  ;;  %v16173_v57 = vadd.f32 %v8566_v61, %v8514_v20  ;;  %v12674_v51 = vld [vmem:[%s17907_s2 + $0x650] ss:$40 sps:$4 sm:$0xff]  }
 0x315   : > { %8836 = vmatmul.mubr.bf16.gmra.mxu0 %v15711_v39  ;;  %v8519_v8 = vpop.f32.mrf.mxu0  ;;  %v12677_v54 = vld [vmem:[%s17907_s2 + $0xb50] ss:$40 sps:$4 sm:$0xff]  }
 0x316   : > { %v8572_v58 = vpop.f32.mrf.mxu1  ;;  %8889 = vmatmul.mubr.bf16.gmra.mxu1 %v14881_v11  ;;  %v16177_v18 = vadd.f32 %v8568_v25, %v8516_v48  ;;  %8904 = vmatpush1.bf16.msra.mxu0 %v12668_v4  ;;  %v8520_v61 = vadd.f32 %v8519_v8, %v16079_v49  ;;  %v12685_v4 = vld [vmem:[%s17907_s2 + $0xb04] ss:$40 sps:$4 sm:$0xff]   ;;  %v12683_v48 = vld [vmem:[%s17907_s2 + $0xb00] ss:$40 sps:$4 sm:$0xff]  }
 0x317   : > { %8957 = vmatpush1.bf16.msra.mxu1 %v12671_v21  ;;  %8905 = vmatprep.subr.bf16.mxu0 %v12676_v47  ;;  %v8521_v20 = vpop.f32.mrf.mxu0 }
 0x318   : > { %8958 = vmatprep.subr.bf16.mxu1 %v12679_v59  ;;  %v8574_v21 = vpop.f32.mrf.mxu1  ;;  %v8522_v13 = vadd.f32 %v8521_v20, %v16093_v10  ;;  %v16193_v25 = vadd.f32 %v8572_v58, %v8520_v61  ;;  %8931 = vmatprep.mubr.bf16.mxu0 %v15189_v27  ;;  %v12680_v59 = vld [vmem:[%s17907_s2 + $0x600] ss:$40 sps:$4 sm:$0xff]   ;;  %v12688_v58 = vld [vmem:[%s17907_s2 + $0x5b4] ss:$40 sps:$4 sm:$0xff]  }
 0x319   : > { %8984 = vmatprep.mubr.bf16.mxu1 %v15241_v29  ;;  %v8523_v49 = vpop.f32.mrf.mxu0 }
 0x31a   : > { %v8576_v47 = vpop.f32.mrf.mxu1  ;;  %8906 = vmatpush1.bf16.msra.mxu0 %v12674_v51  ;;  %v8524_v10 = vadd.f32 %v8523_v49, %v16107_v15  ;;  %v16204_v8 = vadd.f32 %v8574_v21, %v8522_v13  ;;  %v12691_v51 = vld [vmem:[%s17907_s2 + $0xab4] ss:$40 sps:$4 sm:$0xff]   ;;  %v12686_v15 = vld [vmem:[%s17907_s2 + $0x5b0] ss:$40 sps:$4 sm:$0xff]   ;;  %v12697_v21 = vld [vmem:[%s17907_s2 + $0xa64] ss:$40 sps:$4 sm:$0xff]  }
 0x31b   : > { %8959 = vmatpush1.bf16.msra.mxu1 %v12677_v54  ;;  %8907 = vmatprep.subr.bf16.mxu0 %v12682_v44  ;;  %v8525_v54 = vpop.f32.mrf.mxu0  ;;  %v12689_v44 = vld [vmem:[%s17907_s2 + $0xab0] ss:$40 sps:$4 sm:$0xff]   ;;  %v12692_v13 = vld [vmem:[%s17907_s2 + $0x560] ss:$40 sps:$4 sm:$0xff]  }
 0x31c   : > { %8960 = vmatprep.subr.bf16.mxu1 %v12685_v4  ;;  %v8578_v61 = vpop.f32.mrf.mxu1  ;;  %v8526_v20 = vadd.f32 %v8525_v54, %v16121_v6  ;;  %v16213_v12 = vadd.f32 %v8576_v47, %v8524_v10  ;;  %v12694_v6 = vld [vmem:[%s17907_s2 + $0x564] ss:$40 sps:$4 sm:$0xff]   ;;  %v12695_v49 = vld [vmem:[%s17907_s2 + $0xa60] ss:$40 sps:$4 sm:$0xff]   ;;  %v12700_v47 = vld [vmem:[%s17907_s2 + $0x514] ss:$40 sps:$4 sm:$0xff]  }
 0x31d   : > { %v12701_v10 = vld [vmem:[%s17907_s2 + $0xa10] ss:$40 sps:$4 sm:$0xff]   ;;  %v12704_v54 = vld [vmem:[%s17907_s2 + $0x9c0] ss:$40 sps:$4 sm:$0xff]  }
 0x31e   : > { %8908 = vmatpush1.bf16.msra.mxu0 %v12680_v59  ;;  %v16221_v4 = vadd.f32 %v8578_v61, %v8526_v20  ;;  %v12703_v59 = vld [vmem:[%s17907_s2 + $0xa14] ss:$40 sps:$4 sm:$0xff]   ;;  %v12707_v61 = vld [vmem:[%s17907_s2 + $0xec0] ss:$40 sps:$4 sm:$0xff]  }
 0x31f   : > { %8961 = vmatpush1.bf16.msra.mxu1 %v12683_v48  ;;  %8909 = vmatprep.subr.bf16.mxu0 %v12688_v58  ;;  %v12698_v48 = vld [vmem:[%s17907_s2 + $0x510] ss:$40 sps:$4 sm:$0xff]   ;;  %v12706_v58 = vld [vmem:[%s17907_s2 + $0x9c4] ss:$40 sps:$4 sm:$0xff]   ;;  %v12712_v20 = vld [vmem:[%s17907_s2 + $0x974] ss:$40 sps:$4 sm:$0xff]  }
 0x320   : > { %8962 = vmatprep.subr.bf16.mxu1 %v12691_v51  ;;  %v12709_v51 = vld [vmem:[%s17907_s2 + $0xec4] ss:$40 sps:$4 sm:$0xff]  }
 0x322   : > { %8910 = vmatpush1.bf16.msra.mxu0 %v12686_v15  ;;  %v12715_v15 = vld [vmem:[%s17907_s2 + $0xe74] ss:$40 sps:$4 sm:$0xff]  }
 0x323   : > { %8963 = vmatpush1.bf16.msra.mxu1 %v12689_v44  ;;  %8911 = vmatprep.subr.bf16.mxu0 %v12694_v6  ;;  %v12710_v44 = vld [vmem:[%s17907_s2 + $0x970] ss:$40 sps:$4 sm:$0xff]  }
 0x324   : > { %8964 = vmatprep.subr.bf16.mxu1 %v12697_v21  ;;  %v12713_v6 = vld [vmem:[%s17907_s2 + $0xe70] ss:$40 sps:$4 sm:$0xff]   ;;  %v12718_v21 = vld [vmem:[%s17907_s2 + $0x924] ss:$40 sps:$4 sm:$0xff]  }
 0x326   : > { %8912 = vmatpush1.bf16.msra.mxu0 %v12692_v13  ;;  %v12721_v13 = vld [vmem:[%s17907_s2 + $0xe24] ss:$40 sps:$4 sm:$0xff]  }
 0x327   : > { %8965 = vmatpush1.bf16.msra.mxu1 %v12695_v49  ;;  %8913 = vmatprep.subr.bf16.mxu0 %v12700_v47  ;;  %v12716_v49 = vld [vmem:[%s17907_s2 + $0x920] ss:$40 sps:$4 sm:$0xff]  }
 0x328   : > { %8966 = vmatprep.subr.bf16.mxu1 %v12703_v59  ;;  %v12719_v47 = vld [vmem:[%s17907_s2 + $0xe20] ss:$40 sps:$4 sm:$0xff]   ;;  %v12724_v59 = vld [vmem:[%s17907_s2 + $0x8d4] ss:$40 sps:$4 sm:$0xff]  }
 0x32a   : > { %8914 = vmatpush1.bf16.msra.mxu0 %v12698_v48  ;;  %v12727_v48 = vld [vmem:[%s17907_s2 + $0xdd4] ss:$40 sps:$4 sm:$0xff]  }
 0x32b   : > { %8967 = vmatpush1.bf16.msra.mxu1 %v12701_v10  ;;  %8915 = vmatprep.subr.bf16.mxu0 %v12706_v58  ;;  %v12722_v10 = vld [vmem:[%s17907_s2 + $0x8d0] ss:$40 sps:$4 sm:$0xff]  }
 0x32c   : > { %8968 = vmatprep.subr.bf16.mxu1 %v12709_v51  ;;  %v12725_v58 = vld [vmem:[%s17907_s2 + $0xdd0] ss:$40 sps:$4 sm:$0xff]   ;;  %v12730_v51 = vld [vmem:[%s17907_s2 + $0x884] ss:$40 sps:$4 sm:$0xff]  }
 0x32e   : > { %8916 = vmatpush2.bf16.msra.mxu0 %v12704_v54  ;;  %v12733_v54 = vld [vmem:[%s17907_s2 + $0xd84] ss:$40 sps:$4 sm:$0xff]  }
 0x32f   : > { %8969 = vmatpush2.bf16.msra.mxu1 %v12707_v61  ;;  %8917 = vmatprep.subr.bf16.mxu0 %v12712_v20  ;;  %v12728_v61 = vld [vmem:[%s17907_s2 + $0x880] ss:$40 sps:$4 sm:$0xff]  }
 0x330   : > { %8970 = vmatprep.subr.bf16.mxu1 %v12715_v15  ;;  %v12731_v20 = vld [vmem:[%s17907_s2 + $0xd80] ss:$40 sps:$4 sm:$0xff]   ;;  %v12736_v15 = vld [vmem:[%s17907_s2 + $0x834] ss:$40 sps:$4 sm:$0xff]  }
 0x332   : > { %8918 = vmatpush2.bf16.msra.mxu0 %v12710_v44  ;;  %v12739_v44 = vld [vmem:[%s17907_s2 + $0xd34] ss:$40 sps:$4 sm:$0xff]  }
 0x333   : > { %8971 = vmatpush2.bf16.msra.mxu1 %v12713_v6  ;;  %8919 = vmatprep.subr.bf16.mxu0 %v12718_v21  ;;  %v12734_v6 = vld [vmem:[%s17907_s2 + $0x830] ss:$40 sps:$4 sm:$0xff]  }
 0x334   : > { %8972 = vmatprep.subr.bf16.mxu1 %v12721_v13  ;;  %v12737_v21 = vld [vmem:[%s17907_s2 + $0xd30] ss:$40 sps:$4 sm:$0xff]   ;;  %v12742_v13 = vld [vmem:[%s17907_s2 + $0x7e4] ss:$40 sps:$4 sm:$0xff]  }
 0x336   : > { %8920 = vmatpush2.bf16.msra.mxu0 %v12716_v49  ;;  %v12745_v49 = vld [vmem:[%s17907_s2 + $0xce4] ss:$40 sps:$4 sm:$0xff]  }
 0x337   : > { %8973 = vmatpush2.bf16.msra.mxu1 %v12719_v47  ;;  %8921 = vmatprep.subr.bf16.mxu0 %v12724_v59  ;;  %v12740_v47 = vld [vmem:[%s17907_s2 + $0x7e0] ss:$40 sps:$4 sm:$0xff]  }
 0x338   : > { %8974 = vmatprep.subr.bf16.mxu1 %v12727_v48  ;;  %v12743_v59 = vld [vmem:[%s17907_s2 + $0xce0] ss:$40 sps:$4 sm:$0xff]   ;;  %v12748_v48 = vld [vmem:[%s17907_s2 + $0x794] ss:$40 sps:$4 sm:$0xff]  }
 0x33a   : > { %8922 = vmatpush2.bf16.msra.mxu0 %v12722_v10  ;;  %v12751_v10 = vld [vmem:[%s17907_s2 + $0xc94] ss:$40 sps:$4 sm:$0xff]  }
 0x33b   : > { %8975 = vmatpush2.bf16.msra.mxu1 %v12725_v58  ;;  %8923 = vmatprep.subr.bf16.mxu0 %v12730_v51  ;;  %v12746_v58 = vld [vmem:[%s17907_s2 + $0x790] ss:$40 sps:$4 sm:$0xff]  }
 0x33c   : > { %8976 = vmatprep.subr.bf16.mxu1 %v12733_v54  ;;  %v12749_v51 = vld [vmem:[%s17907_s2 + $0xc90] ss:$40 sps:$4 sm:$0xff]   ;;  %v12754_v54 = vld [vmem:[%s17907_s2 + $0x1144] ss:$40 sps:$4 sm:$0xff]  }
 0x33e   : > { %8924 = vmatpush2.bf16.msra.mxu0 %v12728_v61  ;;  %v12757_v61 = vld [vmem:[%s17907_s2 + $0x24c] ss:$40 sps:$4 sm:$0xff]  }
 0x33f   : > { %8977 = vmatpush2.bf16.msra.mxu1 %v12731_v20  ;;  %8925 = vmatprep.subr.bf16.mxu0 %v12736_v15  ;;  %v12752_v20 = vld [vmem:[%s17907_s2 + $0x1140] ss:$40 sps:$4 sm:$0xff]  }
 0x340   : > { %8978 = vmatprep.subr.bf16.mxu1 %v12739_v44  ;;  %v12755_v15 = vld [vmem:[%s17907_s2 + $0x248] ss:$40 sps:$4 sm:$0xff]   ;;  %v12760_v44 = vld [vmem:[%s17907_s2 + $0x10f4] ss:$40 sps:$4 sm:$0xff]  }
 0x342   : > { %8926 = vmatpush2.bf16.msra.mxu0 %v12734_v6  ;;  %v12763_v6 = vld [vmem:[%s17907_s2 + $0x1fc] ss:$40 sps:$4 sm:$0xff]  }
 0x343   : > { %8979 = vmatpush2.bf16.msra.mxu1 %v12737_v21  ;;  %8927 = vmatprep.subr.bf16.mxu0 %v12742_v13 }
 0x344   : > { %8980 = vmatprep.subr.bf16.mxu1 %v12745_v49  ;;  %v12758_v49 = vld [vmem:[%s17907_s2 + $0x10f0] ss:$40 sps:$4 sm:$0xff]  }
 0x346   : > { %8928 = vmatpush2.bf16.msra.mxu0 %v12740_v47  ;;  %v12761_v47 = vld [vmem:[%s17907_s2 + $0x1f8] ss:$40 sps:$4 sm:$0xff]  }
 0x347   : > { %8981 = vmatpush2.bf16.msra.mxu1 %v12743_v59  ;;  %8929 = vmatprep.subr.bf16.mxu0 %v12748_v48  ;;  %v12766_v48 = vld [vmem:[%s17907_s2 + $0x10a4] ss:$40 sps:$4 sm:$0xff]  }
 0x348   : > { %8982 = vmatprep.subr.bf16.mxu1 %v12751_v10 }
 0x34a   : > { %8930 = vmatpush2.bf16.msra.mxu0 %v12746_v58 }
 0x34b   : > { %8983 = vmatpush2.bf16.msra.mxu1 %v12749_v51  ;;  %9005 = vmatprep.subr.bf16.mxu0 %v12754_v54  ;;  %v12764_v54 = vld [vmem:[%s17907_s2 + $0x10a0] ss:$40 sps:$4 sm:$0xff]  }
 0x34c   : > { %9058 = vmatprep.subr.bf16.mxu1 %v12757_v61  ;;  %v12767_v61 = vld [vmem:[%s17907_s2 + $0x1a8] ss:$40 sps:$4 sm:$0xff]  }
 0x34d   : > { %v8615_v21 = vpop.f32.mrf.mxu0  ;;  %8932 = vmatmul.mubr.bf16.vlgmr.msra.gmra.mxu0 %v15424_v37 }
 0x34e   : > { %8985 = vmatmul.mubr.bf16.vlgmr.msra.gmra.mxu1 %v15428_v52  ;;  %v16364_v13 = vadd.f32 %v8615_v21, %v16153_v63  ;;  %9006 = vmatpush1.bf16.msra.mxu0 %v12752_v20  ;;  %v12769_v63 = vld [vmem:[%s17907_s2 + $0x1ac] ss:$40 sps:$4 sm:$0xff]   ;;  %v12770_v21 = vld [vmem:[%s17907_s2 + $0x1050] ss:$40 sps:$4 sm:$0xff]  }
 0x34f   : > { %9059 = vmatpush1.bf16.msra.mxu1 %v12755_v15  ;;  %v8617_v59 = vpop.f32.mrf.mxu0  ;;  %9007 = vmatprep.subr.bf16.mxu0 %v12760_v44  ;;  %v12772_v20 = vld [vmem:[%s17907_s2 + $0x1054] ss:$40 sps:$4 sm:$0xff]  }
 0x350   : > { %17947 = vst [vmem:[#allocation39_spill] sm:$0xff] %v16364_v13  ;;  %9060 = vmatprep.subr.bf16.mxu1 %v12763_v6  ;;  %v16379_v10 = vadd.f32 %v8617_v59, %v16158_v35  ;;  %8941 = vmatprep.mubr.bf16.mxu0 %v15444_v31 }
 0x351   : > { %8994 = vmatprep.mubr.bf16.mxu1 %v15446_v42  ;;  %v8619_v58 = vpop.f32.mrf.mxu0 }
 0x352   : > { %17948 = vst [vmem:[#allocation40_spill] sm:$0xff] %v16379_v10  ;;  %v16384_v51 = vadd.f32 %v8619_v58, %v16173_v57  ;;  %9008 = vmatpush1.bf16.msra.mxu0 %v12758_v49  ;;  %v12775_v57 = vld [vmem:[%s17907_s2 + $0x15c] ss:$40 sps:$4 sm:$0xff]   ;;  %v12773_v49 = vld [vmem:[%s17907_s2 + $0x158] ss:$40 sps:$4 sm:$0xff]  }
 0x353   : > { %9061 = vmatpush1.bf16.msra.mxu1 %v12761_v47  ;;  %v8621_v35 = vpop.f32.mrf.mxu0  ;;  %9009 = vmatprep.subr.bf16.mxu0 %v12766_v48  ;;  %v12778_v47 = vld [vmem:[%s17907_s2 + $0x1004] ss:$40 sps:$4 sm:$0xff]   ;;  %v12776_v58 = vld [vmem:[%s17907_s2 + $0x1000] ss:$40 sps:$4 sm:$0xff]  }
 0x354   : > { %17949 = vst [vmem:[#allocation41_spill] sm:$0xff] %v16384_v51  ;;  %9062 = vmatprep.subr.bf16.mxu1 %v12769_v63  ;;  %v16399_v15 = vadd.f32 %v8621_v35, %v16177_v18  ;;  %v12860_v51 = vld [vmem:[%s17907_s2 + $0x6a8] ss:$40 sps:$4 sm:$0xff]  }
 0x355   : > { %v8625_v44 = vpop.f32.mrf.mxu0  ;;  %8942 = vmatmul.mubr.bf16.gmra.mxu0 %v15488_v1 }
 0x356   : > { %17950 = vst [vmem:[#allocation42_spill] sm:$0xff] %v16399_v15  ;;  %8995 = vmatmul.mubr.bf16.gmra.mxu1 %v15490_v43  ;;  %v16404_v6 = vadd.f32 %v8625_v44, %v16193_v25  ;;  %9010 = vmatpush1.bf16.msra.mxu0 %v12764_v54  ;;  %v12781_v25 = vld [vmem:[%s17907_s2 + $0x10c] ss:$40 sps:$4 sm:$0xff]   ;;  %v12779_v54 = vld [vmem:[%s17907_s2 + $0x108] ss:$40 sps:$4 sm:$0xff]  }
 0x357   : > { %9063 = vmatpush1.bf16.msra.mxu1 %v12767_v61  ;;  %v8627_v18 = vpop.f32.mrf.mxu0  ;;  %9011 = vmatprep.subr.bf16.mxu0 %v12772_v20  ;;  %v12784_v61 = vld [vmem:[%s17907_s2 + $0xfb4] ss:$40 sps:$4 sm:$0xff]   ;;  %v12782_v20 = vld [vmem:[%s17907_s2 + $0xfb0] ss:$40 sps:$4 sm:$0xff]   ;;  %v12790_v44 = vld [vmem:[%s17907_s2 + $0xf64] ss:$40 sps:$4 sm:$0xff]  }
 0x358   : > { %17951 = vst [vmem:[#allocation43_spill] sm:$0xff] %v16404_v6  ;;  %9064 = vmatprep.subr.bf16.mxu1 %v12775_v57  ;;  %v16419_v59 = vadd.f32 %v8627_v18, %v16204_v8  ;;  %9037 = vmatprep.mubr.bf16.mxu0 %v15502_v60  ;;  %v12785_v57 = vld [vmem:[%s17907_s2 + $0xb8] ss:$40 sps:$4 sm:$0xff]   ;;  %v12796_v18 = vld [vmem:[%s17907_s2 + $0xf14] ss:$40 sps:$4 sm:$0xff]  }
 0x359   : > { %9090 = vmatprep.mubr.bf16.mxu1 %v14923_v38  ;;  %v8629_v48 = vpop.f32.mrf.mxu0  ;;  %v12862_v15 = vld [vmem:[%s17907_s2 + $0x6ac] ss:$40 sps:$4 sm:$0xff]  }
 0x35a   : > { %17952 = vst [vmem:[#allocation44_spill] sm:$0xff] %v16419_v59  ;;  %v16424_v63 = vadd.f32 %v8629_v48, %v16213_v12  ;;  %9012 = vmatpush1.bf16.msra.mxu0 %v12770_v21  ;;  %v12787_v12 = vld [vmem:[%s17907_s2 + $0xbc] ss:$40 sps:$4 sm:$0xff]   ;;  %v12788_v21 = vld [vmem:[%s17907_s2 + $0xf60] ss:$40 sps:$4 sm:$0xff]  }
 0x35b   : > { %9065 = vmatpush1.bf16.msra.mxu1 %v12773_v49  ;;  %v8631_v8 = vpop.f32.mrf.mxu0  ;;  %9013 = vmatprep.subr.bf16.mxu0 %v12778_v47  ;;  %v12791_v49 = vld [vmem:[%s17907_s2 + $0x68] ss:$40 sps:$4 sm:$0xff]   ;;  %v12799_v47 = vld [vmem:[%s17907_s2 + $0x1c] ss:$40 sps:$4 sm:$0xff]   ;;  %v12797_v48 = vld [vmem:[%s17907_s2 + $0x18] ss:$40 sps:$4 sm:$0xff]  }
 0x35c   : > { %17953 = vst [vmem:[#allocation45_spill] sm:$0xff] %v16424_v63  ;;  %9066 = vmatprep.subr.bf16.mxu1 %v12781_v25  ;;  %v16439_v35 = vadd.f32 %v8631_v8, %v16221_v4  ;;  %v12793_v4 = vld [vmem:[%s17907_s2 + $0x6c] ss:$40 sps:$4 sm:$0xff]   ;;  %v12794_v25 = vld [vmem:[%s17907_s2 + $0xf10] ss:$40 sps:$4 sm:$0xff]  }
 0x35d   : > { %v12800_v8 = vld [vmem:[%s17907_s2 + $0x13c0] ss:$40 sps:$4 sm:$0xff]  }
 0x35e   : > { %17954 = vst [vmem:[#allocation46_spill] sm:$0xff] %v16439_v35  ;;  %9014 = vmatpush1.bf16.msra.mxu0 %v12776_v58  ;;  %v12802_v58 = vld [vmem:[%s17907_s2 + $0x13c4] ss:$40 sps:$4 sm:$0xff]  }
 0x35f   : > { %9067 = vmatpush1.bf16.msra.mxu1 %v12779_v54  ;;  %9015 = vmatprep.subr.bf16.mxu0 %v12784_v61  ;;  %v12805_v54 = vld [vmem:[%s17907_s2 + $0x4cc] ss:$40 sps:$4 sm:$0xff]   ;;  %v12803_v61 = vld [vmem:[%s17907_s2 + $0x4c8] ss:$40 sps:$4 sm:$0xff]   ;;  %v12859_v35 = vld [vmem:[%s17907_s2 + $0xbfc] ss:$40 sps:$4 sm:$0xff]  }
 0x360   : > { %9068 = vmatprep.subr.bf16.mxu1 %v12787_v12  ;;  %v12808_v12 = vld [vmem:[%s17907_s2 + $0x1374] ss:$40 sps:$4 sm:$0xff]  }
 0x362   : > { %9016 = vmatpush1.bf16.msra.mxu0 %v12782_v20  ;;  %v12811_v20 = vld [vmem:[%s17907_s2 + $0x47c] ss:$40 sps:$4 sm:$0xff]  }
 0x363   : > { %9069 = vmatpush1.bf16.msra.mxu1 %v12785_v57  ;;  %9017 = vmatprep.subr.bf16.mxu0 %v12790_v44  ;;  %v16489_v57 = vpop.f32.mrf.mxu1  ;;  %v12806_v44 = vld [vmem:[%s17907_s2 + $0x1370] ss:$40 sps:$4 sm:$0xff]  }
 0x364   : > { %9070 = vmatprep.subr.bf16.mxu1 %v12793_v4  ;;  %v12809_v4 = vld [vmem:[%s17907_s2 + $0x478] ss:$40 sps:$4 sm:$0xff]  }
 0x366   : > { %9018 = vmatpush1.bf16.msra.mxu0 %v12788_v21  ;;  %v12814_v21 = vld [vmem:[%s17907_s2 + $0x1324] ss:$40 sps:$4 sm:$0xff]  }
 0x367   : > { %9071 = vmatpush1.bf16.msra.mxu1 %v12791_v49  ;;  %9019 = vmatprep.subr.bf16.mxu0 %v12796_v18  ;;  %v12817_v49 = vld [vmem:[%s17907_s2 + $0x42c] ss:$40 sps:$4 sm:$0xff]   ;;  %v16503_v18 = vpop.f32.mrf.mxu1 }
 0x368   : > { %9072 = vmatprep.subr.bf16.mxu1 %v12799_v47  ;;  %v12812_v47 = vld [vmem:[%s17907_s2 + $0x1320] ss:$40 sps:$4 sm:$0xff]  }
 0x36a   : > { %9020 = vmatpush1.bf16.msra.mxu0 %v12794_v25  ;;  %v12815_v25 = vld [vmem:[%s17907_s2 + $0x428] ss:$40 sps:$4 sm:$0xff]  }
 0x36b   : > { %9073 = vmatpush1.bf16.msra.mxu1 %v12797_v48  ;;  %9021 = vmatprep.subr.bf16.mxu0 %v12802_v58  ;;  %v12820_v48 = vld [vmem:[%s17907_s2 + $0x12d4] ss:$40 sps:$4 sm:$0xff]  }
 0x36c   : > { %9074 = vmatprep.subr.bf16.mxu1 %v12805_v54  ;;  %v12823_v58 = vld [vmem:[%s17907_s2 + $0x3dc] ss:$40 sps:$4 sm:$0xff]   ;;  %v16517_v54 = vpop.f32.mrf.mxu1 }
 0x36e   : > { %9022 = vmatpush2.bf16.msra.mxu0 %v12800_v8  ;;  %v12818_v8 = vld [vmem:[%s17907_s2 + $0x12d0] ss:$40 sps:$4 sm:$0xff]  }
 0x36f   : > { %9075 = vmatpush2.bf16.msra.mxu1 %v12803_v61  ;;  %9023 = vmatprep.subr.bf16.mxu0 %v12808_v12  ;;  %v12821_v61 = vld [vmem:[%s17907_s2 + $0x3d8] ss:$40 sps:$4 sm:$0xff]   ;;  %v12826_v12 = vld [vmem:[%s17907_s2 + $0x1284] ss:$40 sps:$4 sm:$0xff]  }
 0x370   : > { %9076 = vmatprep.subr.bf16.mxu1 %v12811_v20  ;;  %v12829_v20 = vld [vmem:[%s17907_s2 + $0x38c] ss:$40 sps:$4 sm:$0xff]  }
 0x372   : > { %9024 = vmatpush2.bf16.msra.mxu0 %v12806_v44  ;;  %v16531_v44 = vpop.f32.mrf.mxu1 }
 0x373   : > { %9077 = vmatpush2.bf16.msra.mxu1 %v12809_v4  ;;  %9025 = vmatprep.subr.bf16.mxu0 %v12814_v21  ;;  %v12824_v4 = vld [vmem:[%s17907_s2 + $0x1280] ss:$40 sps:$4 sm:$0xff]  }
 0x374   : > { %9078 = vmatprep.subr.bf16.mxu1 %v12817_v49  ;;  %v12827_v21 = vld [vmem:[%s17907_s2 + $0x388] ss:$40 sps:$4 sm:$0xff]   ;;  %v12832_v49 = vld [vmem:[%s17907_s2 + $0x1234] ss:$40 sps:$4 sm:$0xff]  }
 0x376   : > { %9026 = vmatpush2.bf16.msra.mxu0 %v12812_v47  ;;  %v12835_v47 = vld [vmem:[%s17907_s2 + $0x33c] ss:$40 sps:$4 sm:$0xff]  }
 0x377   : > { %9079 = vmatpush2.bf16.msra.mxu1 %v12815_v25  ;;  %9027 = vmatprep.subr.bf16.mxu0 %v12820_v48  ;;  %v16545_v25 = vpop.f32.mrf.mxu1  ;;  %v12830_v48 = vld [vmem:[%s17907_s2 + $0x1230] ss:$40 sps:$4 sm:$0xff]  }
 0x378   : > { %9080 = vmatprep.subr.bf16.mxu1 %v12823_v58  ;;  %v12833_v58 = vld [vmem:[%s17907_s2 + $0x338] ss:$40 sps:$4 sm:$0xff]  }
 0x37a   : > { %9028 = vmatpush2.bf16.msra.mxu0 %v12818_v8  ;;  %v12838_v8 = vld [vmem:[%s17907_s2 + $0x11e4] ss:$40 sps:$4 sm:$0xff]  }
 0x37b   : > { %9081 = vmatpush2.bf16.msra.mxu1 %v12821_v61  ;;  %9029 = vmatprep.subr.bf16.mxu0 %v12826_v12  ;;  %v12841_v61 = vld [vmem:[%s17907_s2 + $0x2ec] ss:$40 sps:$4 sm:$0xff]   ;;  %v16559_v12 = vpop.f32.mrf.mxu1 }
 0x37c   : > { %9082 = vmatprep.subr.bf16.mxu1 %v12829_v20  ;;  %v12836_v20 = vld [vmem:[%s17907_s2 + $0x11e0] ss:$40 sps:$4 sm:$0xff]  }
 0x37e   : > { %9030 = vmatpush2.bf16.msra.mxu0 %v12824_v4  ;;  %v12839_v4 = vld [vmem:[%s17907_s2 + $0x2e8] ss:$40 sps:$4 sm:$0xff]  }
 0x37f   : > { %9083 = vmatpush2.bf16.msra.mxu1 %v12827_v21  ;;  %9031 = vmatprep.subr.bf16.mxu0 %v12832_v49  ;;  %v12844_v21 = vld [vmem:[%s17907_s2 + $0x1194] ss:$40 sps:$4 sm:$0xff]  }
 0x380   : > { %9084 = vmatprep.subr.bf16.mxu1 %v12835_v47  ;;  %v12847_v49 = vld [vmem:[%s17907_s2 + $0x29c] ss:$40 sps:$4 sm:$0xff]   ;;  %v16573_v47 = vpop.f32.mrf.mxu1 }
 0x382   : > { %9032 = vmatpush2.bf16.msra.mxu0 %v12830_v48  ;;  %v12842_v48 = vld [vmem:[%s17907_s2 + $0x1190] ss:$40 sps:$4 sm:$0xff]  }
 0x383   : > { %9085 = vmatpush2.bf16.msra.mxu1 %v12833_v58  ;;  %9033 = vmatprep.subr.bf16.mxu0 %v12838_v8  ;;  %v12845_v58 = vld [vmem:[%s17907_s2 + $0x298] ss:$40 sps:$4 sm:$0xff]   ;;  %v12850_v8 = vld [vmem:[%s17907_s2 + $0x74c] ss:$40 sps:$4 sm:$0xff]  }
 0x384   : > { %9086 = vmatprep.subr.bf16.mxu1 %v12841_v61  ;;  %v12853_v61 = vld [vmem:[%s17907_s2 + $0xc4c] ss:$40 sps:$4 sm:$0xff]  }
 0x386   : > { %9034 = vmatpush2.bf16.msra.mxu0 %v12836_v20  ;;  %v16587_v20 = vpop.f32.mrf.mxu1 }
 0x387   : > { %9087 = vmatpush2.bf16.msra.mxu1 %v12839_v4  ;;  %9035 = vmatprep.subr.bf16.mxu0 %v12844_v21  ;;  %v12848_v4 = vld [vmem:[%s17907_s2 + $0x748] ss:$40 sps:$4 sm:$0xff]  }
 0x388   : > { %9088 = vmatprep.subr.bf16.mxu1 %v12847_v49  ;;  %v12851_v21 = vld [vmem:[%s17907_s2 + $0xc48] ss:$40 sps:$4 sm:$0xff]   ;;  %v12856_v49 = vld [vmem:[%s17907_s2 + $0x6fc] ss:$40 sps:$4 sm:$0xff]  }
 0x38a   : > { %9036 = vmatpush2.bf16.msra.mxu0 %v12842_v48 }
 0x38b   : > { %9089 = vmatpush2.bf16.msra.mxu1 %v12845_v58  ;;  %9111 = vmatprep.subr.bf16.mxu0 %v12850_v8  ;;  %v12854_v8 = vld [vmem:[%s17907_s2 + $0x6f8] ss:$40 sps:$4 sm:$0xff]  }
 0x38c   : > { %9164 = vmatprep.subr.bf16.mxu1 %v12853_v61  ;;  %v12857_v61 = vld [vmem:[%s17907_s2 + $0xbf8] ss:$40 sps:$4 sm:$0xff]  }
 0x38d   : > { %v8721_v48 = vpop.f32.mrf.mxu0  ;;  %9038 = vmatmul.mubr.bf16.vlgmr.msra.gmra.mxu0 %v15671_v14 }
 0x38e   : > { %9091 = vmatmul.mubr.bf16.vlgmr.msra.gmra.mxu1 %v15171_v5  ;;  %v8774_v58 = vpop.f32.mrf.mxu1  ;;  %v8722_v59 = vadd.f32 %v8721_v48, %v16489_v57  ;;  %9112 = vmatpush1.bf16.msra.mxu0 %v12848_v4  ;;  %v12865_v57 = vld [vmem:[%s17907_s2 + $0xbac] ss:$40 sps:$4 sm:$0xff]  }
 0x38f   : > { %9165 = vmatpush1.bf16.msra.mxu1 %v12851_v21  ;;  %v8723_v63 = vpop.f32.mrf.mxu0  ;;  %9113 = vmatprep.subr.bf16.mxu0 %v12856_v49 }
 0x390   : > { %v8776_v6 = vpop.f32.mrf.mxu1  ;;  %9166 = vmatprep.subr.bf16.mxu1 %v12859_v35  ;;  %v8724_v4 = vadd.f32 %v8723_v63, %v16503_v18  ;;  %v16617_v21 = vadd.f32 %v8774_v58, %v8722_v59  ;;  %9047 = vmatprep.mubr.bf16.mxu0 %v15687_v16  ;;  %v12863_v59 = vld [vmem:[%s17907_s2 + $0xba8] ss:$40 sps:$4 sm:$0xff]  }
 0x391   : > { %9100 = vmatprep.mubr.bf16.mxu1 %v14879_v7  ;;  %v8725_v48 = vpop.f32.mrf.mxu0 }
 0x392   : > { %v8778_v10 = vpop.f32.mrf.mxu1  ;;  %v8726_v35 = vadd.f32 %v8725_v48, %v16517_v54  ;;  %v16622_v49 = vadd.f32 %v8776_v6, %v8724_v4  ;;  %9114 = vmatpush1.bf16.msra.mxu0 %v12854_v8  ;;  %v12868_v54 = vld [vmem:[%s17907_s2 + $0x65c] ss:$40 sps:$4 sm:$0xff]   ;;  %v12874_v48 = vld [vmem:[%s17907_s2 + $0x60c] ss:$40 sps:$4 sm:$0xff]  }
 0x393   : > { %9167 = vmatpush1.bf16.msra.mxu1 %v12857_v61  ;;  %v8727_v63 = vpop.f32.mrf.mxu0  ;;  %9115 = vmatprep.subr.bf16.mxu0 %v12862_v15  ;;  %v12871_v6 = vld [vmem:[%s17907_s2 + $0xb5c] ss:$40 sps:$4 sm:$0xff]  }
 0x394   : > { %v8780_v18 = vpop.f32.mrf.mxu1  ;;  %9168 = vmatprep.subr.bf16.mxu1 %v12865_v57  ;;  %v8728_v58 = vadd.f32 %v8727_v63, %v16531_v44  ;;  %v16637_v8 = vadd.f32 %v8778_v10, %v8726_v35  ;;  %v12866_v57 = vld [vmem:[%s17907_s2 + $0x658] ss:$40 sps:$4 sm:$0xff]  }
 0x395   : > { %9048 = vmatmul.mubr.bf16.gmra.mxu0 %v15711_v39  ;;  %v8731_v61 = vpop.f32.mrf.mxu0  ;;  %v12869_v44 = vld [vmem:[%s17907_s2 + $0xb58] ss:$40 sps:$4 sm:$0xff]  }
 0x396   : > { %v8784_v4 = vpop.f32.mrf.mxu1  ;;  %9101 = vmatmul.mubr.bf16.gmra.mxu1 %v14881_v11  ;;  %v16641_v15 = vadd.f32 %v8780_v18, %v8728_v58  ;;  %9116 = vmatpush1.bf16.msra.mxu0 %v12860_v51  ;;  %v8732_v10 = vadd.f32 %v8731_v61, %v16545_v25  ;;  %v12877_v51 = vld [vmem:[%s17907_s2 + $0xb0c] ss:$40 sps:$4 sm:$0xff]   ;;  %v12875_v58 = vld [vmem:[%s17907_s2 + $0xb08] ss:$40 sps:$4 sm:$0xff]  }
 0x397   : > { %9169 = vmatpush1.bf16.msra.mxu1 %v12863_v59  ;;  %9117 = vmatprep.subr.bf16.mxu0 %v12868_v54  ;;  %v8733_v35 = vpop.f32.mrf.mxu0 }
 0x398   : > { %9170 = vmatprep.subr.bf16.mxu1 %v12871_v6  ;;  %v8786_v59 = vpop.f32.mrf.mxu1  ;;  %v8734_v63 = vadd.f32 %v8733_v35, %v16559_v12  ;;  %v16657_v18 = vadd.f32 %v8784_v4, %v8732_v10  ;;  %9143 = vmatprep.mubr.bf16.mxu0 %v15189_v27  ;;  %v12872_v6 = vld [vmem:[%s17907_s2 + $0x608] ss:$40 sps:$4 sm:$0xff]   ;;  %v12880_v4 = vld [vmem:[%s17907_s2 + $0x5bc] ss:$40 sps:$4 sm:$0xff]  }
 0x399   : > { %9196 = vmatprep.mubr.bf16.mxu1 %v15241_v29  ;;  %v8735_v25 = vpop.f32.mrf.mxu0 }
 0x39a   : > { %v8788_v54 = vpop.f32.mrf.mxu1  ;;  %9118 = vmatpush1.bf16.msra.mxu0 %v12866_v57  ;;  %v8736_v12 = vadd.f32 %v8735_v25, %v16573_v47  ;;  %v16668_v61 = vadd.f32 %v8786_v59, %v8734_v63  ;;  %v12883_v57 = vld [vmem:[%s17907_s2 + $0xabc] ss:$40 sps:$4 sm:$0xff]   ;;  %v12878_v47 = vld [vmem:[%s17907_s2 + $0x5b8] ss:$40 sps:$4 sm:$0xff]   ;;  %v12889_v59 = vld [vmem:[%s17907_s2 + $0xa6c] ss:$40 sps:$4 sm:$0xff]  }
 0x39b   : > { %9171 = vmatpush1.bf16.msra.mxu1 %v12869_v44  ;;  %9119 = vmatprep.subr.bf16.mxu0 %v12874_v48  ;;  %v8737_v44 = vpop.f32.mrf.mxu0  ;;  %v12881_v48 = vld [vmem:[%s17907_s2 + $0xab8] ss:$40 sps:$4 sm:$0xff]   ;;  %v12884_v63 = vld [vmem:[%s17907_s2 + $0x568] ss:$40 sps:$4 sm:$0xff]  }
 0x39c   : > { %9172 = vmatprep.subr.bf16.mxu1 %v12877_v51  ;;  %v8790_v10 = vpop.f32.mrf.mxu1  ;;  %v8738_v35 = vadd.f32 %v8737_v44, %v16587_v20  ;;  %v16677_v13 = vadd.f32 %v8788_v54, %v8736_v12  ;;  %v12886_v20 = vld [vmem:[%s17907_s2 + $0x56c] ss:$40 sps:$4 sm:$0xff]   ;;  %v12887_v25 = vld [vmem:[%s17907_s2 + $0xa68] ss:$40 sps:$4 sm:$0xff]   ;;  %v12892_v54 = vld [vmem:[%s17907_s2 + $0x51c] ss:$40 sps:$4 sm:$0xff]  }
 0x39d   : > { %v12893_v12 = vld [vmem:[%s17907_s2 + $0xa18] ss:$40 sps:$4 sm:$0xff]   ;;  %v12896_v44 = vld [vmem:[%s17907_s2 + $0x9c8] ss:$40 sps:$4 sm:$0xff]  }
 0x39e   : > { %9120 = vmatpush1.bf16.msra.mxu0 %v12872_v6  ;;  %v16685_v51 = vadd.f32 %v8790_v10, %v8738_v35  ;;  %v12895_v6 = vld [vmem:[%s17907_s2 + $0xa1c] ss:$40 sps:$4 sm:$0xff]   ;;  %v12899_v10 = vld [vmem:[%s17907_s2 + $0xec8] ss:$40 sps:$4 sm:$0xff]  }
 0x39f   : > { %9173 = vmatpush1.bf16.msra.mxu1 %v12875_v58  ;;  %9121 = vmatprep.subr.bf16.mxu0 %v12880_v4  ;;  %v12890_v58 = vld [vmem:[%s17907_s2 + $0x518] ss:$40 sps:$4 sm:$0xff]   ;;  %v12898_v4 = vld [vmem:[%s17907_s2 + $0x9cc] ss:$40 sps:$4 sm:$0xff]   ;;  %v12904_v35 = vld [vmem:[%s17907_s2 + $0x97c] ss:$40 sps:$4 sm:$0xff]  }
 0x3a0   : > { %9174 = vmatprep.subr.bf16.mxu1 %v12883_v57  ;;  %v12901_v57 = vld [vmem:[%s17907_s2 + $0xecc] ss:$40 sps:$4 sm:$0xff]  }
 0x3a2   : > { %9122 = vmatpush1.bf16.msra.mxu0 %v12878_v47  ;;  %v12907_v47 = vld [vmem:[%s17907_s2 + $0xe7c] ss:$40 sps:$4 sm:$0xff]  }
 0x3a3   : > { %9175 = vmatpush1.bf16.msra.mxu1 %v12881_v48  ;;  %9123 = vmatprep.subr.bf16.mxu0 %v12886_v20  ;;  %v12902_v48 = vld [vmem:[%s17907_s2 + $0x978] ss:$40 sps:$4 sm:$0xff]  }
 0x3a4   : > { %9176 = vmatprep.subr.bf16.mxu1 %v12889_v59  ;;  %v12905_v20 = vld [vmem:[%s17907_s2 + $0xe78] ss:$40 sps:$4 sm:$0xff]   ;;  %v12910_v59 = vld [vmem:[%s17907_s2 + $0x92c] ss:$40 sps:$4 sm:$0xff]  }
 0x3a6   : > { %9124 = vmatpush1.bf16.msra.mxu0 %v12884_v63  ;;  %v12913_v63 = vld [vmem:[%s17907_s2 + $0xe2c] ss:$40 sps:$4 sm:$0xff]  }
 0x3a7   : > { %9177 = vmatpush1.bf16.msra.mxu1 %v12887_v25  ;;  %9125 = vmatprep.subr.bf16.mxu0 %v12892_v54  ;;  %v12908_v25 = vld [vmem:[%s17907_s2 + $0x928] ss:$40 sps:$4 sm:$0xff]  }
 0x3a8   : > { %9178 = vmatprep.subr.bf16.mxu1 %v12895_v6  ;;  %v12911_v54 = vld [vmem:[%s17907_s2 + $0xe28] ss:$40 sps:$4 sm:$0xff]   ;;  %v12916_v6 = vld [vmem:[%s17907_s2 + $0x8dc] ss:$40 sps:$4 sm:$0xff]  }
 0x3aa   : > { %9126 = vmatpush1.bf16.msra.mxu0 %v12890_v58  ;;  %v12919_v58 = vld [vmem:[%s17907_s2 + $0xddc] ss:$40 sps:$4 sm:$0xff]  }
 0x3ab   : > { %9179 = vmatpush1.bf16.msra.mxu1 %v12893_v12  ;;  %9127 = vmatprep.subr.bf16.mxu0 %v12898_v4  ;;  %v12914_v12 = vld [vmem:[%s17907_s2 + $0x8d8] ss:$40 sps:$4 sm:$0xff]  }
 0x3ac   : > { %9180 = vmatprep.subr.bf16.mxu1 %v12901_v57  ;;  %v12917_v4 = vld [vmem:[%s17907_s2 + $0xdd8] ss:$40 sps:$4 sm:$0xff]   ;;  %v12922_v57 = vld [vmem:[%s17907_s2 + $0x88c] ss:$40 sps:$4 sm:$0xff]  }
 0x3ae   : > { %9128 = vmatpush2.bf16.msra.mxu0 %v12896_v44  ;;  %v12925_v44 = vld [vmem:[%s17907_s2 + $0xd8c] ss:$40 sps:$4 sm:$0xff]  }
 0x3af   : > { %9181 = vmatpush2.bf16.msra.mxu1 %v12899_v10  ;;  %9129 = vmatprep.subr.bf16.mxu0 %v12904_v35  ;;  %v12920_v10 = vld [vmem:[%s17907_s2 + $0x888] ss:$40 sps:$4 sm:$0xff]  }
 0x3b0   : > { %9182 = vmatprep.subr.bf16.mxu1 %v12907_v47  ;;  %v12923_v35 = vld [vmem:[%s17907_s2 + $0xd88] ss:$40 sps:$4 sm:$0xff]   ;;  %v12928_v47 = vld [vmem:[%s17907_s2 + $0x83c] ss:$40 sps:$4 sm:$0xff]  }
 0x3b2   : > { %9130 = vmatpush2.bf16.msra.mxu0 %v12902_v48  ;;  %v12931_v48 = vld [vmem:[%s17907_s2 + $0xd3c] ss:$40 sps:$4 sm:$0xff]  }
 0x3b3   : > { %9183 = vmatpush2.bf16.msra.mxu1 %v12905_v20  ;;  %9131 = vmatprep.subr.bf16.mxu0 %v12910_v59  ;;  %v12926_v20 = vld [vmem:[%s17907_s2 + $0x838] ss:$40 sps:$4 sm:$0xff]  }
 0x3b4   : > { %9184 = vmatprep.subr.bf16.mxu1 %v12913_v63  ;;  %v12929_v59 = vld [vmem:[%s17907_s2 + $0xd38] ss:$40 sps:$4 sm:$0xff]   ;;  %v12934_v63 = vld [vmem:[%s17907_s2 + $0x7ec] ss:$40 sps:$4 sm:$0xff]  }
 0x3b6   : > { %9132 = vmatpush2.bf16.msra.mxu0 %v12908_v25  ;;  %v12937_v25 = vld [vmem:[%s17907_s2 + $0xcec] ss:$40 sps:$4 sm:$0xff]  }
 0x3b7   : > { %9185 = vmatpush2.bf16.msra.mxu1 %v12911_v54  ;;  %9133 = vmatprep.subr.bf16.mxu0 %v12916_v6  ;;  %v12932_v54 = vld [vmem:[%s17907_s2 + $0x7e8] ss:$40 sps:$4 sm:$0xff]  }
 0x3b8   : > { %9186 = vmatprep.subr.bf16.mxu1 %v12919_v58  ;;  %v12935_v6 = vld [vmem:[%s17907_s2 + $0xce8] ss:$40 sps:$4 sm:$0xff]   ;;  %v12940_v58 = vld [vmem:[%s17907_s2 + $0x79c] ss:$40 sps:$4 sm:$0xff]  }
 0x3ba   : > { %9134 = vmatpush2.bf16.msra.mxu0 %v12914_v12  ;;  %v12943_v12 = vld [vmem:[%s17907_s2 + $0xc9c] ss:$40 sps:$4 sm:$0xff]  }
 0x3bb   : > { %9187 = vmatpush2.bf16.msra.mxu1 %v12917_v4  ;;  %9135 = vmatprep.subr.bf16.mxu0 %v12922_v57  ;;  %v12938_v4 = vld [vmem:[%s17907_s2 + $0x798] ss:$40 sps:$4 sm:$0xff]  }
 0x3bc   : > { %9188 = vmatprep.subr.bf16.mxu1 %v12925_v44  ;;  %v12941_v57 = vld [vmem:[%s17907_s2 + $0xc98] ss:$40 sps:$4 sm:$0xff]   ;;  %v12946_v44 = vld [vmem:[%s17907_s2 + $0x114c] ss:$40 sps:$4 sm:$0xff]  }
 0x3be   : > { %9136 = vmatpush2.bf16.msra.mxu0 %v12920_v10  ;;  %v12949_v10 = vld [vmem:[%s17907_s2 + $0x254] ss:$40 sps:$4 sm:$0xff]  }
 0x3bf   : > { %9189 = vmatpush2.bf16.msra.mxu1 %v12923_v35  ;;  %9137 = vmatprep.subr.bf16.mxu0 %v12928_v47  ;;  %v12944_v35 = vld [vmem:[%s17907_s2 + $0x1148] ss:$40 sps:$4 sm:$0xff]  }
 0x3c0   : > { %9190 = vmatprep.subr.bf16.mxu1 %v12931_v48  ;;  %v12947_v47 = vld [vmem:[%s17907_s2 + $0x250] ss:$40 sps:$4 sm:$0xff]   ;;  %v12952_v48 = vld [vmem:[%s17907_s2 + $0x10fc] ss:$40 sps:$4 sm:$0xff]  }
 0x3c2   : > { %9138 = vmatpush2.bf16.msra.mxu0 %v12926_v20  ;;  %v12955_v20 = vld [vmem:[%s17907_s2 + $0x204] ss:$40 sps:$4 sm:$0xff]  }
 0x3c3   : > { %9191 = vmatpush2.bf16.msra.mxu1 %v12929_v59  ;;  %9139 = vmatprep.subr.bf16.mxu0 %v12934_v63 }
 0x3c4   : > { %9192 = vmatprep.subr.bf16.mxu1 %v12937_v25  ;;  %v12950_v25 = vld [vmem:[%s17907_s2 + $0x10f8] ss:$40 sps:$4 sm:$0xff]  }
 0x3c6   : > { %9140 = vmatpush2.bf16.msra.mxu0 %v12932_v54  ;;  %v12953_v54 = vld [vmem:[%s17907_s2 + $0x200] ss:$40 sps:$4 sm:$0xff]  }
 0x3c7   : > { %9193 = vmatpush2.bf16.msra.mxu1 %v12935_v6  ;;  %9141 = vmatprep.subr.bf16.mxu0 %v12940_v58  ;;  %v12958_v58 = vld [vmem:[%s17907_s2 + $0x10ac] ss:$40 sps:$4 sm:$0xff]  }
 0x3c8   : > { %9194 = vmatprep.subr.bf16.mxu1 %v12943_v12 }
 0x3ca   : > { %9142 = vmatpush2.bf16.msra.mxu0 %v12938_v4 }
 0x3cb   : > { %9195 = vmatpush2.bf16.msra.mxu1 %v12941_v57  ;;  %9217 = vmatprep.subr.bf16.mxu0 %v12946_v44  ;;  %v12956_v44 = vld [vmem:[%s17907_s2 + $0x10a8] ss:$40 sps:$4 sm:$0xff]  }
 0x3cc   : > { %9270 = vmatprep.subr.bf16.mxu1 %v12949_v10  ;;  %v12959_v10 = vld [vmem:[%s17907_s2 + $0x1b0] ss:$40 sps:$4 sm:$0xff]  }
 0x3cd   : > { %v8827_v59 = vpop.f32.mrf.mxu0  ;;  %9144 = vmatmul.mubr.bf16.vlgmr.msra.gmra.mxu0 %v15424_v37 }
 0x3ce   : > { %9197 = vmatmul.mubr.bf16.vlgmr.msra.gmra.mxu1 %v15428_v52  ;;  %v16828_v63 = vadd.f32 %v8827_v59, %v16617_v21  ;;  %9218 = vmatpush1.bf16.msra.mxu0 %v12944_v35  ;;  %v12961_v21 = vld [vmem:[%s17907_s2 + $0x1b4] ss:$40 sps:$4 sm:$0xff]   ;;  %v12962_v59 = vld [vmem:[%s17907_s2 + $0x1058] ss:$40 sps:$4 sm:$0xff]  }
 0x3cf   : > { %9271 = vmatpush1.bf16.msra.mxu1 %v12947_v47  ;;  %v8829_v6 = vpop.f32.mrf.mxu0  ;;  %9219 = vmatprep.subr.bf16.mxu0 %v12952_v48  ;;  %v12964_v35 = vld [vmem:[%s17907_s2 + $0x105c] ss:$40 sps:$4 sm:$0xff]  }
 0x3d0   : > { %9272 = vmatprep.subr.bf16.mxu1 %v12955_v20  ;;  %v16843_v12 = vadd.f32 %v8829_v6, %v16622_v49  ;;  %9153 = vmatprep.mubr.bf16.mxu0 %v15444_v31 }
 0x3d1   : > { %9206 = vmatprep.mubr.bf16.mxu1 %v15446_v42  ;;  %v8831_v4 = vpop.f32.mrf.mxu0 }
 0x3d2   : > { %17955 = vst [vmem:[#allocation47_spill] sm:$0xff] %v16843_v12  ;;  %v16848_v57 = vadd.f32 %v8831_v4, %v16637_v8  ;;  %9220 = vmatpush1.bf16.msra.mxu0 %v12950_v25  ;;  %v12967_v8 = vld [vmem:[%s17907_s2 + $0x164] ss:$40 sps:$4 sm:$0xff]   ;;  %v12965_v25 = vld [vmem:[%s17907_s2 + $0x160] ss:$40 sps:$4 sm:$0xff]  }
 0x3d3   : > { %9273 = vmatpush1.bf16.msra.mxu1 %v12953_v54  ;;  %v8833_v49 = vpop.f32.mrf.mxu0  ;;  %9221 = vmatprep.subr.bf16.mxu0 %v12958_v58  ;;  %v12970_v54 = vld [vmem:[%s17907_s2 + $0x100c] ss:$40 sps:$4 sm:$0xff]   ;;  %v12968_v4 = vld [vmem:[%s17907_s2 + $0x1008] ss:$40 sps:$4 sm:$0xff]  }
 0x3d4   : > { %9274 = vmatprep.subr.bf16.mxu1 %v12961_v21  ;;  %v16863_v47 = vadd.f32 %v8833_v49, %v16641_v15  ;;  %v12974_v49 = vld [vmem:[%s17907_s2 + $0xfb8] ss:$40 sps:$4 sm:$0xff]  }
 0x3d5   : > { %v8837_v48 = vpop.f32.mrf.mxu0  ;;  %9154 = vmatmul.mubr.bf16.gmra.mxu0 %v15488_v1 }
 0x3d6   : > { %17956 = vst [vmem:[#allocation48_spill] sm:$0xff] %v16863_v47  ;;  %9207 = vmatmul.mubr.bf16.gmra.mxu1 %v15490_v43  ;;  %v16868_v20 = vadd.f32 %v8837_v48, %v16657_v18  ;;  %9222 = vmatpush1.bf16.msra.mxu0 %v12956_v44  ;;  %v12973_v18 = vld [vmem:[%s17907_s2 + $0x114] ss:$40 sps:$4 sm:$0xff]   ;;  %v12971_v44 = vld [vmem:[%s17907_s2 + $0x110] ss:$40 sps:$4 sm:$0xff]  }
 0x3d7   : > { %9275 = vmatpush1.bf16.msra.mxu1 %v12959_v10  ;;  %v8839_v15 = vpop.f32.mrf.mxu0  ;;  %9223 = vmatprep.subr.bf16.mxu0 %v12964_v35  ;;  %v12977_v35 = vld [vmem:[%s17907_s2 + $0xc0] ss:$40 sps:$4 sm:$0xff]  }
 0x3d8   : > { %9276 = vmatprep.subr.bf16.mxu1 %v12967_v8  ;;  %v16883_v6 = vadd.f32 %v8839_v15, %v16668_v61  ;;  %9249 = vmatprep.mubr.bf16.mxu0 %v15502_v60  ;;  %v12982_v8 = vld [vmem:[%s17907_s2 + $0xf6c] ss:$40 sps:$4 sm:$0xff]   ;;  %v12980_v48 = vld [vmem:[%s17907_s2 + $0xf68] ss:$40 sps:$4 sm:$0xff]  }
 0x3d9   : > { %9302 = vmatprep.mubr.bf16.mxu1 %v14923_v38  ;;  %v8841_v58 = vpop.f32.mrf.mxu0  ;;  %v12976_v38 = vld [vmem:[%s17907_s2 + $0xfbc] ss:$40 sps:$4 sm:$0xff]  }
 0x3da   : > { %17957 = vst [vmem:[#allocation49_spill] sm:$0xff] %v16883_v6  ;;  %v16888_v21 = vadd.f32 %v8841_v58, %v16677_v13  ;;  %9224 = vmatpush1.bf16.msra.mxu0 %v12962_v59  ;;  %v12979_v13 = vld [vmem:[%s17907_s2 + $0xc4] ss:$40 sps:$4 sm:$0xff]   ;;  %v12983_v59 = vld [vmem:[%s17907_s2 + $0x70] ss:$40 sps:$4 sm:$0xff]  }
 0x3db   : > { %9277 = vmatpush1.bf16.msra.mxu1 %v12965_v25  ;;  %v8843_v61 = vpop.f32.mrf.mxu0  ;;  %9225 = vmatprep.subr.bf16.mxu0 %v12970_v54  ;;  %v12988_v25 = vld [vmem:[%s17907_s2 + $0xf1c] ss:$40 sps:$4 sm:$0xff]   ;;  %v12986_v54 = vld [vmem:[%s17907_s2 + $0xf18] ss:$40 sps:$4 sm:$0xff]   ;;  %v12994_v58 = vld [vmem:[%s17907_s2 + $0x13cc] ss:$40 sps:$4 sm:$0xff]  }
 0x3dc   : > { %17958 = vst [vmem:[#allocation50_spill] sm:$0xff] %v16888_v21  ;;  %9278 = vmatprep.subr.bf16.mxu1 %v12973_v18  ;;  %v16903_v10 = vadd.f32 %v8843_v61, %v16685_v51  ;;  %v12985_v51 = vld [vmem:[%s17907_s2 + $0x74] ss:$40 sps:$4 sm:$0xff]   ;;  %v12991_v15 = vld [vmem:[%s17907_s2 + $0x24] ss:$40 sps:$4 sm:$0xff]  }
 0x3dd   : > { %v12989_v18 = vld [vmem:[%s17907_s2 + $0x20] ss:$40 sps:$4 sm:$0xff]   ;;  %v12995_v61 = vld [vmem:[%s17907_s2 + $0x4d0] ss:$40 sps:$4 sm:$0xff]  }
 0x3de   : > { %17959 = vst [vmem:[#allocation51_spill] sm:$0xff] %v16903_v10  ;;  %9226 = vmatpush1.bf16.msra.mxu0 %v12968_v4  ;;  %v12997_v4 = vld [vmem:[%s17907_s2 + $0x4d4] ss:$40 sps:$4 sm:$0xff]  }
 0x3df   : > { %9279 = vmatpush1.bf16.msra.mxu1 %v12971_v44  ;;  %9227 = vmatprep.subr.bf16.mxu0 %v12976_v38  ;;  %v12992_v44 = vld [vmem:[%s17907_s2 + $0x13c8] ss:$40 sps:$4 sm:$0xff]   ;;  %v13000_v38 = vld [vmem:[%s17907_s2 + $0x137c] ss:$40 sps:$4 sm:$0xff]  }
 0x3e0   : > { %9280 = vmatprep.subr.bf16.mxu1 %v12979_v13  ;;  %v13003_v13 = vld [vmem:[%s17907_s2 + $0x484] ss:$40 sps:$4 sm:$0xff]  }
 0x3e2   : > { %9228 = vmatpush1.bf16.msra.mxu0 %v12974_v49  ;;  %v16953_v49 = vpop.f32.mrf.mxu1 }
 0x3e3   : > { %9281 = vmatpush1.bf16.msra.mxu1 %v12977_v35  ;;  %9229 = vmatprep.subr.bf16.mxu0 %v12982_v8  ;;  %v12998_v35 = vld [vmem:[%s17907_s2 + $0x1378] ss:$40 sps:$4 sm:$0xff]  }
 0x3e4   : > { %9282 = vmatprep.subr.bf16.mxu1 %v12985_v51  ;;  %v13001_v8 = vld [vmem:[%s17907_s2 + $0x480] ss:$40 sps:$4 sm:$0xff]   ;;  %v13006_v51 = vld [vmem:[%s17907_s2 + $0x132c] ss:$40 sps:$4 sm:$0xff]  }
 0x3e6   : > { %9230 = vmatpush1.bf16.msra.mxu0 %v12980_v48  ;;  %v13009_v48 = vld [vmem:[%s17907_s2 + $0x434] ss:$40 sps:$4 sm:$0xff]  }
 0x3e7   : > { %9283 = vmatpush1.bf16.msra.mxu1 %v12983_v59  ;;  %9231 = vmatprep.subr.bf16.mxu0 %v12988_v25  ;;  %v16967_v59 = vpop.f32.mrf.mxu1  ;;  %v13004_v25 = vld [vmem:[%s17907_s2 + $0x1328] ss:$40 sps:$4 sm:$0xff]  }
 0x3e8   : > { %9284 = vmatprep.subr.bf16.mxu1 %v12991_v15  ;;  %v13007_v15 = vld [vmem:[%s17907_s2 + $0x430] ss:$40 sps:$4 sm:$0xff]  }
 0x3ea   : > { %9232 = vmatpush1.bf16.msra.mxu0 %v12986_v54  ;;  %v13012_v54 = vld [vmem:[%s17907_s2 + $0x12dc] ss:$40 sps:$4 sm:$0xff]  }
 0x3eb   : > { %9285 = vmatpush1.bf16.msra.mxu1 %v12989_v18  ;;  %9233 = vmatprep.subr.bf16.mxu0 %v12994_v58  ;;  %v13015_v18 = vld [vmem:[%s17907_s2 + $0x3e4] ss:$40 sps:$4 sm:$0xff]   ;;  %v16981_v58 = vpop.f32.mrf.mxu1 }
 0x3ec   : > { %9286 = vmatprep.subr.bf16.mxu1 %v12997_v4  ;;  %v13010_v4 = vld [vmem:[%s17907_s2 + $0x12d8] ss:$40 sps:$4 sm:$0xff]  }
 0x3ee   : > { %9234 = vmatpush2.bf16.msra.mxu0 %v12992_v44  ;;  %v13013_v44 = vld [vmem:[%s17907_s2 + $0x3e0] ss:$40 sps:$4 sm:$0xff]  }
 0x3ef   : > { %9287 = vmatpush2.bf16.msra.mxu1 %v12995_v61  ;;  %9235 = vmatprep.subr.bf16.mxu0 %v13000_v38  ;;  %v13018_v61 = vld [vmem:[%s17907_s2 + $0x128c] ss:$40 sps:$4 sm:$0xff]  }
 0x3f0   : > { %9288 = vmatprep.subr.bf16.mxu1 %v13003_v13  ;;  %v13021_v38 = vld [vmem:[%s17907_s2 + $0x394] ss:$40 sps:$4 sm:$0xff]   ;;  %v16995_v13 = vpop.f32.mrf.mxu1 }
 0x3f2   : > { %9236 = vmatpush2.bf16.msra.mxu0 %v12998_v35  ;;  %v13016_v35 = vld [vmem:[%s17907_s2 + $0x1288] ss:$40 sps:$4 sm:$0xff]  }
 0x3f3   : > { %9289 = vmatpush2.bf16.msra.mxu1 %v13001_v8  ;;  %9237 = vmatprep.subr.bf16.mxu0 %v13006_v51  ;;  %v13019_v8 = vld [vmem:[%s17907_s2 + $0x390] ss:$40 sps:$4 sm:$0xff]   ;;  %v13024_v51 = vld [vmem:[%s17907_s2 + $0x123c] ss:$40 sps:$4 sm:$0xff]  }
 0x3f4   : > { %9290 = vmatprep.subr.bf16.mxu1 %v13009_v48  ;;  %v13027_v48 = vld [vmem:[%s17907_s2 + $0x344] ss:$40 sps:$4 sm:$0xff]  }
 0x3f6   : > { %9238 = vmatpush2.bf16.msra.mxu0 %v13004_v25  ;;  %v17009_v25 = vpop.f32.mrf.mxu1 }
 0x3f7   : > { %9291 = vmatpush2.bf16.msra.mxu1 %v13007_v15  ;;  %9239 = vmatprep.subr.bf16.mxu0 %v13012_v54  ;;  %v13022_v15 = vld [vmem:[%s17907_s2 + $0x1238] ss:$40 sps:$4 sm:$0xff]  }
 0x3f8   : > { %9292 = vmatprep.subr.bf16.mxu1 %v13015_v18  ;;  %v13025_v54 = vld [vmem:[%s17907_s2 + $0x340] ss:$40 sps:$4 sm:$0xff]   ;;  %v13030_v18 = vld [vmem:[%s17907_s2 + $0x11ec] ss:$40 sps:$4 sm:$0xff]  }
 0x3fa   : > { %9240 = vmatpush2.bf16.msra.mxu0 %v13010_v4  ;;  %v13033_v4 = vld [vmem:[%s17907_s2 + $0x2f4] ss:$40 sps:$4 sm:$0xff]  }
 0x3fb   : > { %9293 = vmatpush2.bf16.msra.mxu1 %v13013_v44  ;;  %9241 = vmatprep.subr.bf16.mxu0 %v13018_v61  ;;  %v17023_v44 = vpop.f32.mrf.mxu1  ;;  %v13028_v61 = vld [vmem:[%s17907_s2 + $0x11e8] ss:$40 sps:$4 sm:$0xff]  }
 0x3fc   : > { %9294 = vmatprep.subr.bf16.mxu1 %v13021_v38  ;;  %v13031_v38 = vld [vmem:[%s17907_s2 + $0x2f0] ss:$40 sps:$4 sm:$0xff]  }
 0x3fe   : > { %9242 = vmatpush2.bf16.msra.mxu0 %v13016_v35  ;;  %v13036_v35 = vld [vmem:[%s17907_s2 + $0x119c] ss:$40 sps:$4 sm:$0xff]  }
 0x3ff   : > { %9295 = vmatpush2.bf16.msra.mxu1 %v13019_v8  ;;  %9243 = vmatprep.subr.bf16.mxu0 %v13024_v51  ;;  %v13039_v8 = vld [vmem:[%s17907_s2 + $0x2a4] ss:$40 sps:$4 sm:$0xff]   ;;  %v17037_v51 = vpop.f32.mrf.mxu1 }
 0x400   : > { %9296 = vmatprep.subr.bf16.mxu1 %v13027_v48  ;;  %v13034_v48 = vld [vmem:[%s17907_s2 + $0x1198] ss:$40 sps:$4 sm:$0xff]  }
 0x402   : > { %9244 = vmatpush2.bf16.msra.mxu0 %v13022_v15  ;;  %v13037_v15 = vld [vmem:[%s17907_s2 + $0x2a0] ss:$40 sps:$4 sm:$0xff]  }
 0x403   : > { %9297 = vmatpush2.bf16.msra.mxu1 %v13025_v54  ;;  %9245 = vmatprep.subr.bf16.mxu0 %v13030_v18  ;;  %v13042_v54 = vld [vmem:[%s17907_s2 + $0x754] ss:$40 sps:$4 sm:$0xff]  }
 0x404   : > { %9298 = vmatprep.subr.bf16.mxu1 %v13033_v4  ;;  %v13045_v18 = vld [vmem:[%s17907_s2 + $0xc54] ss:$40 sps:$4 sm:$0xff]   ;;  %v17051_v4 = vpop.f32.mrf.mxu1 }
 0x406   : > { %9246 = vmatpush2.bf16.msra.mxu0 %v13028_v61  ;;  %v13040_v61 = vld [vmem:[%s17907_s2 + $0x750] ss:$40 sps:$4 sm:$0xff]  }
 0x407   : > { %9299 = vmatpush2.bf16.msra.mxu1 %v13031_v38  ;;  %9247 = vmatprep.subr.bf16.mxu0 %v13036_v35  ;;  %v13043_v38 = vld [vmem:[%s17907_s2 + $0xc50] ss:$40 sps:$4 sm:$0xff]   ;;  %v13048_v35 = vld [vmem:[%s17907_s2 + $0x704] ss:$40 sps:$4 sm:$0xff]  }
 0x408   : > { %9300 = vmatprep.subr.bf16.mxu1 %v13039_v8  ;;  %v13051_v8 = vld [vmem:[%s17907_s2 + $0xc04] ss:$40 sps:$4 sm:$0xff]  }
 0x40a   : > { %9248 = vmatpush2.bf16.msra.mxu0 %v13034_v48 }
 0x40b   : > { %9301 = vmatpush2.bf16.msra.mxu1 %v13037_v15  ;;  %9323 = vmatprep.subr.bf16.mxu0 %v13042_v54  ;;  %v13046_v54 = vld [vmem:[%s17907_s2 + $0x700] ss:$40 sps:$4 sm:$0xff]  }
 0x40c   : > { %9376 = vmatprep.subr.bf16.mxu1 %v13045_v18  ;;  %v13049_v18 = vld [vmem:[%s17907_s2 + $0xc00] ss:$40 sps:$4 sm:$0xff]  }
 0x40d   : > { %v8933_v48 = vpop.f32.mrf.mxu0  ;;  %9250 = vmatmul.mubr.bf16.vlgmr.msra.gmra.mxu0 %v15671_v14 }
 0x40e   : > { %9303 = vmatmul.mubr.bf16.vlgmr.msra.gmra.mxu1 %v15171_v5  ;;  %v8986_v15 = vpop.f32.mrf.mxu1  ;;  %v8934_v10 = vadd.f32 %v8933_v48, %v16953_v49  ;;  %9324 = vmatpush1.bf16.msra.mxu0 %v13040_v61  ;;  %v13054_v5 = vld [vmem:[%s17907_s2 + $0x6b4] ss:$40 sps:$4 sm:$0xff]  }
 0x40f   : > { %9377 = vmatpush1.bf16.msra.mxu1 %v13043_v38  ;;  %v17074_v6 = vpop.f32.mrf.mxu0  ;;  %9325 = vmatprep.subr.bf16.mxu0 %v13048_v35  ;;  %v13057_v49 = vld [vmem:[%s17907_s2 + $0xbb4] ss:$40 sps:$4 sm:$0xff]   ;;  %v13052_v35 = vld [vmem:[%s17907_s2 + $0x6b0] ss:$40 sps:$4 sm:$0xff]  }
 0x410   : > { %v17076_v47 = vpop.f32.mrf.mxu1  ;;  %9378 = vmatprep.subr.bf16.mxu1 %v13051_v8  ;;  %v17084_v61 = vadd.f32 %v8986_v15, %v8934_v10  ;;  %9259 = vmatprep.mubr.bf16.mxu0 %v15687_v16  ;;  %v13055_v8 = vld [vmem:[%s17907_s2 + $0xbb0] ss:$40 sps:$4 sm:$0xff]  }
 0x411   : > { %9312 = vmatprep.mubr.bf16.mxu1 %v14879_v7  ;;  %v8937_v38 = vpop.f32.mrf.mxu0  ;;  %v13060_v7 = vld [vmem:[%s17907_s2 + $0x664] ss:$40 sps:$4 sm:$0xff]  }
 0x412   : > { %v8990_v48 = vpop.f32.mrf.mxu1  ;;  %v8938_v12 = vadd.f32 %v8937_v38, %v16981_v58  ;;  %9326 = vmatpush1.bf16.msra.mxu0 %v13046_v54  ;;  %v13063_v58 = vld [vmem:[%s17907_s2 + $0xb64] ss:$40 sps:$4 sm:$0xff]  }
 0x413   : > { %9379 = vmatpush1.bf16.msra.mxu1 %v13049_v18  ;;  %v17095_v10 = vpop.f32.mrf.mxu0  ;;  %9327 = vmatprep.subr.bf16.mxu0 %v13054_v5  ;;  %v13058_v5 = vld [vmem:[%s17907_s2 + $0x660] ss:$40 sps:$4 sm:$0xff]  }
 0x414   : > { %v17097_v15 = vpop.f32.mrf.mxu1  ;;  %9380 = vmatprep.subr.bf16.mxu1 %v13057_v49  ;;  %v17105_v54 = vadd.f32 %v8990_v48, %v8938_v12  ;;  %v13061_v49 = vld [vmem:[%s17907_s2 + $0xb60] ss:$40 sps:$4 sm:$0xff]   ;;  %v13066_v12 = vld [vmem:[%s17907_s2 + $0x614] ss:$40 sps:$4 sm:$0xff]  }
 0x415   : > { %9260 = vmatmul.mubr.bf16.gmra.mxu0 %v15711_v39  ;;  %v8943_v18 = vpop.f32.mrf.mxu0 }
 0x416   : > { %v8996_v38 = vpop.f32.mrf.mxu1  ;;  %9313 = vmatmul.mubr.bf16.gmra.mxu1 %v14881_v11  ;;  %9328 = vmatpush1.bf16.msra.mxu0 %v13052_v35  ;;  %v8944_v21 = vadd.f32 %v8943_v18, %v17009_v25  ;;  %v13069_v11 = vld [vmem:[%s17907_s2 + $0xb14] ss:$40 sps:$4 sm:$0xff]  }
 0x417   : > { %9381 = vmatpush1.bf16.msra.mxu1 %v13055_v8  ;;  %9329 = vmatprep.subr.bf16.mxu0 %v13060_v7  ;;  %v17122_v48 = vpop.f32.mrf.mxu0  ;;  %v13064_v7 = vld [vmem:[%s17907_s2 + $0x610] ss:$40 sps:$4 sm:$0xff]  }
 0x418   : > { %9382 = vmatprep.subr.bf16.mxu1 %v13063_v58  ;;  %v17124_v35 = vpop.f32.mrf.mxu1  ;;  %v17126_v8 = vadd.f32 %v8996_v38, %v8944_v21  ;;  %9355 = vmatprep.mubr.bf16.mxu0 %v15189_v27  ;;  %v13067_v58 = vld [vmem:[%s17907_s2 + $0xb10] ss:$40 sps:$4 sm:$0xff]   ;;  %v13072_v27 = vld [vmem:[%s17907_s2 + $0x5c4] ss:$40 sps:$4 sm:$0xff]  }
 0x419   : > { %9408 = vmatprep.mubr.bf16.mxu1 %v15241_v29  ;;  %v8947_v25 = vpop.f32.mrf.mxu0  ;;  %v13075_v29 = vld [vmem:[%s17907_s2 + $0xac4] ss:$40 sps:$4 sm:$0xff]  }
 0x41a   : > { %9330 = vmatpush1.bf16.msra.mxu0 %v13058_v5  ;;  %v8948_v18 = vadd.f32 %v8947_v25, %v17037_v51  ;;  %v9000_v21 = vpop.f32.mrf.mxu1  ;;  %v13070_v5 = vld [vmem:[%s17907_s2 + $0x5c0] ss:$40 sps:$4 sm:$0xff]   ;;  %v13079_v25 = vld [vmem:[%s17907_s2 + $0xa70] ss:$40 sps:$4 sm:$0xff]  }
 0x41b   : > { %9383 = vmatpush1.bf16.msra.mxu1 %v13061_v49  ;;  %9331 = vmatprep.subr.bf16.mxu0 %v13066_v12  ;;  %v13073_v51 = vld [vmem:[%s17907_s2 + $0xac0] ss:$40 sps:$4 sm:$0xff]   ;;  %v13078_v49 = vld [vmem:[%s17907_s2 + $0x574] ss:$40 sps:$4 sm:$0xff]  }
 0x41c   : > { %9384 = vmatprep.subr.bf16.mxu1 %v13069_v11  ;;  %v17143_v38 = vadd.f32 %v9000_v21, %v8948_v18  ;;  %v13081_v12 = vld [vmem:[%s17907_s2 + $0xa74] ss:$40 sps:$4 sm:$0xff]   ;;  %v13076_v11 = vld [vmem:[%s17907_s2 + $0x570] ss:$40 sps:$4 sm:$0xff]   ;;  %v13082_v18 = vld [vmem:[%s17907_s2 + $0x520] ss:$40 sps:$4 sm:$0xff]  }
 0x41d   : > { %v13093_v21 = vld [vmem:[%s17907_s2 + $0xed4] ss:$40 sps:$4 sm:$0xff]  }
 0x41e   : > { %9332 = vmatpush1.bf16.msra.mxu0 %v13064_v7  ;;  %v13084_v7 = vld [vmem:[%s17907_s2 + $0x524] ss:$40 sps:$4 sm:$0xff]  }
 0x41f   : > { %9385 = vmatpush1.bf16.msra.mxu1 %v13067_v58  ;;  %9333 = vmatprep.subr.bf16.mxu0 %v13072_v27  ;;  %v13087_v58 = vld [vmem:[%s17907_s2 + $0xa24] ss:$40 sps:$4 sm:$0xff]   ;;  %v13085_v27 = vld [vmem:[%s17907_s2 + $0xa20] ss:$40 sps:$4 sm:$0xff]  }
 0x420   : > { %9386 = vmatprep.subr.bf16.mxu1 %v13075_v29  ;;  %v13090_v29 = vld [vmem:[%s17907_s2 + $0x9d4] ss:$40 sps:$4 sm:$0xff]  }
 0x422   : > { %9334 = vmatpush1.bf16.msra.mxu0 %v13070_v5  ;;  %v13088_v5 = vld [vmem:[%s17907_s2 + $0x9d0] ss:$40 sps:$4 sm:$0xff]  }
 0x423   : > { %9387 = vmatpush1.bf16.msra.mxu1 %v13073_v51  ;;  %9335 = vmatprep.subr.bf16.mxu0 %v13078_v49  ;;  %v13091_v51 = vld [vmem:[%s17907_s2 + $0xed0] ss:$40 sps:$4 sm:$0xff]   ;;  %v13096_v49 = vld [vmem:[%s17907_s2 + $0x984] ss:$40 sps:$4 sm:$0xff]  }
 0x424   : > { %9388 = vmatprep.subr.bf16.mxu1 %v13081_v12  ;;  %v13099_v12 = vld [vmem:[%s17907_s2 + $0xe84] ss:$40 sps:$4 sm:$0xff]  }
 0x426   : > { %9336 = vmatpush1.bf16.msra.mxu0 %v13076_v11  ;;  %v13094_v11 = vld [vmem:[%s17907_s2 + $0x980] ss:$40 sps:$4 sm:$0xff]  }
 0x427   : > { %9389 = vmatpush1.bf16.msra.mxu1 %v13079_v25  ;;  %9337 = vmatprep.subr.bf16.mxu0 %v13084_v7  ;;  %v13097_v25 = vld [vmem:[%s17907_s2 + $0xe80] ss:$40 sps:$4 sm:$0xff]   ;;  %v13102_v7 = vld [vmem:[%s17907_s2 + $0x934] ss:$40 sps:$4 sm:$0xff]  }
 0x428   : > { %9390 = vmatprep.subr.bf16.mxu1 %v13087_v58  ;;  %v13105_v58 = vld [vmem:[%s17907_s2 + $0xe34] ss:$40 sps:$4 sm:$0xff]  }
 0x42a   : > { %9338 = vmatpush1.bf16.msra.mxu0 %v13082_v18  ;;  %v13100_v18 = vld [vmem:[%s17907_s2 + $0x930] ss:$40 sps:$4 sm:$0xff]  }
 0x42b   : > { %9391 = vmatpush1.bf16.msra.mxu1 %v13085_v27  ;;  %9339 = vmatprep.subr.bf16.mxu0 %v13090_v29  ;;  %v13103_v27 = vld [vmem:[%s17907_s2 + $0xe30] ss:$40 sps:$4 sm:$0xff]   ;;  %v13108_v29 = vld [vmem:[%s17907_s2 + $0x8e4] ss:$40 sps:$4 sm:$0xff]  }
 0x42c   : > { %9392 = vmatprep.subr.bf16.mxu1 %v13093_v21  ;;  %v13111_v21 = vld [vmem:[%s17907_s2 + $0xde4] ss:$40 sps:$4 sm:$0xff]  }
 0x42e   : > { %9340 = vmatpush2.bf16.msra.mxu0 %v13088_v5  ;;  %v1663_v5 = vmul.f32 %v14991_v19, %v14991_v19  ;;  %v13117_v19 = vld [vmem:[%s17907_s2 + $0xd94] ss:$40 sps:$4 sm:$0xff]  }
 0x42f   : > { %9393 = vmatpush2.bf16.msra.mxu1 %v13091_v51  ;;  %9341 = vmatprep.subr.bf16.mxu0 %v13096_v49  ;;  %v13106_v51 = vld [vmem:[%s17907_s2 + $0x8e0] ss:$40 sps:$4 sm:$0xff]  }
 0x430   : > { %9394 = vmatprep.subr.bf16.mxu1 %v13099_v12  ;;  %v13109_v49 = vld [vmem:[%s17907_s2 + $0xde0] ss:$40 sps:$4 sm:$0xff]   ;;  %v1643_v12 = vmul.f32 %v14487_v36, %v14487_v36  ;;  %v13115_v36 = vld [vmem:[%s17907_s2 + $0xd90] ss:$40 sps:$4 sm:$0xff]  }
 0x432   : > { %9342 = vmatpush2.bf16.msra.mxu0 %v13094_v11  ;;  %v13114_v11 = vld [vmem:[%s17907_s2 + $0x894] ss:$40 sps:$4 sm:$0xff]  }
 0x433   : > { %9395 = vmatpush2.bf16.msra.mxu1 %v13097_v25  ;;  %9343 = vmatprep.subr.bf16.mxu0 %v13102_v7  ;;  %v1683_v25 = vadd.f32 %v1663_v5, %v1643_v12  ;;  %v13112_v7 = vld [vmem:[%s17907_s2 + $0x890] ss:$40 sps:$4 sm:$0xff]   ;;  %v13126_v5 = vld [vmem:[%s17907_s2 + $0x7f4] ss:$40 sps:$4 sm:$0xff]  }
 0x434   : > { %9396 = vmatprep.subr.bf16.mxu1 %v13105_v58  ;;  %v13120_v58 = vld [vmem:[%s17907_s2 + $0x844] ss:$40 sps:$4 sm:$0xff]   ;;  %v13127_v12 = vld [vmem:[%s17907_s2 + $0xcf0] ss:$40 sps:$4 sm:$0xff]  }
 0x436   : > { %9344 = vmatpush2.bf16.msra.mxu0 %v13100_v18  ;;  %v13123_v18 = vld [vmem:[%s17907_s2 + $0xd44] ss:$40 sps:$4 sm:$0xff]  }
 0x437   : > { %9397 = vmatpush2.bf16.msra.mxu1 %v13103_v27  ;;  %9345 = vmatprep.subr.bf16.mxu0 %v13108_v29  ;;  %v1703_v27 = vadd.f32 1e-18, %v1683_v25  ;;  %v13118_v29 = vld [vmem:[%s17907_s2 + $0x840] ss:$40 sps:$4 sm:$0xff]  }
 0x438   : > { %9398 = vmatprep.subr.bf16.mxu1 %v13111_v21  ;;  %v13121_v21 = vld [vmem:[%s17907_s2 + $0xd40] ss:$40 sps:$4 sm:$0xff]  }
 0x439   : > { %13184 = vlog2.f32 %v1703_v27  ;;  %v13130_v25 = vld [vmem:[%s17907_s2 + $0x7a0] ss:$40 sps:$4 sm:$0xff]   ;;  %v13136_v27 = vld [vmem:[%s17907_s2 + $0x1150] ss:$40 sps:$4 sm:$0xff]  }
 0x43a   : > { %9346 = vmatpush2.bf16.msra.mxu0 %v13106_v51  ;;  %v13129_v51 = vld [vmem:[%s17907_s2 + $0xcf4] ss:$40 sps:$4 sm:$0xff]  }
 0x43b   : > { %9399 = vmatpush2.bf16.msra.mxu1 %v13109_v49  ;;  %9347 = vmatprep.subr.bf16.mxu0 %v13114_v11  ;;  %v13124_v49 = vld [vmem:[%s17907_s2 + $0x7f0] ss:$40 sps:$4 sm:$0xff]   ;;  %v13132_v11 = vld [vmem:[%s17907_s2 + $0x7a4] ss:$40 sps:$4 sm:$0xff]  }
 0x43c   : > { %9400 = vmatprep.subr.bf16.mxu1 %v13117_v19  ;;  %v13135_v19 = vld [vmem:[%s17907_s2 + $0xca4] ss:$40 sps:$4 sm:$0xff]  }
 0x43e   : > { %9348 = vmatpush2.bf16.msra.mxu0 %v13112_v7  ;;  %v13133_v7 = vld [vmem:[%s17907_s2 + $0xca0] ss:$40 sps:$4 sm:$0xff]  }
 0x43f   : > { %9401 = vmatpush2.bf16.msra.mxu1 %v13115_v36  ;;  %9349 = vmatprep.subr.bf16.mxu0 %v13120_v58  ;;  %v13138_v36 = vld [vmem:[%s17907_s2 + $0x1154] ss:$40 sps:$4 sm:$0xff]  }
 0x440   : > { %9402 = vmatprep.subr.bf16.mxu1 %v13123_v18  ;;  %v279_v58 = vld [vmem:[%s17908_s3 + $0xf8] sm:$0xff]  ;;  %v1662_v18 = vmul.f32 %v14587_v17, %v14587_v17  ;;  %v13141_v17 = vld [vmem:[%s17907_s2 + $0x1104] ss:$40 sps:$4 sm:$0xff]  }
 0x442   : > { %9350 = vmatpush2.bf16.msra.mxu0 %v13118_v29  ;;  %v1668_v29 = vmul.f32 %v15019_v40, %v15019_v40  ;;  %v1648_v40 = vmul.f32 %v14515_v46, %v14515_v46  ;;  %v13139_v46 = vld [vmem:[%s17907_s2 + $0x1100] ss:$40 sps:$4 sm:$0xff]  }
 0x443   : > { %9403 = vmatpush2.bf16.msra.mxu1 %v13121_v21  ;;  %9351 = vmatprep.subr.bf16.mxu0 %v13126_v5  ;;  %v17288_v21 = vpop.f32.mrf.mxu0  ;;  %v263_v5 = vld [vmem:[%s17908_s3 + $0x78] sm:$0xff] }
 0x444   : > { %9404 = vmatprep.subr.bf16.mxu1 %v13129_v51  ;;  %v1642_v51 = vmul.f32 %v14479_v33, %v14479_v33  ;;  %v1667_v33 = vmul.f32 %v14615_v23, %v14615_v23  ;;  %v261_v23 = vld [vmem:[%s17908_s3 + $0x68] sm:$0xff] }
 0x446   : > { %9352 = vmatpush2.bf16.msra.mxu0 %v13124_v49  ;;  %v278_v49 = vld [vmem:[%s17908_s3 + $0xf0] sm:$0xff] }
 0x447   : > { %9405 = vmatpush2.bf16.msra.mxu1 %v13127_v12  ;;  %9353 = vmatprep.subr.bf16.mxu0 %v13132_v11  ;;  %v262_v11 = vld [vmem:[%s17908_s3 + $0x70] sm:$0xff] }
 0x448   : > { %9406 = vmatprep.subr.bf16.mxu1 %v13135_v19  ;;  %v13185_v19 = vpop.eup %13184 }
 0x44a   : > { %9354 = vmatpush2.bf16.msra.mxu0 %v13130_v25  ;;  %v1682_v25 = vadd.f32 %v1662_v18, %v1642_v51  ;;  %v1673_v18 = vmul.f32 %v15041_v55, %v15041_v55 }
 0x44b   : > { %9407 = vmatpush2.bf16.msra.mxu1 %v13133_v7  ;;  %9429 = vmatprep.subr.bf16.mxu0 %v13138_v36 }
 0x44c   : > { %11258 = vmatprep.subr.mxu1 %v279_v58  ;;  %v1647_v58 = vmul.f32 %v14501_v41, %v14501_v41  ;;  %v1653_v41 = vmul.f32 %v14537_v56, %v14537_v56  ;;  %v1702_v55 = vadd.f32 1e-18, %v1682_v25  ;;  %v4114_v25 = vadd.f32 %v15689_v26, %v15659_v28  ;;  %v258_v28 = vld [vmem:[%s17908_s3 + $0x50] sm:$0xff] }
 0x44d   : > { %v9039_v12 = vpop.f32.mrf.mxu0  ;;  %9356 = vmatmul.mubr.bf16.vlgmr.msra.gmra.mxu0 %v15424_v37  ;;  %v277_v37 = vld [vmem:[%s17908_s3 + $0xe8] sm:$0xff] }
 0x44e   : > { %9409 = vmatmul.mubr.bf16.vlgmr.msra.gmra.mxu1 %v15428_v52  ;;  %v17311_v7 = vadd.f32 %v9039_v12, %v17084_v61  ;;  %9430 = vmatpush1.bf16.msra.mxu0 %v13136_v27  ;;  %v1688_v52 = vadd.f32 %v1668_v29, %v1648_v40  ;;  %v13144_v61 = vld [vmem:[%s17907_s2 + $0x10b4] ss:$40 sps:$4 sm:$0xff]   ;;  %v276_v27 = vld [vmem:[%s17908_s3 + $0xe0] sm:$0xff]  ;;  %v1687_v51 = vadd.f32 %v1667_v33, %v1647_v58  ;;  %13186 = vlog2.f32 %v1702_v55 }
 0x44f   : > { %11259 = vmatpush3.msra.mxu1 %v263_v5  ;;  %v17319_v36 = vpop.f32.mrf.mxu0  ;;  %9431 = vmatprep.subr.bf16.mxu0 %v13141_v17  ;;  %v260_v5 = vld [vmem:[%s17908_s3 + $0x60] sm:$0xff]  ;;  %v1725_v17 = vmul.f32 0.6931472, %v13185_v19  ;;  %v275_v40 = vld [vmem:[%s17908_s3 + $0xd8] sm:$0xff]  ;;  %v1678_v19 = vmul.f32 %v15072_v24, %v15072_v24  ;;  %v1677_v58 = vmul.f32 %v14677_v53, %v14677_v53  ;;  %v4118_v53 = vadd.f32 %v15709_v2, %v15699_v32 }
 0x450   : > { %11260 = vmatprep.subr.mxu1 %v278_v49  ;;  %9418 = vmatprep.mubr.bf16.mxu1 %v15446_v42  ;;  %v13142_v42 = vld [vmem:[%s17907_s2 + $0x10b0] ss:$40 sps:$4 sm:$0xff]   ;;  %v1708_v12 = vadd.f32 1e-18, %v1688_v52  ;;  %v13147_v33 = vld [vmem:[%s17907_s2 + $0x1064] ss:$40 sps:$4 sm:$0xff]  }
 0x451   : > { %11261 = vmatpush3.msra.mxu1 %v262_v11  ;;  %v9043_v29 = vpop.f32.mrf.mxu0  ;;  %9365 = vmatprep.mubr.bf16.mxu0 %v15444_v31  ;;  %v1672_v31 = vmul.f32 %v14643_v34, %v14643_v34  ;;  %v1693_v11 = vadd.f32 %v1673_v18, %v1653_v41  ;;  %v274_v34 = vld [vmem:[%s17908_s3 + $0xd0] sm:$0xff]  ;;  %v1763_v24 = vmul.f32 0.5, %v1725_v17  ;;  %v1707_v26 = vadd.f32 1e-18, %v1687_v51  ;;  %v256_v51 = vld [vmem:[%s17908_s3 + $0x40] sm:$0xff] }
 0x452   : > { %11262 = vmatprep.subr.mxu1 %v277_v37  ;;  %v17342_v49 = vadd.f32 %v9043_v29, %v17105_v54  ;;  %9432 = vmatpush1.bf16.msra.mxu0 %v13139_v46  ;;  %v259_v54 = vld [vmem:[%s17908_s3 + $0x58] sm:$0xff]  ;;  %v1652_v46 = vmul.f32 %v14523_v50, %v14523_v50  ;;  %v1658_v37 = vmul.f32 %v14565_v3, %v14565_v3  ;;  %v13145_v50 = vld [vmem:[%s17907_s2 + $0x1060] ss:$40 sps:$4 sm:$0xff]   ;;  %13188 = vlog2.f32 %v1708_v12  ;;  %v17960_v17 = vld [vmem:[#allocation24_spill] sm:$0xff] }
 0x453   : > { %11263 = vmatpush3.msra.mxu1 %v261_v23  ;;  %v17352_v56 = vpop.f32.mrf.mxu0  ;;  %9433 = vmatprep.subr.bf16.mxu0 %v13144_v61  ;;  %v3858_v23 = vadd.f32 %v15125_v45, %v15105_v9  ;;  %v273_v3 = vld [vmem:[%s17908_s3 + $0xc8] sm:$0xff]  ;;  %v4030_v9 = vadd.f32 %v15466_v30, %v15448_v0  ;;  %v13150_v18 = vld [vmem:[%s17907_s2 + $0x1014] ss:$40 sps:$4 sm:$0xff]   ;;  %v272_v0 = vld [vmem:[%s17908_s3 + $0xc0] sm:$0xff]  ;;  %v1657_v30 = vmul.f32 %v14551_v62, %v14551_v62  ;;  %13190 = vlog2.f32 %v1707_v26 }
 0x454   : > { %11264 = vmatprep.subr.mxu1 %v276_v27  ;;  %v1713_v27 = vadd.f32 1e-18, %v1693_v11  ;;  %v1698_v29 = vadd.f32 %v1678_v19, %v1658_v37  ;;  %v3856_v41 = vadd.f32 %v17960_v17, %v15091_v22  ;;  %v17961_v2 = vld [vmem:[#allocation26_spill] sm:$0xff]  ;;  %v13148_v62 = vld [vmem:[%s17907_s2 + $0x1010] ss:$40 sps:$4 sm:$0xff]   ;;  %v17964_v19 = vld [vmem:[#allocation31_spill] sm:$0xff]  ;;  %v4224_v37 = vmul.f32 %v4118_v53, %v4118_v53 }
 0x455   : > { %11265 = vmatpush3.msra.mxu1 %v260_v5  ;;  %v9049_v52 = vpop.f32.mrf.mxu0  ;;  %v4219_v5 = vmul.f32 %v4114_v25, %v4114_v25  ;;  %9366 = vmatmul.mubr.bf16.gmra.mxu0 %v15488_v1  ;;  %v4209_v32 = vmul.f32 %v3858_v23, %v3858_v23  ;;  %v271_v22 = vld [vmem:[%s17908_s3 + $0xb8] sm:$0xff]  ;;  %v1697_v1 = vadd.f32 %v1677_v58, %v1657_v30  ;;  %v17963_v11 = vld [vmem:[#allocation30_spill] sm:$0xff]  ;;  %v17966_v26 = vld [vmem:[#allocation27_spill] sm:$0xff] }
 0x456   : > { %9419 = vmatmul.mubr.bf16.gmra.mxu1 %v15490_v43  ;;  %11266 = vmatprep.subr.mxu1 %v275_v40  ;;  %v17378_v61 = vadd.f32 %v9049_v52, %v17126_v8  ;;  %v1692_v43 = vadd.f32 %v1672_v31, %v1652_v46  ;;  %v257_v8 = vld [vmem:[%s17908_s3 + $0x48] sm:$0xff]  ;;  %v4034_v25 = vadd.f32 %v17964_v19, %v17963_v11  ;;  %13192 = vlog2.f32 %v1713_v27  ;;  %v270_v52 = vld [vmem:[%s17908_s3 + $0xb0] sm:$0xff]  ;;  %v268_v53 = vld [vmem:[%s17908_s3 + $0xa0] sm:$0xff] }
 0x457   : > { %9434 = vmatpush1.bf16.msra.mxu0 %v13142_v42  ;;  %11267 = vmatpush3.msra.mxu1 %v259_v54  ;;  %v17390_v45 = vpop.f32.mrf.mxu0  ;;  %v17962_v42 = vld [vmem:[#allocation28_spill] sm:$0xff]  ;;  %v4218_v54 = vmul.f32 %v4030_v9, %v4030_v9  ;;  %v4229_v46 = vadd.f32 %v4219_v5, %v4209_v32  ;;  %v1717_v58 = vadd.f32 1e-18, %v1697_v1  ;;  %v252_v30 = vld [vmem:[%s17908_s3 + $0x20] sm:$0xff]  ;;  %v265_v11 = vld [vmem:[%s17908_s3 + $0x88] sm:$0xff] }
 0x458   : > { %9686 = vmatprep.mubr.f32.mxu1 %v1763_v24  ;;  %11268 = vmatprep.subr.mxu1 %v274_v34  ;;  %v3862_v40 = vadd.f32 %v17962_v42, %v17961_v2  ;;  %v1712_v31 = vadd.f32 1e-18, %v1692_v43  ;;  %v13153_v34 = vld [vmem:[%s17907_s2 + $0xfc4] ss:$40 sps:$4 sm:$0xff]   ;;  %v4208_v24 = vmul.f32 %v3856_v41, %v3856_v41  ;;  %v13151_v43 = vld [vmem:[%s17907_s2 + $0xfc0] ss:$40 sps:$4 sm:$0xff]  }
 0x459   : > { %11269 = vmatpush3.msra.mxu1 %v258_v28  ;;  %9435 = vmatprep.subr.bf16.mxu0 %v13147_v33  ;;  %v9053_v55 = vpop.f32.mrf.mxu0  ;;  %v1718_v33 = vadd.f32 1e-18, %v1698_v29  ;;  %v17965_v28 = vld [vmem:[#allocation25_spill] sm:$0xff]  ;;  %v4239_v29 = vadd.f32 1e-18, %v4229_v46 }
 0x45a   : > { %11270 = vmatprep.subr.mxu1 %v273_v3  ;;  %v17414_v12 = vadd.f32 %v9053_v55, %v17143_v38  ;;  %v255_v38 = vld [vmem:[%s17908_s3 + $0x38] sm:$0xff]  ;;  %9461 = vmatprep.mubr.bf16.mxu0 %v15502_v60  ;;  %v3860_v23 = vadd.f32 %v17966_v26, %v17965_v28  ;;  %v4214_v3 = vmul.f32 %v3862_v40, %v3862_v40  ;;  %v269_v60 = vld [vmem:[%s17908_s3 + $0xa8] sm:$0xff]  ;;  %13194 = vlog2.f32 %v1712_v31  ;;  %v250_v31 = vld [vmem:[%s17908_s3 + $0x10] sm:$0xff] }
 0x45b   : > { %9436 = vmatpush1.bf16.msra.mxu0 %v13145_v50  ;;  %11271 = vmatpush3.msra.mxu1 %v257_v8  ;;  %v254_v50 = vld [vmem:[%s17908_s3 + $0x30] sm:$0xff]  ;;  %v4228_v9 = vadd.f32 %v4218_v54, %v4208_v24  ;;  %v4223_v8 = vmul.f32 %v4034_v25, %v4034_v25  ;;  %13196 = vlog2.f32 %v1718_v33  ;;  %v267_v41 = vld [vmem:[%s17908_s3 + $0x98] sm:$0xff]  ;;  %v13187_v55 = vpop.eup %13186  ;;  %v13159_v42 = vld [vmem:[%s17907_s2 + $0xf24] ss:$40 sps:$4 sm:$0xff]  }
 0x45c   : > { %11272 = vmatprep.subr.mxu1 %v272_v0  ;;  %9437 = vmatprep.subr.bf16.mxu0 %v13150_v18  ;;  %v253_v18 = vld [vmem:[%s17908_s3 + $0x28] sm:$0xff]  ;;  %v13156_v27 = vld [vmem:[%s17907_s2 + $0xf74] ss:$40 sps:$4 sm:$0xff]   ;;  %v4234_v5 = vadd.f32 %v4224_v37, %v4214_v3  ;;  %v4213_v0 = vmul.f32 %v3860_v23, %v3860_v23  ;;  %v13154_v17 = vld [vmem:[%s17907_s2 + $0xf70] ss:$40 sps:$4 sm:$0xff]   ;;  %13198 = vlog2.f32 %v1717_v58  ;;  %v17499_v23 = vpop.f32.mrf.mxu1 }
 0x45d   : > { %11273 = vmatpush3.msra.mxu1 %v256_v51  ;;  %v4238_v51 = vadd.f32 1e-18, %v4228_v9  ;;  %v251_v2 = vld [vmem:[%s17908_s3 + $0x18] sm:$0xff]  ;;  %13200 = vlog2.f32 %v4239_v29  ;;  %v1723_v1 = vmul.f32 0.6931472, %v13187_v55  ;;  %v264_v33 = vld [vmem:[%s17908_s3 + $0x80] sm:$0xff] }
 0x45e   : > { %11274 = vmatprep.subr.mxu1 %v271_v22  ;;  %v4233_v32 = vadd.f32 %v4223_v8, %v4213_v0  ;;  %v266_v22 = vld [vmem:[%s17908_s3 + $0x90] sm:$0xff]  ;;  %v13157_v54 = vld [vmem:[%s17907_s2 + $0xf20] ss:$40 sps:$4 sm:$0xff]   ;;  %v311_v28 = vld [vmem:[%s17908_s3 + $0x1f8] sm:$0xff] }
 0x45f   : > { %9438 = vmatpush1.bf16.msra.mxu0 %v13148_v62  ;;  %11275 = vmatpush3.msra.mxu1 %v255_v38  ;;  %v13189_v40 = vpop.eup %13188  ;;  %v4244_v62 = vadd.f32 1e-18, %v4234_v5  ;;  %13202 = vlog2.f32 %v4238_v51  ;;  %v249_v38 = vld [vmem:[%s17908_s3 + $0x8] sm:$0xff]  ;;  %v13160_v24 = vld [vmem:[%s17907_s2 + $0x13d0] ss:$40 sps:$4 sm:$0xff]   ;;  %v1762_v26 = vmul.f32 0.5, %v1723_v1 }
 0x460   : > { %11276 = vmatprep.subr.mxu1 %v270_v52  ;;  %9439 = vmatprep.subr.bf16.mxu0 %v13153_v34  ;;  %v13191_v19 = vpop.eup %13190  ;;  %v4243_v25 = vadd.f32 1e-18, %v4233_v32  ;;  %v13162_v34 = vld [vmem:[%s17907_s2 + $0x13d4] ss:$40 sps:$4 sm:$0xff]   ;;  %v1735_v46 = vmul.f32 0.6931472, %v13189_v40 }
 0x461   : > { %11277 = vmatpush3.msra.mxu1 %v254_v50  ;;  %13204 = vlog2.f32 %v4244_v62  ;;  %v248_v52 = vld [vmem:[%s17908_s3] sm:$0xff]  ;;  %v1733_v3 = vmul.f32 0.6931472, %v13191_v19  ;;  %v295_v9 = vld [vmem:[%s17908_s3 + $0x178] sm:$0xff]  ;;  %v294_v55 = vld [vmem:[%s17908_s3 + $0x170] sm:$0xff] }
 0x462   : > { %11278 = vmatprep.subr.mxu1 %v269_v60  ;;  %13206 = vlog2.f32 %v4243_v25  ;;  %v13165_v50 = vld [vmem:[%s17907_s2 + $0x1384] ss:$40 sps:$4 sm:$0xff]   ;;  %v1768_v60 = vmul.f32 0.5, %v1735_v46  ;;  %v13163_v29 = vld [vmem:[%s17907_s2 + $0x1380] ss:$40 sps:$4 sm:$0xff]  }
 0x463   : > { %9440 = vmatpush1.bf16.msra.mxu0 %v13151_v43  ;;  %11279 = vmatpush3.msra.mxu1 %v253_v18  ;;  %v13193_v37 = vpop.eup %13192  ;;  %v17507_v18 = vpop.f32.mrf.mxu1  ;;  %v1767_v5 = vmul.f32 0.5, %v1733_v3  ;;  %v13171_v62 = vld [vmem:[%s17907_s2 + $0x12e4] ss:$40 sps:$4 sm:$0xff]  }
 0x464   : > { %11280 = vmatprep.subr.mxu1 %v268_v53  ;;  %9441 = vmatprep.subr.bf16.mxu0 %v13156_v27  ;;  %v1745_v58 = vmul.f32 0.6931472, %v13193_v37  ;;  %v310_v27 = vld [vmem:[%s17908_s3 + $0x1f0] sm:$0xff]  ;;  %v17967_v1 = vld [vmem:[#allocation6_spill] sm:$0xff]  ;;  %v293_v25 = vld [vmem:[%s17908_s3 + $0x168] sm:$0xff] }
 0x465   : > { %11281 = vmatpush3.msra.mxu1 %v252_v30  ;;  %v13168_v53 = vld [vmem:[%s17907_s2 + $0x1334] ss:$40 sps:$4 sm:$0xff]   ;;  %v17521_v32 = vpop.f32.mrf.mxu1  ;;  %v17968_v46 = vld [vmem:[#allocation2_spill] sm:$0xff] }
 0x466   : > { %11282 = vmatprep.subr.mxu1 %v267_v41  ;;  %v1646_v37 = vmul.f32 %v17968_v46, %v17968_v46  ;;  %v13181_v46 = vld [vmem:[%s17907_s2 + $0x11a0] ss:$40 sps:$4 sm:$0xff]  }
 0x467   : > { %9442 = vmatpush1.bf16.msra.mxu0 %v13154_v17  ;;  %11283 = vmatpush3.msra.mxu1 %v251_v2  ;;  %v13195_v43 = vpop.eup %13194  ;;  %v1773_v17 = vmul.f32 0.5, %v1745_v58  ;;  %v309_v2 = vld [vmem:[%s17908_s3 + $0x1e8] sm:$0xff]  ;;  %v292_v58 = vld [vmem:[%s17908_s3 + $0x160] sm:$0xff] }
 0x468   : > { %11284 = vmatprep.subr.mxu1 %v266_v22  ;;  %9443 = vmatprep.subr.bf16.mxu0 %v13159_v42  ;;  %v13197_v8 = vpop.eup %13196  ;;  %v1743_v0 = vmul.f32 0.6931472, %v13195_v43  ;;  %v13166_v42 = vld [vmem:[%s17907_s2 + $0x1330] ss:$40 sps:$4 sm:$0xff]  }
 0x469   : > { %11285 = vmatpush3.msra.mxu1 %v250_v31  ;;  %v13199_v30 = vpop.eup %13198  ;;  %v1755_v41 = vmul.f32 0.6931472, %v13197_v8  ;;  %v307_v8 = vld [vmem:[%s17908_s3 + $0x1d8] sm:$0xff] }
 0x46a   : > { %11286 = vmatprep.subr.mxu1 %v265_v11  ;;  %v13201_v51 = vpop.eup %13200  ;;  %v1772_v40 = vmul.f32 0.5, %v1743_v0  ;;  %v1753_v22 = vmul.f32 0.6931472, %v13199_v30 }
 0x46b   : > { %9444 = vmatpush1.bf16.msra.mxu0 %v13157_v54  ;;  %11287 = vmatpush3.msra.mxu1 %v249_v38  ;;  %v1666_v54 = vmul.f32 %v17967_v1, %v17967_v1  ;;  %v1778_v11 = vmul.f32 0.5, %v1755_v41  ;;  %v4251_v19 = vmul.f32 0.6931472, %v13201_v51  ;;  %v13175_v51 = vld [vmem:[%s17907_s2 + $0x1240] ss:$40 sps:$4 sm:$0xff]  }
 0x46c   : > { %11288 = vmatprep.subr.mxu1 %v264_v33  ;;  %9445 = vmatprep.subr.bf16.mxu0 %v13162_v34  ;;  %v13203_v31 = vpop.eup %13202  ;;  %v17537_v34 = vpop.f32.mrf.mxu1  ;;  %v308_v33 = vld [vmem:[%s17908_s3 + $0x1e0] sm:$0xff]  ;;  %v13178_v1 = vld [vmem:[%s17907_s2 + $0x11f0] ss:$40 sps:$4 sm:$0xff]  }
 0x46d   : > { %11289 = vmatpush3.msra.mxu1 %v248_v52  ;;  %v13169_v52 = vld [vmem:[%s17907_s2 + $0x12e0] ss:$40 sps:$4 sm:$0xff]   ;;  %v1686_v3 = vadd.f32 %v1666_v54, %v1646_v37  ;;  %v4269_v43 = vmul.f32 0.5, %v4251_v19  ;;  %v302_v37 = vld [vmem:[%s17908_s3 + $0x1b0] sm:$0xff] }
 0x46e   : > { %9687 = vmatmul.mubr.f32.vlgmr.msra.gmra.mxu1 %v1762_v26  ;;  %11320 = vmatprep.subr.mxu1 %v311_v28  ;;  %v13205_v38 = vpop.eup %13204  ;;  %v1777_v28 = vmul.f32 0.5, %v1753_v22  ;;  %v13174_v26 = vld [vmem:[%s17907_s2 + $0x1294] ss:$40 sps:$4 sm:$0xff]   ;;  %v304_v54 = vld [vmem:[%s17908_s3 + $0x1c0] sm:$0xff] }
 0x46f   : > { %9446 = vmatpush2.bf16.msra.mxu0 %v13160_v24  ;;  %9691 = vmatprep.mubr.f32.mxu1 %v1768_v60  ;;  %v4249_v24 = vmul.f32 0.6931472, %v13203_v31  ;;  %v4261_v60 = vmul.f32 0.6931472, %v13205_v38  ;;  %v1706_v0 = vadd.f32 1e-18, %v1686_v3 }
 0x470   : > { %9447 = vmatprep.subr.bf16.mxu0 %v13165_v50  ;;  %11321 = vmatpush3.msra.mxu1 %v295_v9  ;;  %v13207_v50 = vpop.eup %13206  ;;  %v17553_v9 = vpop.f32.mrf.mxu1  ;;  %v289_v31 = vld [vmem:[%s17908_s3 + $0x148] sm:$0xff]  ;;  %v288_v19 = vld [vmem:[%s17908_s3 + $0x140] sm:$0xff] }
 0x471   : > { %11322 = vmatprep.subr.mxu1 %v310_v27  ;;  %v13172_v27 = vld [vmem:[%s17907_s2 + $0x1290] ss:$40 sps:$4 sm:$0xff]   ;;  %v4274_v30 = vmul.f32 0.5, %v4261_v60  ;;  %13208 = vlog2.f32 %v1706_v0  ;;  %v300_v3 = vld [vmem:[%s17908_s3 + $0x1a0] sm:$0xff]  ;;  %v17971_v0 = vld [vmem:[#allocation3_spill] sm:$0xff] }
 0x472   : > { %9692 = vmatmul.mubr.f32.gmra.mxu1 %v1767_v5  ;;  %v4268_v5 = vmul.f32 0.5, %v4249_v24  ;;  %v17567_v41 = vpop.f32.mrf.mxu1  ;;  %v327_v24 = vld [vmem:[%s17908_s3 + $0x278] sm:$0xff] }
 0x473   : > { %9448 = vmatpush2.bf16.msra.mxu0 %v13163_v29  ;;  %9696 = vmatprep.mubr.f32.mxu1 %v1773_v17  ;;  %v4259_v29 = vmul.f32 0.6931472, %v13207_v50  ;;  %v291_v17 = vld [vmem:[%s17908_s3 + $0x158] sm:$0xff]  ;;  %v285_v50 = vld [vmem:[%s17908_s3 + $0x128] sm:$0xff] }
 0x474   : > { %9449 = vmatprep.subr.bf16.mxu0 %v13168_v53  ;;  %11323 = vmatpush3.msra.mxu1 %v294_v55  ;;  %v13177_v53 = vld [vmem:[%s17907_s2 + $0x1244] ss:$40 sps:$4 sm:$0xff]   ;;  %v306_v55 = vld [vmem:[%s17908_s3 + $0x1d0] sm:$0xff]  ;;  %v17584_v22 = vpop.f32.mrf.mxu1 }
 0x475   : > { %11324 = vmatprep.subr.mxu1 %v309_v2  ;;  %v4273_v2 = vmul.f32 0.5, %v4259_v29  ;;  %v326_v29 = vld [vmem:[%s17908_s3 + $0x270] sm:$0xff] }
 0x476   : > { %9697 = vmatmul.mubr.f32.gmra.mxu1 %v1772_v40  ;;  %v290_v40 = vld [vmem:[%s17908_s3 + $0x150] sm:$0xff]  ;;  %v17604_v38 = vpop.f32.mrf.mxu1 }
 0x477   : > { %9450 = vmatpush2.bf16.msra.mxu0 %v13166_v42  ;;  %9701 = vmatprep.mubr.f32.mxu1 %v1778_v11  ;;  %v13180_v42 = vld [vmem:[%s17907_s2 + $0x11f4] ss:$40 sps:$4 sm:$0xff]   ;;  %v13183_v11 = vld [vmem:[%s17907_s2 + $0x11a4] ss:$40 sps:$4 sm:$0xff]  }
 0x478   : > { %9451 = vmatprep.subr.bf16.mxu0 %v13171_v62  ;;  %11325 = vmatpush3.msra.mxu1 %v293_v25  ;;  %v305_v62 = vld [vmem:[%s17908_s3 + $0x1c8] sm:$0xff]  ;;  %v303_v25 = vld [vmem:[%s17908_s3 + $0x1b8] sm:$0xff] }
 0x479   : > { %11326 = vmatprep.subr.mxu1 %v308_v33  ;;  %v287_v33 = vld [vmem:[%s17908_s3 + $0x138] sm:$0xff] }
 0x47a   : > { %9702 = vmatmul.mubr.f32.gmra.mxu1 %v1777_v28  ;;  %v301_v28 = vld [vmem:[%s17908_s3 + $0x1a8] sm:$0xff] }
 0x47b   : > { %9452 = vmatpush2.bf16.msra.mxu0 %v13169_v52  ;;  %9706 = vmatprep.mubr.f32.mxu1 %v4269_v43  ;;  %v286_v52 = vld [vmem:[%s17908_s3 + $0x130] sm:$0xff]  ;;  %v17969_v43 = vld [vmem:[#allocation9_spill] sm:$0xff] }
 0x47c   : > { %9453 = vmatprep.subr.bf16.mxu0 %v13174_v26  ;;  %11327 = vmatpush3.msra.mxu1 %v292_v58  ;;  %v17624_v26 = vpop.f32.mrf.mxu1  ;;  %v1671_v60 = vmul.f32 %v17969_v43, %v17969_v43  ;;  %v17634_v58 = vpop.f32.mrf.mxu0 }
 0x47d   : > { %11328 = vmatprep.subr.mxu1 %v307_v8  ;;  %v17970_v8 = vld [vmem:[#allocation11_spill] sm:$0xff] }
 0x47e   : > { %9707 = vmatmul.mubr.f32.gmra.mxu1 %v4268_v5  ;;  %v284_v5 = vld [vmem:[%s17908_s3 + $0x120] sm:$0xff] }
 0x47f   : > { %9454 = vmatpush2.bf16.msra.mxu0 %v13172_v27  ;;  %9711 = vmatprep.mubr.f32.mxu1 %v4274_v30  ;;  %v1676_v27 = vmul.f32 %v17970_v8, %v17970_v8  ;;  %v1651_v30 = vmul.f32 %v17971_v0, %v17971_v0  ;;  %v322_v0 = vld [vmem:[%s17908_s3 + $0x250] sm:$0xff] }
 0x480   : > { %9455 = vmatprep.subr.bf16.mxu0 %v13177_v53  ;;  %11329 = vmatpush3.msra.mxu1 %v291_v17  ;;  %v13209_v53 = vpop.eup %13208 }
 0x481   : > { %11330 = vmatprep.subr.mxu1 %v306_v55 }
 0x482   : > { %9712 = vmatmul.mubr.f32.gmra.mxu1 %v4273_v2  ;;  %v17972_v2 = vld [vmem:[#allocation4_spill] sm:$0xff] }
 0x483   : > { %9456 = vmatpush2.bf16.msra.mxu0 %v13175_v51  ;;  %11331 = vmatpush3.msra.mxu1 %v290_v40  ;;  %v299_v51 = vld [vmem:[%s17908_s3 + $0x198] sm:$0xff]  ;;  %v325_v40 = vld [vmem:[%s17908_s3 + $0x268] sm:$0xff] }
 0x484   : > { %9457 = vmatprep.subr.bf16.mxu0 %v13180_v42  ;;  %11332 = vmatprep.subr.mxu1 %v305_v62  ;;  %v1656_v42 = vmul.f32 %v17972_v2, %v17972_v2  ;;  %v1691_v62 = vadd.f32 %v1671_v60, %v1651_v30  ;;  %v281_v30 = vld [vmem:[%s17908_s3 + $0x108] sm:$0xff] }
 0x485   : > { %11333 = vmatpush3.msra.mxu1 %v289_v31  ;;  %v17973_v31 = vld [vmem:[#allocation37_spill] sm:$0xff] }
 0x486   : > { %11334 = vmatprep.subr.mxu1 %v304_v54  ;;  %v1711_v43 = vadd.f32 1e-18, %v1691_v62  ;;  %v321_v62 = vld [vmem:[%s17908_s3 + $0x248] sm:$0xff] }
 0x487   : > { %9458 = vmatpush2.bf16.msra.mxu0 %v13178_v1  ;;  %11335 = vmatpush3.msra.mxu1 %v288_v19  ;;  %v17974_v1 = vld [vmem:[#allocation38_spill] sm:$0xff] }
 0x488   : > { %9459 = vmatprep.subr.bf16.mxu0 %v13183_v11  ;;  %11336 = vmatprep.subr.mxu1 %v303_v25  ;;  %v4206_v54 = vadd.f32 %v17974_v1, %v17973_v31  ;;  %v298_v25 = vld [vmem:[%s17908_s3 + $0x190] sm:$0xff]  ;;  %13210 = vlog2.f32 %v1711_v43  ;;  %v17976_v31 = vld [vmem:[#allocation13_spill] sm:$0xff] }
 0x489   : > { %11337 = vmatpush3.msra.mxu1 %v287_v33  ;;  %v1696_v33 = vadd.f32 %v1676_v27, %v1656_v42  ;;  %v1721_v1 = vadd.f32 1e-18, %v17976_v31 }
 0x48a   : > { %11338 = vmatprep.subr.mxu1 %v302_v37  ;;  %v1731_v37 = vmul.f32 0.6931472, %v13209_v53  ;;  %v4227_v60 = vmul.f32 %v4206_v54, %v4206_v54 }
 0x48b   : > { %9460 = vmatpush2.bf16.msra.mxu0 %v13181_v46  ;;  %11339 = vmatpush3.msra.mxu1 %v286_v52  ;;  %v282_v52 = vld [vmem:[%s17908_s3 + $0x110] sm:$0xff] }
 0x48c   : > { %11408 = vmatprep.subr.mxu0 %v327_v24  ;;  %11340 = vmatprep.subr.mxu1 %v301_v28  ;;  %v1766_v53 = vmul.f32 0.5, %v1731_v37 }
 0x48d   : > { %11341 = vmatpush3.msra.mxu1 %v285_v50  ;;  %v17646_v17 = vpop.f32.mrf.mxu0 }
 0x48e   : > { %9462 = vmatmul.mubr.bf16.vlgmr.msra.gmra.mxu0 %v15671_v14  ;;  %v17649_v55 = vpop.f32.mrf.mxu1  ;;  %11342 = vmatprep.subr.mxu1 %v300_v3  ;;  %v283_v14 = vld [vmem:[%s17908_s3 + $0x118] sm:$0xff] }
 0x48f   : > { %11409 = vmatpush3.msra.mxu0 %v327_v24  ;;  %9471 = vmatprep.mubr.bf16.mxu0 %v15687_v16  ;;  %v9147_v11 = vpop.f32.mrf.mxu0  ;;  %v324_v16 = vld [vmem:[%s17908_s3 + $0x260] sm:$0xff]  ;;  %v323_v3 = vld [vmem:[%s17908_s3 + $0x258] sm:$0xff] }
 0x490   : > { %11410 = vmatprep.subr.mxu0 %v326_v29  ;;  %v9200_v19 = vpop.f32.mrf.mxu1  ;;  %11343 = vmatpush3.msra.mxu1 %v284_v5  ;;  %v9148_v46 = vadd.f32 %v9147_v11, %v17521_v32  ;;  %v297_v32 = vld [vmem:[%s17908_s3 + $0x188] sm:$0xff] }
 0x491   : > { %11411 = vmatpush3.msra.mxu0 %v326_v29  ;;  %11344 = vmatprep.subr.mxu1 %v299_v51  ;;  %v17675_v24 = vpop.f32.mrf.mxu0  ;;  %v1716_v29 = vadd.f32 1e-18, %v1696_v33  ;;  %v17975_v51 = vld [vmem:[#allocation29_spill] sm:$0xff]  ;;  %v320_v33 = vld [vmem:[%s17908_s3 + $0x240] sm:$0xff] }
 0x492   : > { %11412 = vmatprep.subr.mxu0 %v325_v40  ;;  %v17677_v28 = vpop.f32.mrf.mxu1  ;;  %11345 = vmatpush3.msra.mxu1 %v283_v14  ;;  %v17682_v50 = vadd.f32 %v9200_v19, %v9148_v46  ;;  %v4217_v2 = vmul.f32 %v17975_v51, %v17975_v51  ;;  %v17977_v19 = vld [vmem:[#allocation35_spill] sm:$0xff] }
 0x493   : > { %11413 = vmatpush3.msra.mxu0 %v325_v40  ;;  %11346 = vmatprep.subr.mxu1 %v298_v25  ;;  %v9151_v8 = vpop.f32.mrf.mxu0  ;;  %v296_v40 = vld [vmem:[%s17908_s3 + $0x180] sm:$0xff]  ;;  %13212 = vlog2.f32 %v1716_v29  ;;  %v4242_v25 = vadd.f32 1e-18, %v17977_v19 }
 0x494   : > { %11414 = vmatprep.subr.mxu0 %v324_v16  ;;  %v9204_v27 = vpop.f32.mrf.mxu1  ;;  %11347 = vmatpush3.msra.mxu1 %v282_v52  ;;  %v9152_v5 = vadd.f32 %v9151_v8, %v17553_v9  ;;  %v4237_v54 = vadd.f32 %v4227_v60, %v4217_v2  ;;  %v319_v52 = vld [vmem:[%s17908_s3 + $0x238] sm:$0xff]  ;;  %13214 = vlog2.f32 %v1721_v1  ;;  %v317_v8 = vld [vmem:[%s17908_s3 + $0x228] sm:$0xff]  ;;  %v312_v2 = vld [vmem:[%s17908_s3 + $0x200] sm:$0xff] }
 0x495   : > { %11415 = vmatpush3.msra.mxu0 %v324_v16  ;;  %11348 = vmatprep.subr.mxu1 %v297_v32  ;;  %v17697_v42 = vpop.f32.mrf.mxu0  ;;  %13216 = vlog2.f32 %v4242_v25  ;;  %v13211_v29 = vpop.eup %13210 }
 0x496   : > { %9472 = vmatmul.mubr.bf16.gmra.mxu0 %v15711_v39  ;;  %11416 = vmatprep.subr.mxu0 %v323_v3  ;;  %v17699_v9 = vpop.f32.mrf.mxu1  ;;  %v17704_v14 = vadd.f32 %v9204_v27, %v9152_v5  ;;  %v280_v39 = vld [vmem:[%s17908_s3 + $0x100] sm:$0xff]  ;;  %v314_v5 = vld [vmem:[%s17908_s3 + $0x210] sm:$0xff] }
 0x497   : > { %11417 = vmatpush3.msra.mxu0 %v323_v3  ;;  %11440 = vmatprep.mubr.f32.mxu0 %v1766_v53  ;;  %v9157_v11 = vpop.f32.mrf.mxu0  ;;  %v4247_v3 = vadd.f32 1e-18, %v4237_v54  ;;  %v316_v27 = vld [vmem:[%s17908_s3 + $0x220] sm:$0xff] }
 0x498   : > { %11418 = vmatprep.subr.mxu0 %v322_v0  ;;  %11349 = vmatpush3.msra.mxu1 %v281_v30  ;;  %v9158_v46 = vadd.f32 %v9157_v11, %v17584_v22  ;;  %v9210_v37 = vpop.f32.mrf.mxu1  ;;  %v318_v22 = vld [vmem:[%s17908_s3 + $0x230] sm:$0xff]  ;;  %v1741_v30 = vmul.f32 0.6931472, %v13211_v29  ;;  %v17978_v29 = vld [vmem:[#allocation39_spill] sm:$0xff] }
 0x499   : > { %11419 = vmatpush3.msra.mxu0 %v322_v0  ;;  %11350 = vmatprep.subr.mxu1 %v296_v40  ;;  %v17718_v16 = vpop.f32.mrf.mxu0  ;;  %13218 = vlog2.f32 %v4247_v3  ;;  %v313_v0 = vld [vmem:[%s17908_s3 + $0x208] sm:$0xff]  ;;  %v8940_v3 = vadd.f32 %v17095_v10, %v16995_v13 }
 0x49a   : > { %11420 = vmatprep.subr.mxu0 %v321_v62  ;;  %11351 = vmatpush3.msra.mxu1 %v280_v39  ;;  %v17723_v32 = vadd.f32 %v9210_v37, %v9158_v46  ;;  %v1771_v39 = vmul.f32 0.5, %v1741_v30  ;;  %v8936_v37 = vadd.f32 %v17074_v6, %v16967_v59  ;;  %v9146_v6 = vadd.f32 %v17646_v17, %v17507_v18  ;;  %v17980_v17 = vld [vmem:[#allocation5_spill] sm:$0xff]  ;;  %v17982_v30 = vld [vmem:[#allocation20_spill] sm:$0xff] }
 0x49b   : > { %11421 = vmatpush3.msra.mxu0 %v321_v62  ;;  %v9161_v43 = vpop.f32.mrf.mxu0  ;;  %v8950_v59 = vadd.f32 %v17288_v21, %v17051_v4 }
 0x49c   : > { %11422 = vmatprep.subr.mxu0 %v320_v33  ;;  %v17729_v60 = vadd.f32 %v9161_v43, %v17624_v26  ;;  %v315_v26 = vld [vmem:[%s17908_s3 + $0x218] sm:$0xff] }
 0x49d   : > { %11423 = vmatpush3.msra.mxu0 %v320_v33 }
 0x49e   : > { %11424 = vmatprep.subr.mxu0 %v319_v52 }
 0x49f   : > { %11425 = vmatpush3.msra.mxu0 %v319_v52  ;;  %v8989_v52 = vadd.f32 %v17076_v47, %v8936_v37 }
 0x4a0   : > { %11426 = vmatprep.subr.mxu0 %v318_v22  ;;  %v13213_v53 = vpop.eup %13212 }
 0x4a1   : > { %11427 = vmatpush3.msra.mxu0 %v318_v22  ;;  %v13215_v51 = vpop.eup %13214  ;;  %v1751_v40 = vmul.f32 0.6931472, %v13213_v53  ;;  %v9042_v43 = vadd.f32 %v17319_v36, %v8989_v52  ;;  %v8993_v22 = vadd.f32 %v17097_v15, %v8940_v3  ;;  %v17979_v36 = vld [vmem:[#allocation41_spill] sm:$0xff]  ;;  %v9003_v53 = vadd.f32 %v17499_v23, %v8950_v59 }
 0x4a2   : > { %11428 = vmatprep.subr.mxu0 %v317_v8  ;;  %v13217_v62 = vpop.eup %13216  ;;  %v1761_v31 = vmul.f32 0.6931472, %v13215_v51 }
 0x4a3   : > { %11429 = vmatpush3.msra.mxu0 %v317_v8  ;;  %v1776_v54 = vmul.f32 0.5, %v1751_v40  ;;  %v4257_v11 = vmul.f32 0.6931472, %v13217_v62  ;;  %v8946_v8 = vadd.f32 %v17122_v48, %v17023_v44  ;;  %v9199_v44 = vadd.f32 %v17649_v55, %v9146_v6  ;;  %v17983_v40 = vld [vmem:[#allocation40_spill] sm:$0xff]  ;;  %v17987_v6 = vld [vmem:[#allocation45_spill] sm:$0xff] }
 0x4a4   : > { %11430 = vmatprep.subr.mxu0 %v316_v27  ;;  %v1781_v25 = vmul.f32 0.5, %v1761_v31  ;;  %v9150_v48 = vadd.f32 %v17675_v24, %v17537_v34  ;;  %v1664_v55 = vmul.f32 %v17982_v30, %v17982_v30  ;;  %v9056_v24 = vadd.f32 %v17634_v58, %v9003_v53 }
 0x4a5   : > { %11431 = vmatpush3.msra.mxu0 %v316_v27  ;;  %v4272_v33 = vmul.f32 0.5, %v4257_v11  ;;  %v9502_v27 = vmul.f32 %v9042_v43, %v9042_v43  ;;  %v8999_v47 = vadd.f32 %v17124_v35, %v8946_v8  ;;  %v1644_v35 = vmul.f32 %v17980_v17, %v17980_v17  ;;  %v17985_v11 = vld [vmem:[#allocation43_spill] sm:$0xff] }
 0x4a6   : > { %11432 = vmatprep.subr.mxu0 %v315_v26  ;;  %v13219_v1 = vpop.eup %13218  ;;  %v9483_v23 = vmul.f32 %v17983_v40, %v17983_v40  ;;  %v9203_v62 = vadd.f32 %v17677_v28, %v9150_v48  ;;  %v9156_v58 = vadd.f32 %v17697_v42, %v17567_v41  ;;  %v9160_v43 = vadd.f32 %v17718_v16, %v17604_v38  ;;  %v17986_v41 = vld [vmem:[#allocation15_spill] sm:$0xff] }
 0x4a7   : > { %11433 = vmatpush3.msra.mxu0 %v315_v26  ;;  %v4267_v19 = vmul.f32 0.6931472, %v13219_v1  ;;  %v9046_v26 = vadd.f32 %v17352_v56, %v8993_v22  ;;  %v9052_v15 = vadd.f32 %v17390_v45, %v8999_v47  ;;  %v9487_v56 = vmul.f32 %v17979_v36, %v17979_v36  ;;  %v17984_v1 = vld [vmem:[#allocation42_spill] sm:$0xff]  ;;  %v9212_v22 = vpop.f32.mrf.mxu1 }
 0x4a8   : > { %11434 = vmatprep.subr.mxu0 %v314_v5  ;;  %v1650_v42 = vmul.f32 %v17986_v41, %v17986_v41  ;;  %v9497_v47 = vmul.f32 %v17987_v6, %v17987_v6  ;;  %v9209_v59 = vadd.f32 %v17699_v9, %v9156_v58  ;;  %v9489_v38 = vmul.f32 %v16848_v57, %v16848_v57  ;;  %v17988_v9 = vld [vmem:[#allocation8_spill] sm:$0xff] }
 0x4a9   : > { %11435 = vmatpush3.msra.mxu0 %v314_v5  ;;  %v4277_v46 = vmul.f32 0.5, %v4267_v19  ;;  %v9482_v5 = vmul.f32 %v17978_v29, %v17978_v29  ;;  %v9507_v10 = vmul.f32 %v9046_v26, %v9046_v26  ;;  %v9512_v34 = vmul.f32 %v9052_v15, %v9052_v15 }
 0x4aa   : > { %11436 = vmatprep.subr.mxu0 %v313_v0  ;;  %v9492_v19 = vmul.f32 %v17985_v11, %v17985_v11 }
 0x4ab   : > { %11437 = vmatpush3.msra.mxu0 %v313_v0  ;;  %v9522_v13 = vadd.f32 %v9502_v27, %v9482_v5  ;;  %v17981_v0 = vld [vmem:[#allocation14_spill] sm:$0xff]  ;;  %v9527_v51 = vadd.f32 %v9507_v10, %v9487_v56  ;;  %v1684_v5 = vadd.f32 %v1664_v55, %v1644_v35  ;;  %v9213_v56 = vadd.f32 %v9212_v22, %v9160_v43  ;;  %v17996_v43 = vld [vmem:[#allocation17_spill] sm:$0xff] }
 0x4ac   : > { %11438 = vmatprep.subr.mxu0 %v312_v2  ;;  %v17777_v4 = vmul.f32 %v17981_v0, %v17981_v0  ;;  %v9532_v3 = vadd.f32 %v9512_v34, %v9492_v19  ;;  %v1670_v35 = vmul.f32 %v17988_v9, %v17988_v9  ;;  %v17989_v0 = vld [vmem:[#allocation44_spill] sm:$0xff]  ;;  %v17993_v19 = vld [vmem:[#allocation10_spill] sm:$0xff]  ;;  %v1655_v22 = vmul.f32 %v17996_v43, %v17996_v43 }
 0x4ad   : > { %11439 = vmatpush3.msra.mxu0 %v312_v2  ;;  %v9542_v21 = vadd.f32 1e-18, %v9522_v13  ;;  %v9547_v52 = vadd.f32 1e-18, %v9527_v51  ;;  %v9493_v57 = vmul.f32 %v17989_v0, %v17989_v0 }
 0x4ae   : > { %11441 = vmatmul.mubr.f32.vlgmr.msra.gmra.mxu0 %v1771_v39  ;;  %v9552_v15 = vadd.f32 1e-18, %v9532_v3 }
 0x4af   : > { %11443 = vmatprep.mubr.f32.mxu0 %v1776_v54  ;;  %v9488_v54 = vmul.f32 %v17984_v1, %v17984_v1  ;;  %13220 = vlog2.f32 %v9542_v21  ;;  %v9494_v21 = vmul.f32 %v16868_v20, %v16868_v20 }
 0x4b2   : > { %11444 = vmatmul.mubr.f32.gmra.mxu0 %v1781_v25  ;;  %v9484_v25 = vmul.f32 %v16828_v63, %v16828_v63 }
 0x4b3   : > { %11446 = vmatprep.mubr.f32.mxu0 %v4272_v33 }
 0x4b6   : > { %11447 = vmatmul.mubr.f32.gmra.mxu0 %v4277_v46 }
 0x4cd   : > { %v9251_v18 = vpop.f32.mrf.mxu0 }
 0x4ce   : > { %v9252_v45 = vadd.f32 %v9251_v18, %v9199_v44 }
 0x4cf   : > { %v9253_v2 = vpop.f32.mrf.mxu0 }
 0x4d0   : > { %v9503_v39 = vmul.f32 %v9252_v45, %v9252_v45  ;;  %v9254_v31 = vadd.f32 %v9253_v2, %v17682_v50  ;;  %v9517_v50 = vmul.f32 %v9056_v24, %v9056_v24  ;;  %v17990_v24 = vld [vmem:[#allocation21_spill] sm:$0xff] }
 0x4d1   : > { %v9255_v33 = vpop.f32.mrf.mxu0  ;;  %v1669_v2 = vmul.f32 %v17990_v24, %v17990_v24 }
 0x4d2   : > { %v9523_v46 = vadd.f32 %v9503_v39, %v9483_v23  ;;  %v9504_v37 = vmul.f32 %v9254_v31, %v9254_v31  ;;  %v9256_v28 = vadd.f32 %v9255_v33, %v9203_v62  ;;  %v9537_v44 = vadd.f32 %v9517_v50, %v9497_v47  ;;  %v17994_v33 = vld [vmem:[#allocation16_spill] sm:$0xff]  ;;  %v13221_v50 = vpop.eup %13220 }
 0x4d3   : > { %v9257_v8 = vpop.f32.mrf.mxu0 }
 0x4d4   : > { %v9543_v27 = vadd.f32 1e-18, %v9523_v46  ;;  %v17796_v26 = vadd.f32 %v9504_v37, %v9484_v25  ;;  %v9508_v63 = vmul.f32 %v9256_v28, %v9256_v28  ;;  %v9258_v29 = vadd.f32 %v9257_v8, %v17704_v14  ;;  %v9214_v14 = vpop.f32.mrf.mxu1  ;;  %v17995_v37 = vld [vmem:[#allocation50_spill] sm:$0xff] }
 0x4d5   : > { %v9261_v13 = vpop.f32.mrf.mxu0  ;;  %v9215_v55 = vadd.f32 %v9214_v14, %v17729_v60  ;;  %v9557_v39 = vadd.f32 1e-18, %v9537_v44  ;;  %v1690_v60 = vadd.f32 %v1670_v35, %v1650_v42  ;;  %v1675_v25 = vmul.f32 %v17993_v19, %v17993_v19 }
 0x4d6   : > { %13222 = vlog2.f32 %v9543_v27  ;;  %v9528_v16 = vadd.f32 %v9508_v63, %v9488_v54  ;;  %v9509_v10 = vmul.f32 %v9258_v29, %v9258_v29  ;;  %v9262_v48 = vadd.f32 %v9261_v13, %v9209_v59  ;;  %v17992_v54 = vld [vmem:[#allocation7_spill] sm:$0xff]  ;;  %v17997_v63 = vld [vmem:[#allocation22_spill] sm:$0xff]  ;;  %v17998_v59 = vld [vmem:[#allocation12_spill] sm:$0xff] }
 0x4d7   : > { %13224 = vlog2.f32 %v9547_v52  ;;  %v9263_v36 = vpop.f32.mrf.mxu0  ;;  %v1705_v11 = vadd.f32 1e-18, %v17992_v54  ;;  %v1654_v46 = vmul.f32 %v17994_v33, %v17994_v33  ;;  %v9499_v28 = vmul.f32 %v17995_v37, %v17995_v37 }
 0x4d8   : > { %v9548_v53 = vadd.f32 1e-18, %v9528_v16  ;;  %v17806_v18 = vadd.f32 %v9509_v10, %v9489_v38  ;;  %v9264_v17 = vadd.f32 %v9263_v36, %v17723_v32  ;;  %v9513_v45 = vmul.f32 %v9262_v48, %v9262_v48  ;;  %v17991_v32 = vld [vmem:[#allocation46_spill] sm:$0xff]  ;;  %v18001_v36 = vld [vmem:[#allocation23_spill] sm:$0xff] }
 0x4d9   : > { %v9265_v30 = vpop.f32.mrf.mxu0  ;;  %v9498_v40 = vmul.f32 %v17991_v32, %v17991_v32  ;;  %v1704_v8 = vadd.f32 1e-18, %v1684_v5  ;;  %v1689_v27 = vadd.f32 %v1669_v2, %v17777_v4  ;;  %v1674_v29 = vmul.f32 %v17997_v63, %v17997_v63  ;;  %v17999_v16 = vld [vmem:[#allocation18_spill] sm:$0xff]  ;;  %v18000_v4 = vld [vmem:[#allocation19_spill] sm:$0xff] }
 0x4da   : > { %13226 = vlog2.f32 %v9548_v53  ;;  %v9514_v51 = vmul.f32 %v9264_v17, %v9264_v17  ;;  %v9266_v34 = vadd.f32 %v9265_v30, %v9213_v56  ;;  %v9533_v23 = vadd.f32 %v9513_v45, %v9493_v57 }
 0x4db   : > { %13228 = vlog2.f32 %v9552_v15  ;;  %v9267_v62 = vpop.f32.mrf.mxu0  ;;  %v1710_v6 = vadd.f32 1e-18, %v1690_v60  ;;  %v1695_v47 = vadd.f32 %v1675_v25, %v1655_v22  ;;  %v1680_v13 = vmul.f32 %v17998_v59, %v17998_v59  ;;  %v18003_v60 = vld [vmem:[#allocation32_spill] sm:$0xff] }
 0x4dc   : > { %v17820_v31 = vadd.f32 %v9514_v51, %v9494_v21  ;;  %v9518_v20 = vmul.f32 %v9266_v34, %v9266_v34  ;;  %v9268_v1 = vadd.f32 %v9267_v62, %v9215_v55  ;;  %v9553_v58 = vadd.f32 1e-18, %v9533_v23 }
 0x4dd   : > { %v1659_v5 = vmul.f32 %v17999_v16, %v17999_v16  ;;  %v1660_v10 = vmul.f32 %v18000_v4, %v18000_v4  ;;  %v9563_v15 = vmul.f32 0.6931472, %v13221_v50  ;;  %v1709_v14 = vadd.f32 1e-18, %v1689_v27 }
 0x4de   : > { %v9538_v52 = vadd.f32 %v9518_v20, %v9498_v40  ;;  %v9519_v3 = vmul.f32 %v9268_v1, %v9268_v1  ;;  %13230 = vlog2.f32 %v9553_v58  ;;  %v1694_v48 = vadd.f32 %v1674_v29, %v1654_v46 }
 0x4df   : > { %13232 = vlog2.f32 %v9557_v39  ;;  %v1679_v56 = vmul.f32 %v18001_v36, %v18001_v36  ;;  %v1715_v17 = vadd.f32 1e-18, %v1695_v47  ;;  %v1700_v9 = vadd.f32 %v1680_v13, %v1660_v10  ;;  %v18002_v39 = vld [vmem:[#allocation34_spill] sm:$0xff] }
 0x4e0   : > { %v9558_v41 = vadd.f32 1e-18, %v9538_v52  ;;  %v17834_v42 = vadd.f32 %v9519_v3, %v9499_v28  ;;  %13234 = vlog2.f32 %v1705_v11  ;;  %v9602_v21 = vmul.f32 0.5, %v9563_v15  ;;  %v18004_v28 = vld [vmem:[#allocation36_spill] sm:$0xff] }
 0x4e1   : > { %v1714_v30 = vadd.f32 1e-18, %v1694_v48  ;;  %v1699_v55 = vadd.f32 %v1679_v56, %v1659_v5  ;;  %v1720_v34 = vadd.f32 1e-18, %v1700_v9  ;;  %v4241_v20 = vadd.f32 1e-18, %v18002_v39 }
 0x4e2   : > { %13236 = vlog2.f32 %v9558_v41  ;;  %v4240_v19 = vadd.f32 1e-18, %v18003_v60  ;;  %v4246_v52 = vadd.f32 1e-18, %v18004_v28 }
 0x4e3   : > { %v13223_v38 = vpop.eup %13222  ;;  %13238 = vlog2.f32 %v1704_v8  ;;  %v1719_v40 = vadd.f32 1e-18, %v1699_v55  ;;  %v18005_v8 = vld [vmem:[#allocation33_spill] sm:$0xff] }
 0x4e4   : > { %v13225_v44 = vpop.eup %13224  ;;  %v9565_v53 = vmul.f32 0.6931472, %v13223_v38  ;;  %13240 = vlog2.f32 %v1710_v6  ;;  %v4245_v27 = vadd.f32 1e-18, %v18005_v8 }
 0x4e5   : > { %v9573_v57 = vmul.f32 0.6931472, %v13225_v44  ;;  %13242 = vlog2.f32 %v1709_v14 }
 0x4e6   : > { %v9603_v35 = vmul.f32 0.5, %v9565_v53  ;;  %13244 = vlog2.f32 %v1715_v17 }
 0x4e7   : > { %v13227_v0 = vpop.eup %13226  ;;  %v9607_v2 = vmul.f32 0.5, %v9573_v57  ;;  %13246 = vlog2.f32 %v1714_v30 }
 0x4e8   : > { %v13229_v45 = vpop.eup %13228  ;;  %9716 = vmatprep.mubr.f32.mxu1 %v9603_v35  ;;  %v9575_v51 = vmul.f32 0.6931472, %v13227_v0  ;;  %13248 = vlog2.f32 %v1720_v34 }
 0x4e9   : > { %9717 = vmatmul.mubr.f32.gmra.mxu1 %v9602_v21  ;;  %v9583_v23 = vmul.f32 0.6931472, %v13229_v45  ;;  %13250 = vlog2.f32 %v1719_v40 }
 0x4ea   : > { %v9608_v24 = vmul.f32 0.5, %v9575_v51  ;;  %13252 = vlog2.f32 %v4241_v20 }
 0x4eb   : > { %v13231_v32 = vpop.eup %13230  ;;  %v9612_v46 = vmul.f32 0.5, %v9583_v23  ;;  %13254 = vlog2.f32 %v4240_v19 }
 0x4ec   : > { %9721 = vmatprep.mubr.f32.mxu1 %v9608_v24  ;;  %v13233_v62 = vpop.eup %13232  ;;  %v9585_v1 = vmul.f32 0.6931472, %v13231_v32  ;;  %13256 = vlog2.f32 %v4246_v52  ;;  %v9304_v32 = vpop.f32.mrf.mxu1 }
 0x4ed   : > { %9722 = vmatmul.mubr.f32.gmra.mxu1 %v9607_v2  ;;  %v13235_v54 = vpop.eup %13234  ;;  %v9593_v33 = vmul.f32 0.6931472, %v13233_v62  ;;  %13258 = vlog2.f32 %v4245_v27 }
 0x4ee   : > { %v9613_v25 = vmul.f32 0.5, %v9585_v1  ;;  %v1729_v3 = vmul.f32 0.6931472, %v13235_v54  ;;  %v9306_v40 = vpop.f32.mrf.mxu1 }
 0x4ef   : > { %v13237_v11 = vpop.eup %13236  ;;  %v9617_v63 = vmul.f32 0.5, %v9593_v33 }
 0x4f0   : > { %v13239_v58 = vpop.eup %13238  ;;  %v9595_v37 = vmul.f32 0.6931472, %v13237_v11  ;;  %9726 = vmatprep.mubr.f32.mxu1 %v9613_v25  ;;  %v1765_v41 = vmul.f32 0.5, %v1729_v3  ;;  %v9308_v23 = vpop.f32.mrf.mxu1 }
 0x4f1   : > { %v13241_v50 = vpop.eup %13240  ;;  %9727 = vmatmul.mubr.f32.gmra.mxu1 %v9612_v46  ;;  %v1727_v22 = vmul.f32 0.6931472, %v13239_v58 }
 0x4f2   : > { %v9618_v43 = vmul.f32 0.5, %v9595_v37  ;;  %v13243_v29 = vpop.eup %13242  ;;  %v1739_v6 = vmul.f32 0.6931472, %v13241_v50  ;;  %v9310_v62 = vpop.f32.mrf.mxu1 }
 0x4f3   : > { %v13245_v47 = vpop.eup %13244  ;;  %v1764_v59 = vmul.f32 0.5, %v1727_v22  ;;  %v1737_v13 = vmul.f32 0.6931472, %v13243_v29 }
 0x4f4   : > { %9731 = vmatprep.mubr.f32.mxu1 %v9618_v43  ;;  %v13247_v38 = vpop.eup %13246  ;;  %v1770_v16 = vmul.f32 0.5, %v1739_v6  ;;  %v1749_v5 = vmul.f32 0.6931472, %v13245_v47  ;;  %v9314_v39 = vpop.f32.mrf.mxu1 }
 0x4f5   : > { %9732 = vmatmul.mubr.f32.gmra.mxu1 %v9617_v63  ;;  %v13249_v4 = vpop.eup %13248  ;;  %v1769_v10 = vmul.f32 0.5, %v1737_v13  ;;  %v1747_v15 = vmul.f32 0.6931472, %v13247_v38  ;;  %v18006_v38 = vld [vmem:[#allocation47_spill] sm:$0xff] }
 0x4f6   : > { %9801 = vmatprep.mubr.f32.mxu1 %v1765_v41  ;;  %v13251_v44 = vpop.eup %13250  ;;  %v1775_v14 = vmul.f32 0.5, %v1749_v5  ;;  %v1759_v48 = vmul.f32 0.6931472, %v13249_v4  ;;  %v9316_v1 = vpop.f32.mrf.mxu1 }
 0x4f7   : > { %v13253_v36 = vpop.eup %13252  ;;  %v1774_v56 = vmul.f32 0.5, %v1747_v15  ;;  %v1757_v53 = vmul.f32 0.6931472, %v13251_v44  ;;  %v18007_v44 = vld [vmem:[#allocation48_spill] sm:$0xff] }
 0x4f8   : > { %v13255_v17 = vpop.eup %13254  ;;  %v1780_v9 = vmul.f32 0.5, %v1759_v48  ;;  %v4255_v35 = vmul.f32 0.6931472, %v13253_v36  ;;  %v9318_v11 = vpop.f32.mrf.mxu1  ;;  %v9486_v48 = vmul.f32 %v17311_v7, %v17311_v7 }
 0x4f9   : > { %9802 = vmatmul.mubr.f32.vlgmr.msra.gmra.mxu1 %v1764_v59  ;;  %v13257_v0 = vpop.eup %13256  ;;  %v4253_v57 = vmul.f32 0.6931472, %v13255_v17  ;;  %v1779_v21 = vmul.f32 0.5, %v1757_v53  ;;  %v9544_v59 = vadd.f32 1e-18, %v17796_v26 }
 0x4fa   : > { %9806 = vmatprep.mubr.f32.mxu1 %v1770_v16  ;;  %v13259_v45 = vpop.eup %13258  ;;  %v4271_v30 = vmul.f32 0.5, %v4255_v35  ;;  %v4265_v55 = vmul.f32 0.6931472, %v13257_v0  ;;  %v9320_v19 = vpop.f32.mrf.mxu1  ;;  %v9485_v16 = vmul.f32 %v18006_v38, %v18006_v38  ;;  %v18008_v0 = vld [vmem:[#allocation49_spill] sm:$0xff] }
 0x4fb   : > { %v4263_v51 = vmul.f32 0.6931472, %v13259_v45  ;;  %v4270_v34 = vmul.f32 0.5, %v4253_v57  ;;  %v9495_v57 = vmul.f32 %v18008_v0, %v18008_v0  ;;  %13260 = vlog2.f32 %v9544_v59 }
 0x4fc   : > { %v4276_v24 = vmul.f32 0.5, %v4265_v55 }
 0x4fd   : > { %9807 = vmatmul.mubr.f32.gmra.mxu1 %v1769_v10  ;;  %v4275_v2 = vmul.f32 0.5, %v4263_v51 }
 0x4fe   : > { %9811 = vmatprep.mubr.f32.mxu1 %v1775_v14  ;;  %v9490_v14 = vmul.f32 %v18007_v44, %v18007_v44 }
 0x501   : > { %9812 = vmatmul.mubr.f32.gmra.mxu1 %v1774_v56 }
 0x502   : > { %9816 = vmatprep.mubr.f32.mxu1 %v1780_v9 }
 0x505   : > { %9817 = vmatmul.mubr.f32.gmra.mxu1 %v1779_v21  ;;  %v9549_v21 = vadd.f32 1e-18, %v17806_v18  ;;  %v9554_v18 = vadd.f32 1e-18, %v17820_v31 }
 0x506   : > { %9821 = vmatprep.mubr.f32.mxu1 %v4271_v30 }
 0x509   : > { %9822 = vmatmul.mubr.f32.gmra.mxu1 %v4270_v34 }
 0x50a   : > { %9826 = vmatprep.mubr.f32.mxu1 %v4276_v24 }
 0x50d   : > { %9827 = vmatmul.mubr.f32.gmra.mxu1 %v4275_v2  ;;  %v9357_v20 = vpop.f32.mrf.mxu0  ;;  %v9491_v2 = vmul.f32 %v17342_v49, %v17342_v49  ;;  %v9496_v49 = vmul.f32 %v17378_v61, %v17378_v61  ;;  %v9501_v61 = vmul.f32 %v17414_v12, %v17414_v12 }
 0x50e   : > { %v9410_v58 = vpop.f32.mrf.mxu1  ;;  %v9358_v3 = vadd.f32 %v9357_v20, %v9304_v32 }
 0x50f   : > { %v9359_v54 = vpop.f32.mrf.mxu0 }
 0x510   : > { %v9412_v46 = vpop.f32.mrf.mxu1  ;;  %v9360_v50 = vadd.f32 %v9359_v54, %v9306_v40  ;;  %v9411_v8 = vadd.f32 %v9410_v58, %v9358_v3 }
 0x511   : > { %v9361_v60 = vpop.f32.mrf.mxu0 }
 0x512   : > { %v9414_v28 = vpop.f32.mrf.mxu1  ;;  %v9362_v27 = vadd.f32 %v9361_v60, %v9308_v23  ;;  %v9413_v41 = vadd.f32 %v9412_v46, %v9360_v50 }
 0x513   : > { %v9363_v25 = vpop.f32.mrf.mxu0 }
 0x514   : > { %v9416_v43 = vpop.f32.mrf.mxu1  ;;  %v9364_v6 = vadd.f32 %v9363_v25, %v9310_v62  ;;  %v9415_v5 = vadd.f32 %v9414_v28, %v9362_v27 }
 0x515   : > { %v9367_v33 = vpop.f32.mrf.mxu0 }
 0x516   : > { %v9420_v63 = vpop.f32.mrf.mxu1  ;;  %v9368_v36 = vadd.f32 %v9367_v33, %v9314_v39  ;;  %v9417_v17 = vadd.f32 %v9416_v43, %v9364_v6  ;;  %v18009_v43 = vld [vmem:[#allocation51_spill] sm:$0xff] }
 0x517   : > { %v9369_v37 = vpop.f32.mrf.mxu0 }
 0x518   : > { %v9422_v4 = vpop.f32.mrf.mxu1  ;;  %v9370_v56 = vadd.f32 %v9369_v37, %v9316_v1  ;;  %v9421_v40 = vadd.f32 %v9420_v63, %v9368_v36 }
 0x519   : > { %v9371_v52 = vpop.f32.mrf.mxu0 }
 0x51a   : > { %v9372_v45 = vadd.f32 %v9371_v52, %v9318_v11  ;;  %v9424_v55 = vpop.f32.mrf.mxu1  ;;  %v9423_v62 = vadd.f32 %v9422_v4, %v9370_v56 }
 0x51b   : > { %v9373_v22 = vpop.f32.mrf.mxu0 }
 0x51c   : > { %v9374_v32 = vadd.f32 %v9373_v22, %v9320_v19  ;;  %v9425_v60 = vadd.f32 %v9424_v55, %v9372_v45  ;;  %v9426_v25 = vpop.f32.mrf.mxu1  ;;  %v9559_v19 = vadd.f32 1e-18, %v17834_v42  ;;  %v9500_v22 = vmul.f32 %v18009_v43, %v18009_v43 }
 0x51e   : > { %v9427_v52 = vadd.f32 %v9426_v25, %v9374_v32 }
 0x54e   : > { %v9463_v29 = vpop.f32.mrf.mxu0 }
 0x54f   : > { %v9464_v47 = vadd.f32 %v9463_v29, %v9411_v8 }
 0x550   : > { %v9465_v13 = vpop.f32.mrf.mxu0 }
 0x551   : > { %v9505_v10 = vmul.f32 %v9464_v47, %v9464_v47  ;;  %v9466_v15 = vadd.f32 %v9465_v13, %v9413_v41  ;;  %v13261_v13 = vpop.eup %13260 }
 0x552   : > { %v9467_v53 = vpop.f32.mrf.mxu0 }
 0x553   : > { %v9525_v9 = vadd.f32 %v9505_v10, %v9485_v16  ;;  %v9506_v26 = vmul.f32 %v9466_v15, %v9466_v15  ;;  %v9468_v35 = vadd.f32 %v9467_v53, %v9415_v5  ;;  %v9567_v10 = vmul.f32 0.6931472, %v13261_v13 }
 0x554   : > { %v9469_v30 = vpop.f32.mrf.mxu0 }
 0x555   : > { %v9545_v51 = vadd.f32 1e-18, %v9525_v9  ;;  %v9526_v34 = vadd.f32 %v9506_v26, %v9486_v48  ;;  %v9510_v24 = vmul.f32 %v9468_v35, %v9468_v35  ;;  %v9470_v7 = vadd.f32 %v9469_v30, %v9417_v17 }
 0x556   : > { %v9473_v23 = vpop.f32.mrf.mxu0  ;;  %v9604_v53 = vmul.f32 0.5, %v9567_v10 }
 0x557   : > { %13262 = vlog2.f32 %v9545_v51  ;;  %v9546_v39 = vadd.f32 1e-18, %v9526_v34  ;;  %v9530_v20 = vadd.f32 %v9510_v24, %v9490_v14  ;;  %v9511_v1 = vmul.f32 %v9470_v7, %v9470_v7 }
 0x558   : > { %13264 = vlog2.f32 %v9549_v21  ;;  %v9474_v54 = vadd.f32 %v9473_v23, %v9421_v40  ;;  %v9475_v11 = vpop.f32.mrf.mxu0 }
 0x559   : > { %13266 = vlog2.f32 %v9546_v39  ;;  %v9550_v58 = vadd.f32 1e-18, %v9530_v20  ;;  %v9531_v33 = vadd.f32 %v9511_v1, %v9491_v2  ;;  %v9476_v46 = vadd.f32 %v9475_v11, %v9423_v62 }
 0x55a   : > { %v9515_v37 = vmul.f32 %v9474_v54, %v9474_v54  ;;  %v9477_v28 = vpop.f32.mrf.mxu0 }
 0x55b   : > { %13268 = vlog2.f32 %v9550_v58  ;;  %v9551_v3 = vadd.f32 1e-18, %v9531_v33  ;;  %v9516_v50 = vmul.f32 %v9476_v46, %v9476_v46  ;;  %v9478_v31 = vadd.f32 %v9477_v28, %v9425_v60  ;;  %v11290_v60 = vpop.f32.mrf.mxu1 }
 0x55c   : > { %13270 = vlog2.f32 %v9554_v18  ;;  %v9535_v8 = vadd.f32 %v9515_v37, %v9495_v57  ;;  %v9479_v27 = vpop.f32.mrf.mxu0 }
 0x55d   : > { %13272 = vlog2.f32 %v9551_v3  ;;  %v9536_v63 = vadd.f32 %v9516_v50, %v9496_v49  ;;  %v9520_v29 = vmul.f32 %v9478_v31, %v9478_v31  ;;  %v9480_v41 = vadd.f32 %v9479_v27, %v9427_v52  ;;  %v11291_v25 = vpop.f32.mrf.mxu1 }
 0x55e   : > { %v9555_v42 = vadd.f32 1e-18, %v9535_v8  ;;  %13274 = vlog2.f32 %v9559_v19 }
 0x55f   : > { %v9556_v6 = vadd.f32 1e-18, %v9536_v63  ;;  %v9540_v47 = vadd.f32 %v9520_v29, %v9500_v22  ;;  %v9521_v59 = vmul.f32 %v9480_v41, %v9480_v41  ;;  %v11293_v58 = vpop.f32.mrf.mxu1 }
 0x560   : > { %13276 = vlog2.f32 %v9555_v42 }
 0x561   : > { %13278 = vlog2.f32 %v9556_v6  ;;  %v9560_v38 = vadd.f32 1e-18, %v9540_v47  ;;  %v9541_v16 = vadd.f32 %v9521_v59, %v9501_v61  ;;  %v11294_v33 = vpop.f32.mrf.mxu1 }
 0x563   : > { %13280 = vlog2.f32 %v9560_v38  ;;  %v9561_v5 = vadd.f32 1e-18, %v9541_v16  ;;  %v11296_v46 = vpop.f32.mrf.mxu1  ;;  %v11292_v16 = vadd.f32 %v11291_v25, %v11290_v60 }
 0x564   : > { %v13263_v4 = vpop.eup %13262 }
 0x565   : > { %v13265_v15 = vpop.eup %13264  ;;  %13282 = vlog2.f32 %v9561_v5  ;;  %v9569_v44 = vmul.f32 0.6931472, %v13263_v4  ;;  %v11297_v49 = vpop.f32.mrf.mxu1 }
 0x566   : > { %v13267_v14 = vpop.eup %13266  ;;  %v9577_v56 = vmul.f32 0.6931472, %v13265_v15 }
 0x567   : > { %v9605_v48 = vmul.f32 0.5, %v9569_v44  ;;  %v9571_v12 = vmul.f32 0.6931472, %v13267_v14  ;;  %v11299_v19 = vpop.f32.mrf.mxu1  ;;  %v11295_v14 = vadd.f32 %v11294_v33, %v11293_v58 }
 0x568   : > { %v13269_v36 = vpop.eup %13268  ;;  %v9609_v45 = vmul.f32 0.5, %v9577_v56 }
 0x569   : > { %v13271_v17 = vpop.eup %13270  ;;  %9831 = vmatprep.mubr.f32.mxu1 %v9605_v48  ;;  %v9606_v9 = vmul.f32 0.5, %v9571_v12  ;;  %v9579_v26 = vmul.f32 0.6931472, %v13269_v36  ;;  %v11300_v37 = vpop.f32.mrf.mxu1 }
 0x56a   : > { %v13273_v35 = vpop.eup %13272  ;;  %9832 = vmatmul.mubr.f32.gmra.mxu1 %v9604_v53  ;;  %v9587_v55 = vmul.f32 0.6931472, %v13271_v17 }
 0x56b   : > { %v9581_v0 = vmul.f32 0.6931472, %v13273_v35  ;;  %11449 = vmatprep.mubr.f32.mxu0 %v9606_v9  ;;  %v9610_v57 = vmul.f32 0.5, %v9579_v26  ;;  %v13275_v21 = vpop.eup %13274  ;;  %v11302_v28 = vpop.f32.mrf.mxu1  ;;  %v11298_v9 = vadd.f32 %v11297_v49, %v11296_v46 }
 0x56c   : > { %v9597_v40 = vmul.f32 0.6931472, %v13275_v21  ;;  %v9614_v23 = vmul.f32 0.5, %v9587_v55 }
 0x56d   : > { %v13277_v30 = vpop.eup %13276  ;;  %9836 = vmatprep.mubr.f32.mxu1 %v9610_v57  ;;  %v9611_v51 = vmul.f32 0.5, %v9581_v0  ;;  %v11303_v52 = vpop.f32.mrf.mxu1 }
 0x56e   : > { %v13279_v34 = vpop.eup %13278  ;;  %9837 = vmatmul.mubr.f32.gmra.mxu1 %v9609_v45  ;;  %v9589_v24 = vmul.f32 0.6931472, %v13277_v30  ;;  %v9619_v54 = vmul.f32 0.5, %v9597_v40  ;;  %v11442_v13 = vpop.f32.mrf.mxu0  ;;  %v11301_v30 = vadd.f32 %v11300_v37, %v11299_v19 }
 0x56f   : > { %11450 = vmatmul.mubr.f32.gmra.mxu0 %v9611_v51  ;;  %v9591_v7 = vmul.f32 0.6931472, %v13279_v34  ;;  %v11305_v3 = vpop.f32.mrf.mxu1 }
 0x570   : > { %v13281_v2 = vpop.eup %13280  ;;  %v9615_v32 = vmul.f32 0.5, %v9589_v24  ;;  %v9918_v15 = vpop.f32.mrf.mxu0 }
 0x571   : > { %v9616_v62 = vmul.f32 0.5, %v9591_v7  ;;  %v9599_v39 = vmul.f32 0.6931472, %v13281_v2  ;;  %v11306_v50 = vpop.f32.mrf.mxu1 }
 0x572   : > { %v13283_v20 = vpop.eup %13282  ;;  %9841 = vmatprep.mubr.f32.mxu1 %v9615_v32  ;;  %v11445_v53 = vpop.f32.mrf.mxu0  ;;  %v11304_v32 = vadd.f32 %v11303_v52, %v11302_v28 }
 0x573   : > { %v9601_v1 = vmul.f32 0.6931472, %v13283_v20  ;;  %9842 = vmatmul.mubr.f32.gmra.mxu1 %v9614_v23  ;;  %11452 = vmatprep.mubr.f32.mxu0 %v9616_v62  ;;  %v9620_v18 = vmul.f32 0.5, %v9599_v39 }
 0x574   : > { %v9928_v21 = vpop.f32.mrf.mxu0 }
 0x575   : > { %9846 = vmatprep.mubr.f32.mxu1 %v9620_v18  ;;  %v9621_v11 = vmul.f32 0.5, %v9601_v1  ;;  %v11307_v18 = vadd.f32 %v11306_v50, %v11305_v3 }
 0x576   : > { %v11448_v7 = vpop.f32.mrf.mxu0 }
 0x577   : > { %9847 = vmatmul.mubr.f32.gmra.mxu1 %v9619_v54  ;;  %11453 = vmatmul.mubr.f32.gmra.mxu0 %v9621_v11 }
 0x578   : > { %v9938_v20 = vpop.f32.mrf.mxu0 }
 0x5a9   : > { %v11308_v31 = vpop.f32.mrf.mxu1 }
 0x5ab   : > { %v11309_v43 = vpop.f32.mrf.mxu1 }
 0x5ac   : > { %v17868_v22 = vadd.f32 %v11309_v43, %v11308_v31 }
 0x5ad   : > { %v11311_v8 = vpop.f32.mrf.mxu1 }
 0x5af   : > { %v11312_v27 = vpop.f32.mrf.mxu1 }
 0x5b0   : > { %v17870_v63 = vadd.f32 %v11312_v27, %v11311_v8 }
 0x5b1   : > { %v11314_v29 = vpop.f32.mrf.mxu1 }
 0x5b3   : > { %v11315_v41 = vpop.f32.mrf.mxu1 }
 0x5b4   : > { %v17872_v61 = vadd.f32 %v11315_v41, %v11314_v29 }
 0x5b5   : > { %v11317_v42 = vpop.f32.mrf.mxu1 }
 0x5b7   : > { %v11318_v6 = vpop.f32.mrf.mxu1 }
 0x5b8   : > { %v17874_v47 = vadd.f32 %v11318_v6, %v11317_v42 }
 0x5b9   : > { %v11352_v59 = vpop.f32.mrf.mxu1 }
 0x5bb   : > { %v11353_v38 = vpop.f32.mrf.mxu1 }
 0x5bc   : > { %v11354_v5 = vadd.f32 %v11353_v38, %v11352_v59 }
 0x5bd   : > { %v11355_v4 = vpop.f32.mrf.mxu1 }
 0x5be   : > { %v9804_v10 = vadd.f32 %v11354_v5, %v11292_v16 }
 0x5bf   : > { %v11356_v44 = vpop.f32.mrf.mxu1 }
 0x5c0   : > { %v9919_v48 = vadd.f32 %v9918_v15, %v9804_v10  ;;  %v11357_v12 = vadd.f32 %v11356_v44, %v11355_v4 }
 0x5c1   : > { %v11358_v36 = vpop.f32.mrf.mxu1 }
 0x5c2   : > { %9967 = vst [vmem:[%s17880_s12] sm:$0xff] %v9919_v48  ;;  %v9809_v56 = vadd.f32 %v11357_v12, %v11295_v14 }
 0x5c3   : > { %v11359_v17 = vpop.f32.mrf.mxu1 }
 0x5c4   : > { %v9924_v26 = vadd.f32 %v11442_v13, %v9809_v56  ;;  %v11360_v35 = vadd.f32 %v11359_v17, %v11358_v36 }
 0x5c5   : > { %v11361_v0 = vpop.f32.mrf.mxu1 }
 0x5c6   : > { %9968 = vst [vmem:[%s17880_s12 + $0x8] sm:$0xff] %v9924_v26  ;;  %v9814_v57 = vadd.f32 %v11360_v35, %v11298_v9 }
 0x5c7   : > { %v11362_v45 = vpop.f32.mrf.mxu1 }
 0x5c8   : > { %v9929_v55 = vadd.f32 %v9928_v21, %v9814_v57  ;;  %v11363_v51 = vadd.f32 %v11362_v45, %v11361_v0 }
 0x5c9   : > { %v11364_v34 = vpop.f32.mrf.mxu1 }
 0x5ca   : > { %9969 = vst [vmem:[%s17880_s12 + $0x10] sm:$0xff] %v9929_v55  ;;  %v9819_v24 = vadd.f32 %v11363_v51, %v11301_v30 }
 0x5cb   : > { %v11365_v2 = vpop.f32.mrf.mxu1 }
 0x5cc   : > { %v9934_v40 = vadd.f32 %v11445_v53, %v9819_v24  ;;  %v11366_v23 = vadd.f32 %v11365_v2, %v11364_v34 }
 0x5cd   : > { %v11367_v62 = vpop.f32.mrf.mxu1 }
 0x5ce   : > { %9970 = vst [vmem:[%s17880_s12 + $0x18] sm:$0xff] %v9934_v40  ;;  %v9824_v39 = vadd.f32 %v11366_v23, %v11304_v32 }
 0x5cf   : > { %v11368_v1 = vpop.f32.mrf.mxu1 }
 0x5d0   : > { %v9939_v54 = vadd.f32 %v9938_v20, %v9824_v39  ;;  %v11369_v11 = vadd.f32 %v11368_v1, %v11367_v62 }
 0x5d2   : > { %9971 = vst [vmem:[%s17880_s12 + $0x20] sm:$0xff] %v9939_v54  ;;  %v9829_v60 = vadd.f32 %v11369_v11, %v11307_v18 }
 0x5d4   : > { %v9944_v25 = vadd.f32 %v11448_v7, %v9829_v60 }
 0x5d6   : > { %9972 = vst [vmem:[%s17880_s12 + $0x28] sm:$0xff] %v9944_v25 }
 0x62a   : > { %v11370_v58 = vpop.f32.mrf.mxu1 }
 0x62c   : > { %v11371_v33 = vpop.f32.mrf.mxu1 }
 0x62d   : > { %v11372_v46 = vadd.f32 %v11371_v33, %v11370_v58 }
 0x62e   : > { %v11373_v49 = vpop.f32.mrf.mxu1 }
 0x62f   : > { %v11451_v19 = vpop.f32.mrf.mxu0  ;;  %v9834_v37 = vadd.f32 %v11372_v46, %v17868_v22 }
 0x630   : > { %v11374_v28 = vpop.f32.mrf.mxu1 }
 0x631   : > { %v11375_v52 = vadd.f32 %v11374_v28, %v11373_v49  ;;  %v9948_v31 = vpop.f32.mrf.mxu0 }
 0x632   : > { %v9949_v43 = vadd.f32 %v9948_v31, %v9834_v37 }
 0x633   : > { %v9839_v3 = vadd.f32 %v11375_v52, %v17870_v63  ;;  %v11376_v50 = vpop.f32.mrf.mxu1 }
 0x634   : > { %9973 = vst [vmem:[%s17880_s12 + $0x30] sm:$0xff] %v9949_v43 }
 0x635   : > { %v9954_v8 = vadd.f32 %v11451_v19, %v9839_v3  ;;  %v11377_v27 = vpop.f32.mrf.mxu1 }
 0x636   : > { %v11378_v29 = vadd.f32 %v11377_v27, %v11376_v50 }
 0x637   : > { %9974 = vst [vmem:[%s17880_s12 + $0x38] sm:$0xff] %v9954_v8  ;;  %v11379_v41 = vpop.f32.mrf.mxu1  ;;  %v11454_v42 = vpop.f32.mrf.mxu0 }
 0x638   : > { %v9844_v6 = vadd.f32 %v11378_v29, %v17872_v61 }
 0x639   : > { %v11380_v59 = vpop.f32.mrf.mxu1  ;;  %v9958_v22 = vpop.f32.mrf.mxu0 }
 0x63a   : > { %v11381_v13 = vadd.f32 %v11380_v59, %v11379_v41  ;;  %v9959_v38 = vadd.f32 %v9958_v22, %v9844_v6 }
 0x63c   : > { %v9849_v16 = vadd.f32 %v11381_v13, %v17874_v47  ;;  %9975 = vst [vmem:[%s17880_s12 + $0x40] sm:$0xff] %v9959_v38 }
 0x63e   : > { %v9964_v5 = vadd.f32 %v11454_v42, %v9849_v16 }
 0x640   : > { %9976 = vst [vmem:[%s17880_s12 + $0x48] sm:$0xff] %v9964_v5 }
 0x641 PF: > { %s14_s17 = sadd.s32 1, %s13312_s17   ;;  %s18010_s15 = smov %s13308_s16 }
 0x642   : > { %p11_p5 = scmp.ge.s32.totalorder %s14_s17, 4   ;;  %s18011_s16 = smov %s18013_s18 }
 0x644   :  { %13 = sbr.rel (!%p11_p5) target bundleno = 2 (0x2), region = 66 }

</bundles_post_ra>
